<compile_context>
chip_gen: v7x
topology: tpu7x:2x2x1
jax: 0.10.0
libtpu: 0.0.40
codegen_flags: <defaults>
</compile_context>

<pallas_src>
import functools

import jax
import jax.numpy as jnp
from jax import lax
from jax.experimental import pallas as pl
from jax.experimental.pallas import tpu as pltpu


# ----------------------------- in-kernel helpers -----------------------------

def _erf(z):
    # Abramowitz & Stegun 7.1.26 polynomial (|err| < 1.5e-7); exp/mul/add/where only.
    a1, a2, a3, a4, a5 = 0.254829592, -0.284496736, 1.421413741, -1.453152027, 1.061405429
    p = 0.3275911
    za = jnp.abs(z)
    t = 1.0 / (1.0 + p * za)
    poly = ((((a5 * t + a4) * t + a3) * t + a2) * t + a1) * t
    y = 1.0 - poly * jnp.exp(-za * za)
    return jnp.where(z >= 0.0, y, -y)


def _gelu(x):
    # exact (erf-based) GELU, matching torch.nn.GELU() default
    return 0.5 * x * (1.0 + _erf(x * 0.7071067811865476))


def _round_up(x, m):
    return ((x + m - 1) // m) * m


# --------------------------------- kernel ------------------------------------

def moc_fused_kernel(xcat_ref,    # (1, H, W*C2)  concat(x1,x2), lane-dense rows
                     x1r_ref,     # (1, H, W*C)   x1 wide rows (warp row mix)
                     x2r_ref,     # (1, H, W*C)
                     x1p_ref,     # (1, H*W, C)   x1 pixel-major (|warp - x| term)
                     x2p_ref,     # (1, H*W, C)
                     tapw_ref,    # (25, W*C2)    depthwise taps tiled over w
                     dwbt_ref,    # (1, W*C2)     depthwise bias tiled over w
                     rmc2_ref,    # (W*C2, C2)    per-channel reduce   (bf16 0/1)
                     expc2_ref,   # (C2, W*C2)    per-channel expand   (bf16 0/1)
                     pwbig_ref,   # (W*C2, 4*W)   1x1 conv block-diagonal
                     selh_ref,    # (H*W, H)      wide->pixel row replication (bf16)
                     msel4_ref,   # (H*W, 4*W)    wide->pixel column mask (bf16)
                     rm4s_ref,    # (4*W, 4)      group reduce * unnorm scale
                     abase4_ref,  # (H*W, 4)      base sampling coords [w, h, w, h]
                     ec_ref,      # (W, W*C)      expand column one-hot (bf16)
                     rmc_ref,     # (W*C, C)      reduce w-groups per channel (bf16)
                     selht_ref,   # (H, H*W)      pixel->wide row scatter (bf16)
                     mselc2_ref,  # (H*W, W*C2)   pixel->wide column mask (bf16)
                     band3s_ref,  # (3*W*C2, W*C) 3x3 conv, kh stacked along K
                     b3w_ref,     # (1, W*C)      conv bias tiled over w
                     conv_ref,    # out: (1, H, W*C)  conv3x3 output (pre-BN)
                     stats_ref,   # out: (1, 2, C)    per-sample [sum, sum(x^2)]
                     pad_ref,     # scratch: (PAD_ROWS, 128 + W*C2 + 128)
                     *, H, W, C):
    C2 = 2 * C
    WC2 = W * C2
    WC = W * C
    P = H * W
    f32 = jnp.float32
    R0 = 8                           # sublane-aligned row offset of real data
    LP = 128                         # left zero-pad lanes (>= 2*C2, 128-aligned)
    PAD_LANES = pad_ref.shape[1]

    # -- halo maintenance (every step).  Scratch is per-core and uninitialised,
    #    and with a "parallel" batch grid program_id(0)==0 may never execute on
    #    the second TensorCore, so a one-shot pl.when guard would be unsafe.
    #    Only the halo rows / side pads are zeroed; the interior is fully
    #    overwritten each step (all four stores lane/sublane aligned).
    pad_ref[0:R0, :] = jnp.zeros((R0, PAD_LANES), f32)
    pad_ref[R0 + H:R0 + H + 8, :] = jnp.zeros((8, PAD_LANES), f32)
    pad_ref[R0:R0 + H, 0:LP] = jnp.zeros((H, LP), f32)
    pad_ref[R0:R0 + H, LP + WC2:PAD_LANES] = jnp.zeros((H, PAD_LANES - LP - WC2), f32)

    # ===================== flow_make ==========================================
    # depthwise 5x5 (groups=2C) on the VPU: 25 shifted FMAs against the padded
    # scratch (no O(W^2*C^2) banded matrix; MXU stays free for the real matmuls).
    pad_ref[R0:R0 + H, LP:LP + WC2] = xcat_ref[0]
    acc = dwbt_ref[...] + jnp.zeros((H, WC2), f32)
    for kh in range(5):
        rows = pad_ref[R0 - 2 + kh:R0 - 2 + kh + H, :]           # (H, PAD_LANES)
        for kw in range(5):
            off = LP + (kw - 2) * C2
            k = 5 * kh + kw
            acc = acc + rows[:, off:off + WC2] * tapw_ref[k:k + 1, :]

    # InstanceNorm2d (no affine, biased var, eps=1e-5): reduce -> per-channel -> expand
    inv_hw = 1.0 / float(H * W)
    mean_c = jnp.dot(jnp.sum(acc, axis=0, keepdims=True), rmc2_ref[...],
                     preferred_element_type=f32) * inv_hw               # (1, C2)
    mean_w = jnp.dot(mean_c, expc2_ref[...], preferred_element_type=f32)
    cen = acc - mean_w
    var_c = jnp.dot(jnp.sum(cen * cen, axis=0, keepdims=True), rmc2_ref[...],
                    preferred_element_type=f32) * inv_hw                # (1, C2)
    var_w = jnp.dot(var_c, expc2_ref[...], preferred_element_type=f32)
    g = _gelu(cen * lax.rsqrt(var_w + 1e-5))

    # 1x1 conv (C2 -> 4, no bias) as one block-diagonal matmul -> (H, 4W), then
    # relayout to pixel-major; rm4s carries the align_corners un-normalisation
    # scale and abase4 the base grid, so ixy are already pixel coordinates.
    flow_wide = jnp.dot(g, pwbig_ref[...], preferred_element_type=f32)  # (H, 4W)
    rep = jnp.dot(selh_ref[...], flow_wide, preferred_element_type=f32)  # (P, 4W)
    ixy = abase4_ref[...] + jnp.dot(rep * msel4_ref[...], rm4s_ref[...],
                                    preferred_element_type=f32)          # (P, 4)

    # ============ warp: bilinear grid_sample (align_corners, zeros pad) =======
    iota_w = lax.broadcasted_iota(jnp.int32, (P, W), 1)
    iota_h = lax.broadcasted_iota(jnp.int32, (P, H), 1)

    def onehot(coord, iota):
        c0 = jnp.floor(coord)
        frac = coord - c0
        c0i = c0.astype(jnp.int32)
        # out-of-range corners match no column -> contribute 0 (zeros padding)
        return (jnp.where(iota == c0i, 1.0 - frac, 0.0)
                + jnp.where(iota == c0i + 1, frac, 0.0))

    cw1 = onehot(ixy[:, 0:1], iota_w)                                    # (P, W)
    rh1 = onehot(ixy[:, 1:2], iota_h)                                    # (P, H)
    cw2 = onehot(ixy[:, 2:3], iota_w)
    rh2 = onehot(ixy[:, 3:4], iota_h)

    rowmix1 = jnp.dot(rh1, x1r_ref[0], preferred_element_type=f32)       # (P, WC)
    rowmix2 = jnp.dot(rh2, x2r_ref[0], preferred_element_type=f32)
    # batch the two warps through the shared-RHS matmuls (2P-tall M)
    cwe = jnp.dot(jnp.concatenate([cw1, cw2], axis=0), ec_ref[...],
                  preferred_element_type=f32)                            # (2P, WC)
    prod = cwe * jnp.concatenate([rowmix1, rowmix2], axis=0)
    warp12 = jnp.dot(prod, rmc_ref[...], preferred_element_type=f32)     # (2P, C)
    diff = jnp.abs(warp12 - jnp.concatenate([x2p_ref[0], x1p_ref[0]], axis=0))
    feat = jnp.concatenate([diff[:P, :], diff[P:, :]], axis=1)           # (P, 2C)

    # relayout pixel-major (P, C2) -> lane-dense wide rows (H, W*C2)
    feat_wide = jnp.dot(
        selht_ref[...],
        jnp.dot(feat, expc2_ref[...], preferred_element_type=f32) * mselc2_ref[...],
        preferred_element_type=f32)                                      # (H, WC2)

    # ===== convfinal: 3x3 conv (2C -> C, bias) as ONE matmul (kh folded in K) ==
    # halo rows R0-1 / R0+H stayed zero => vertical zero padding for free.
    pad_ref[R0:R0 + H, LP:LP + WC2] = feat_wide
    win = jnp.concatenate(
        [pad_ref[R0 - 1 + kh:R0 - 1 + kh + H, LP:LP + WC2] for kh in range(3)],
        axis=1)                                                          # (H, 3*WC2)
    out = b3w_ref[...] + jnp.dot(win, band3s_ref[...], preferred_element_type=f32)
    conv_ref[0] = out

    # per-sample partial sums for training-mode BatchNorm2d (one batched matmul)
    srows = jnp.concatenate([jnp.sum(out, axis=0, keepdims=True),
                             jnp.sum(out * out, axis=0, keepdims=True)], axis=0)
    stats_ref[0] = jnp.dot(srows, rmc_ref[...], preferred_element_type=f32)


# --------------------------------- wrapper ------------------------------------

def moc_forward(x1_nchw, x2_nchw, params):
    N, C, H, W = x1_nchw.shape
    C2 = 2 * C
    P = H * W
    WC = W * C
    WC2 = W * C2
    f32 = jnp.float32
    bf16 = jnp.bfloat16

    # NCHW -> NHWC; all reshapes below are contiguous (no data movement, no pad)
    x1 = jnp.transpose(x1_nchw, (0, 2, 3, 1)).astype(f32)
    x2 = jnp.transpose(x2_nchw, (0, 2, 3, 1)).astype(f32)
    xcat_w = jnp.concatenate([x1, x2], axis=-1).reshape(N, H, WC2)
    x1r = x1.reshape(N, H, WC)
    x2r = x2.reshape(N, H, WC)
    x1p = x1.reshape(N, P, C)
    x2p = x2.reshape(N, P, C)
    # NOTE: at production H/W/C the wide/pixel-major layouts should be derived
    # in-kernel to cut activation HBM traffic (irrelevant at this toy size).

    dw_w = params["dw_w"].astype(f32)          # (5, 5, C2) depthwise taps
    dw_b = params["dw_b"].astype(f32)          # (C2,)
    pw_w = params["pw_w"].astype(f32)          # (C2, 4)
    w3 = params["w3"].astype(f32)              # (3, 3, C2, C)
    b3 = params["b3"].astype(f32)              # (C,)

    # ---------------- constant operands (built once, outside the kernel) ------
    # depthwise taps tiled over w: row 5*kh+kw = tile(dw_w[kh, kw, :], W)
    tapw = jnp.tile(dw_w.reshape(25, 1, C2), (1, W, 1)).reshape(25, WC2)
    dwbt = jnp.tile(dw_b.reshape(1, C2), (1, W))                        # (1, WC2)
    # per-channel reduce / expand (InstanceNorm + feat relayout); exact in bf16
    rmc2 = jnp.tile(jnp.eye(C2, dtype=f32), (W, 1)).astype(bf16)        # (WC2, C2)
    expc2 = jnp.tile(jnp.eye(C2, dtype=f32), (1, W)).astype(bf16)       # (C2, WC2)
    # 1x1 conv C2 -> 4 as a block-diagonal matmul in the wide layout
    pwbig = jnp.kron(jnp.eye(W, dtype=f32), pw_w)                       # (WC2, 4W)
    # wide (H, 4W) -> pixel-major (P, 4) relayout helpers (0/1, exact in bf16)
    selh = jnp.kron(jnp.eye(H, dtype=f32), jnp.ones((W, 1), f32)).astype(bf16)   # (P, H)
    msel4 = (jnp.arange(P)[:, None] % W
             == jnp.arange(4 * W)[None, :] // 4).astype(bf16)           # (P, 4W)
    # align_corners un-normalisation folded into the group-reduce matrix
    bscale = jnp.array([0.5 * (W - 1) / W, 0.5 * (H - 1) / H] * 2, f32)
    rm4s = jnp.tile(jnp.eye(4, dtype=f32), (W, 1)) * bscale[None, :]    # (4W, 4)
    # base sampling coordinates: with align_corners=True the base grid is just
    # the pixel index, so abase4 = [w_p, h_p, w_p, h_p]
    pidx = jnp.arange(P, dtype=jnp.int32)
    wp = (pidx % W).astype(f32)
    hp = (pidx // W).astype(f32)
    abase4 = jnp.stack([wp, hp, wp, hp], axis=1)                        # (P, 4)
    # warp column expand / per-channel reduce (0/1, exact in bf16)
    ec = jnp.kron(jnp.eye(W, dtype=f32), jnp.ones((1, C), f32)).astype(bf16)     # (W, WC)
    rmc = jnp.tile(jnp.eye(C, dtype=f32), (W, 1)).astype(bf16)          # (WC, C)
    # pixel-major -> wide relayout for feat (0/1, exact in bf16)
    selht = jnp.kron(jnp.eye(H, dtype=f32), jnp.ones((1, W), f32)).astype(bf16)  # (H, P)
    mselc2 = (jnp.arange(P)[:, None] % W
              == jnp.arange(WC2)[None, :] // C2).astype(bf16)           # (P, WC2)
    # 3x3 conv: kw folded into a banded matrix, kh stacked along the K dimension
    band3s = jnp.concatenate([
        sum(jnp.kron(jnp.eye(W, W, k=1 - kw, dtype=f32), w3[kh, kw]) for kw in range(3))
        for kh in range(3)], axis=0)                                    # (3*WC2, WC)
    b3w = jnp.tile(b3.reshape(1, C), (1, W))                            # (1, WC)

    R0 = 8
    pad_rows = _round_up(R0 + H + 8, 8)
    pad_lanes = WC2 + 256                       # 128 zero lanes each side

    def dspec(shape):                           # per-sample data / output blocks
        return pl.BlockSpec(shape, lambda n: (n,) + (0,) * (len(shape) - 1))

    def cspec(shape):                           # replicated constant blocks (2-D)
        return pl.BlockSpec(shape, lambda n: (0, 0))

    conv_w, stats = pl.pallas_call(
        functools.partial(moc_fused_kernel, H=H, W=W, C=C),
        out_shape=(jax.ShapeDtypeStruct((N, H, WC), f32),
                   jax.ShapeDtypeStruct((N, 2, C), f32)),
        grid=(N,),
        in_specs=[
            dspec((1, H, WC2)),
            dspec((1, H, WC)),
            dspec((1, H, WC)),
            dspec((1, P, C)),
            dspec((1, P, C)),
            cspec((25, WC2)),
            cspec((1, WC2)),
            cspec((WC2, C2)),
            cspec((C2, WC2)),
            cspec((WC2, 4 * W)),
            cspec((P, H)),
            cspec((P, 4 * W)),
            cspec((4 * W, 4)),
            cspec((P, 4)),
            cspec((W, WC)),
            cspec((WC, C)),
            cspec((H, P)),
            cspec((P, WC2)),
            cspec((3 * WC2, WC)),
            cspec((1, WC)),
        ],
        out_specs=[dspec((1, H, WC)), dspec((1, 2, C))],
        scratch_shapes=[pltpu.VMEM((pad_rows, pad_lanes), f32)],
        compiler_params=pltpu.CompilerParams(
            dimension_semantics=("parallel",),
            vmem_limit_bytes=32 * 1024 * 1024),
    )(xcat_w, x1r, x2r, x1p, x2p,
      tapw, dwbt, rmc2, expc2, pwbig, selh, msel4, rm4s, abase4,
      ec, rmc, selht, mselc2, band3s, b3w)

    # --- BatchNorm2d training-mode batch statistics + affine + ReLU ----------
    # (plain jnp: XLA fuses the scale/shift/ReLU into the NHWC->NCHW transpose,
    #  removing the extra HBM round-trip of a dedicated BN kernel)
    cnt = float(N * H * W)
    mean = jnp.sum(stats[:, 0, :], axis=0) / cnt
    ex2 = jnp.sum(stats[:, 1, :], axis=0) / cnt
    var = jnp.maximum(ex2 - mean * mean, 0.0)           # biased batch variance
    scale = params["gamma"].astype(f32) * lax.rsqrt(var + 1e-5)
    shift = params["beta"].astype(f32) - mean * scale
    y = jnp.maximum(conv_w.reshape(N, H, W, C) * scale + shift, 0.0)
    return jnp.transpose(y, (0, 3, 1, 2))               # NHWC -> NCHW


# ----------------------------------- main -------------------------------------

if __name__ == "__main__":
    N, C, H, W = 2, 4, 16, 16
    C2 = 2 * C
    key = jax.random.PRNGKey(0)
    ks = jax.random.split(key, 7)
    x1 = jax.random.normal(ks[0], (N, C, H, W), jnp.float32)
    x2 = jax.random.normal(ks[1], (N, C, H, W), jnp.float32)

    # Deterministic synthetic parameters (shapes match nn.Module.__init__).
    params = {
        "dw_w": jax.random.normal(ks[2], (5, 5, C2), jnp.float32) * 0.1,   # Conv2d(2C,2C,5,groups=2C)
        "dw_b": jax.random.normal(ks[3], (C2,), jnp.float32) * 0.1,
        "pw_w": jax.random.normal(ks[4], (C2, 4), jnp.float32) * 0.1,      # Conv2d(2C,4,1,bias=False)
        "w3": jax.random.normal(ks[5], (3, 3, C2, C), jnp.float32) * 0.1,  # Conv2d(2C,C,3)
        "b3": jax.random.normal(ks[6], (C,), jnp.float32) * 0.1,
        "gamma": jnp.ones((C,), jnp.float32),                              # BatchNorm2d affine
        "beta": jnp.zeros((C,), jnp.float32),
    }

    out = jax.block_until_ready(jax.jit(moc_forward)(x1, x2, params))
    assert out.shape == (N, C, H, W)
    print("KERNEL_OK")
</pallas_src>

<mosaic_0001>
module attributes {stable_mosaic.version = 11 : i64} {
  func.func @moc_fused_kernel(%arg0: i32, %arg1: memref<1x16x128xf32, #tpu.memory_space<vmem>>, %arg2: memref<1x16x64xf32, #tpu.memory_space<vmem>>, %arg3: memref<1x16x64xf32, #tpu.memory_space<vmem>>, %arg4: memref<1x256x4xf32, #tpu.memory_space<vmem>>, %arg5: memref<1x256x4xf32, #tpu.memory_space<vmem>>, %arg6: memref<25x128xf32, #tpu.memory_space<vmem>>, %arg7: memref<1x128xf32, #tpu.memory_space<vmem>>, %arg8: memref<128x8xbf16, #tpu.memory_space<vmem>>, %arg9: memref<8x128xbf16, #tpu.memory_space<vmem>>, %arg10: memref<128x64xf32, #tpu.memory_space<vmem>>, %arg11: memref<256x16xbf16, #tpu.memory_space<vmem>>, %arg12: memref<256x64xbf16, #tpu.memory_space<vmem>>, %arg13: memref<64x4xf32, #tpu.memory_space<vmem>>, %arg14: memref<256x4xf32, #tpu.memory_space<vmem>>, %arg15: memref<16x64xbf16, #tpu.memory_space<vmem>>, %arg16: memref<64x4xbf16, #tpu.memory_space<vmem>>, %arg17: memref<16x256xbf16, #tpu.memory_space<vmem>>, %arg18: memref<256x128xbf16, #tpu.memory_space<vmem>>, %arg19: memref<384x64xf32, #tpu.memory_space<vmem>>, %arg20: memref<1x64xf32, #tpu.memory_space<vmem>>, %arg21: memref<1x16x64xf32, #tpu.memory_space<vmem>>, %arg22: memref<1x2x4xf32, #tpu.memory_space<vmem>>, %arg23: memref<32x384xf32, #tpu.memory_space<vmem>>) attributes {dimension_semantics = [#tpu.dimension_semantics<parallel>], iteration_bounds = array<i64: 2>, scalar_prefetch = 0 : i64, scratch_operands = 1 : i64, tpu.core_type = #tpu.core_type<tc>, window_params = [{transform_indices = @transform_0, window_bounds = array<i64: 1, 16, 128>}, {transform_indices = @transform_1, window_bounds = array<i64: 1, 16, 64>}, {transform_indices = @transform_2, window_bounds = array<i64: 1, 16, 64>}, {transform_indices = @transform_3, window_bounds = array<i64: 1, 256, 4>}, {transform_indices = @transform_4, window_bounds = array<i64: 1, 256, 4>}, {pipeline_mode = #tpu.pipeline_mode<synchronous>, transform_indices = @transform_5, window_bounds = array<i64: 25, 128>}, {pipeline_mode = #tpu.pipeline_mode<synchronous>, transform_indices = @transform_6, window_bounds = array<i64: 1, 128>}, {pipeline_mode = #tpu.pipeline_mode<synchronous>, transform_indices = @transform_7, window_bounds = array<i64: 128, 8>}, {pipeline_mode = #tpu.pipeline_mode<synchronous>, transform_indices = @transform_8, window_bounds = array<i64: 8, 128>}, {pipeline_mode = #tpu.pipeline_mode<synchronous>, transform_indices = @transform_9, window_bounds = array<i64: 128, 64>}, {pipeline_mode = #tpu.pipeline_mode<synchronous>, transform_indices = @transform_10, window_bounds = array<i64: 256, 16>}, {pipeline_mode = #tpu.pipeline_mode<synchronous>, transform_indices = @transform_11, window_bounds = array<i64: 256, 64>}, {pipeline_mode = #tpu.pipeline_mode<synchronous>, transform_indices = @transform_12, window_bounds = array<i64: 64, 4>}, {pipeline_mode = #tpu.pipeline_mode<synchronous>, transform_indices = @transform_13, window_bounds = array<i64: 256, 4>}, {pipeline_mode = #tpu.pipeline_mode<synchronous>, transform_indices = @transform_14, window_bounds = array<i64: 16, 64>}, {pipeline_mode = #tpu.pipeline_mode<synchronous>, transform_indices = @transform_15, window_bounds = array<i64: 64, 4>}, {pipeline_mode = #tpu.pipeline_mode<synchronous>, transform_indices = @transform_16, window_bounds = array<i64: 16, 256>}, {pipeline_mode = #tpu.pipeline_mode<synchronous>, transform_indices = @transform_17, window_bounds = array<i64: 256, 128>}, {pipeline_mode = #tpu.pipeline_mode<synchronous>, transform_indices = @transform_18, window_bounds = array<i64: 384, 64>}, {pipeline_mode = #tpu.pipeline_mode<synchronous>, transform_indices = @transform_19, window_bounds = array<i64: 1, 64>}, {transform_indices = @transform_20, window_bounds = array<i64: 1, 16, 64>}, {transform_indices = @transform_21, window_bounds = array<i64: 1, 2, 4>}]} {
    %cst = arith.constant 0.000000e+00 : f32
    %0 = vector.broadcast %cst : f32 to vector<8x384xf32>
    %c0 = arith.constant 0 : index
    %c0_0 = arith.constant 0 : index
    %1 = vector.load %arg23[%c0, %c0_0] : memref<32x384xf32, #tpu.memory_space<vmem>>, vector<8x384xf32>
    tpu.vector_store %arg23[%c0, %c0_0], %0 {strides = array<i32>} : memref<32x384xf32, #tpu.memory_space<vmem>>, vector<8x384xf32>,
    %cst_1 = arith.constant 0.000000e+00 : f32
    %2 = vector.broadcast %cst_1 : f32 to vector<8x384xf32>
    %c24 = arith.constant 24 : index
    %c0_2 = arith.constant 0 : index
    %3 = vector.load %arg23[%c24, %c0_2] : memref<32x384xf32, #tpu.memory_space<vmem>>, vector<8x384xf32>
    tpu.vector_store %arg23[%c24, %c0_2], %2 {strides = array<i32>} : memref<32x384xf32, #tpu.memory_space<vmem>>, vector<8x384xf32>,
    %cst_3 = arith.constant 0.000000e+00 : f32
    %4 = vector.broadcast %cst_3 : f32 to vector<16x128xf32>
    %c8 = arith.constant 8 : index
    %c0_4 = arith.constant 0 : index
    %5 = vector.load %arg23[%c8, %c0_4] : memref<32x384xf32, #tpu.memory_space<vmem>>, vector<16x128xf32>
    tpu.vector_store %arg23[%c8, %c0_4], %4 {strides = array<i32>} : memref<32x384xf32, #tpu.memory_space<vmem>>, vector<16x128xf32>,
    %cst_5 = arith.constant 0.000000e+00 : f32
    %6 = vector.broadcast %cst_5 : f32 to vector<16x128xf32>
    %c8_6 = arith.constant 8 : index
    %c256 = arith.constant 256 : index
    %7 = vector.load %arg23[%c8_6, %c256] : memref<32x384xf32, #tpu.memory_space<vmem>>, vector<16x128xf32>
    tpu.vector_store %arg23[%c8_6, %c256], %6 {strides = array<i32>} : memref<32x384xf32, #tpu.memory_space<vmem>>, vector<16x128xf32>,
    %c0_7 = arith.constant 0 : index
    %c0_8 = arith.constant 0 : index
    %c0_9 = arith.constant 0 : index
    %8 = vector.load %arg1[%c0_7, %c0_8, %c0_9] : memref<1x16x128xf32, #tpu.memory_space<vmem>>, vector<1x16x128xf32>
    %9 = vector.shape_cast %8 : vector<1x16x128xf32> to vector<16x128xf32>
    %c8_10 = arith.constant 8 : index
    %c128 = arith.constant 128 : index
    %10 = vector.load %arg23[%c8_10, %c128] : memref<32x384xf32, #tpu.memory_space<vmem>>, vector<16x128xf32>
    tpu.vector_store %arg23[%c8_10, %c128], %9 {strides = array<i32>} : memref<32x384xf32, #tpu.memory_space<vmem>>, vector<16x128xf32>,
    %c0_11 = arith.constant 0 : index
    %c0_12 = arith.constant 0 : index
    %11 = vector.load %arg7[%c0_11, %c0_12] : memref<1x128xf32, #tpu.memory_space<vmem>>, vector<1x128xf32>
    %cst_13 = arith.constant 0.000000e+00 : f32
    %12 = vector.broadcast %cst_13 : f32 to vector<16x128xf32>
    %13 = vector.broadcast %11 : vector<1x128xf32> to vector<16x128xf32>
    %14 = arith.addf %13, %12 : vector<16x128xf32>
    %c6 = arith.constant 6 : index
    %c0_14 = arith.constant 0 : index
    %15 = vector.load %arg23[%c6, %c0_14] : memref<32x384xf32, #tpu.memory_space<vmem>>, vector<16x384xf32>
    %16 = vector.extract_strided_slice %15 {offsets = [0, 112], sizes = [16, 128], strides = [1, 1]} : vector<16x384xf32> to vector<16x128xf32>
    %c0_15 = arith.constant 0 : index
    %c0_16 = arith.constant 0 : index
    %17 = vector.load %arg6[%c0_15, %c0_16] : memref<25x128xf32, #tpu.memory_space<vmem>>, vector<1x128xf32>
    %18 = vector.broadcast %17 : vector<1x128xf32> to vector<16x128xf32>
    %19 = arith.mulf %16, %18 : vector<16x128xf32>
    %20 = arith.addf %14, %19 : vector<16x128xf32>
    %21 = vector.extract_strided_slice %15 {offsets = [0, 120], sizes = [16, 128], strides = [1, 1]} : vector<16x384xf32> to vector<16x128xf32>
    %c1 = arith.constant 1 : index
    %c0_17 = arith.constant 0 : index
    %22 = vector.load %arg6[%c1, %c0_17] : memref<25x128xf32, #tpu.memory_space<vmem>>, vector<1x128xf32>
    %23 = vector.broadcast %22 : vector<1x128xf32> to vector<16x128xf32>
    %24 = arith.mulf %21, %23 : vector<16x128xf32>
    %25 = arith.addf %20, %24 : vector<16x128xf32>
    %26 = vector.extract_strided_slice %15 {offsets = [0, 128], sizes = [16, 128], strides = [1, 1]} : vector<16x384xf32> to vector<16x128xf32>
    %c2 = arith.constant 2 : index
    %c0_18 = arith.constant 0 : index
    %27 = vector.load %arg6[%c2, %c0_18] : memref<25x128xf32, #tpu.memory_space<vmem>>, vector<1x128xf32>
    %28 = vector.broadcast %27 : vector<1x128xf32> to vector<16x128xf32>
    %29 = arith.mulf %26, %28 : vector<16x128xf32>
    %30 = arith.addf %25, %29 : vector<16x128xf32>
    %31 = vector.extract_strided_slice %15 {offsets = [0, 136], sizes = [16, 128], strides = [1, 1]} : vector<16x384xf32> to vector<16x128xf32>
    %c3 = arith.constant 3 : index
    %c0_19 = arith.constant 0 : index
    %32 = vector.load %arg6[%c3, %c0_19] : memref<25x128xf32, #tpu.memory_space<vmem>>, vector<1x128xf32>
    %33 = vector.broadcast %32 : vector<1x128xf32> to vector<16x128xf32>
    %34 = arith.mulf %31, %33 : vector<16x128xf32>
    %35 = arith.addf %30, %34 : vector<16x128xf32>
    %36 = vector.extract_strided_slice %15 {offsets = [0, 144], sizes = [16, 128], strides = [1, 1]} : vector<16x384xf32> to vector<16x128xf32>
    %c4 = arith.constant 4 : index
    %c0_20 = arith.constant 0 : index
    %37 = vector.load %arg6[%c4, %c0_20] : memref<25x128xf32, #tpu.memory_space<vmem>>, vector<1x128xf32>
    %38 = vector.broadcast %37 : vector<1x128xf32> to vector<16x128xf32>
    %39 = arith.mulf %36, %38 : vector<16x128xf32>
    %40 = arith.addf %35, %39 : vector<16x128xf32>
    %c7 = arith.constant 7 : index
    %c0_21 = arith.constant 0 : index
    %41 = vector.load %arg23[%c7, %c0_21] : memref<32x384xf32, #tpu.memory_space<vmem>>, vector<16x384xf32>
    %42 = vector.extract_strided_slice %41 {offsets = [0, 112], sizes = [16, 128], strides = [1, 1]} : vector<16x384xf32> to vector<16x128xf32>
    %c5 = arith.constant 5 : index
    %c0_22 = arith.constant 0 : index
    %43 = vector.load %arg6[%c5, %c0_22] : memref<25x128xf32, #tpu.memory_space<vmem>>, vector<1x128xf32>
    %44 = vector.broadcast %43 : vector<1x128xf32> to vector<16x128xf32>
    %45 = arith.mulf %42, %44 : vector<16x128xf32>
    %46 = arith.addf %40, %45 : vector<16x128xf32>
    %47 = vector.extract_strided_slice %41 {offsets = [0, 120], sizes = [16, 128], strides = [1, 1]} : vector<16x384xf32> to vector<16x128xf32>
    %c6_23 = arith.constant 6 : index
    %c0_24 = arith.constant 0 : index
    %48 = vector.load %arg6[%c6_23, %c0_24] : memref<25x128xf32, #tpu.memory_space<vmem>>, vector<1x128xf32>
    %49 = vector.broadcast %48 : vector<1x128xf32> to vector<16x128xf32>
    %50 = arith.mulf %47, %49 : vector<16x128xf32>
    %51 = arith.addf %46, %50 : vector<16x128xf32>
    %52 = vector.extract_strided_slice %41 {offsets = [0, 128], sizes = [16, 128], strides = [1, 1]} : vector<16x384xf32> to vector<16x128xf32>
    %c7_25 = arith.constant 7 : index
    %c0_26 = arith.constant 0 : index
    %53 = vector.load %arg6[%c7_25, %c0_26] : memref<25x128xf32, #tpu.memory_space<vmem>>, vector<1x128xf32>
    %54 = vector.broadcast %53 : vector<1x128xf32> to vector<16x128xf32>
    %55 = arith.mulf %52, %54 : vector<16x128xf32>
    %56 = arith.addf %51, %55 : vector<16x128xf32>
    %57 = vector.extract_strided_slice %41 {offsets = [0, 136], sizes = [16, 128], strides = [1, 1]} : vector<16x384xf32> to vector<16x128xf32>
    %c8_27 = arith.constant 8 : index
    %c0_28 = arith.constant 0 : index
    %58 = vector.load %arg6[%c8_27, %c0_28] : memref<25x128xf32, #tpu.memory_space<vmem>>, vector<1x128xf32>
    %59 = vector.broadcast %58 : vector<1x128xf32> to vector<16x128xf32>
    %60 = arith.mulf %57, %59 : vector<16x128xf32>
    %61 = arith.addf %56, %60 : vector<16x128xf32>
    %62 = vector.extract_strided_slice %41 {offsets = [0, 144], sizes = [16, 128], strides = [1, 1]} : vector<16x384xf32> to vector<16x128xf32>
    %c9 = arith.constant 9 : index
    %c0_29 = arith.constant 0 : index
    %63 = vector.load %arg6[%c9, %c0_29] : memref<25x128xf32, #tpu.memory_space<vmem>>, vector<1x128xf32>
    %64 = vector.broadcast %63 : vector<1x128xf32> to vector<16x128xf32>
    %65 = arith.mulf %62, %64 : vector<16x128xf32>
    %66 = arith.addf %61, %65 : vector<16x128xf32>
    %c8_30 = arith.constant 8 : index
    %c0_31 = arith.constant 0 : index
    %67 = vector.load %arg23[%c8_30, %c0_31] : memref<32x384xf32, #tpu.memory_space<vmem>>, vector<16x384xf32>
    %68 = vector.extract_strided_slice %67 {offsets = [0, 112], sizes = [16, 128], strides = [1, 1]} : vector<16x384xf32> to vector<16x128xf32>
    %c10 = arith.constant 10 : index
    %c0_32 = arith.constant 0 : index
    %69 = vector.load %arg6[%c10, %c0_32] : memref<25x128xf32, #tpu.memory_space<vmem>>, vector<1x128xf32>
    %70 = vector.broadcast %69 : vector<1x128xf32> to vector<16x128xf32>
    %71 = arith.mulf %68, %70 : vector<16x128xf32>
    %72 = arith.addf %66, %71 : vector<16x128xf32>
    %73 = vector.extract_strided_slice %67 {offsets = [0, 120], sizes = [16, 128], strides = [1, 1]} : vector<16x384xf32> to vector<16x128xf32>
    %c11 = arith.constant 11 : index
    %c0_33 = arith.constant 0 : index
    %74 = vector.load %arg6[%c11, %c0_33] : memref<25x128xf32, #tpu.memory_space<vmem>>, vector<1x128xf32>
    %75 = vector.broadcast %74 : vector<1x128xf32> to vector<16x128xf32>
    %76 = arith.mulf %73, %75 : vector<16x128xf32>
    %77 = arith.addf %72, %76 : vector<16x128xf32>
    %78 = vector.extract_strided_slice %67 {offsets = [0, 128], sizes = [16, 128], strides = [1, 1]} : vector<16x384xf32> to vector<16x128xf32>
    %c12 = arith.constant 12 : index
    %c0_34 = arith.constant 0 : index
    %79 = vector.load %arg6[%c12, %c0_34] : memref<25x128xf32, #tpu.memory_space<vmem>>, vector<1x128xf32>
    %80 = vector.broadcast %79 : vector<1x128xf32> to vector<16x128xf32>
    %81 = arith.mulf %78, %80 : vector<16x128xf32>
    %82 = arith.addf %77, %81 : vector<16x128xf32>
    %83 = vector.extract_strided_slice %67 {offsets = [0, 136], sizes = [16, 128], strides = [1, 1]} : vector<16x384xf32> to vector<16x128xf32>
    %c13 = arith.constant 13 : index
    %c0_35 = arith.constant 0 : index
    %84 = vector.load %arg6[%c13, %c0_35] : memref<25x128xf32, #tpu.memory_space<vmem>>, vector<1x128xf32>
    %85 = vector.broadcast %84 : vector<1x128xf32> to vector<16x128xf32>
    %86 = arith.mulf %83, %85 : vector<16x128xf32>
    %87 = arith.addf %82, %86 : vector<16x128xf32>
    %88 = vector.extract_strided_slice %67 {offsets = [0, 144], sizes = [16, 128], strides = [1, 1]} : vector<16x384xf32> to vector<16x128xf32>
    %c14 = arith.constant 14 : index
    %c0_36 = arith.constant 0 : index
    %89 = vector.load %arg6[%c14, %c0_36] : memref<25x128xf32, #tpu.memory_space<vmem>>, vector<1x128xf32>
    %90 = vector.broadcast %89 : vector<1x128xf32> to vector<16x128xf32>
    %91 = arith.mulf %88, %90 : vector<16x128xf32>
    %92 = arith.addf %87, %91 : vector<16x128xf32>
    %c9_37 = arith.constant 9 : index
    %c0_38 = arith.constant 0 : index
    %93 = vector.load %arg23[%c9_37, %c0_38] : memref<32x384xf32, #tpu.memory_space<vmem>>, vector<16x384xf32>
    %94 = vector.extract_strided_slice %93 {offsets = [0, 112], sizes = [16, 128], strides = [1, 1]} : vector<16x384xf32> to vector<16x128xf32>
    %c15 = arith.constant 15 : index
    %c0_39 = arith.constant 0 : index
    %95 = vector.load %arg6[%c15, %c0_39] : memref<25x128xf32, #tpu.memory_space<vmem>>, vector<1x128xf32>
    %96 = vector.broadcast %95 : vector<1x128xf32> to vector<16x128xf32>
    %97 = arith.mulf %94, %96 : vector<16x128xf32>
    %98 = arith.addf %92, %97 : vector<16x128xf32>
    %99 = vector.extract_strided_slice %93 {offsets = [0, 120], sizes = [16, 128], strides = [1, 1]} : vector<16x384xf32> to vector<16x128xf32>
    %c16 = arith.constant 16 : index
    %c0_40 = arith.constant 0 : index
    %100 = vector.load %arg6[%c16, %c0_40] : memref<25x128xf32, #tpu.memory_space<vmem>>, vector<1x128xf32>
    %101 = vector.broadcast %100 : vector<1x128xf32> to vector<16x128xf32>
    %102 = arith.mulf %99, %101 : vector<16x128xf32>
    %103 = arith.addf %98, %102 : vector<16x128xf32>
    %104 = vector.extract_strided_slice %93 {offsets = [0, 128], sizes = [16, 128], strides = [1, 1]} : vector<16x384xf32> to vector<16x128xf32>
    %c17 = arith.constant 17 : index
    %c0_41 = arith.constant 0 : index
    %105 = vector.load %arg6[%c17, %c0_41] : memref<25x128xf32, #tpu.memory_space<vmem>>, vector<1x128xf32>
    %106 = vector.broadcast %105 : vector<1x128xf32> to vector<16x128xf32>
    %107 = arith.mulf %104, %106 : vector<16x128xf32>
    %108 = arith.addf %103, %107 : vector<16x128xf32>
    %109 = vector.extract_strided_slice %93 {offsets = [0, 136], sizes = [16, 128], strides = [1, 1]} : vector<16x384xf32> to vector<16x128xf32>
    %c18 = arith.constant 18 : index
    %c0_42 = arith.constant 0 : index
    %110 = vector.load %arg6[%c18, %c0_42] : memref<25x128xf32, #tpu.memory_space<vmem>>, vector<1x128xf32>
    %111 = vector.broadcast %110 : vector<1x128xf32> to vector<16x128xf32>
    %112 = arith.mulf %109, %111 : vector<16x128xf32>
    %113 = arith.addf %108, %112 : vector<16x128xf32>
    %114 = vector.extract_strided_slice %93 {offsets = [0, 144], sizes = [16, 128], strides = [1, 1]} : vector<16x384xf32> to vector<16x128xf32>
    %c19 = arith.constant 19 : index
    %c0_43 = arith.constant 0 : index
    %115 = vector.load %arg6[%c19, %c0_43] : memref<25x128xf32, #tpu.memory_space<vmem>>, vector<1x128xf32>
    %116 = vector.broadcast %115 : vector<1x128xf32> to vector<16x128xf32>
    %117 = arith.mulf %114, %116 : vector<16x128xf32>
    %118 = arith.addf %113, %117 : vector<16x128xf32>
    %c10_44 = arith.constant 10 : index
    %c0_45 = arith.constant 0 : index
    %119 = vector.load %arg23[%c10_44, %c0_45] : memref<32x384xf32, #tpu.memory_space<vmem>>, vector<16x384xf32>
    %120 = vector.extract_strided_slice %119 {offsets = [0, 112], sizes = [16, 128], strides = [1, 1]} : vector<16x384xf32> to vector<16x128xf32>
    %c20 = arith.constant 20 : index
    %c0_46 = arith.constant 0 : index
    %121 = vector.load %arg6[%c20, %c0_46] : memref<25x128xf32, #tpu.memory_space<vmem>>, vector<1x128xf32>
    %122 = vector.broadcast %121 : vector<1x128xf32> to vector<16x128xf32>
    %123 = arith.mulf %120, %122 : vector<16x128xf32>
    %124 = arith.addf %118, %123 : vector<16x128xf32>
    %125 = vector.extract_strided_slice %119 {offsets = [0, 120], sizes = [16, 128], strides = [1, 1]} : vector<16x384xf32> to vector<16x128xf32>
    %c21 = arith.constant 21 : index
    %c0_47 = arith.constant 0 : index
    %126 = vector.load %arg6[%c21, %c0_47] : memref<25x128xf32, #tpu.memory_space<vmem>>, vector<1x128xf32>
    %127 = vector.broadcast %126 : vector<1x128xf32> to vector<16x128xf32>
    %128 = arith.mulf %125, %127 : vector<16x128xf32>
    %129 = arith.addf %124, %128 : vector<16x128xf32>
    %130 = vector.extract_strided_slice %119 {offsets = [0, 128], sizes = [16, 128], strides = [1, 1]} : vector<16x384xf32> to vector<16x128xf32>
    %c22 = arith.constant 22 : index
    %c0_48 = arith.constant 0 : index
    %131 = vector.load %arg6[%c22, %c0_48] : memref<25x128xf32, #tpu.memory_space<vmem>>, vector<1x128xf32>
    %132 = vector.broadcast %131 : vector<1x128xf32> to vector<16x128xf32>
    %133 = arith.mulf %130, %132 : vector<16x128xf32>
    %134 = arith.addf %129, %133 : vector<16x128xf32>
    %135 = vector.extract_strided_slice %119 {offsets = [0, 136], sizes = [16, 128], strides = [1, 1]} : vector<16x384xf32> to vector<16x128xf32>
    %c23 = arith.constant 23 : index
    %c0_49 = arith.constant 0 : index
    %136 = vector.load %arg6[%c23, %c0_49] : memref<25x128xf32, #tpu.memory_space<vmem>>, vector<1x128xf32>
    %137 = vector.broadcast %136 : vector<1x128xf32> to vector<16x128xf32>
    %138 = arith.mulf %135, %137 : vector<16x128xf32>
    %139 = arith.addf %134, %138 : vector<16x128xf32>
    %140 = vector.extract_strided_slice %119 {offsets = [0, 144], sizes = [16, 128], strides = [1, 1]} : vector<16x384xf32> to vector<16x128xf32>
    %c24_50 = arith.constant 24 : index
    %c0_51 = arith.constant 0 : index
    %141 = vector.load %arg6[%c24_50, %c0_51] : memref<25x128xf32, #tpu.memory_space<vmem>>, vector<1x128xf32>
    %142 = vector.broadcast %141 : vector<1x128xf32> to vector<16x128xf32>
    %143 = arith.mulf %140, %142 : vector<16x128xf32>
    %144 = arith.addf %139, %143 : vector<16x128xf32>
    %cst_52 = arith.constant dense<0.000000e+00> : vector<128xf32>
    %145 = vector.multi_reduction <add>, %144, %cst_52 [0] : vector<16x128xf32> to vector<128xf32>
    %146 = vector.shape_cast %145 : vector<128xf32> to vector<1x128xf32>
    %c0_53 = arith.constant 0 : index
    %c0_54 = arith.constant 0 : index
    %147 = vector.load %arg8[%c0_53, %c0_54] : memref<128x8xbf16, #tpu.memory_space<vmem>>, vector<128x8xbf16>
    %cst_55 = arith.constant dense<0.000000e+00> : vector<1x8xf32>
    %148 = tpu.matmul %146, %147, %cst_55 {dimension_numbers = #tpu.dot_dimension_numbers<[1], [0], [0], [1], [0, 0, 1, 1], [], []>} : vector<1x128xf32>, vector<128x8xbf16>, vector<1x8xf32> -> vector<1x8xf32>
    %cst_56 = arith.constant 3.906250e-03 : f32
    %149 = vector.broadcast %cst_56 : f32 to vector<1x8xf32>
    %150 = arith.mulf %148, %149 : vector<1x8xf32>
    %c0_57 = arith.constant 0 : index
    %c0_58 = arith.constant 0 : index
    %151 = vector.load %arg9[%c0_57, %c0_58] : memref<8x128xbf16, #tpu.memory_space<vmem>>, vector<8x128xbf16>
    %cst_59 = arith.constant dense<0.000000e+00> : vector<1x128xf32>
    %152 = tpu.matmul %150, %151, %cst_59 {dimension_numbers = #tpu.dot_dimension_numbers<[1], [0], [0], [1], [0, 0, 1, 1], [], []>} : vector<1x8xf32>, vector<8x128xbf16>, vector<1x128xf32> -> vector<1x128xf32>
    %153 = vector.broadcast %152 : vector<1x128xf32> to vector<16x128xf32>
    %154 = arith.subf %144, %153 : vector<16x128xf32>
    %155 = arith.mulf %154, %154 : vector<16x128xf32>
    %cst_60 = arith.constant dense<0.000000e+00> : vector<128xf32>
    %156 = vector.multi_reduction <add>, %155, %cst_60 [0] : vector<16x128xf32> to vector<128xf32>
    %157 = vector.shape_cast %156 : vector<128xf32> to vector<1x128xf32>
    %c0_61 = arith.constant 0 : index
    %c0_62 = arith.constant 0 : index
    %158 = vector.load %arg8[%c0_61, %c0_62] : memref<128x8xbf16, #tpu.memory_space<vmem>>, vector<128x8xbf16>
    %cst_63 = arith.constant dense<0.000000e+00> : vector<1x8xf32>
    %159 = tpu.matmul %157, %158, %cst_63 {dimension_numbers = #tpu.dot_dimension_numbers<[1], [0], [0], [1], [0, 0, 1, 1], [], []>} : vector<1x128xf32>, vector<128x8xbf16>, vector<1x8xf32> -> vector<1x8xf32>
    %cst_64 = arith.constant 3.906250e-03 : f32
    %160 = vector.broadcast %cst_64 : f32 to vector<1x8xf32>
    %161 = arith.mulf %159, %160 : vector<1x8xf32>
    %c0_65 = arith.constant 0 : index
    %c0_66 = arith.constant 0 : index
    %162 = vector.load %arg9[%c0_65, %c0_66] : memref<8x128xbf16, #tpu.memory_space<vmem>>, vector<8x128xbf16>
    %cst_67 = arith.constant dense<0.000000e+00> : vector<1x128xf32>
    %163 = tpu.matmul %161, %162, %cst_67 {dimension_numbers = #tpu.dot_dimension_numbers<[1], [0], [0], [1], [0, 0, 1, 1], [], []>} : vector<1x8xf32>, vector<8x128xbf16>, vector<1x128xf32> -> vector<1x128xf32>
    %cst_68 = arith.constant 9.99999974E-6 : f32
    %164 = vector.broadcast %cst_68 : f32 to vector<1x128xf32>
    %165 = arith.addf %163, %164 : vector<1x128xf32>
    %166 = math.rsqrt %165 : vector<1x128xf32>
    %167 = vector.broadcast %166 : vector<1x128xf32> to vector<16x128xf32>
    %168 = arith.mulf %154, %167 : vector<16x128xf32>
    %cst_69 = arith.constant 5.000000e-01 : f32
    %169 = vector.broadcast %cst_69 : f32 to vector<16x128xf32>
    %170 = arith.mulf %169, %168 : vector<16x128xf32>
    %cst_70 = arith.constant 0.707106769 : f32
    %171 = vector.broadcast %cst_70 : f32 to vector<16x128xf32>
    %172 = arith.mulf %168, %171 : vector<16x128xf32>
    %173 = math.absf %172 : vector<16x128xf32>
    %cst_71 = arith.constant 0.327591091 : f32
    %174 = vector.broadcast %cst_71 : f32 to vector<16x128xf32>
    %175 = arith.mulf %174, %173 : vector<16x128xf32>
    %cst_72 = arith.constant 1.000000e+00 : f32
    %176 = vector.broadcast %cst_72 : f32 to vector<16x128xf32>
    %177 = arith.addf %176, %175 : vector<16x128xf32>
    %cst_73 = arith.constant 1.000000e+00 : f32
    %178 = vector.broadcast %cst_73 : f32 to vector<16x128xf32>
    %179 = arith.divf %178, %177 : vector<16x128xf32>
    %cst_74 = arith.constant 1.06140542 : f32
    %180 = vector.broadcast %cst_74 : f32 to vector<16x128xf32>
    %181 = arith.mulf %180, %179 : vector<16x128xf32>
    %cst_75 = arith.constant -1.45315206 : f32
    %182 = vector.broadcast %cst_75 : f32 to vector<16x128xf32>
    %183 = arith.addf %181, %182 : vector<16x128xf32>
    %184 = arith.mulf %183, %179 : vector<16x128xf32>
    %cst_76 = arith.constant 1.42141378 : f32
    %185 = vector.broadcast %cst_76 : f32 to vector<16x128xf32>
    %186 = arith.addf %184, %185 : vector<16x128xf32>
    %187 = arith.mulf %186, %179 : vector<16x128xf32>
    %cst_77 = arith.constant -0.284496725 : f32
    %188 = vector.broadcast %cst_77 : f32 to vector<16x128xf32>
    %189 = arith.addf %187, %188 : vector<16x128xf32>
    %190 = arith.mulf %189, %179 : vector<16x128xf32>
    %cst_78 = arith.constant 0.254829586 : f32
    %191 = vector.broadcast %cst_78 : f32 to vector<16x128xf32>
    %192 = arith.addf %190, %191 : vector<16x128xf32>
    %193 = arith.mulf %192, %179 : vector<16x128xf32>
    %cst_79 = arith.constant 0.000000e+00 : f32
    %194 = vector.broadcast %cst_79 : f32 to vector<16x128xf32>
    %195 = arith.subf %194, %173 : vector<16x128xf32>
    %196 = arith.mulf %195, %173 : vector<16x128xf32>
    %197 = math.exp %196 : vector<16x128xf32>
    %198 = arith.mulf %193, %197 : vector<16x128xf32>
    %cst_80 = arith.constant 1.000000e+00 : f32
    %199 = vector.broadcast %cst_80 : f32 to vector<16x128xf32>
    %200 = arith.subf %199, %198 : vector<16x128xf32>
    %cst_81 = arith.constant 0.000000e+00 : f32
    %201 = vector.broadcast %cst_81 : f32 to vector<16x128xf32>
    %202 = arith.cmpf oge, %172, %201 : vector<16x128xf32>
    %cst_82 = arith.constant 0.000000e+00 : f32
    %203 = vector.broadcast %cst_82 : f32 to vector<16x128xf32>
    %204 = arith.subf %203, %200 : vector<16x128xf32>
    %205 = arith.select %202, %200, %204 : vector<16x128xi1>, vector<16x128xf32>
    %cst_83 = arith.constant 1.000000e+00 : f32
    %206 = vector.broadcast %cst_83 : f32 to vector<16x128xf32>
    %207 = arith.addf %206, %205 : vector<16x128xf32>
    %208 = arith.mulf %170, %207 : vector<16x128xf32>
    %c0_84 = arith.constant 0 : index
    %c0_85 = arith.constant 0 : index
    %209 = vector.load %arg10[%c0_84, %c0_85] : memref<128x64xf32, #tpu.memory_space<vmem>>, vector<128x64xf32>
    %cst_86 = arith.constant dense<0.000000e+00> : vector<16x64xf32>
    %210 = tpu.matmul %208, %209, %cst_86 {dimension_numbers = #tpu.dot_dimension_numbers<[1], [0], [0], [1], [0, 0, 1, 1], [], []>} : vector<16x128xf32>, vector<128x64xf32>, vector<16x64xf32> -> vector<16x64xf32>
    %c0_87 = arith.constant 0 : index
    %c0_88 = arith.constant 0 : index
    %211 = vector.load %arg11[%c0_87, %c0_88] : memref<256x16xbf16, #tpu.memory_space<vmem>>, vector<256x16xbf16>
    %cst_89 = arith.constant dense<0.000000e+00> : vector<256x64xf32>
    %212 = tpu.matmul %211, %210, %cst_89 {dimension_numbers = #tpu.dot_dimension_numbers<[1], [0], [0], [1], [0, 0, 1, 1], [], []>} : vector<256x16xbf16>, vector<16x64xf32>, vector<256x64xf32> -> vector<256x64xf32>
    %c0_90 = arith.constant 0 : index
    %c0_91 = arith.constant 0 : index
    %213 = vector.load %arg14[%c0_90, %c0_91] : memref<256x4xf32, #tpu.memory_space<vmem>>, vector<256x4xf32>
    %c0_92 = arith.constant 0 : index
    %c0_93 = arith.constant 0 : index
    %214 = vector.load %arg12[%c0_92, %c0_93] : memref<256x64xbf16, #tpu.memory_space<vmem>>, vector<256x64xbf16>
    %215 = arith.extf %214 : vector<256x64xbf16> to vector<256x64xf32>
    %216 = arith.mulf %212, %215 : vector<256x64xf32>
    %c0_94 = arith.constant 0 : index
    %c0_95 = arith.constant 0 : index
    %217 = vector.load %arg13[%c0_94, %c0_95] : memref<64x4xf32, #tpu.memory_space<vmem>>, vector<64x4xf32>
    %cst_96 = arith.constant dense<0.000000e+00> : vector<256x4xf32>
    %218 = tpu.matmul %216, %217, %cst_96 {dimension_numbers = #tpu.dot_dimension_numbers<[1], [0], [0], [1], [0, 0, 1, 1], [], []>} : vector<256x64xf32>, vector<64x4xf32>, vector<256x4xf32> -> vector<256x4xf32>
    %219 = arith.addf %213, %218 : vector<256x4xf32>
    %220 = tpu.iota {dimensions = array<i32: 1>} : vector<256x16xi32>
    %221 = tpu.iota {dimensions = array<i32: 1>} : vector<256x16xi32>
    %222 = vector.extract_strided_slice %219 {offsets = [0, 0], sizes = [256, 1], strides = [1, 1]} : vector<256x4xf32> to vector<256x1xf32>
    %223 = math.floor %222 : vector<256x1xf32>
    %224 = arith.subf %222, %223 : vector<256x1xf32>
    %225 = arith.fptosi %223 : vector<256x1xf32> to vector<256x1xi32>
    %226 = vector.broadcast %225 : vector<256x1xi32> to vector<256x16xi32>
    %227 = arith.cmpi eq, %220, %226 : vector<256x16xi32>
    %cst_97 = arith.constant 1.000000e+00 : f32
    %228 = vector.broadcast %cst_97 : f32 to vector<256x1xf32>
    %229 = arith.subf %228, %224 : vector<256x1xf32>
    %cst_98 = arith.constant 0.000000e+00 : f32
    %230 = vector.shape_cast %229 : vector<256x1xf32> to vector<256x1xf32>
    %231 = vector.broadcast %230 : vector<256x1xf32> to vector<256x16xf32>
    %232 = vector.broadcast %cst_98 : f32 to vector<256x16xf32>
    %233 = arith.select %227, %231, %232 : vector<256x16xi1>, vector<256x16xf32>
    %c1_i32 = arith.constant 1 : i32
    %234 = vector.broadcast %c1_i32 : i32 to vector<256x1xi32>
    %235 = arith.addi %225, %234 : vector<256x1xi32>
    %236 = vector.broadcast %235 : vector<256x1xi32> to vector<256x16xi32>
    %237 = arith.cmpi eq, %220, %236 : vector<256x16xi32>
    %cst_99 = arith.constant 0.000000e+00 : f32
    %238 = vector.shape_cast %224 : vector<256x1xf32> to vector<256x1xf32>
    %239 = vector.broadcast %238 : vector<256x1xf32> to vector<256x16xf32>
    %240 = vector.broadcast %cst_99 : f32 to vector<256x16xf32>
    %241 = arith.select %237, %239, %240 : vector<256x16xi1>, vector<256x16xf32>
    %242 = arith.addf %233, %241 : vector<256x16xf32>
    %243 = vector.extract_strided_slice %219 {offsets = [0, 1], sizes = [256, 1], strides = [1, 1]} : vector<256x4xf32> to vector<256x1xf32>
    %244 = math.floor %243 : vector<256x1xf32>
    %245 = arith.subf %243, %244 : vector<256x1xf32>
    %246 = arith.fptosi %244 : vector<256x1xf32> to vector<256x1xi32>
    %247 = vector.broadcast %246 : vector<256x1xi32> to vector<256x16xi32>
    %248 = arith.cmpi eq, %221, %247 : vector<256x16xi32>
    %cst_100 = arith.constant 1.000000e+00 : f32
    %249 = vector.broadcast %cst_100 : f32 to vector<256x1xf32>
    %250 = arith.subf %249, %245 : vector<256x1xf32>
    %cst_101 = arith.constant 0.000000e+00 : f32
    %251 = vector.shape_cast %250 : vector<256x1xf32> to vector<256x1xf32>
    %252 = vector.broadcast %251 : vector<256x1xf32> to vector<256x16xf32>
    %253 = vector.broadcast %cst_101 : f32 to vector<256x16xf32>
    %254 = arith.select %248, %252, %253 : vector<256x16xi1>, vector<256x16xf32>
    %c1_i32_102 = arith.constant 1 : i32
    %255 = vector.broadcast %c1_i32_102 : i32 to vector<256x1xi32>
    %256 = arith.addi %246, %255 : vector<256x1xi32>
    %257 = vector.broadcast %256 : vector<256x1xi32> to vector<256x16xi32>
    %258 = arith.cmpi eq, %221, %257 : vector<256x16xi32>
    %cst_103 = arith.constant 0.000000e+00 : f32
    %259 = vector.shape_cast %245 : vector<256x1xf32> to vector<256x1xf32>
    %260 = vector.broadcast %259 : vector<256x1xf32> to vector<256x16xf32>
    %261 = vector.broadcast %cst_103 : f32 to vector<256x16xf32>
    %262 = arith.select %258, %260, %261 : vector<256x16xi1>, vector<256x16xf32>
    %263 = arith.addf %254, %262 : vector<256x16xf32>
    %264 = vector.extract_strided_slice %219 {offsets = [0, 2], sizes = [256, 1], strides = [1, 1]} : vector<256x4xf32> to vector<256x1xf32>
    %265 = math.floor %264 : vector<256x1xf32>
    %266 = arith.subf %264, %265 : vector<256x1xf32>
    %267 = arith.fptosi %265 : vector<256x1xf32> to vector<256x1xi32>
    %268 = vector.broadcast %267 : vector<256x1xi32> to vector<256x16xi32>
    %269 = arith.cmpi eq, %220, %268 : vector<256x16xi32>
    %cst_104 = arith.constant 1.000000e+00 : f32
    %270 = vector.broadcast %cst_104 : f32 to vector<256x1xf32>
    %271 = arith.subf %270, %266 : vector<256x1xf32>
    %cst_105 = arith.constant 0.000000e+00 : f32
    %272 = vector.shape_cast %271 : vector<256x1xf32> to vector<256x1xf32>
    %273 = vector.broadcast %272 : vector<256x1xf32> to vector<256x16xf32>
    %274 = vector.broadcast %cst_105 : f32 to vector<256x16xf32>
    %275 = arith.select %269, %273, %274 : vector<256x16xi1>, vector<256x16xf32>
    %c1_i32_106 = arith.constant 1 : i32
    %276 = vector.broadcast %c1_i32_106 : i32 to vector<256x1xi32>
    %277 = arith.addi %267, %276 : vector<256x1xi32>
    %278 = vector.broadcast %277 : vector<256x1xi32> to vector<256x16xi32>
    %279 = arith.cmpi eq, %220, %278 : vector<256x16xi32>
    %cst_107 = arith.constant 0.000000e+00 : f32
    %280 = vector.shape_cast %266 : vector<256x1xf32> to vector<256x1xf32>
    %281 = vector.broadcast %280 : vector<256x1xf32> to vector<256x16xf32>
    %282 = vector.broadcast %cst_107 : f32 to vector<256x16xf32>
    %283 = arith.select %279, %281, %282 : vector<256x16xi1>, vector<256x16xf32>
    %284 = arith.addf %275, %283 : vector<256x16xf32>
    %285 = vector.extract_strided_slice %219 {offsets = [0, 3], sizes = [256, 1], strides = [1, 1]} : vector<256x4xf32> to vector<256x1xf32>
    %286 = math.floor %285 : vector<256x1xf32>
    %287 = arith.subf %285, %286 : vector<256x1xf32>
    %288 = arith.fptosi %286 : vector<256x1xf32> to vector<256x1xi32>
    %289 = vector.broadcast %288 : vector<256x1xi32> to vector<256x16xi32>
    %290 = arith.cmpi eq, %221, %289 : vector<256x16xi32>
    %cst_108 = arith.constant 1.000000e+00 : f32
    %291 = vector.broadcast %cst_108 : f32 to vector<256x1xf32>
    %292 = arith.subf %291, %287 : vector<256x1xf32>
    %cst_109 = arith.constant 0.000000e+00 : f32
    %293 = vector.shape_cast %292 : vector<256x1xf32> to vector<256x1xf32>
    %294 = vector.broadcast %293 : vector<256x1xf32> to vector<256x16xf32>
    %295 = vector.broadcast %cst_109 : f32 to vector<256x16xf32>
    %296 = arith.select %290, %294, %295 : vector<256x16xi1>, vector<256x16xf32>
    %c1_i32_110 = arith.constant 1 : i32
    %297 = vector.broadcast %c1_i32_110 : i32 to vector<256x1xi32>
    %298 = arith.addi %288, %297 : vector<256x1xi32>
    %299 = vector.broadcast %298 : vector<256x1xi32> to vector<256x16xi32>
    %300 = arith.cmpi eq, %221, %299 : vector<256x16xi32>
    %cst_111 = arith.constant 0.000000e+00 : f32
    %301 = vector.shape_cast %287 : vector<256x1xf32> to vector<256x1xf32>
    %302 = vector.broadcast %301 : vector<256x1xf32> to vector<256x16xf32>
    %303 = vector.broadcast %cst_111 : f32 to vector<256x16xf32>
    %304 = arith.select %300, %302, %303 : vector<256x16xi1>, vector<256x16xf32>
    %305 = arith.addf %296, %304 : vector<256x16xf32>
    %c0_112 = arith.constant 0 : index
    %c0_113 = arith.constant 0 : index
    %c0_114 = arith.constant 0 : index
    %306 = vector.load %arg2[%c0_112, %c0_113, %c0_114] : memref<1x16x64xf32, #tpu.memory_space<vmem>>, vector<1x16x64xf32>
    %307 = vector.shape_cast %306 : vector<1x16x64xf32> to vector<16x64xf32>
    %cst_115 = arith.constant dense<0.000000e+00> : vector<256x64xf32>
    %308 = tpu.matmul %263, %307, %cst_115 {dimension_numbers = #tpu.dot_dimension_numbers<[1], [0], [0], [1], [0, 0, 1, 1], [], []>} : vector<256x16xf32>, vector<16x64xf32>, vector<256x64xf32> -> vector<256x64xf32>
    %c0_116 = arith.constant 0 : index
    %c0_117 = arith.constant 0 : index
    %c0_118 = arith.constant 0 : index
    %309 = vector.load %arg3[%c0_116, %c0_117, %c0_118] : memref<1x16x64xf32, #tpu.memory_space<vmem>>, vector<1x16x64xf32>
    %310 = vector.shape_cast %309 : vector<1x16x64xf32> to vector<16x64xf32>
    %cst_119 = arith.constant dense<0.000000e+00> : vector<256x64xf32>
    %311 = tpu.matmul %305, %310, %cst_119 {dimension_numbers = #tpu.dot_dimension_numbers<[1], [0], [0], [1], [0, 0, 1, 1], [], []>} : vector<256x16xf32>, vector<16x64xf32>, vector<256x64xf32> -> vector<256x64xf32>
    %312 = tpu.concatenate %242, %284 in 0 : vector<256x16xf32>, vector<256x16xf32> -> vector<512x16xf32>
    %c0_120 = arith.constant 0 : index
    %c0_121 = arith.constant 0 : index
    %313 = vector.load %arg15[%c0_120, %c0_121] : memref<16x64xbf16, #tpu.memory_space<vmem>>, vector<16x64xbf16>
    %cst_122 = arith.constant dense<0.000000e+00> : vector<512x64xf32>
    %314 = tpu.matmul %312, %313, %cst_122 {dimension_numbers = #tpu.dot_dimension_numbers<[1], [0], [0], [1], [0, 0, 1, 1], [], []>} : vector<512x16xf32>, vector<16x64xbf16>, vector<512x64xf32> -> vector<512x64xf32>
    %315 = tpu.concatenate %308, %311 in 0 : vector<256x64xf32>, vector<256x64xf32> -> vector<512x64xf32>
    %316 = arith.mulf %314, %315 : vector<512x64xf32>
    %c0_123 = arith.constant 0 : index
    %c0_124 = arith.constant 0 : index
    %317 = vector.load %arg16[%c0_123, %c0_124] : memref<64x4xbf16, #tpu.memory_space<vmem>>, vector<64x4xbf16>
    %cst_125 = arith.constant dense<0.000000e+00> : vector<512x4xf32>
    %318 = tpu.matmul %316, %317, %cst_125 {dimension_numbers = #tpu.dot_dimension_numbers<[1], [0], [0], [1], [0, 0, 1, 1], [], []>} : vector<512x64xf32>, vector<64x4xbf16>, vector<512x4xf32> -> vector<512x4xf32>
    %c0_126 = arith.constant 0 : index
    %c0_127 = arith.constant 0 : index
    %c0_128 = arith.constant 0 : index
    %319 = vector.load %arg5[%c0_126, %c0_127, %c0_128] : memref<1x256x4xf32, #tpu.memory_space<vmem>>, vector<1x256x4xf32>
    %320 = vector.shape_cast %319 : vector<1x256x4xf32> to vector<256x4xf32>
    %c0_129 = arith.constant 0 : index
    %c0_130 = arith.constant 0 : index
    %c0_131 = arith.constant 0 : index
    %321 = vector.load %arg4[%c0_129, %c0_130, %c0_131] : memref<1x256x4xf32, #tpu.memory_space<vmem>>, vector<1x256x4xf32>
    %322 = vector.shape_cast %321 : vector<1x256x4xf32> to vector<256x4xf32>
    %323 = tpu.concatenate %320, %322 in 0 : vector<256x4xf32>, vector<256x4xf32> -> vector<512x4xf32>
    %324 = arith.subf %318, %323 : vector<512x4xf32>
    %325 = math.absf %324 : vector<512x4xf32>
    %326 = vector.extract_strided_slice %325 {offsets = [0, 0], sizes = [256, 4], strides = [1, 1]} : vector<512x4xf32> to vector<256x4xf32>
    %327 = vector.extract_strided_slice %325 {offsets = [256, 0], sizes = [256, 4], strides = [1, 1]} : vector<512x4xf32> to vector<256x4xf32>
    %328 = tpu.concatenate %326, %327 in 1 : vector<256x4xf32>, vector<256x4xf32> -> vector<256x8xf32>
    %c0_132 = arith.constant 0 : index
    %c0_133 = arith.constant 0 : index
    %329 = vector.load %arg17[%c0_132, %c0_133] : memref<16x256xbf16, #tpu.memory_space<vmem>>, vector<16x256xbf16>
    %c0_134 = arith.constant 0 : index
    %c0_135 = arith.constant 0 : index
    %330 = vector.load %arg9[%c0_134, %c0_135] : memref<8x128xbf16, #tpu.memory_space<vmem>>, vector<8x128xbf16>
    %cst_136 = arith.constant dense<0.000000e+00> : vector<256x128xf32>
    %331 = tpu.matmul %328, %330, %cst_136 {dimension_numbers = #tpu.dot_dimension_numbers<[1], [0], [0], [1], [0, 0, 1, 1], [], []>} : vector<256x8xf32>, vector<8x128xbf16>, vector<256x128xf32> -> vector<256x128xf32>
    %c0_137 = arith.constant 0 : index
    %c0_138 = arith.constant 0 : index
    %332 = vector.load %arg18[%c0_137, %c0_138] : memref<256x128xbf16, #tpu.memory_space<vmem>>, vector<256x128xbf16>
    %333 = arith.extf %332 : vector<256x128xbf16> to vector<256x128xf32>
    %334 = arith.mulf %331, %333 : vector<256x128xf32>
    %cst_139 = arith.constant dense<0.000000e+00> : vector<16x128xf32>
    %335 = tpu.matmul %329, %334, %cst_139 {dimension_numbers = #tpu.dot_dimension_numbers<[1], [0], [0], [1], [0, 0, 1, 1], [], []>} : vector<16x256xbf16>, vector<256x128xf32>, vector<16x128xf32> -> vector<16x128xf32>
    %c8_140 = arith.constant 8 : index
    %c128_141 = arith.constant 128 : index
    %336 = vector.load %arg23[%c8_140, %c128_141] : memref<32x384xf32, #tpu.memory_space<vmem>>, vector<16x128xf32>
    tpu.vector_store %arg23[%c8_140, %c128_141], %335 {strides = array<i32>} : memref<32x384xf32, #tpu.memory_space<vmem>>, vector<16x128xf32>,
    %c7_142 = arith.constant 7 : index
    %c128_143 = arith.constant 128 : index
    %337 = vector.load %arg23[%c7_142, %c128_143] : memref<32x384xf32, #tpu.memory_space<vmem>>, vector<16x128xf32>
    %c8_144 = arith.constant 8 : index
    %c128_145 = arith.constant 128 : index
    %338 = vector.load %arg23[%c8_144, %c128_145] : memref<32x384xf32, #tpu.memory_space<vmem>>, vector<16x128xf32>
    %c9_146 = arith.constant 9 : index
    %c128_147 = arith.constant 128 : index
    %339 = vector.load %arg23[%c9_146, %c128_147] : memref<32x384xf32, #tpu.memory_space<vmem>>, vector<16x128xf32>
    %340 = tpu.concatenate %337, %338, %339 in 1 : vector<16x128xf32>, vector<16x128xf32>, vector<16x128xf32> -> vector<16x384xf32>
    %c0_148 = arith.constant 0 : index
    %c0_149 = arith.constant 0 : index
    %341 = vector.load %arg20[%c0_148, %c0_149] : memref<1x64xf32, #tpu.memory_space<vmem>>, vector<1x64xf32>
    %c0_150 = arith.constant 0 : index
    %c0_151 = arith.constant 0 : index
    %342 = vector.load %arg19[%c0_150, %c0_151] : memref<384x64xf32, #tpu.memory_space<vmem>>, vector<384x64xf32>
    %cst_152 = arith.constant dense<0.000000e+00> : vector<16x64xf32>
    %343 = tpu.matmul %340, %342, %cst_152 {dimension_numbers = #tpu.dot_dimension_numbers<[1], [0], [0], [1], [0, 0, 1, 1], [], []>} : vector<16x384xf32>, vector<384x64xf32>, vector<16x64xf32> -> vector<16x64xf32>
    %344 = vector.broadcast %341 : vector<1x64xf32> to vector<16x64xf32>
    %345 = arith.addf %344, %343 : vector<16x64xf32>
    %c0_153 = arith.constant 0 : index
    %c0_154 = arith.constant 0 : index
    %c0_155 = arith.constant 0 : index
    %346 = vector.load %arg21[%c0_153, %c0_154, %c0_155] : memref<1x16x64xf32, #tpu.memory_space<vmem>>, vector<1x16x64xf32>
    %347 = vector.shape_cast %346 : vector<1x16x64xf32> to vector<16x64xf32>
    %348 = vector.shape_cast %345 : vector<16x64xf32> to vector<1x16x64xf32>
    tpu.vector_store %arg21[%c0_153, %c0_154, %c0_155], %348 {strides = array<i32>} : memref<1x16x64xf32, #tpu.memory_space<vmem>>, vector<1x16x64xf32>,
    %cst_156 = arith.constant dense<0.000000e+00> : vector<64xf32>
    %349 = vector.multi_reduction <add>, %345, %cst_156 [0] : vector<16x64xf32> to vector<64xf32>
    %350 = vector.shape_cast %349 : vector<64xf32> to vector<1x64xf32>
    %351 = arith.mulf %345, %345 : vector<16x64xf32>
    %cst_157 = arith.constant dense<0.000000e+00> : vector<64xf32>
    %352 = vector.multi_reduction <add>, %351, %cst_157 [0] : vector<16x64xf32> to vector<64xf32>
    %353 = vector.shape_cast %352 : vector<64xf32> to vector<1x64xf32>
    %354 = tpu.concatenate %350, %353 in 0 : vector<1x64xf32>, vector<1x64xf32> -> vector<2x64xf32>
    %c0_158 = arith.constant 0 : index
    %c0_159 = arith.constant 0 : index
    %355 = vector.load %arg16[%c0_158, %c0_159] : memref<64x4xbf16, #tpu.memory_space<vmem>>, vector<64x4xbf16>
    %cst_160 = arith.constant dense<0.000000e+00> : vector<2x4xf32>
    %356 = tpu.matmul %354, %355, %cst_160 {dimension_numbers = #tpu.dot_dimension_numbers<[1], [0], [0], [1], [0, 0, 1, 1], [], []>} : vector<2x64xf32>, vector<64x4xbf16>, vector<2x4xf32> -> vector<2x4xf32>
    %c0_161 = arith.constant 0 : index
    %c0_162 = arith.constant 0 : index
    %c0_163 = arith.constant 0 : index
    %357 = vector.load %arg22[%c0_161, %c0_162, %c0_163] : memref<1x2x4xf32, #tpu.memory_space<vmem>>, vector<1x2x4xf32>
    %358 = vector.shape_cast %357 : vector<1x2x4xf32> to vector<2x4xf32>
    %359 = vector.shape_cast %356 : vector<2x4xf32> to vector<1x2x4xf32>
    tpu.vector_store %arg22[%c0_161, %c0_162, %c0_163], %359 {strides = array<i32>} : memref<1x2x4xf32, #tpu.memory_space<vmem>>, vector<1x2x4xf32>,
    return
  }
  func.func @transform_0(%arg0: i32) -> (i32, i32, i32) {
    %c0_i32 = arith.constant 0 : i32
    %c0_i32_0 = arith.constant 0 : i32
    %c0_i32_1 = arith.constant 0 : i32
    return %arg0, %c0_i32, %c0_i32_0 : i32, i32, i32
  }
  func.func @transform_1(%arg0: i32) -> (i32, i32, i32) {
    %c0_i32 = arith.constant 0 : i32
    %c0_i32_0 = arith.constant 0 : i32
    %c0_i32_1 = arith.constant 0 : i32
    return %arg0, %c0_i32, %c0_i32_0 : i32, i32, i32
  }
  func.func @transform_2(%arg0: i32) -> (i32, i32, i32) {
    %c0_i32 = arith.constant 0 : i32
    %c0_i32_0 = arith.constant 0 : i32
    %c0_i32_1 = arith.constant 0 : i32
    return %arg0, %c0_i32, %c0_i32_0 : i32, i32, i32
  }
  func.func @transform_3(%arg0: i32) -> (i32, i32, i32) {
    %c0_i32 = arith.constant 0 : i32
    %c0_i32_0 = arith.constant 0 : i32
    %c0_i32_1 = arith.constant 0 : i32
    return %arg0, %c0_i32, %c0_i32_0 : i32, i32, i32
  }
  func.func @transform_4(%arg0: i32) -> (i32, i32, i32) {
    %c0_i32 = arith.constant 0 : i32
    %c0_i32_0 = arith.constant 0 : i32
    %c0_i32_1 = arith.constant 0 : i32
    return %arg0, %c0_i32, %c0_i32_0 : i32, i32, i32
  }
  func.func @transform_5(%arg0: i32) -> (i32, i32) {
    %c0_i32 = arith.constant 0 : i32
    %c0_i32_0 = arith.constant 0 : i32
    %c0_i32_1 = arith.constant 0 : i32
    return %c0_i32, %c0_i32_0 : i32, i32
  }
  func.func @transform_6(%arg0: i32) -> (i32, i32) {
    %c0_i32 = arith.constant 0 : i32
    %c0_i32_0 = arith.constant 0 : i32
    %c0_i32_1 = arith.constant 0 : i32
    return %c0_i32, %c0_i32_0 : i32, i32
  }
  func.func @transform_7(%arg0: i32) -> (i32, i32) {
    %c0_i32 = arith.constant 0 : i32
    %c0_i32_0 = arith.constant 0 : i32
    %c0_i32_1 = arith.constant 0 : i32
    return %c0_i32, %c0_i32_0 : i32, i32
  }
  func.func @transform_8(%arg0: i32) -> (i32, i32) {
    %c0_i32 = arith.constant 0 : i32
    %c0_i32_0 = arith.constant 0 : i32
    %c0_i32_1 = arith.constant 0 : i32
    return %c0_i32, %c0_i32_0 : i32, i32
  }
  func.func @transform_9(%arg0: i32) -> (i32, i32) {
    %c0_i32 = arith.constant 0 : i32
    %c0_i32_0 = arith.constant 0 : i32
    %c0_i32_1 = arith.constant 0 : i32
    return %c0_i32, %c0_i32_0 : i32, i32
  }
  func.func @transform_10(%arg0: i32) -> (i32, i32) {
    %c0_i32 = arith.constant 0 : i32
    %c0_i32_0 = arith.constant 0 : i32
    %c0_i32_1 = arith.constant 0 : i32
    return %c0_i32, %c0_i32_0 : i32, i32
  }
  func.func @transform_11(%arg0: i32) -> (i32, i32) {
    %c0_i32 = arith.constant 0 : i32
    %c0_i32_0 = arith.constant 0 : i32
    %c0_i32_1 = arith.constant 0 : i32
    return %c0_i32, %c0_i32_0 : i32, i32
  }
  func.func @transform_12(%arg0: i32) -> (i32, i32) {
    %c0_i32 = arith.constant 0 : i32
    %c0_i32_0 = arith.constant 0 : i32
    %c0_i32_1 = arith.constant 0 : i32
    return %c0_i32, %c0_i32_0 : i32, i32
  }
  func.func @transform_13(%arg0: i32) -> (i32, i32) {
    %c0_i32 = arith.constant 0 : i32
    %c0_i32_0 = arith.constant 0 : i32
    %c0_i32_1 = arith.constant 0 : i32
    return %c0_i32, %c0_i32_0 : i32, i32
  }
  func.func @transform_14(%arg0: i32) -> (i32, i32) {
    %c0_i32 = arith.constant 0 : i32
    %c0_i32_0 = arith.constant 0 : i32
    %c0_i32_1 = arith.constant 0 : i32
    return %c0_i32, %c0_i32_0 : i32, i32
  }
  func.func @transform_15(%arg0: i32) -> (i32, i32) {
    %c0_i32 = arith.constant 0 : i32
    %c0_i32_0 = arith.constant 0 : i32
    %c0_i32_1 = arith.constant 0 : i32
    return %c0_i32, %c0_i32_0 : i32, i32
  }
  func.func @transform_16(%arg0: i32) -> (i32, i32) {
    %c0_i32 = arith.constant 0 : i32
    %c0_i32_0 = arith.constant 0 : i32
    %c0_i32_1 = arith.constant 0 : i32
    return %c0_i32, %c0_i32_0 : i32, i32
  }
  func.func @transform_17(%arg0: i32) -> (i32, i32) {
    %c0_i32 = arith.constant 0 : i32
    %c0_i32_0 = arith.constant 0 : i32
    %c0_i32_1 = arith.constant 0 : i32
    return %c0_i32, %c0_i32_0 : i32, i32
  }
  func.func @transform_18(%arg0: i32) -> (i32, i32) {
    %c0_i32 = arith.constant 0 : i32
    %c0_i32_0 = arith.constant 0 : i32
    %c0_i32_1 = arith.constant 0 : i32
    return %c0_i32, %c0_i32_0 : i32, i32
  }
  func.func @transform_19(%arg0: i32) -> (i32, i32) {
    %c0_i32 = arith.constant 0 : i32
    %c0_i32_0 = arith.constant 0 : i32
    %c0_i32_1 = arith.constant 0 : i32
    return %c0_i32, %c0_i32_0 : i32, i32
  }
  func.func @transform_20(%arg0: i32) -> (i32, i32, i32) {
    %c0_i32 = arith.constant 0 : i32
    %c0_i32_0 = arith.constant 0 : i32
    %c0_i32_1 = arith.constant 0 : i32
    return %arg0, %c0_i32, %c0_i32_0 : i32, i32, i32
  }
  func.func @transform_21(%arg0: i32) -> (i32, i32, i32) {
    %c0_i32 = arith.constant 0 : i32
    %c0_i32_0 = arith.constant 0 : i32
    %c0_i32_1 = arith.constant 0 : i32
    return %arg0, %c0_i32, %c0_i32_0 : i32, i32, i32
  }
}

</mosaic_0001>

<bundles_post_ra>
// kernel: moc_forward.1
= control target key start
LH: loop header
LB: loop body
LE: loop exit
PB: predicated region body
PF: predicated region fallthrough
CT: control target
= control target key end

     0   :  { %s15987_s0 = inlined_call_operand.vmem [shape: f32[2,16,128], index: 0, kind: input, shape index: {}]   ;;  %s15988_s1 = inlined_call_operand.vmem [shape: f32[2,16,64], index: 1, kind: input, shape index: {}]   ;;  %s15989_s2 = inlined_call_operand.vmem [shape: f32[2,16,64], index: 2, kind: input, shape index: {}]   ;;  %s15990_s3 = inlined_call_operand.vmem [shape: f32[2,256,4], index: 3, kind: input, shape index: {}]   ;;  %s15991_s4 = inlined_call_operand.vmem [shape: f32[2,256,4], index: 4, kind: input, shape index: {}]   ;;  %s15992_s5 = inlined_call_operand.vmem [shape: f32[25,128], index: 5, kind: input, shape index: {}]   ;;  %s15993_s6 = inlined_call_operand.vmem [shape: f32[1,128], index: 6, kind: input, shape index: {}]   ;;  %s15994_s7 = inlined_call_operand.vmem [shape: bf16[128,8], index: 7, kind: input, shape index: {}]   ;;  %s15995_s8 = inlined_call_operand.vmem [shape: bf16[8,128], index: 8, kind: input, shape index: {}]   ;;  %s15996_s9 = inlined_call_operand.vmem [shape: f32[128,64], index: 9, kind: input, shape index: {}]   ;;  %s15997_s10 = inlined_call_operand.vmem [shape: bf16[256,16], index: 10, kind: input, shape index: {}]   ;;  %s15998_s11 = inlined_call_operand.vmem [shape: bf16[256,64], index: 11, kind: input, shape index: {}]   ;;  %s15999_s12 = inlined_call_operand.vmem [shape: f32[64,4], index: 12, kind: input, shape index: {}]   ;;  %s16000_s13 = inlined_call_operand.vmem [shape: f32[256,4], index: 13, kind: input, shape index: {}]   ;;  %s16001_s14 = inlined_call_operand.vmem [shape: bf16[16,64], index: 14, kind: input, shape index: {}]   ;;  %s16002_s15 = inlined_call_operand.vmem [shape: bf16[64,4], index: 15, kind: input, shape index: {}]   ;;  %s16003_s16 = inlined_call_operand.vmem [shape: bf16[16,256], index: 16, kind: input, shape index: {}]   ;;  %s16004_s17 = inlined_call_operand.vmem [shape: bf16[256,128], index: 17, kind: input, shape index: {}]   ;;  %s16005_s18 = inlined_call_operand.vmem [shape: f32[384,64], index: 18, kind: input, shape index: {}]   ;;  %s16006_s19 = inlined_call_operand.vmem [shape: f32[1,64], index: 19, kind: input, shape index: {}]   ;;  %s16007_s20 = inlined_call_operand.vmem [shape: f32[2,16,64], index: 20, kind: output, shape index: {0}]   ;;  %s16008_s21 = inlined_call_operand.vmem [shape: f32[2,2,4], index: 21, kind: output, shape index: {1}]  }
   0x1   :  { %16122 = sst [smem:[#allocation248_spill]] %s15987_s0 }
   0x2   :  { %16123 = sst [smem:[#allocation249_spill]] %s15988_s1 }
   0x3   :  { %16124 = sst [smem:[#allocation250_spill]] %s15989_s2  ;;  %s11073_s2 = smov 0  }
   0x4   :  { %16125 = sst [smem:[#allocation251_spill]] %s15990_s3 }
   0x5   :  { %16126 = sst [smem:[#allocation252_spill]] %s15991_s4 }
   0x6   :  { %16127 = sst [smem:[#allocation253_spill]] %s15992_s5 }
   0x7 LB: > { %16128 = sst [smem:[#allocation3_spill]] %s10950_s2  ;;  %s8794_s25 = sadd.s32 4294967295, %s10950_s2   ;;  %s10950_s2 = sphi %s11073_s2, %s32_s2  }
   0x8   : > { %p8798_p0 = scmp.ge.s32.totalorder %s10950_s2, 1  ;;  %p630_p1 = scmp.lt.s32.totalorder %s10950_s2, 3 }
   0xa   : > { %p631_p2 = pnand %p8798_p0, %p630_p1 }
   0xc   : > { %634 = sbr.rel (%p631_p2) target bundleno = 4970 (0x136a), region = 100 }
  0x13   : > { %s16129_s3 = sld [smem:[#allocation253_spill]]  ;;  %s16010_s28 = smov 112   ;;  %v10956_v7 = vmov 0.0   ;;  %vm801_vm0 = vcmask 1041408   ;;  %vm1012_vm1 = vcmask 1040384   ;;  %vm1358_vm2 = vcmask 1046528  }
  0x14   : > { %s10953_s5 = smov 8   ;;  %s10954_s1 = smov 120   ;;  %755 = vst [vmem:[#allocation2 + $0x18] sm:$0xff] %v10956_v7  ;;  %749 = vst [vmem:[#allocation2] sm:$0xff] %v10956_v7  ;;  %9746 = vmatprep.subr.bf16.mxu0 %v10956_v7  ;;  %9765 = vmatprep.subr.bf16.mxu1 %v10956_v7  ;;  %vm1565_vm3 = vcmask 1045504   ;;  %vm10957_vm4 = vmmov 0  }
  0x15   : > { %s16012_s27 = smov 16   ;;  %p11105_p3 = scmp.lt.s32.totalorder %s8794_s25, 1  ;;  %750 = vst [vmem:[#allocation2 + $0x8] sm:$0xff] %v10956_v7  ;;  %751 = vst [vmem:[#allocation2 + $0x10] sm:$0xff] %v10956_v7  ;;  %vm820_vm5 = vcmask 130048   ;;  %vm866_vm6 = vcmask 64512  }
  0x16   : > { %752 = vst [vmem:[#allocation2 + $0x48] sm:$0xff] %v10956_v7  ;;  %753 = vst [vmem:[#allocation2 + $0x50] sm:$0xff] %v10956_v7  ;;  %s16132_s4 = smov 16   ;;  %s16133_s29 = smov 112   ;;  %vm932_vm7 = vcmask 982016   ;;  %vm978_vm8 = vcmask 916480  }
  0x17   : > { %754 = vst [vmem:[#allocation2 + $0x58] sm:$0xff] %v10956_v7  ;;  %756 = vst [vmem:[#allocation2 + $0x30] sm:$0xff] %v10956_v7  ;;  %s16896_s25 = smov (!%p11105_p3, %s8794_s25), 1  ;;  %vm1859_vm9 = vcmask 1043456   ;;  %vm2637_vm12 = vcmask 523264   ;;  %s16826_s23 = sld [smem:[#allocation252_spill]] }
  0x18   : > { %757 = vst [vmem:[#allocation2 + $0x28] sm:$0xff] %v10956_v7  ;;  %758 = vst [vmem:[#allocation2 + $0x40] sm:$0xff] %v10956_v7  ;;  %s11136_s26 = sshll.u32 %s16896_s25, 4 }
  0x19   : > { %v8813_v0 = vld [vmem:[%s16129_s3] ss:$0 sm:$0xff]  ;;  %v8816_v1 = vld [vmem:[%s16129_s3 + $0x3] ss:$0 sm:$0xff]  ;;  %v8814_v2 = vld [vmem:[%s16129_s3 + $0x1] ss:$0 sm:$0xff] }
  0x1a   : > { %786 = vrot.lane.b32.xlu0 %v8813_v0, %s16010_s28  ;;  %899 = vrot.lane.b32.xlu1 %v8816_v1, %s10953_s5  ;;  %v8817_v3 = vld [vmem:[%s16129_s3 + $0x4] ss:$0 sm:$0xff]  ;;  %v8818_v4 = vld [vmem:[%s16129_s3 + $0x5] ss:$0 sm:$0xff] }
  0x1b   : > { %v8819_v5 = vld [vmem:[%s16129_s3 + $0x6] ss:$0 sm:$0xff]  ;;  %v8821_v6 = vld [vmem:[%s16129_s3 + $0x8] ss:$0 sm:$0xff]  ;;  %v8822_v8 = vld [vmem:[%s16129_s3 + $0x9] ss:$0 sm:$0xff] }
  0x1c   : > { %v8823_v9 = vld [vmem:[%s16129_s3 + $0xa] ss:$0 sm:$0xff]  ;;  %v8824_v12 = vld [vmem:[%s16129_s3 + $0xb] ss:$0 sm:$0xff]  ;;  %v8826_v13 = vld [vmem:[%s16129_s3 + $0xd] ss:$0 sm:$0xff] }
  0x1d   : > { %v8828_v14 = vld [vmem:[%s16129_s3 + $0xf] ss:$0 sm:$0xff]  ;;  %v8827_v15 = vld [vmem:[%s16129_s3 + $0xe] ss:$0 sm:$0xff]  ;;  %v8829_v16 = vld [vmem:[%s16129_s3 + $0x10] ss:$0 sm:$0xff] }
  0x1e   : > { %833 = vrot.lane.b32.xlu0 %v8814_v2, %s10954_s1  ;;  %945 = vrot.lane.b32.xlu1 %v8817_v3, %s16012_s27  ;;  %v8831_v17 = vld [vmem:[%s16129_s3 + $0x12] ss:$0 sm:$0xff]  ;;  %v8832_v18 = vld [vmem:[%s16129_s3 + $0x13] ss:$0 sm:$0xff]  ;;  %v771_v38 = vld [vmem:[#allocation2] sm:$0xc0] }
  0x1f   : > { %v8833_v19 = vld [vmem:[%s16129_s3 + $0x14] ss:$0 sm:$0xff]  ;;  %v8834_v20 = vld [vmem:[%s16129_s3 + $0x15] ss:$0 sm:$0xff]  ;;  %v8836_v21 = vld [vmem:[%s16129_s3 + $0x17] ss:$0 sm:$0xff] }
  0x20   : > { %v8837_v22 = vld [vmem:[%s16129_s3 + $0x18] ss:$0 sm:$0xff]  ;;  %v11219_v39 = vld [vmem:[#allocation2 + $0x8] sm:$0xc0]  ;;  %v777_v46 = vld [vmem:[#allocation2 + $0x30] sm:$0x3f] }
  0x22   : > { %997 = vrot.lane.b32.xlu0 %v8818_v4, %s16010_s28  ;;  %1043 = vrot.lane.b32.xlu1 %v8819_v5, %s10954_s1  ;;  %s16131_s28 = sld [smem:[#allocation248_spill]] }
  0x26   : > { %1108 = vrot.lane.b32.xlu0 %v8821_v6, %s10953_s5  ;;  %1153 = vrot.lane.b32.xlu1 %v8822_v8, %s16132_s4 }
  0x28   : > { %s718_s27 = scalar_lea.vmem %s16131_s28, %s11136_s26 }
  0x29   : > { %v11146_v10 = vld [vmem:[%s718_s27] sm:$0xff]  ;;  %v11148_v11 = vld [vmem:[%s718_s27 + $0x8] sm:$0xff]  ;;  %s10962_s27 = smov 4  }
  0x2a   : > { %761 = vst [vmem:[#allocation2 + $0x20] sm:$0xff] %v11146_v10  ;;  %762 = vst [vmem:[#allocation2 + $0x38] sm:$0xff] %v11148_v11  ;;  %1201 = vrot.lane.b32.xlu0 %v8823_v9, %s16133_s29  ;;  %1232 = vrot.lane.b32.xlu1 %v8824_v12, %s10954_s1  ;;  %v773_v9 = vld [vmem:[#allocation2 + $0x10] sm:$0xc0] }
  0x2e   : > { %1272 = vrot.lane.b32.xlu0 %v8826_v13, %s10953_s5  ;;  %1343 = vrot.lane.b32.xlu1 %v8828_v14, %s16133_s29 }
  0x31   : > { %v11226_v47 = vld [vmem:[#allocation2 + $0x38] sm:$0x3f] }
  0x32   : > { %1303 = vrot.lane.b32.xlu0 %v8827_v15, %s16132_s4  ;;  %1389 = vrot.lane.b32.xlu1 %v8829_v16, %s10954_s1 }
  0x36   : > { %1454 = vrot.lane.b32.xlu0 %v8831_v17, %s10953_s5  ;;  %1499 = vrot.lane.b32.xlu1 %v8832_v18, %s16132_s4 }
  0x3a   : > { %1550 = vrot.lane.b32.xlu0 %v8833_v19, %s16133_s29  ;;  %1596 = vrot.lane.b32.xlu1 %v8834_v20, %s10954_s1  ;;  %v779_v20 = vld [vmem:[#allocation2 + $0x40] sm:$0x3f] }
  0x3e   : > { %1661 = vrot.lane.b32.xlu0 %v8836_v21, %s10953_s5  ;;  %1706 = vrot.lane.b32.xlu1 %v8837_v22, %s16132_s4 }
  0x8c   : > { %v787_v23 = vpop.permute.xlu0 %786  ;;  %v11198_v24 = vpop.permute.xlu1 %899 }
  0x8d   : > { %v789_v42 = vmul.f32 %v787_v23, %v771_v38  ;;  %v791_v43 = vmul.f32 0.0, %v787_v23  ;;  %v790_v44 = vmul.f32 %v787_v23, %v11219_v39  ;;  %v792_v45 = vmul.f32 %v787_v23, %v11146_v10 }
  0x8e   : > { %v793_v50 = vmul.f32 %v787_v23, %v777_v46  ;;  %v794_v51 = vmul.f32 %v787_v23, %v11226_v47  ;;  %v902_v13 = vmul.f32 %v11198_v24, %v11219_v39  ;;  %v904_v14 = vmul.f32 %v11198_v24, %v11146_v10 }
  0x8f   : > { %v802_v52 = vrot.slane %v789_v42, 6  ;;  %v803_v53 = vrot.slane %v791_v43, 6  ;;  %v805_v54 = vrot.slane %v790_v44, 6  ;;  %v806_v55 = vrot.slane %v792_v45, 6 }
  0x90   : > { %v834_v25 = vpop.permute.xlu0 %833  ;;  %v11200_v26 = vpop.permute.xlu1 %945  ;;  %v808_v56 = vrot.slane %v793_v50, 6  ;;  %v810_v57 = vrot.slane %v794_v51, 6  ;;  %v903_v15 = vmul.f32 %v11198_v24, %v773_v9  ;;  %v905_v19 = vmul.f32 0.0, %v11198_v24  ;;  %v985_v50 = vld [vmem:[#allocation2] sm:$0x80] }
  0x91   : > { %v836_v58 = vmul.f32 %v834_v25, %v771_v38  ;;  %v838_v59 = vmul.f32 0.0, %v834_v25  ;;  %v804_v60 = vsel %vm801_vm0, %v802_v52, %v803_v53  ;;  %v807_v61 = vsel %vm801_vm0, %v805_v54, %v806_v55 }
  0x92   : > { %v837_v62 = vmul.f32 %v834_v25, %v11219_v39  ;;  %v839_v63 = vmul.f32 %v834_v25, %v11146_v10  ;;  %v809_v0 = vsel %vm801_vm0, %v803_v53, %v808_v56  ;;  %v811_v1 = vsel %vm801_vm0, %v806_v55, %v810_v57  ;;  %v11282_v55 = vld [vmem:[#allocation2 + $0x8] sm:$0x80] }
  0x93   : > { %v848_v2 = vrot.slane %v836_v58, 6  ;;  %v849_v3 = vrot.slane %v838_v59, 6  ;;  %v840_v6 = vmul.f32 %v834_v25, %v777_v46  ;;  %v841_v8 = vmul.f32 %v834_v25, %v11226_v47 }
  0x94   : > { %v11202_v27 = vpop.permute.xlu0 %997  ;;  %v11204_v28 = vpop.permute.xlu1 %1043  ;;  %v851_v4 = vrot.slane %v837_v62, 6  ;;  %v852_v5 = vrot.slane %v839_v63, 6  ;;  %v914_v21 = vrot.slane %v902_v13, 6  ;;  %v915_v22 = vrot.slane %v904_v14, 6  ;;  %v988_v63 = vld [vmem:[#allocation2 + $0x30] sm:$0x7f] }
  0x95   : > { %v850_v12 = vsel %vm801_vm0, %v848_v2, %v849_v3  ;;  %v854_v17 = vrot.slane %v840_v6, 6  ;;  %v856_v18 = vrot.slane %v841_v8, 6  ;;  %v906_v23 = vmul.f32 %v11198_v24, %v11226_v47 }
  0x96   : > { %v853_v16 = vsel %vm801_vm0, %v851_v4, %v852_v5  ;;  %v907_v25 = vmul.f32 %v11198_v24, %v779_v20  ;;  %v948_v38 = vmul.f32 %v11200_v26, %v11219_v39  ;;  %v950_v24 = vmul.f32 %v11200_v26, %v11146_v10 }
  0x97   : > { %v949_v42 = vmul.f32 %v11200_v26, %v773_v9  ;;  %v951_v43 = vmul.f32 0.0, %v11200_v26  ;;  %v953_v54 = vmul.f32 %v11200_v26, %v779_v20  ;;  %v1000_v56 = vmul.f32 %v11202_v27, %v985_v50 }
  0x98   : > { %v11206_v29 = vpop.permute.xlu0 %1108  ;;  %v11208_v30 = vpop.permute.xlu1 %1153  ;;  %v960_v46 = vrot.slane %v948_v38, 6  ;;  %v961_v51 = vrot.slane %v950_v24, 6  ;;  %v1002_v57 = vmul.f32 0.0, %v11202_v27  ;;  %v1001_v58 = vmul.f32 %v11202_v27, %v11282_v55 }
  0x99   : > { %v963_v52 = vrot.slane %v949_v42, 6  ;;  %v964_v53 = vrot.slane %v951_v43, 6  ;;  %v1003_v59 = vmul.f32 %v11202_v27, %v11146_v10  ;;  %v968_v62 = vrot.slane %v953_v54, 6  ;;  %v990_v42 = vld [vmem:[#allocation2 + $0x40] sm:$0x7f] }
  0x9a   : > { %v1014_v2 = vrot.slane %v1002_v57, 7  ;;  %v1004_v8 = vmul.f32 %v11202_v27, %v988_v63  ;;  %v1046_v14 = vmul.f32 %v11204_v28, %v985_v50  ;;  %v1113_v38 = vmul.f32 %v11206_v29, %v11146_v10 }
  0x9b   : > { %v1017_v4 = vrot.slane %v1003_v59, 7  ;;  %v969_v6 = vsel %vm801_vm0, %v964_v53, %v968_v62  ;;  %v1114_v24 = vmul.f32 0.0, %v11206_v29  ;;  %v1156_v54 = vmul.f32 %v11208_v30, %v11282_v55 }
  0x9c   : > { %v1202_v31 = vpop.permute.xlu0 %1201  ;;  %v1233_v34 = vpop.permute.xlu1 %1232 }
  0x9d   : > { %v1204_v32 = vmul.f32 0.0, %v1202_v31  ;;  %v1205_v33 = vmul.f32 %v1202_v31, %v11146_v10  ;;  %v1207_v35 = vmul.f32 %v1202_v31, %v11148_v11  ;;  %v1235_v36 = vmul.f32 0.0, %v1233_v34 }
  0x9e   : > { %v1236_v37 = vmul.f32 %v1233_v34, %v11146_v10  ;;  %v1238_v41 = vmul.f32 %v1233_v34, %v11148_v11  ;;  %v855_v31 = vsel %vm801_vm0, %v849_v3, %v854_v17  ;;  %v918_v34 = vrot.slane %v905_v19, 6 }
  0x9f   : > { %1212 = vrot.lane.b32.xlu0 %v1204_v32, %s16132_s4  ;;  %1214 = vrot.lane.b32.xlu1 %v1205_v33, %s16132_s4  ;;  %v917_v33 = vrot.slane %v903_v15, 6  ;;  %v1016_v3 = vrot.slane %v1001_v58, 7  ;;  %v1048_v15 = vmul.f32 0.0, %v11204_v28  ;;  %v1058_v19 = vrot.slane %v1046_v14, 7 }
  0xa0   : > { %v11221_v40 = vpop.permute.xlu0 %1272  ;;  %v1344_v14 = vpop.permute.xlu1 %1343 }
  0xa1   : > { %v1275_v48 = vmul.f32 %v11221_v40, %v11146_v10  ;;  %v11233_v49 = vmul.f32 0.0, %v11221_v40  ;;  %v1018_v13 = vsel %vm1012_vm1, %v1016_v3, %v1017_v4  ;;  %v1059_v20 = vrot.slane %v1048_v15, 7  ;;  %v1328_v15 = vld [vmem:[#allocation2 + $0x18] sm:$0xfe] }
  0xa3   : > { %1216 = vrot.lane.b32.xlu0 %v1204_v32, %s16132_s4  ;;  %1218 = vrot.lane.b32.xlu1 %v1207_v35, %s16132_s4  ;;  %v857_v32 = vsel %vm801_vm0, %v852_v5, %v856_v18  ;;  %v916_v35 = vsel %vm801_vm0, %v914_v21, %v915_v22  ;;  %v1047_v18 = vmul.f32 %v11204_v28, %v11282_v55 }
  0xa4   : > { %v1050_v21 = vmul.f32 %v11204_v28, %v988_v63 }
  0xa7   : > { %1243 = vrot.lane.b32.xlu0 %v1235_v36, %s10953_s5  ;;  %1245 = vrot.lane.b32.xlu1 %v1236_v37, %s10953_s5  ;;  %v922_v37 = vrot.slane %v907_v25, 6 }
  0xa9   : > { %v923_v45 = vsel %vm801_vm0, %v918_v34, %v922_v37  ;;  %v1111_v37 = vmul.f32 %v11206_v29, %v11282_v55 }
  0xab   : > { %1247 = vrot.lane.b32.xlu0 %v1235_v36, %s10953_s5  ;;  %1249 = vrot.lane.b32.xlu1 %v1238_v41, %s10953_s5  ;;  %v920_v36 = vrot.slane %v906_v23, 6  ;;  %v919_v41 = vsel %vm801_vm0, %v917_v33, %v918_v34  ;;  %v987_v33 = vld [vmem:[#allocation2 + $0x10] sm:$0x80]  ;;  %v1060_v34 = vsel %vm1012_vm1, %v1058_v19, %v1059_v20  ;;  %v1346_v19 = vmul.f32 %v1344_v14, %v1328_v15 }
  0xac   : > { %v1157_v57 = vmul.f32 %v11208_v30, %v987_v33 }
  0xad   : > { %v921_v44 = vsel %vm801_vm0, %v915_v22, %v920_v36 }
  0xae   : > { %v1171_v63 = vrot.slane %v1157_v57, 7  ;;  %v1330_v57 = vld [vmem:[#allocation2 + $0x28] sm:$0xfe] }
  0xaf   : > { %1283 = vrot.lane.b32.xlu0 %v1275_v48, %s10954_s1  ;;  %1285 = vrot.lane.b32.xlu1 %v11233_v49, %s10954_s1  ;;  %v952_v48 = vmul.f32 %v11200_v26, %v11226_v47  ;;  %v965_v26 = vsel %vm801_vm0, %v963_v52, %v964_v53  ;;  %v1116_v52 = vmul.f32 %v11206_v29, %v990_v42 }
  0xb3   : > { %812 = vrot.lane.b32.xlu0 %v804_v60, %s16132_s4  ;;  %814 = vrot.lane.b32.xlu1 %v807_v61, %s16132_s4  ;;  %v962_v60 = vsel %vm801_vm0, %v960_v46, %v961_v51  ;;  %v966_v61 = vrot.slane %v952_v48, 6  ;;  %v1124_v48 = vrot.slane %v1113_v38, 7 }
  0xb5   : > { %v967_v5 = vsel %vm801_vm0, %v961_v51, %v966_v61  ;;  %v1127_v51 = vrot.slane %v1114_v24, 7  ;;  %v1168_v61 = vrot.slane %v1156_v54, 7 }
  0xb7   : > { %816 = vrot.lane.b32.xlu0 %v809_v0, %s16132_s4  ;;  %818 = vrot.lane.b32.xlu1 %v811_v1, %s16132_s4  ;;  %v11296_v0 = vld [vmem:[#allocation2 + $0x38] sm:$0x7f]  ;;  %v1013_v1 = vrot.slane %v1000_v56, 7  ;;  %v1158_v56 = vmul.f32 %v11208_v30, %v11146_v10 }
  0xb8   : > { %v1005_v9 = vmul.f32 %v11202_v27, %v11296_v0  ;;  %v1049_v27 = vmul.f32 %v11204_v28, %v11146_v10  ;;  %v1051_v22 = vmul.f32 %v11204_v28, %v11296_v0  ;;  %v1115_v46 = vmul.f32 %v11206_v29, %v11296_v0 }
  0xb9   : > { %v1169_v62 = vrot.slane %v1158_v56, 7  ;;  %v1160_v3 = vmul.f32 %v11208_v30, %v11296_v0 }
  0xba   : > { %v1021_v17 = vrot.slane %v1005_v9, 7  ;;  %v1066_v36 = vrot.slane %v1051_v22, 7  ;;  %v1129_v53 = vrot.slane %v1115_v46, 7  ;;  %v1349_v22 = vmul.f32 %v1344_v14, %v11148_v11 }
  0xbb   : > { %858 = vrot.lane.b32.xlu0 %v850_v12, %s10953_s5  ;;  %860 = vrot.lane.b32.xlu1 %v853_v16, %s10953_s5  ;;  %v1015_v12 = vsel %vm1012_vm1, %v1013_v1, %v1014_v2  ;;  %v1019_v16 = vrot.slane %v1004_v8, 7  ;;  %v1174_v8 = vrot.slane %v1160_v3, 7  ;;  %v1336_v3 = vld [vmem:[#allocation2 + $0x58] sm:$0x1] }
  0xbc   : > { %v1022_v25 = vsel %vm1012_vm1, %v1017_v4, %v1021_v17  ;;  %v1161_v4 = vmul.f32 %v11208_v30, %v990_v42  ;;  %v11366_v17 = vld [vmem:[#allocation2 + $0x20] sm:$0xfe] }
  0xbd   : > { %v1020_v23 = vsel %vm1012_vm1, %v1014_v2, %v1019_v16  ;;  %v1277_v16 = vmul.f32 %v11221_v40, %v11148_v11  ;;  %v1359_v40 = vrot.slane %v1346_v19, 1 }
  0xbe   : > { %v1176_v9 = vrot.slane %v1161_v4, 7 }
  0xbf   : > { %862 = vrot.lane.b32.xlu0 %v855_v31, %s10953_s5  ;;  %864 = vrot.lane.b32.xlu1 %v857_v32, %s10953_s5  ;;  %v1061_v31 = vrot.slane %v1047_v18, 7  ;;  %v1062_v32 = vrot.slane %v1049_v27, 7 }
  0xc1   : > { %v1063_v28 = vsel %vm1012_vm1, %v1061_v31, %v1062_v32 }
  0xc3   : > { %924 = vrot.lane.b32.xlu0 %v916_v35, %s10954_s1  ;;  %926 = vrot.lane.b32.xlu1 %v919_v41, %s10954_s1  ;;  %v1064_v35 = vrot.slane %v1050_v21, 7  ;;  %v1112_v41 = vmul.f32 %v11206_v29, %v987_v33  ;;  %v1159_v29 = vmul.f32 0.0, %v11208_v30  ;;  %v1304_v30 = vpop.permute.xlu0 %1303  ;;  %v1347_v21 = vmul.f32 %v1344_v14, %v11366_v17 }
  0xc4   : > { %v1306_v18 = vmul.f32 %v1304_v30, %v11146_v10  ;;  %v1307_v27 = vmul.f32 0.0, %v1304_v30  ;;  %v11376_v10 = vld [vmem:[#allocation2 + $0x50] sm:$0x1]  ;;  %v1308_v33 = vmul.f32 %v1304_v30, %v11148_v11 }
  0xc5   : > { %v1065_v43 = vsel %vm1012_vm1, %v1059_v20, %v1064_v35  ;;  %v1126_v50 = vrot.slane %v1112_v41, 7  ;;  %v1172_v2 = vrot.slane %v1159_v29, 7  ;;  %v1348_v20 = vmul.f32 0.0, %v1344_v14 }
  0xc6   : > { %v1362_v31 = vrot.slane %v1347_v21, 1  ;;  %v1351_v35 = vmul.f32 %v1344_v14, %v11376_v10 }
  0xc7   : > { %928 = vrot.lane.b32.xlu0 %v921_v44, %s10954_s1  ;;  %930 = vrot.lane.b32.xlu1 %v923_v45, %s10954_s1  ;;  %v1067_v44 = vsel %vm1012_vm1, %v1062_v32, %v1066_v36  ;;  %v1123_v45 = vrot.slane %v1111_v37, 7  ;;  %v1128_v59 = vsel %vm1012_vm1, %v1126_v50, %v1127_v51  ;;  %v1363_v32 = vrot.slane %v1349_v22, 1 }
  0xc9   : > { %v1125_v58 = vsel %vm1012_vm1, %v1123_v45, %v1124_v48  ;;  %v1455_v45 = vpop.permute.xlu0 %1454 }
  0xca   : > { %v1462_v30 = vmul.f32 %v1455_v45, %v1336_v3 }
  0xcb   : > { %970 = vrot.lane.b32.xlu0 %v962_v60, %s16133_s29  ;;  %972 = vrot.lane.b32.xlu1 %v965_v26, %s16133_s29  ;;  %v1131_v60 = vrot.slane %v1116_v52, 7  ;;  %v1130_v26 = vsel %vm1012_vm1, %v1124_v48, %v1129_v53 }
  0xcc   : > { %v1477_v21 = vrot.slane %v1462_v30, 1  ;;  %v11473_v30 = vld [vmem:[%s15994_s7] sm:$0xff]  }
  0xcd   : > { %v1132_v1 = vsel %vm1012_vm1, %v1127_v51, %v1131_v60  ;;  %v11397_v29 = vpop.permute.xlu0 %1550  ;;  %9747 = vmatpush3.bf16.msra.mxu0 %v11473_v30 }
  0xce   : > { %9748 = vmatprep.subr.bf16.mxu0 %v10956_v7 }
  0xcf   : > { %974 = vrot.lane.b32.xlu0 %v967_v5, %s16133_s29  ;;  %976 = vrot.lane.b32.xlu1 %v969_v6, %s16133_s29  ;;  %v1170_v5 = vsel %vm1012_vm1, %v1168_v61, %v1169_v62  ;;  %v1173_v6 = vsel %vm1012_vm1, %v1171_v63, %v1172_v2  ;;  %v1459_v61 = vmul.f32 %v1455_v45, %v11148_v11  ;;  %v1460_v63 = vmul.f32 0.0, %v1455_v45 }
  0xd3   : > { %1023 = vrot.lane.b32.xlu0 %v1015_v12, %s16132_s4  ;;  %1025 = vrot.lane.b32.xlu1 %v1018_v13, %s16132_s4  ;;  %v1175_v12 = vsel %vm1012_vm1, %v1169_v62, %v1174_v8  ;;  %v1177_v13 = vsel %vm1012_vm1, %v1172_v2, %v1176_v9  ;;  %v1458_v62 = vmul.f32 %v1455_v45, %v1330_v57  ;;  %v1473_v8 = vrot.slane %v1460_v63, 1 }
  0xd7   : > { %1027 = vrot.lane.b32.xlu0 %v1020_v23, %s16132_s4  ;;  %1029 = vrot.lane.b32.xlu1 %v1022_v25, %s16132_s4  ;;  %v1360_v23 = vrot.slane %v1348_v20, 1  ;;  %v1334_v25 = vld [vmem:[#allocation2 + $0x48] sm:$0x1] }
  0xd9   : > { %v1361_v36 = vsel %vm1358_vm2, %v1359_v40, %v1360_v23 }
  0xdb   : > { %1068 = vrot.lane.b32.xlu0 %v1060_v34, %s10953_s5  ;;  %1070 = vrot.lane.b32.xlu1 %v1063_v28, %s10953_s5  ;;  %v1350_v34 = vmul.f32 %v1344_v14, %v1334_v25  ;;  %v1364_v28 = vsel %vm1358_vm2, %v1362_v31, %v1363_v32 }
  0xdd   : > { %v1365_v42 = vrot.slane %v1350_v34, 1 }
  0xdf   : > { %1072 = vrot.lane.b32.xlu0 %v1065_v43, %s10953_s5  ;;  %1074 = vrot.lane.b32.xlu1 %v1067_v44, %s10953_s5  ;;  %v1367_v43 = vrot.slane %v1351_v35, 1  ;;  %v1366_v52 = vsel %vm1358_vm2, %v1360_v23, %v1365_v42  ;;  %v1478_v35 = vsel %vm1358_vm2, %v1473_v8, %v1477_v21 }
  0xe1   : > { %v1368_v53 = vsel %vm1358_vm2, %v1363_v32, %v1367_v43 }
  0xe3   : > { %1133 = vrot.lane.b32.xlu0 %v1125_v58, %s10954_s1  ;;  %1135 = vrot.lane.b32.xlu1 %v1128_v59, %s10954_s1 }
  0xe7   : > { %1137 = vrot.lane.b32.xlu0 %v1130_v26, %s10954_s1  ;;  %1139 = vrot.lane.b32.xlu1 %v1132_v1, %s10954_s1  ;;  %v1457_v26 = vmul.f32 %v1455_v45, %v11366_v17 }
  0xe9   : > { %v1469_v4 = vrot.slane %v1457_v26, 1 }
  0xeb   : > { %1178 = vrot.lane.b32.xlu0 %v1170_v5, %s16133_s29  ;;  %1180 = vrot.lane.b32.xlu1 %v1173_v6, %s16133_s29  ;;  %v1470_v5 = vrot.slane %v1459_v61, 1  ;;  %v1472_v6 = vrot.slane %v1458_v62, 1 }
  0xef   : > { %1182 = vrot.lane.b32.xlu0 %v1175_v12, %s16133_s29  ;;  %1184 = vrot.lane.b32.xlu1 %v1177_v13, %s16133_s29  ;;  %v1461_v13 = vmul.f32 %v1455_v45, %v11376_v10  ;;  %v1555_v45 = vmul.f32 0.0, %v11397_v29 }
  0xf1   : > { %v1475_v20 = vrot.slane %v1461_v13, 1  ;;  %v1567_v26 = vrot.slane %v1555_v45, 2 }
  0xf3   : > { %1287 = vrot.lane.b32.xlu0 %v1277_v16, %s10954_s1  ;;  %1289 = vrot.lane.b32.xlu1 %v11233_v49, %s10954_s1  ;;  %v1390_v49 = vpop.permute.xlu1 %1389  ;;  %v1471_v16 = vsel %vm1358_vm2, %v1469_v4, %v1470_v5  ;;  %v1476_v34 = vsel %vm1358_vm2, %v1470_v5, %v1475_v20 }
  0xf4   : > { %v1392_v37 = vmul.f32 %v1390_v49, %v1328_v15  ;;  %v1394_v38 = vmul.f32 0.0, %v1390_v49  ;;  %v1393_v41 = vmul.f32 %v1390_v49, %v11366_v17  ;;  %v1395_v24 = vmul.f32 %v1390_v49, %v11148_v11  ;;  %v11410_v15 = vpop.permute.xlu0 %1661 }
  0xf5   : > { %v1396_v54 = vmul.f32 %v1390_v49, %v1334_v25  ;;  %v1397_v56 = vmul.f32 %v1390_v49, %v11376_v10  ;;  %v1667_v45 = vmul.f32 0.0, %v11410_v15 }
  0xf6   : > { %v1404_v46 = vrot.slane %v1392_v37, 1  ;;  %v1405_v48 = vrot.slane %v1394_v38, 1  ;;  %v1407_v50 = vrot.slane %v1393_v41, 1  ;;  %v1408_v51 = vrot.slane %v1395_v24, 1  ;;  %v11427_v38 = vld [vmem:[#allocation2 + $0x20] sm:$0xfc] }
  0xf7   : > { %1314 = vrot.lane.b32.xlu0 %v1306_v18, %s16133_s29  ;;  %1316 = vrot.lane.b32.xlu1 %v1307_v27, %s16133_s29  ;;  %v1500_v44 = vpop.permute.xlu1 %1499  ;;  %v1410_v1 = vrot.slane %v1396_v54, 1  ;;  %v1412_v2 = vrot.slane %v1397_v56, 1  ;;  %v1474_v18 = vsel %vm1358_vm2, %v1472_v6, %v1473_v8 }
  0xf8   : > { %v1406_v58 = vsel %vm1358_vm2, %v1404_v46, %v1405_v48  ;;  %v1409_v59 = vsel %vm1358_vm2, %v1407_v50, %v1408_v51  ;;  %v1504_v19 = vmul.f32 %v1500_v44, %v11148_v11  ;;  %v1503_v22 = vmul.f32 %v1500_v44, %v1330_v57 }
  0xf9   : > { %v1411_v9 = vsel %vm1358_vm2, %v1405_v48, %v1410_v1  ;;  %v1413_v12 = vsel %vm1358_vm2, %v1408_v51, %v1412_v2  ;;  %v1505_v40 = vmul.f32 0.0, %v1500_v44  ;;  %v1506_v49 = vmul.f32 %v1500_v44, %v11376_v10 }
  0xfa   : > { %v1515_v32 = vrot.slane %v1504_v19, 1  ;;  %v1554_v50 = vmul.f32 %v11397_v29, %v11427_v38  ;;  %v1556_v51 = vmul.f32 %v11397_v29, %v11148_v11 }
  0xfb   : > { %1318 = vrot.lane.b32.xlu0 %v1308_v33, %s16133_s29  ;;  %1320 = vrot.lane.b32.xlu1 %v1307_v27, %s16133_s29  ;;  %v11395_v60 = vpop.permute.xlu1 %1596  ;;  %v1502_v27 = vmul.f32 %v1500_v44, %v11366_v17  ;;  %v1507_v33 = vmul.f32 %v1500_v44, %v1336_v3  ;;  %v1518_v37 = vrot.slane %v1505_v40, 1  ;;  %v1520_v42 = vrot.slane %v1506_v49, 1  ;;  %v1540_v49 = vld [vmem:[#allocation2 + $0x28] sm:$0xfc] }
  0xfc   : > { %v1569_v61 = vrot.slane %v1554_v50, 2  ;;  %v1570_v62 = vrot.slane %v1556_v51, 2  ;;  %v1601_v5 = vmul.f32 0.0, %v11395_v60  ;;  %v1600_v6 = vmul.f32 %v11395_v60, %v11427_v38 }
  0xfd   : > { %v1514_v31 = vrot.slane %v1502_v27, 1  ;;  %v1522_v43 = vrot.slane %v1507_v33, 1  ;;  %v1521_v57 = vsel %vm1358_vm2, %v1515_v32, %v1520_v42  ;;  %v1602_v8 = vmul.f32 %v11395_v60, %v11148_v11  ;;  %v11491_v33 = vld [vmem:[%s15994_s7 + $0x8] sm:$0xff]  }
  0xfe   : > { %v1612_v19 = vrot.slane %v1601_v5, 2  ;;  %v1614_v20 = vrot.slane %v1600_v6, 2  ;;  %9749 = vmatpush3.bf16.msra.mxu0 %v11491_v33 }
  0xff   : > { %1369 = vrot.lane.b32.xlu0 %v1361_v36, %s16132_s4  ;;  %1371 = vrot.lane.b32.xlu1 %v1364_v28, %s16132_s4  ;;  %v11408_v14 = vpop.permute.xlu1 %1706  ;;  %v1517_v36 = vrot.slane %v1503_v22, 1  ;;  %v1538_v28 = vld [vmem:[#allocation2 + $0x18] sm:$0xfc]  ;;  %v1516_v46 = vsel %vm1358_vm2, %v1514_v31, %v1515_v32  ;;  %v1615_v21 = vrot.slane %v1602_v8, 2 }
 0x100   : > { %v1553_v44 = vmul.f32 %v11397_v29, %v1538_v28  ;;  %v1599_v2 = vmul.f32 %v11395_v60, %v1538_v28  ;;  %v1664_v28 = vmul.f32 %v11410_v15, %v11427_v38  ;;  %9750 = vmatprep.subr.bf16.mxu0 %v10956_v7  ;;  %v1709_v8 = vmul.f32 %v11408_v14, %v11427_v38 }
 0x101   : > { %v1519_v48 = vsel %vm1358_vm2, %v1517_v36, %v1518_v37 }
 0x103   : > { %1373 = vrot.lane.b32.xlu0 %v1366_v52, %s16132_s4  ;;  %1375 = vrot.lane.b32.xlu1 %v1368_v53, %s16132_s4  ;;  %v1541_v52 = vld [vmem:[#allocation2 + $0x48] sm:$0x3]  ;;  %v11443_v53 = vld [vmem:[#allocation2 + $0x50] sm:$0x3] }
 0x104   : > { %v1557_v63 = vmul.f32 %v11397_v29, %v1541_v52  ;;  %v1558_v1 = vmul.f32 %v11397_v29, %v11443_v53  ;;  %v1603_v22 = vmul.f32 %v11395_v60, %v1541_v52  ;;  %v1604_v32 = vmul.f32 %v11395_v60, %v11443_v53 }
 0x105   : > { %v1616_v60 = vsel %vm1565_vm3, %v1614_v20, %v1615_v21 }
 0x106   : > { %v1574_v13 = vrot.slane %v1558_v1, 2  ;;  %v1619_v42 = vrot.slane %v1604_v32, 2  ;;  %v11530_v1 = vld [vmem:[%s15994_s7 + $0x18] sm:$0xff]  }
 0x107   : > { %1414 = vrot.lane.b32.xlu0 %v1406_v58, %s10953_s5  ;;  %1416 = vrot.lane.b32.xlu1 %v1409_v59, %s10953_s5  ;;  %v1523_v58 = vsel %vm1358_vm2, %v1518_v37, %v1522_v43  ;;  %v1566_v59 = vrot.slane %v1553_v44, 2  ;;  %v1617_v37 = vrot.slane %v1603_v22, 2  ;;  %v1666_v43 = vmul.f32 %v11410_v15, %v11148_v11  ;;  %16134 = vst [vmem:[#allocation4_spill] sm:$0xff] %v11530_v1 }
 0x108   : > { %v1575_v31 = vsel %vm1565_vm3, %v1570_v62, %v1574_v13  ;;  %v1665_v44 = vmul.f32 %v11410_v15, %v1540_v49  ;;  %v11540_v13 = vld [vmem:[#allocation2 + $0x18] sm:$0xff]  ;;  %v1721_v22 = vrot.slane %v1709_v8, 2 }
 0x109   : > { %v1568_v29 = vsel %vm1565_vm3, %v1566_v59, %v1567_v26  ;;  %v1618_v52 = vsel %vm1565_vm3, %v1612_v19, %v1617_v37  ;;  %9762 = vmatprep.mubr.msk.f32.mxu0 %vm10957_vm4, %v11540_v13  ;;  %9767 = vmatprep.mubr.msk.f32.mxu1 %vm10957_vm4, %v11540_v13 }
 0x10b   : > { %1418 = vrot.lane.b32.xlu0 %v1411_v9, %s10953_s5  ;;  %1420 = vrot.lane.b32.xlu1 %v1413_v12, %s10953_s5  ;;  %v1571_v9 = vsel %vm1565_vm3, %v1569_v61, %v1570_v62  ;;  %v1572_v12 = vrot.slane %v1557_v63, 2  ;;  %v1677_v61 = vrot.slane %v1666_v43, 2  ;;  %v1679_v62 = vrot.slane %v1665_v44, 2 }
 0x10c   : > { %v1680_v63 = vrot.slane %v1667_v45, 2 }
 0x10d   : > { %v1573_v40 = vsel %vm1565_vm3, %v1567_v26, %v1572_v12  ;;  %v1620_v26 = vsel %vm1565_vm3, %v1615_v21, %v1619_v42  ;;  %v1710_v12 = vmul.f32 %v11408_v14, %v1540_v49  ;;  %v1713_v49 = vmul.f32 %v11408_v14, %v11443_v53 }
 0x10f   : > { %1479 = vrot.lane.b32.xlu0 %v1471_v16, %s10954_s1  ;;  %1481 = vrot.lane.b32.xlu1 %v1474_v18, %s10954_s1  ;;  %v1611_v16 = vrot.slane %v1599_v2, 2  ;;  %v1727_v44 = vrot.slane %v1713_v49, 2 }
 0x111   : > { %v11418_v23 = vpop.permute.xlu0 %1212  ;;  %v11420_v25 = vpop.permute.xlu1 %1214  ;;  %v1613_v36 = vsel %vm1565_vm3, %v1611_v16, %v1612_v19  ;;  %v1712_v16 = vmul.f32 %v11540_v13, %v11408_v14 }
 0x113   : > { %1483 = vrot.lane.b32.xlu0 %v1476_v34, %s10954_s1  ;;  %1485 = vrot.lane.b32.xlu1 %v1478_v35, %s10954_s1  ;;  %v1725_v32 = vrot.slane %v1712_v16, 2 }
 0x115   : > { %v11429_v41 = vpop.permute.xlu0 %1216  ;;  %v11431_v24 = vpop.permute.xlu1 %1218 }
 0x117   : > { %1524 = vrot.lane.b32.xlu0 %v1516_v46, %s16133_s29  ;;  %1526 = vrot.lane.b32.xlu1 %v1519_v48, %s16133_s29  ;;  %v1543_v46 = vld [vmem:[#allocation2 + $0x58] sm:$0x3]  ;;  %v11512_v48 = vld [vmem:[%s15994_s7 + $0x10] sm:$0xff]  }
 0x118   : > { %v1669_v59 = vmul.f32 %v11410_v15, %v1543_v46  ;;  %9751 = vmatpush3.bf16.msra.mxu0 %v11512_v48 }
 0x119   : > { %v11445_v54 = vpop.permute.xlu0 %1243  ;;  %v11447_v56 = vpop.permute.xlu1 %1245  ;;  %9752 = vmatprep.subr.bf16.mxu0 %v10956_v7 }
 0x11a   : > { %v1684_v6 = vrot.slane %v1669_v59, 2 }
 0x11b   : > { %1528 = vrot.lane.b32.xlu0 %v1521_v57, %s16133_s29  ;;  %1530 = vrot.lane.b32.xlu1 %v1523_v58, %s16133_s29  ;;  %v1676_v57 = vrot.slane %v1664_v28, 2  ;;  %v1668_v58 = vmul.f32 %v11410_v15, %v11443_v53  ;;  %v11561_v28 = vld [vmem:[%s15994_s7 + $0x20] sm:$0xff]  }
 0x11c   : > { %9753 = vmatpush3.bf16.msra.mxu0 %v11530_v1  ;;  %v1685_v21 = vsel %vm1565_vm3, %v1680_v63, %v1684_v6  ;;  %16135 = vst [vmem:[#allocation5_spill] sm:$0xff] %v11561_v28 }
 0x11d   : > { %v11457_v3 = vpop.permute.xlu0 %1247  ;;  %v11459_v4 = vpop.permute.xlu1 %1249  ;;  %v1682_v5 = vrot.slane %v1668_v58, 2  ;;  %v1678_v7 = vsel %vm1565_vm3, %v1676_v57, %v1677_v61  ;;  %9754 = vmatprep.subr.bf16.mxu0 %v11540_v13 }
 0x11f   : > { %1576 = vrot.lane.b32.xlu0 %v1568_v29, %s16132_s4  ;;  %1578 = vrot.lane.b32.xlu1 %v1571_v9, %s16132_s4  ;;  %v1711_v29 = vmul.f32 %v11408_v14, %v11148_v11  ;;  %v1681_v9 = vsel %vm1565_vm3, %v1679_v62, %v1680_v63  ;;  %v1683_v20 = vsel %vm1565_vm3, %v1677_v61, %v1682_v5  ;;  %v11593_v61 = vld [vmem:[#allocation2 + $0x20] sm:$0xff]  ;;  %v11603_v63 = vld [vmem:[%s15994_s7 + $0x30] sm:$0xff]  }
 0x120   : > { %9755 = vmatpush3.bf16.msra.mxu0 %v11561_v28  ;;  %16137 = vst [vmem:[#allocation7_spill] sm:$0xff] %v11603_v63 }
 0x121   : > { %v11475_v18 = vpop.permute.xlu0 %1283  ;;  %v11477_v27 = vpop.permute.xlu1 %1285  ;;  %9756 = vmatprep.subr.bf16.mxu0 %v11540_v13 }
 0x123   : > { %1580 = vrot.lane.b32.xlu0 %v1573_v40, %s16132_s4  ;;  %1582 = vrot.lane.b32.xlu1 %v1575_v31, %s16132_s4  ;;  %v1722_v40 = vrot.slane %v1711_v29, 2  ;;  %v1724_v31 = vrot.slane %v1710_v12, 2  ;;  %v11618_v12 = vld [vmem:[%s15994_s7 + $0x38] sm:$0xff]  }
 0x124   : > { %16138 = vst [vmem:[#allocation8_spill] sm:$0xff] %v11618_v12 }
 0x125   : > { %v11493_v34 = vpop.permute.xlu0 %812  ;;  %v11495_v35 = vpop.permute.xlu1 %814  ;;  %v1723_v42 = vsel %vm1565_vm3, %v1721_v22, %v1722_v40  ;;  %v1726_v43 = vsel %vm1565_vm3, %v1724_v31, %v1725_v32  ;;  %v1728_v58 = vsel %vm1565_vm3, %v1722_v40, %v1727_v44 }
 0x126   : > { %v821_v8 = vsel %vm820_vm5, %v11493_v34, %v11495_v35  ;;  %v8820_v34 = vld [vmem:[%s16129_s3 + $0x7] ss:$0 sm:$0xff] }
 0x127   : > { %1621 = vrot.lane.b32.xlu0 %v1613_v36, %s10953_s5  ;;  %1623 = vrot.lane.b32.xlu1 %v1616_v60, %s10953_s5  ;;  %v1714_v36 = vmul.f32 %v11408_v14, %v1543_v46  ;;  %v11575_v14 = vld [vmem:[%s15994_s7 + $0x28] sm:$0xff]   ;;  %v11580_v46 = vld [vmem:[%s16129_s3 + $0x2] ss:$0 sm:$0xff]  ;;  %v1087_v31 = vmul.f32 %v8820_v34, %v11282_v55 }
 0x128   : > { %16136 = vst [vmem:[#allocation6_spill] sm:$0xff] %v11575_v14  ;;  %v11597_v62 = vmul.f32 %v11593_v61, %v11580_v46  ;;  %9757 = vmatpush3.bf16.msra.mxu0 %v11575_v14 }
 0x129   : > { %v11514_v50 = vpop.permute.xlu0 %816  ;;  %v11516_v51 = vpop.permute.xlu1 %818  ;;  %v1729_v45 = vrot.slane %v1714_v36, 2  ;;  %9758 = vmatprep.subr.bf16.mxu0 %v11540_v13 }
 0x12b   : > { %1625 = vrot.lane.b32.xlu0 %v1618_v52, %s10953_s5  ;;  %1627 = vrot.lane.b32.xlu1 %v1620_v26, %s10953_s5  ;;  %v1730_v59 = vsel %vm1565_vm3, %v1725_v32, %v1729_v45  ;;  %v878_v26 = vmul.f32 %v11580_v46, %v11219_v39  ;;  %v8812_v39 = vld [vmem:[%s15993_s6] ss:$0 sm:$0xff]  ;;  %v1088_v32 = vmul.f32 %v11593_v61, %v8820_v34  ;;  %s16150_s5 = sld [smem:[#allocation249_spill]] }
 0x12c   : > { %9759 = vmatpush3.bf16.msra.mxu0 %v11603_v63  ;;  %v825_v16 = vadd.f32 %v8812_v39, %v821_v8 }
 0x12d   : > { %v859_v2 = vpop.permute.xlu0 %858  ;;  %v861_v15 = vpop.permute.xlu1 %860  ;;  %9760 = vmatprep.subr.bf16.mxu0 %v11540_v13 }
 0x12e   : > { %v867_v29 = vsel %vm866_vm6, %v859_v2, %v861_v15 }
 0x12f   : > { %1686 = vrot.lane.b32.xlu0 %v1678_v7, %s10954_s1  ;;  %1688 = vrot.lane.b32.xlu1 %v1681_v9, %s10954_s1  ;;  %v884_v7 = vrot.slane %v878_v26, 6  ;;  %v885_v9 = vrot.slane %v11597_v62, 6  ;;  %v871_v22 = vadd.f32 %v867_v29, %v825_v16 }
 0x130   : > { %9761 = vmatpush3.bf16.msra.mxu0 %v11618_v12 }
 0x131   : > { %v11547_v11 = vpop.permute.xlu0 %862  ;;  %v11549_v19 = vpop.permute.xlu1 %864  ;;  %v886_v35 = vsel %vm801_vm0, %v884_v7, %v885_v9  ;;  %9789 = vmatprep.subr.bf16.mxu0 %v11540_v13  ;;  %s723_s30 = scalar_lea.vmem %s16150_s5, %s11136_s26  ;;  %s743_s5 = scalar_lea.vmem %s16007_s20, %s11136_s26 }
 0x132   : > { %v891_v49 = vadd.f32 %v886_v35, %v871_v22 }
 0x133   : > { %1690 = vrot.lane.b32.xlu0 %v1683_v20, %s10954_s1  ;;  %1692 = vrot.lane.b32.xlu1 %v1685_v21, %s10954_s1  ;;  %s9154_s1 = sshll.u32 %s16896_s25, 8 }
 0x134   : > { %s15216_s24 = scalar_lea.vmem %s16826_s23, %s9154_s1 }
 0x135   : > { %v925_v60 = vpop.permute.xlu0 %924  ;;  %v927_v37 = vpop.permute.xlu1 %926 }
 0x136   : > { %v933_v40 = vsel %vm932_vm7, %v925_v60, %v927_v37 }
 0x137   : > { %1731 = vrot.lane.b32.xlu0 %v1723_v42, %s16133_s29  ;;  %1733 = vrot.lane.b32.xlu1 %v1726_v43, %s16133_s29  ;;  %v937_v42 = vadd.f32 %v933_v40, %v891_v49 }
 0x139   : > { %v11582_v52 = vpop.permute.xlu0 %928  ;;  %v11584_v57 = vpop.permute.xlu1 %930 }
 0x13b   : > { %1735 = vrot.lane.b32.xlu0 %v1728_v58, %s16133_s29  ;;  %1737 = vrot.lane.b32.xlu1 %v1730_v59, %s16133_s29  ;;  %v1093_v58 = vrot.slane %v1087_v31, 7  ;;  %v1094_v59 = vrot.slane %v1088_v32, 7  ;;  %s16153_s29 = sld [smem:[#allocation250_spill]] }
 0x13d   : > { %v971_v5 = vpop.permute.xlu0 %970  ;;  %v973_v6 = vpop.permute.xlu1 %972  ;;  %v1095_v55 = vsel %vm1012_vm1, %v1093_v58, %v1094_v59  ;;  %v880_v58 = vmul.f32 %v11580_v46, %v11226_v47 }
 0x13e   : > { %v979_v36 = vsel %vm978_vm8, %v971_v5, %v973_v6 }
 0x13f   : > { %v983_v26 = vadd.f32 %v979_v36, %v937_v42 }
 0x141   : > { %v975_v20 = vpop.permute.xlu0 %974  ;;  %v977_v21 = vpop.permute.xlu1 %976  ;;  %s728_s0 = scalar_lea.vmem %s16153_s29, %s11136_s26  ;;  %s8811_s26 = sshll.u32 %s16896_s25, 1 }
 0x142   : > { %v980_v28 = vsel %vm978_vm8, %v975_v20, %v977_v21  ;;  %s747_s2 = scalar_lea.vmem %s16008_s21, %s8811_s26 }
 0x145   : > { %v1024_v2 = vpop.permute.xlu0 %1023  ;;  %v1026_v15 = vpop.permute.xlu1 %1025 }
 0x146   : > { %v1031_v45 = vsel %vm820_vm5, %v1024_v2, %v1026_v15 }
 0x147   : > { %v1035_v62 = vadd.f32 %v1031_v45, %v983_v26  ;;  %v822_v26 = vsel %vm820_vm5, %v11514_v50, %v11516_v51  ;;  %v934_v50 = vsel %vm932_vm7, %v11582_v52, %v11584_v57 }
 0x149   : > { %v1028_v43 = vpop.permute.xlu0 %1027  ;;  %v1030_v44 = vpop.permute.xlu1 %1029 }
 0x14d   : > { %v1069_v8 = vpop.permute.xlu0 %1068  ;;  %v1071_v29 = vpop.permute.xlu1 %1070 }
 0x14e   : > { %v1076_v60 = vsel %vm866_vm6, %v1069_v8, %v1071_v29  ;;  %v868_v29 = vsel %vm866_vm6, %v11547_v11, %v11549_v19  ;;  %v1089_v11 = vmul.f32 %v8820_v34, %v11296_v0 }
 0x14f   : > { %v1080_v37 = vadd.f32 %v1076_v60, %v1035_v62  ;;  %v887_v60 = vrot.slane %v880_v58, 6 }
 0x151   : > { %v1073_v7 = vpop.permute.xlu0 %1072  ;;  %v1075_v16 = vpop.permute.xlu1 %1074  ;;  %v1100_v22 = vadd.f32 %v1095_v55, %v1080_v37  ;;  %v826_v55 = vadd.f32 %v8812_v39, %v822_v26  ;;  %v888_v47 = vsel %vm801_vm0, %v885_v9, %v887_v60  ;;  %v1032_v39 = vsel %vm820_vm5, %v1028_v43, %v1030_v44 }
 0x152   : > { %v1077_v9 = vsel %vm866_vm6, %v1073_v7, %v1075_v16  ;;  %v1096_v60 = vrot.slane %v1089_v11, 7 }
 0x153   : > { %v872_v37 = vadd.f32 %v868_v29, %v826_v55 }
 0x155   : > { %v1134_v5 = vpop.permute.xlu0 %1133  ;;  %v1136_v6 = vpop.permute.xlu1 %1135  ;;  %v892_v51 = vadd.f32 %v888_v47, %v872_v37  ;;  %v1097_v37 = vsel %vm1012_vm1, %v1094_v59, %v1096_v60  ;;  %v1220_v59 = vsel %vm820_vm5, %v11418_v23, %v11420_v25  ;;  %v1252_v23 = vsel %vm866_vm6, %v11457_v3, %v11459_v4 }
 0x156   : > { %v1141_v47 = vsel %vm932_vm7, %v1134_v5, %v1136_v6  ;;  %v1291_v4 = vsel %vm932_vm7, %v11475_v18, %v11477_v27 }
 0x157   : > { %v938_v19 = vadd.f32 %v934_v50, %v892_v51  ;;  %v1145_v44 = vadd.f32 %v1141_v47, %v1100_v22  ;;  %v8825_v22 = vld [vmem:[%s16129_s3 + $0xc] ss:$0 sm:$0xff] }
 0x159   : > { %v1138_v35 = vpop.permute.xlu0 %1137  ;;  %v1140_v40 = vpop.permute.xlu1 %1139  ;;  %v984_v58 = vadd.f32 %v980_v28, %v938_v19 }
 0x15a   : > { %v1142_v20 = vsel %vm932_vm7, %v1138_v35, %v1140_v40 }
 0x15b   : > { %v1036_v55 = vadd.f32 %v1032_v39, %v984_v58  ;;  %v8830_v39 = vld [vmem:[%s16129_s3 + $0x11] ss:$0 sm:$0xff] }
 0x15c   : > { %v1435_v3 = vmul.f32 %v8830_v39, %v11376_v10 }
 0x15d   : > { %v1179_v49 = vpop.permute.xlu0 %1178  ;;  %v1181_v2 = vpop.permute.xlu1 %1180  ;;  %v1081_v1 = vadd.f32 %v1077_v9, %v1036_v55 }
 0x15e   : > { %v1186_v28 = vsel %vm978_vm8, %v1179_v49, %v1181_v2  ;;  %v1251_v49 = vsel %vm866_vm6, %v11445_v54, %v11447_v56  ;;  %v1433_v56 = vmul.f32 %v8830_v39, %v11366_v17 }
 0x15f   : > { %v1101_v0 = vadd.f32 %v1097_v37, %v1081_v1  ;;  %v1190_v16 = vadd.f32 %v1186_v28, %v1145_v44  ;;  %v1221_v1 = vsel %vm820_vm5, %v11429_v41, %v11431_v24  ;;  %v1262_v24 = vmul.f32 %v11593_v61, %v8825_v22 }
 0x160   : > { %v1439_v28 = vrot.slane %v1433_v56, 1 }
 0x161   : > { %v1183_v15 = vpop.permute.xlu0 %1182  ;;  %v1185_v31 = vpop.permute.xlu1 %1184  ;;  %v1146_v7 = vadd.f32 %v1142_v20, %v1101_v0  ;;  %v1224_v5 = vadd.f32 %v1220_v59, %v1190_v16 }
 0x162   : > { %v1187_v43 = vsel %vm978_vm8, %v1183_v15, %v1185_v31  ;;  %v10941_v15 = vld [vmem:[#allocation2 + $0x38] sm:$0xff] }
 0x163   : > { %v1191_v50 = vadd.f32 %v1187_v43, %v1146_v7  ;;  %v1255_v25 = vadd.f32 %v1251_v49, %v1224_v5  ;;  %v1263_v41 = vmul.f32 %v10941_v15, %v8825_v22  ;;  %v1434_v55 = vmul.f32 %v10941_v15, %v8830_v39 }
 0x165   : > { %v11634_v32 = vpop.permute.xlu0 %1287  ;;  %v11636_v36 = vpop.permute.xlu1 %1289  ;;  %v1225_v6 = vadd.f32 %v1221_v1, %v1191_v50  ;;  %v1264_v9 = vadd.f32 %v1262_v24, %v1255_v25  ;;  %v1440_v43 = vrot.slane %v1434_v55, 1 }
 0x166   : > { %v1292_v61 = vsel %vm932_vm7, %v11634_v32, %v11636_v36 }
 0x167   : > { %v1256_v2 = vadd.f32 %v1252_v23, %v1225_v6  ;;  %v1295_v20 = vadd.f32 %v1291_v4, %v1264_v9 }
 0x169   : > { %v11638_v42 = vpop.permute.xlu0 %1314  ;;  %v11640_v45 = vpop.permute.xlu1 %1316  ;;  %v1265_v58 = vadd.f32 %v1263_v41, %v1256_v2 }
 0x16a   : > { %v1322_v37 = vsel %vm978_vm8, %v11638_v42, %v11640_v45 }
 0x16b   : > { %v1296_v17 = vadd.f32 %v1292_v61, %v1265_v58  ;;  %v1326_v32 = vadd.f32 %v1322_v37, %v1295_v20 }
 0x16d   : > { %v11647_v62 = vpop.permute.xlu0 %1318  ;;  %v11649_v8 = vpop.permute.xlu1 %1320 }
 0x16e   : > { %v1323_v47 = vsel %vm978_vm8, %v11647_v62, %v11649_v8  ;;  %v1442_v62 = vrot.slane %v1435_v3, 1 }
 0x16f   : > { %v1327_v36 = vadd.f32 %v1323_v47, %v1296_v17 }
 0x171   : > { %v11654_v12 = vpop.permute.xlu0 %1369  ;;  %v11656_v63 = vpop.permute.xlu1 %1371 }
 0x172   : > { %v1377_v18 = vsel %vm820_vm5, %v11654_v12, %v11656_v63  ;;  %v1441_v63 = vsel %vm1358_vm2, %v1439_v28, %v1440_v43  ;;  %v1443_v12 = vsel %vm1358_vm2, %v1440_v43, %v1442_v62 }
 0x173   : > { %v1381_v8 = vadd.f32 %v1377_v18, %v1326_v32 }
 0x175   : > { %v11662_v46 = vpop.permute.xlu0 %1373  ;;  %v1376_v14 = vpop.permute.xlu1 %1375 }
 0x176   : > { %v1378_v27 = vsel %vm820_vm5, %v11662_v46, %v1376_v14  ;;  %v8835_v14 = vld [vmem:[%s16129_s3 + $0x16] ss:$0 sm:$0xff] }
 0x177   : > { %v1382_v44 = vadd.f32 %v1378_v27, %v1327_v36  ;;  %v1640_v5 = vmul.f32 %v8835_v14, %v11427_v38  ;;  %v1641_v49 = vmul.f32 %v10941_v15, %v8835_v14  ;;  %v1642_v23 = vmul.f32 %v8835_v14, %v11443_v53  ;;  %v16141_v14 = vld [vmem:[#allocation5_spill] sm:$0xff] }
 0x179   : > { %v1415_v26 = vpop.permute.xlu0 %1414  ;;  %v1417_v29 = vpop.permute.xlu1 %1416 }
 0x17a   : > { %v1422_v42 = vsel %vm866_vm6, %v1415_v26, %v1417_v29 }
 0x17b   : > { %v1426_v50 = vadd.f32 %v1422_v42, %v1381_v8 }
 0x17d   : > { %v1419_v52 = vpop.permute.xlu0 %1418  ;;  %v1421_v57 = vpop.permute.xlu1 %1420 }
 0x17e   : > { %v1423_v45 = vsel %vm866_vm6, %v1419_v52, %v1421_v57  ;;  %v1446_v57 = vadd.f32 %v1441_v63, %v1426_v50 }
 0x17f   : > { %v1427_v59 = vadd.f32 %v1423_v45, %v1382_v44 }
 0x181   : > { %v11671_v21 = vpop.permute.xlu0 %1479  ;;  %v1482_v34 = vpop.permute.xlu1 %1481  ;;  %v1447_v1 = vadd.f32 %v1443_v12, %v1427_v59  ;;  %v16140_v12 = vld [vmem:[#allocation4_spill] sm:$0xff] }
 0x182   : > { %v1487_v29 = vsel %vm932_vm7, %v11671_v21, %v1482_v34 }
 0x183   : > { %v1491_v25 = vadd.f32 %v1487_v29, %v1446_v57 }
 0x185   : > { %v1484_v51 = vpop.permute.xlu0 %1483  ;;  %v1486_v11 = vpop.permute.xlu1 %1485 }
 0x186   : > { %v1488_v52 = vsel %vm932_vm7, %v1484_v51, %v1486_v11  ;;  %v1646_v11 = vrot.slane %v1640_v5, 2 }
 0x187   : > { %v1492_v2 = vadd.f32 %v1488_v52, %v1447_v1 }
 0x189   : > { %v1525_v35 = vpop.permute.xlu0 %1524  ;;  %v1527_v40 = vpop.permute.xlu1 %1526 }
 0x18a   : > { %v1532_v6 = vsel %vm978_vm8, %v1525_v35, %v1527_v40  ;;  %v1647_v40 = vrot.slane %v1641_v49, 2 }
 0x18b   : > { %v1536_v34 = vadd.f32 %v1532_v6, %v1491_v25 }
 0x18c   : > { %v1648_v55 = vsel %vm1565_vm3, %v1646_v11, %v1647_v40  ;;  %v2057_v11 = vld [vmem:[%s15996_s9] sm:$0xff] }
 0x18d   : > { %v1529_v31 = vpop.permute.xlu0 %1528  ;;  %v1531_v19 = vpop.permute.xlu1 %1530 }
 0x18e   : > { %v1533_v22 = vsel %vm978_vm8, %v1529_v31, %v1531_v19  ;;  %v1649_v31 = vrot.slane %v1642_v23, 2 }
 0x18f   : > { %v1537_v51 = vadd.f32 %v1533_v22, %v1492_v2 }
 0x191   : > { %v1577_v60 = vpop.permute.xlu0 %1576  ;;  %v1579_v54 = vpop.permute.xlu1 %1578 }
 0x192   : > { %v1584_v39 = vsel %vm820_vm5, %v1577_v60, %v1579_v54  ;;  %v1650_v60 = vsel %vm1565_vm3, %v1647_v40, %v1649_v31  ;;  %v2060_v31 = vld [vmem:[%s15996_s9 + $0x18] sm:$0xff] }
 0x193   : > { %v1588_v15 = vadd.f32 %v1584_v39, %v1536_v34 }
 0x195   : > { %v1581_v0 = vpop.permute.xlu0 %1580  ;;  %v1583_v10 = vpop.permute.xlu1 %1582 }
 0x196   : > { %v1585_v21 = vsel %vm820_vm5, %v1581_v0, %v1583_v10 }
 0x197   : > { %v1589_v19 = vadd.f32 %v1585_v21, %v1537_v51 }
 0x199   : > { %v1622_v7 = vpop.permute.xlu0 %1621  ;;  %v1624_v16 = vpop.permute.xlu1 %1623 }
 0x19a   : > { %v1629_v38 = vsel %vm866_vm6, %v1622_v7, %v1624_v16  ;;  %v1855_v7 = vld [vmem:[%s15995_s8] sm:$0xf] }
 0x19b   : > { %v1633_v9 = vadd.f32 %v1629_v38, %v1588_v15  ;;  %v11743_v16 = vsel %vm1859_vm9, %v1855_v7, 0  ;;  %v2058_v38 = vld [vmem:[%s15996_s9 + $0x8] sm:$0xff] }
 0x19c   : > { %16139 = vst [vmem:[#allocation9_spill] sm:$0xff] %v11743_v16  ;;  %9766 = vmatpush3.bf16.msra.mxu1 %v11743_v16  ;;  %v10331_v40 = vpack.c.bf16 %v2058_v38, %v2057_v11 }
 0x19d   : > { %v1626_v46 = vpop.permute.xlu0 %1625  ;;  %v1628_v26 = vpop.permute.xlu1 %1627  ;;  %v1653_v37 = vadd.f32 %v1648_v55, %v1633_v9  ;;  %9770 = vmatprep.subr.bf16.mxu1 %v11540_v13  ;;  %v2063_v9 = vld [vmem:[%s15996_s9 + $0x30] sm:$0xff] }
 0x19e   : > { %v1630_v35 = vsel %vm866_vm6, %v1626_v46, %v1628_v26  ;;  %v16143_v46 = vld [vmem:[#allocation7_spill] sm:$0xff] }
 0x19f   : > { %v1634_v56 = vadd.f32 %v1630_v35, %v1589_v19  ;;  %v2059_v35 = vld [vmem:[%s15996_s9 + $0x10] sm:$0xff]  ;;  %v2061_v19 = vld [vmem:[%s15996_s9 + $0x20] sm:$0xff] }
 0x1a0   : > { %v10335_v15 = vpack.c.bf16 %v2060_v31, %v2059_v35 }
 0x1a1   : > { %v1687_v41 = vpop.permute.xlu0 %1686  ;;  %v1689_v24 = vpop.permute.xlu1 %1688  ;;  %v1654_v47 = vadd.f32 %v1650_v60, %v1634_v56  ;;  %v2064_v56 = vld [vmem:[%s15996_s9 + $0x38] sm:$0xff]  ;;  %v2065_v60 = vld [vmem:[%s15996_s9 + $0x40] sm:$0xff] }
 0x1a2   : > { %v1694_v4 = vsel %vm932_vm7, %v1687_v41, %v1689_v24  ;;  %v10343_v55 = vpack.c.bf16 %v2064_v56, %v2063_v9 }
 0x1a3   : > { %v1698_v20 = vadd.f32 %v1694_v4, %v1653_v37  ;;  %v2067_v4 = vld [vmem:[%s15996_s9 + $0x50] sm:$0xff] }
 0x1a5   : > { %v1691_v53 = vpop.permute.xlu0 %1690  ;;  %v1693_v58 = vpop.permute.xlu1 %1692 }
 0x1a6   : > { %v1695_v61 = vsel %vm932_vm7, %v1691_v53, %v1693_v58  ;;  %v2062_v53 = vld [vmem:[%s15996_s9 + $0x28] sm:$0xff] }
 0x1a7   : > { %v1699_v0 = vadd.f32 %v1695_v61, %v1654_v47  ;;  %v10339_v58 = vpack.c.bf16 %v2062_v53, %v2061_v19  ;;  %v2068_v61 = vld [vmem:[%s15996_s9 + $0x58] sm:$0xff]  ;;  %v2069_v47 = vld [vmem:[%s15996_s9 + $0x60] sm:$0xff] }
 0x1a8   : > { %v10351_v37 = vpack.c.bf16 %v2068_v61, %v2067_v4 }
 0x1a9   : > { %v1732_v54 = vpop.permute.xlu0 %1731  ;;  %v1734_v3 = vpop.permute.xlu1 %1733 }
 0x1aa   : > { %v1739_v17 = vsel %vm978_vm8, %v1732_v54, %v1734_v3  ;;  %v2066_v54 = vld [vmem:[%s15996_s9 + $0x48] sm:$0xff] }
 0x1ab   : > { %v1743_v32 = vadd.f32 %v1739_v17, %v1698_v20  ;;  %v10347_v3 = vpack.c.bf16 %v2066_v54, %v2065_v60  ;;  %v2070_v17 = vld [vmem:[%s15996_s9 + $0x68] sm:$0xff] }
 0x1ac   : > { %v10355_v20 = vpack.c.bf16 %v2070_v17, %v2069_v47  ;;  %v10901_v17 = vld [vmem:[%s15997_s10] sm:$0xff]  }
 0x1ad   : > { %v1736_v10 = vpop.permute.xlu0 %1735  ;;  %v1738_v18 = vpop.permute.xlu1 %1737 }
 0x1ae   : > { %v1740_v27 = vsel %vm978_vm8, %v1736_v10, %v1738_v18  ;;  %v2072_v10 = vld [vmem:[%s15996_s9 + $0x78] sm:$0xff] }
 0x1af   : > { %v1744_v36 = vadd.f32 %v1740_v27, %v1699_v0  ;;  %v2071_v0 = vld [vmem:[%s15996_s9 + $0x70] sm:$0xff] }
 0x1b0   : > { %v10359_v18 = vpack.c.bf16 %v2072_v10, %v2071_v0  ;;  %v2630_v0 = vld [vmem:[%s15999_s12 + $0x8] sm:$0xff]  ;;  %v2631_v10 = vld [vmem:[%s15999_s12 + $0x10] sm:$0xff] }
 0x1b1   : > { %v1745_v28 = vadd.f32 %v1744_v36, %v1743_v32 }
 0x1b3   : > { %v1746_v42 = vrot.slane %v1745_v28, 4 }
 0x1b5   : > { %v1747_v45 = vadd.f32 %v1746_v42, %v1745_v28 }
 0x1b7   : > { %v1748_v43 = vrot.slane %v1747_v45, 2 }
 0x1b9   : > { %v1749_v62 = vadd.f32 %v1748_v43, %v1747_v45 }
 0x1bb   : > { %v1750_v8 = vrot.slane %v1749_v62, 1 }
 0x1bd   : > { %v1751_v44 = vadd.f32 %v1750_v8, %v1749_v62 }
 0x1bf   : > { %9763 = vmatmul.mubr.f32.vlgmr.msra.gmra.mrb[0].mxu0 %v1751_v44 }
 0x1c0   : > { %9791 = vmatprep.mubr.msk.f32.mxu0 %vm10957_vm4, %v11540_v13  ;;  %9790 = vmatpush3.bf16.msra.mxu0 %v11743_v16  ;;  %v2512_v16 = vld [vmem:[%s16000_s13 + $0x58] sm:$0xff] }
 0x1c1   : > { %10332 = vmatprep.subr.bf16.mxu0 %v10331_v40 }
 0x292   : > { %v1850_v50 = vpop.f32.mrb[0].mxu0 }
 0x293   : > { %v1854_v59 = vmul.f32 0.00390625, %v1850_v50  ;;  %v9764_v63 = vpop.f32.mrb[1].mxu0 }
 0x295   : > { %9768 = vmatmul.mubr.msk.f32.vlgmr.msra.gmra.mrb[0].mxu1 %vm866_vm6, %v1854_v59 }
 0x296   : > { %9771 = vmatpush3.bf16.msra.mxu1 %v11473_v30  ;;  %9786 = vmatprep.mubr.msk.f32.mxu1 %vm10957_vm4, %v11540_v13  ;;  %v16142_v30 = vld [vmem:[#allocation6_spill] sm:$0xff] }
 0x297   : > { %9772 = vmatprep.subr.bf16.mxu1 %v11540_v13 }
 0x29a   : > { %9773 = vmatpush3.bf16.msra.mxu1 %v11491_v33  ;;  %v16144_v33 = vld [vmem:[#allocation8_spill] sm:$0xff] }
 0x29b   : > { %9774 = vmatprep.subr.bf16.mxu1 %v11540_v13 }
 0x29e   : > { %9775 = vmatpush3.bf16.msra.mxu1 %v11512_v48  ;;  %v1901_v48 = vlaneseq }
 0x29f   : > { %9776 = vmatprep.subr.bf16.mxu1 %v11540_v13 }
 0x2a0   : > { %v11767_v26 = vshrl.u32 %v1901_v48, 7 }
 0x2a2   : > { %9777 = vmatpush3.bf16.msra.mxu1 %v16140_v12  ;;  %v1903_v29 = vsub.s32 0, %v11767_v26 }
 0x2a3   : > { %9778 = vmatprep.subr.bf16.mxu1 %v11540_v13 }
 0x2a6   : > { %9779 = vmatpush3.bf16.msra.mxu1 %v16141_v14 }
 0x2a7   : > { %9780 = vmatprep.subr.bf16.mxu1 %v11540_v13 }
 0x2aa   : > { %9781 = vmatpush3.bf16.msra.mxu1 %v16142_v30 }
 0x2ab   : > { %9782 = vmatprep.subr.bf16.mxu1 %v11540_v13 }
 0x2ae   : > { %9783 = vmatpush3.bf16.msra.mxu1 %v16143_v46 }
 0x2af   : > { %9784 = vmatprep.subr.bf16.mxu1 %v11540_v13 }
 0x2b2   : > { %9785 = vmatpush3.bf16.msra.mxu1 %v16144_v33 }
 0x368   : > { %v1897_v52 = vpop.f32.mrb[0].mxu1 }
 0x369   : > { %v1904_v57 = vrot.slane %v1897_v52, %v1903_v29  ;;  %v9769_v1 = vpop.f32.mrb[1].mxu1 }
 0x36b   : > { %v1905_v5 = vsub.f32 %v1743_v32, %v1904_v57  ;;  %v1906_v6 = vsub.f32 %v1744_v36, %v1904_v57 }
 0x36d   : > { %v1907_v22 = vmul.f32 %v1905_v5, %v1905_v5  ;;  %v1908_v49 = vmul.f32 %v1906_v6, %v1906_v6 }
 0x36f   : > { %v1909_v23 = vadd.f32 %v1908_v49, %v1907_v22 }
 0x371   : > { %v1910_v25 = vrot.slane %v1909_v23, 4 }
 0x373   : > { %v1911_v13 = vadd.f32 %v1910_v25, %v1909_v23 }
 0x375   : > { %v1912_v2 = vrot.slane %v1911_v13, 2 }
 0x377   : > { %v1913_v41 = vadd.f32 %v1912_v2, %v1911_v13 }
 0x379   : > { %v1914_v24 = vrot.slane %v1913_v41, 1 }
 0x37b   : > { %v1915_v39 = vadd.f32 %v1914_v24, %v1913_v41 }
 0x37d   : > { %9787 = vmatmul.mubr.f32.vlgmr.msra.gmra.mrb[2].mxu1 %v1915_v39 }
 0x37e   : > { %9833 = vmatprep.mubr.msk.bf16.mxu1 %vm820_vm5, %v10901_v17 }
 0x450   : > { %v1950_v21 = vpop.f32.mrb[2].mxu1 }
 0x451   : > { %v1954_v34 = vmul.f32 0.00390625, %v1950_v21  ;;  %v9788_v51 = vpop.f32.mrb[3].mxu1 }
 0x453   : > { %9792 = vmatmul.mubr.msk.f32.vlgmr.msra.gmra.mrb[2].mxu0 %vm866_vm6, %v1954_v34 }
 0x454   : > { %10334 = vmatpush3.bf16.msra.mxu0 %v10331_v40 }
 0x455   : > { %10336 = vmatprep.subr.bf16.mxu0 %v10335_v15 }
 0x458   : > { %10338 = vmatpush3.bf16.msra.mxu0 %v10335_v15 }
 0x459   : > { %10340 = vmatprep.subr.bf16.mxu0 %v10339_v58 }
 0x45c   : > { %10342 = vmatpush3.bf16.msra.mxu0 %v10339_v58 }
 0x45d   : > { %10344 = vmatprep.subr.bf16.mxu0 %v10343_v55 }
 0x460   : > { %10346 = vmatpush3.bf16.msra.mxu0 %v10343_v55 }
 0x461   : > { %10348 = vmatprep.subr.bf16.mxu0 %v10347_v3 }
 0x464   : > { %10350 = vmatpush3.bf16.msra.mxu0 %v10347_v3 }
 0x465   : > { %10352 = vmatprep.subr.bf16.mxu0 %v10351_v37 }
 0x468   : > { %10354 = vmatpush3.bf16.msra.mxu0 %v10351_v37 }
 0x469   : > { %10356 = vmatprep.subr.bf16.mxu0 %v10355_v20 }
 0x46c   : > { %10358 = vmatpush3.bf16.msra.mxu0 %v10355_v20  ;;  %v2629_v20 = vld [vmem:[%s15999_s12] sm:$0xff] }
 0x46d   : > { %10360 = vmatprep.subr.bf16.mxu0 %v10359_v18 }
 0x470   : > { %10362 = vmatpush3.bf16.msra.mxu0 %v10359_v18  ;;  %v10367_v18 = vpack.c.bf16 %v2630_v0, %v2629_v20 }
 0x472   : > { %10368 = vmatprep.subr.bf16.mxu0 %v10367_v18 }
 0x526   : > { %v1992_v27 = vpop.f32.mrb[2].mxu0 }
 0x527   : > { %v1993_v32 = vadd.f32 1e-05, %v1992_v27  ;;  %v9793_v36 = vpop.f32.mrb[3].mxu0  ;;  %v2632_v27 = vld [vmem:[%s15999_s12 + $0x18] sm:$0xff] }
 0x528   : > { %v2633_v36 = vld [vmem:[%s15999_s12 + $0x20] sm:$0xff] }
 0x529   : > { %10929 = vrsqrt.f32 %v1993_v32  ;;  %v10371_v32 = vpack.c.bf16 %v2632_v27, %v2631_v10  ;;  %v10911_v27 = vld [vmem:[%s15997_s10 + $0x50] sm:$0xff]  }
 0x533   : > { %v10930_v28 = vpop.eup %10929 }
 0x534   : > { %v2000_v42 = vrot.slane %v10930_v28, %v1903_v29  ;;  %v2634_v28 = vld [vmem:[%s15999_s12 + $0x28] sm:$0xff] }
 0x536   : > { %v2001_v45 = vmul.f32 %v2000_v42, %v1905_v5  ;;  %v2002_v43 = vmul.f32 %v2000_v42, %v1906_v6  ;;  %v10375_v42 = vpack.c.bf16 %v2634_v28, %v2633_v36  ;;  %v10913_v36 = vld [vmem:[%s15997_s10 + $0x60] sm:$0xff]   ;;  %v16026_v28 = vmov 1  }
 0x537   : > { %10572 = vset.pattern.permute.xlu1 %v16026_v28 }
 0x538   : > { %v2005_v62 = vmul.f32 0.70710677, %v2001_v45  ;;  %v2006_v8 = vmul.f32 0.70710677, %v2002_v43  ;;  %v2003_v60 = vmul.f32 0.5, %v2001_v45  ;;  %v2004_v4 = vmul.f32 0.5, %v2002_v43 }
 0x53a   : > { %v2007_v44 = vand.u32 2147483647, %v2005_v62  ;;  %v2008_v7 = vand.u32 2147483647, %v2006_v8  ;;  %vm2047_vm10 = vcmp.ge.f32.partialorder %v2005_v62, 0.0  ;;  %vm2048_vm11 = vcmp.ge.f32.partialorder %v2006_v8, 0.0 }
 0x53b   : > { %v10902_v8 = vld [vmem:[%s15997_s10 + $0x8] sm:$0xff]  }
 0x53c   : > { %v2009_v50 = vmul.f32 0.3275911, %v2007_v44  ;;  %v2010_v59 = vmul.f32 0.3275911, %v2008_v7  ;;  %v2035_v14 = vsub.f32 0.0, %v2007_v44  ;;  %v2036_v30 = vsub.f32 0.0, %v2008_v7 }
 0x53e   : > { %v2011_v63 = vadd.f32 1.0, %v2009_v50  ;;  %v2012_v12 = vadd.f32 1.0, %v2010_v59  ;;  %v2037_v33 = vmul.f32 %v2035_v14, %v2007_v44  ;;  %v2038_v26 = vmul.f32 %v2036_v30, %v2008_v7  ;;  %v10903_v44 = vld [vmem:[%s15997_s10 + $0x10] sm:$0xff]   ;;  %v10904_v7 = vld [vmem:[%s15997_s10 + $0x18] sm:$0xff]   ;;  %v10905_v50 = vld [vmem:[%s15997_s10 + $0x20] sm:$0xff]  }
 0x53f   : > { %v10906_v59 = vld [vmem:[%s15997_s10 + $0x28] sm:$0xff]   ;;  %v10907_v30 = vld [vmem:[%s15997_s10 + $0x30] sm:$0xff]  }
 0x540   : > { %10931 = vrcp.f32 %v2011_v63  ;;  %v2039_v5 = vmul.f32 1.442695, %v2037_v33  ;;  %v2041_v49 = vmul.f32 1.442695, %v2038_v26  ;;  %v2635_v63 = vld [vmem:[%s15999_s12 + $0x30] sm:$0xff]  ;;  %v10909_v33 = vld [vmem:[%s15997_s10 + $0x40] sm:$0xff]  }
 0x541   : > { %10933 = vrcp.f32 %v2012_v12  ;;  %v2636_v12 = vld [vmem:[%s15999_s12 + $0x38] sm:$0xff]  ;;  %v9285_v26 = vld [vmem:[%s15998_s11 + $0x8] sm:$0xff]  }
 0x542   : > { %10935 = vpow2.f32 %v2039_v5  ;;  %v10379_v14 = vpack.c.bf16 %v2636_v12, %v2635_v63 }
 0x543   : > { %10937 = vpow2.f32 %v2041_v49 }
 0x54a   : > { %v10932_v46 = vpop.eup %10931 }
 0x54b   : > { %v10934_v52 = vpop.eup %10933  ;;  %v2017_v57 = vmul.f32 1.0614054, %v10932_v46 }
 0x54c   : > { %v2018_v29 = vmul.f32 1.0614054, %v10934_v52  ;;  %v10936_v35 = vpop.eup %10935 }
 0x54d   : > { %v2019_v1 = vadd.f32 -1.4531521, %v2017_v57  ;;  %v10938_v31 = vpop.eup %10937  ;;  %v9158_v57 = vld [vmem:[%s15998_s11] sm:$0xff]  }
 0x54e   : > { %v2020_v6 = vadd.f32 -1.4531521, %v2018_v29  ;;  %v9159_v29 = vunpack.c.l.bf16 %v9158_v57  ;;  %v9160_v5 = vunpack.c.h.bf16 %v9158_v57 }
 0x54f   : > { %v2021_v22 = vmul.f32 %v10932_v46, %v2019_v1 }
 0x550   : > { %v2022_v23 = vmul.f32 %v10934_v52, %v2020_v6  ;;  %v9163_v6 = vunpack.c.l.bf16 %v9285_v26 }
 0x551   : > { %v2023_v25 = vadd.f32 1.4214138, %v2021_v22 }
 0x552   : > { %v2024_v13 = vadd.f32 1.4214138, %v2022_v23 }
 0x553   : > { %v2025_v2 = vmul.f32 %v10932_v46, %v2023_v25 }
 0x554   : > { %v2026_v41 = vmul.f32 %v10934_v52, %v2024_v13  ;;  %v9286_v13 = vld [vmem:[%s15998_s11 + $0x10] sm:$0xff]  }
 0x555   : > { %v2027_v24 = vadd.f32 -0.28449672, %v2025_v2  ;;  %v9164_v2 = vunpack.c.h.bf16 %v9285_v26 }
 0x556   : > { %v2028_v39 = vadd.f32 -0.28449672, %v2026_v41 }
 0x557   : > { %v2029_v21 = vmul.f32 %v10932_v46, %v2027_v24  ;;  %v9287_v24 = vld [vmem:[%s15998_s11 + $0x18] sm:$0xff]  }
 0x558   : > { %v2030_v34 = vmul.f32 %v10934_v52, %v2028_v39 }
 0x559   : > { %v2031_v51 = vadd.f32 0.2548296, %v2029_v21  ;;  %v9167_v21 = vunpack.c.l.bf16 %v9286_v13 }
 0x55a   : > { %v2032_v11 = vadd.f32 0.2548296, %v2030_v34  ;;  %v9171_v34 = vunpack.c.l.bf16 %v9287_v24 }
 0x55b   : > { %v2033_v38 = vmul.f32 %v10932_v46, %v2031_v51  ;;  %v10908_v46 = vld [vmem:[%s15997_s10 + $0x38] sm:$0xff]  }
 0x55c   : > { %v2034_v40 = vmul.f32 %v10934_v52, %v2032_v11  ;;  %v10910_v52 = vld [vmem:[%s15997_s10 + $0x48] sm:$0xff]  }
 0x55d   : > { %v2043_v15 = vmul.f32 %v10936_v35, %v2033_v38  ;;  %v9168_v38 = vunpack.c.h.bf16 %v9286_v13 }
 0x55e   : > { %v2044_v19 = vmul.f32 %v10938_v31, %v2034_v40 }
 0x55f   : > { %v2045_v53 = vsub.f32 1.0, %v2043_v15  ;;  %v9172_v15 = vunpack.c.h.bf16 %v9287_v24 }
 0x560   : > { %v2046_v58 = vsub.f32 1.0, %v2044_v19 }
 0x561   : > { %v2049_v9 = vsub.f32 0.0, %v2045_v53 }
 0x562   : > { %v2050_v56 = vsub.f32 0.0, %v2046_v58 }
 0x563   : > { %v2051_v55 = vsel %vm2047_vm10, %v2045_v53, %v2049_v9 }
 0x564   : > { %v2053_v54 = vadd.f32 1.0, %v2051_v55  ;;  %v2052_v3 = vsel %vm2048_vm11, %v2046_v58, %v2050_v56  ;;  %v9288_v58 = vld [vmem:[%s15998_s11 + $0x20] sm:$0xff]   ;;  %v9289_v56 = vld [vmem:[%s15998_s11 + $0x28] sm:$0xff]  }
 0x565   : > { %v2054_v61 = vadd.f32 1.0, %v2052_v3  ;;  %v9180_v17 = vunpack.c.h.bf16 %v9289_v56 }
 0x566   : > { %v2055_v37 = vmul.f32 %v2053_v54, %v2003_v60  ;;  %v9175_v60 = vunpack.c.l.bf16 %v9288_v58  ;;  %v9179_v54 = vunpack.c.l.bf16 %v9289_v56 }
 0x567   : > { %v2056_v47 = vmul.f32 %v2054_v61, %v2004_v4  ;;  %v9176_v4 = vunpack.c.h.bf16 %v9288_v58 }
 0x568   : > { %9826 = vmatprep.mubr.f32.mxu0 %v2055_v37 }
 0x569   : > { %9827 = vmatmul.mubr.f32.vlgmr.msra.gmra.mrb[4].mxu0 %v2056_v47 }
 0x56a   : > { %10370 = vmatpush3.bf16.msra.mxu0 %v10367_v18 }
 0x56b   : > { %10372 = vmatprep.subr.bf16.mxu0 %v10371_v32 }
 0x56e   : > { %10374 = vmatpush3.bf16.msra.mxu0 %v10371_v32  ;;  %v10912_v32 = vld [vmem:[%s15997_s10 + $0x58] sm:$0xff]  }
 0x56f   : > { %10376 = vmatprep.subr.bf16.mxu0 %v10375_v42 }
 0x572   : > { %10378 = vmatpush3.bf16.msra.mxu0 %v10375_v42  ;;  %v16024_v42 = vmov 0  }
 0x573   : > { %10380 = vmatprep.subr.bf16.mxu0 %v10379_v14  ;;  %10571 = vset.pattern.permute.xlu0 %v16024_v42 }
 0x576   : > { %10382 = vmatpush3.bf16.msra.mxu0 %v10379_v14 }
 0x63c   : > { %v9828_v45 = vpop.f32.mrb[4].mxu0 }
 0x63d   : > { %v2139_v43 = vpop.f32.mrb[5].mxu0 }
 0x63e   : > { %v10363_v62 = vpack.c.bf16 %v9828_v45, %v2139_v43  ;;  %v10914_v45 = vld [vmem:[%s15997_s10 + $0x68] sm:$0xff]   ;;  %v10915_v43 = vld [vmem:[%s15997_s10 + $0x70] sm:$0xff]  }
 0x640   : > { %10364 = vmatprep.subr.bf16.mxu1 %v10363_v62 }
 0x641   : > { %10366 = vmatpush3.bf16.msra.mxu1 %v10363_v62  ;;  %v10916_v62 = vld [vmem:[%s15997_s10 + $0x78] sm:$0xff]  }
 0x644   : > { %9834 = vmatmul.mubr.msk.bf16.vlgmr.msra.gmra.mrb[4].mxu1 %vm820_vm5, %v10902_v8 }
 0x645   : > { %9837 = vmatprep.mubr.msk.bf16.mxu1 %vm820_vm5, %v10903_v44  ;;  %v9291_v44 = vld [vmem:[%s15998_s11 + $0x38] sm:$0xff]  }
 0x64c   : > { %9838 = vmatmul.mubr.msk.bf16.gmra.mrb[8].mxu1 %vm820_vm5, %v10904_v7  ;;  %v9187_v7 = vunpack.c.l.bf16 %v9291_v44 }
 0x64d   : > { %9841 = vmatprep.mubr.msk.bf16.mxu1 %vm820_vm5, %v10905_v50 }
 0x654   : > { %9842 = vmatmul.mubr.msk.bf16.gmra.mrb[12].mxu1 %vm820_vm5, %v10906_v59  ;;  %v9290_v59 = vld [vmem:[%s15998_s11 + $0x30] sm:$0xff]  }
 0x655   : > { %9845 = vmatprep.mubr.msk.bf16.mxu1 %vm820_vm5, %v10907_v30  ;;  %v9183_v63 = vunpack.c.l.bf16 %v9290_v59  ;;  %v9184_v14 = vunpack.c.h.bf16 %v9290_v59  ;;  %v9188_v30 = vunpack.c.h.bf16 %v9291_v44  ;;  %v5649_v59 = vld [vmem:[%s723_s30] sm:$0xff] }
 0x65c   : > { %9846 = vmatmul.mubr.msk.bf16.gmra.mrb[16].mxu1 %vm820_vm5, %v10908_v46 }
 0x65d   : > { %9849 = vmatprep.mubr.msk.bf16.mxu1 %vm820_vm5, %v10909_v33 }
 0x664   : > { %9850 = vmatmul.mubr.msk.bf16.gmra.mrb[20].mxu1 %vm820_vm5, %v10910_v52 }
 0x665   : > { %9853 = vmatprep.mubr.msk.bf16.mxu1 %vm820_vm5, %v10911_v27 }
 0x66c   : > { %9854 = vmatmul.mubr.msk.bf16.gmra.mrb[24].mxu1 %vm820_vm5, %v10912_v32 }
 0x66d   : > { %9857 = vmatprep.mubr.msk.bf16.mxu1 %vm820_vm5, %v10913_v36 }
 0x674   : > { %9858 = vmatmul.mubr.msk.bf16.gmra.mrb[28].mxu1 %vm820_vm5, %v10914_v45 }
 0x675   : > { %9861 = vmatprep.mubr.msk.bf16.mxu1 %vm820_vm5, %v10915_v43 }
 0x67c   : > { %9862 = vmatmul.mubr.msk.bf16.gmra.mrb[32].mxu1 %vm820_vm5, %v10916_v62 }
 0x717   : > { %v9835_v1 = vpop.f32.mrb[4].mxu1 }
 0x718   : > { %v2374_v22 = vpop.f32.mrb[5].mxu1  ;;  %v2599_v39 = vmul.f32 %v9835_v1, %v9163_v6  ;;  %v2501_v1 = vld [vmem:[%s16000_s13] sm:$0xff] }
 0x719   : > { %v2597_v49 = vmul.f32 %v9159_v29, %v2374_v22  ;;  %v9836_v23 = vpop.f32.mrb[6].mxu1  ;;  %v2502_v29 = vld [vmem:[%s16000_s13 + $0x8] sm:$0xff] }
 0x71a   : > { %v2377_v25 = vpop.f32.mrb[7].mxu1  ;;  %v2600_v51 = vmul.f32 %v9836_v23, %v9164_v2 }
 0x71b   : > { %v2598_v41 = vmul.f32 %v9160_v5, %v2377_v25  ;;  %9881 = vmatprep.mubr.msk.f32.mxu0 %vm2637_vm12, %v2597_v49 }
 0x71d   : > { %9882 = vmatmul.mubr.msk.f32.vlgmr.msra.gmra.mrb[6].mxu0 %vm2637_vm12, %v2598_v41 }
 0x71e   : > { %9884 = vmatprep.mubr.msk.f32.mxu0 %vm2637_vm12, %v2599_v39 }
 0x71f   : > { %v9839_v11 = vpop.f32.mrb[8].mxu1 }
 0x720   : > { %v2390_v35 = vpop.f32.mrb[9].mxu1  ;;  %v2603_v19 = vmul.f32 %v9839_v11, %v9171_v34  ;;  %v16022_v34 = vmov 3  }
 0x721   : > { %9885 = vmatmul.mubr.msk.f32.gmra.mrb[8].mxu0 %vm2637_vm12, %v2600_v51  ;;  %v2601_v40 = vmul.f32 %v9167_v21, %v2390_v35  ;;  %v9840_v31 = vpop.f32.mrb[10].mxu1 }
 0x722   : > { %v2393_v53 = vpop.f32.mrb[11].mxu1  ;;  %v2604_v55 = vmul.f32 %v9840_v31, %v9172_v15  ;;  %v16020_v15 = vmov 2  }
 0x723   : > { %v2602_v9 = vmul.f32 %v9168_v38, %v2393_v53  ;;  %9887 = vmatprep.mubr.msk.f32.mxu0 %vm2637_vm12, %v2601_v40 }
 0x725   : > { %9888 = vmatmul.mubr.msk.f32.gmra.mrb[10].mxu0 %vm2637_vm12, %v2602_v9 }
 0x726   : > { %9890 = vmatprep.mubr.msk.f32.mxu0 %vm2637_vm12, %v2603_v19  ;;  %v2504_v19 = vld [vmem:[%s16000_s13 + $0x18] sm:$0xff] }
 0x727   : > { %v9843_v3 = vpop.f32.mrb[12].mxu1 }
 0x728   : > { %v2406_v61 = vpop.f32.mrb[13].mxu1  ;;  %v2607_v20 = vmul.f32 %v9843_v3, %v9179_v54 }
 0x729   : > { %9891 = vmatmul.mubr.msk.f32.gmra.mrb[12].mxu0 %vm2637_vm12, %v2604_v55  ;;  %v2605_v37 = vmul.f32 %v9175_v60, %v2406_v61  ;;  %v9844_v47 = vpop.f32.mrb[14].mxu1  ;;  %v2503_v60 = vld [vmem:[%s16000_s13 + $0x10] sm:$0xff] }
 0x72a   : > { %v2409_v0 = vpop.f32.mrb[15].mxu1  ;;  %v2608_v18 = vmul.f32 %v9844_v47, %v9180_v17 }
 0x72b   : > { %v2606_v10 = vmul.f32 %v9176_v4, %v2409_v0  ;;  %9893 = vmatprep.mubr.msk.f32.mxu0 %vm2637_vm12, %v2605_v37  ;;  %v9293_v0 = vld [vmem:[%s15998_s11 + $0x48] sm:$0xff]  }
 0x72d   : > { %9894 = vmatmul.mubr.msk.f32.gmra.mrb[14].mxu0 %vm2637_vm12, %v2606_v10  ;;  %v9292_v10 = vld [vmem:[%s15998_s11 + $0x40] sm:$0xff]  }
 0x72e   : > { %9896 = vmatprep.mubr.msk.f32.mxu0 %vm2637_vm12, %v2607_v20  ;;  %v9191_v32 = vunpack.c.l.bf16 %v9292_v10  ;;  %v9192_v45 = vunpack.c.h.bf16 %v9292_v10 }
 0x72f   : > { %v9847_v8 = vpop.f32.mrb[16].mxu1 }
 0x730   : > { %v2422_v50 = vpop.f32.mrb[17].mxu1  ;;  %v2611_v33 = vmul.f32 %v9847_v8, %v9187_v7  ;;  %v9196_v8 = vunpack.c.h.bf16 %v9293_v0 }
 0x731   : > { %9897 = vmatmul.mubr.msk.f32.gmra.mrb[16].mxu0 %vm2637_vm12, %v2608_v18  ;;  %v9848_v12 = vpop.f32.mrb[18].mxu1  ;;  %v2609_v52 = vmul.f32 %v9183_v63, %v2422_v50  ;;  %v9195_v18 = vunpack.c.l.bf16 %v9293_v0  ;;  %v5650_v63 = vld [vmem:[%s723_s30 + $0x8] sm:$0xff] }
 0x732   : > { %v2425_v46 = vpop.f32.mrb[19].mxu1  ;;  %v2612_v26 = vmul.f32 %v9848_v12, %v9188_v30 }
 0x733   : > { %v2610_v57 = vmul.f32 %v9184_v14, %v2425_v46  ;;  %9899 = vmatprep.mubr.msk.f32.mxu0 %vm2637_vm12, %v2609_v52  ;;  %v10383_v14 = vpack.c.bf16 %v5650_v63, %v5649_v59 }
 0x735   : > { %9900 = vmatmul.mubr.msk.f32.gmra.mrb[18].mxu0 %vm2637_vm12, %v2610_v57  ;;  %10384 = vmatprep.subr.bf16.mxu1 %v10383_v14  ;;  %v2506_v57 = vld [vmem:[%s16000_s13 + $0x28] sm:$0xff] }
 0x736   : > { %9902 = vmatprep.mubr.msk.f32.mxu0 %vm2637_vm12, %v2611_v33  ;;  %10386 = vmatpush3.bf16.msra.mxu1 %v10383_v14 }
 0x737   : > { %v9851_v20 = vpop.f32.mrb[20].mxu1 }
 0x738   : > { %v2438_v27 = vpop.f32.mrb[21].mxu1  ;;  %v2615_v43 = vmul.f32 %v9851_v20, %v9195_v18 }
 0x739   : > { %9903 = vmatmul.mubr.msk.f32.gmra.mrb[20].mxu0 %vm2637_vm12, %v2612_v26  ;;  %v9852_v36 = vpop.f32.mrb[22].mxu1  ;;  %v2613_v62 = vmul.f32 %v9191_v32, %v2438_v27 }
 0x73a   : > { %v2441_v44 = vpop.f32.mrb[23].mxu1  ;;  %v2616_v12 = vmul.f32 %v9852_v36, %v9196_v8  ;;  %v9298_v8 = vld [vmem:[%s15998_s11 + $0x70] sm:$0xff]  }
 0x73b   : > { %v2614_v50 = vmul.f32 %v9192_v45, %v2441_v44  ;;  %9905 = vmatprep.mubr.msk.f32.mxu0 %vm2637_vm12, %v2613_v62 }
 0x73d   : > { %9906 = vmatmul.mubr.msk.f32.gmra.mrb[22].mxu0 %vm2637_vm12, %v2614_v50  ;;  %v9299_v50 = vld [vmem:[%s15998_s11 + $0x78] sm:$0xff]  }
 0x73e   : > { %9908 = vmatprep.mubr.msk.f32.mxu0 %vm2637_vm12, %v2615_v43 }
 0x741   : > { %9909 = vmatmul.mubr.msk.f32.gmra.mrb[24].mxu0 %vm2637_vm12, %v2616_v12  ;;  %v9215_v12 = vunpack.c.l.bf16 %v9298_v8 }
 0x7f0   : > { %v9883_v5 = vpop.f32.mrb[6].mxu0 }
 0x7f1   : > { %v2960_v6 = vadd.f32 %v9883_v5, %v2502_v29  ;;  %v2800_v22 = vpop.f32.mrb[7].mxu0  ;;  %v2505_v5 = vld [vmem:[%s16000_s13 + $0x20] sm:$0xff] }
 0x7f2   : > { %v2959_v49 = vadd.f32 %v2800_v22, %v2501_v1  ;;  %v9295_v22 = vld [vmem:[%s15998_s11 + $0x58] sm:$0xff]  }
 0x7f3   : > { %v2994_v23 = vfloor.f32 %v2960_v6 }
 0x7f4   : > { %v9886_v25 = vpop.f32.mrb[8].mxu0  ;;  %v2993_v41 = vfloor.f32 %v2959_v49 }
 0x7f5   : > { %v11959_v13 = vsub.f32 %v2960_v6, %v2994_v23  ;;  %v2810_v2 = vpop.f32.mrb[9].mxu0  ;;  %v10490_v35 = vtrunc.f32 %v2994_v23  ;;  %v2962_v58 = vadd.f32 %v9886_v25, %v2504_v19  ;;  %v9204_v19 = vunpack.c.h.bf16 %v9295_v22 }
 0x7f6   : > { %v3025_v21 = vsub.f32 %v2959_v49, %v2993_v41  ;;  %v10488_v31 = vtrunc.f32 %v2993_v41  ;;  %v2961_v54 = vadd.f32 %v2810_v2, %v2503_v60  ;;  %v9294_v49 = vld [vmem:[%s15998_s11 + $0x50] sm:$0xff]   ;;  %v9203_v2 = vunpack.c.l.bf16 %v9295_v22  ;;  %v9855_v41 = vpop.f32.mrb[24].mxu1  ;;  %v9297_v60 = vld [vmem:[%s15998_s11 + $0x68] sm:$0xff]  }
 0x7f7   : > { %16145 = vst [vmem:[#allocation4_spill] sm:$0xff] %v11959_v13  ;;  %4246 = vperm.xlu1 %10572, %v11959_v13   ;;  %3608 = vperm.xlu0 %10571, %v11959_v13   ;;  %v3218_v11 = vsub.f32 1.0, %v11959_v13  ;;  %v11979_v40 = vcvt.f32.s32 %v10490_v35  ;;  %v2996_v9 = vfloor.f32 %v2962_v58  ;;  %v9199_v25 = vunpack.c.l.bf16 %v9294_v49 }
 0x7f8   : > { %v11963_v24 = vpop.f32.mrb[10].mxu0  ;;  %v11987_v53 = vcvt.f32.s32 %v10488_v31  ;;  %v2995_v4 = vfloor.f32 %v2961_v54  ;;  %v3217_v61 = vsub.f32 1.0, %v3025_v21  ;;  %v9211_v20 = vunpack.c.l.bf16 %v9297_v60 }
 0x7f9   : > { %v11965_v39 = vpop.f32.mrb[11].mxu0  ;;  %16146 = vst [vmem:[#allocation5_spill] sm:$0xff] %v11979_v40  ;;  %v11994_v56 = vadd.s32 1, %v11979_v40  ;;  %v11999_v55 = vsub.f32 %v2962_v58, %v2996_v9  ;;  %v10494_v47 = vtrunc.f32 %v2996_v9  ;;  %v2964_v26 = vadd.f32 %v11963_v24, %v2506_v57  ;;  %v9296_v58 = vld [vmem:[%s15998_s11 + $0x60] sm:$0xff]  }
 0x7fa   : > { %v12010_v3 = vadd.s32 1, %v11987_v53  ;;  %v12014_v37 = vsub.f32 %v2961_v54, %v2995_v4  ;;  %v10492_v46 = vtrunc.f32 %v2995_v4  ;;  %v12088_v23 = vadd.f32 %v11965_v39, %v2505_v5 }
 0x7fb   : > { %10573 = vset.pattern.permute.xlu1 %v16022_v34  ;;  %10577 = vset.pattern.permute.xlu0 %v16022_v34  ;;  %16147 = vst [vmem:[#allocation6_spill] sm:$0xff] %v11994_v56  ;;  %16148 = vst [vmem:[#allocation7_spill] sm:$0xff] %v11999_v55  ;;  %v12019_v17 = vcvt.f32.s32 %v10494_v47  ;;  %v12031_v7 = vsub.f32 1.0, %v11999_v55  ;;  %v2998_v29 = vfloor.f32 %v2964_v26  ;;  %v9200_v24 = vunpack.c.h.bf16 %v9294_v49 }
 0x7fc   : > { %5462 = vperm.xlu1 %10573, %v11959_v13   ;;  %5458 = vperm.xlu0 %10577, %v3025_v21   ;;  %v11970_v51 = vpop.f32.mrb[12].mxu0  ;;  %16149 = vst [vmem:[#allocation8_spill] sm:$0xff] %v12010_v3  ;;  %v12056_v52 = vcvt.f32.s32 %v10492_v46  ;;  %v2619_v39 = vmul.f32 %v9855_v41, %v9203_v2  ;;  %v9207_v47 = vunpack.c.l.bf16 %v9296_v58  ;;  %v9208_v10 = vunpack.c.h.bf16 %v9296_v58  ;;  %v5972_v41 = vld [vmem:[%s728_s0] sm:$0xff] }
 0x7fd   : > { %v11975_v38 = vpop.f32.mrb[13].mxu0  ;;  %v12071_v1 = vadd.s32 1, %v12019_v17  ;;  %v12078_v6 = vsub.f32 %v2964_v26, %v2998_v29  ;;  %v10498_v4 = vtrunc.f32 %v2998_v29  ;;  %v9212_v45 = vunpack.c.h.bf16 %v9297_v60 }
 0x7fe   : > { %16151 = vst [vmem:[#allocation10_spill] sm:$0xff] %v12056_v52  ;;  %v9219_v46 = vunpack.c.l.bf16 %v9299_v50  ;;  %v9216_v57 = vunpack.c.h.bf16 %v9298_v8  ;;  %v9220_v22 = vunpack.c.h.bf16 %v9299_v50  ;;  %v12183_v60 = vsub.f32 1.0, %v12014_v37 }
 0x7ff   : > { %16152 = vst [vmem:[#allocation11_spill] sm:$0xff] %v12078_v6  ;;  %v12114_v27 = vcvt.f32.s32 %v10498_v4  ;;  %v12129_v59 = vsub.f32 1.0, %v12078_v6 }
 0x800   : > { %10574 = vset.pattern.permute.xlu1 %v16024_v42  ;;  %10579 = vset.pattern.permute.xlu0 %v16024_v42  ;;  %v12043_v30 = vpop.f32.mrb[14].mxu0  ;;  %16156 = vst [vmem:[#allocation14_spill] sm:$0xff] %v12183_v60 }
 0x801   : > { %3256 = vperm.xlu0 %10579, %v3218_v11   ;;  %3603 = vperm.xlu1 %10574, %v3025_v21   ;;  %v12053_v33 = vpop.f32.mrb[15].mxu0 }
 0x805   : > { %10581 = vset.pattern.permute.xlu0 %v16026_v28  ;;  %10575 = vset.pattern.permute.xlu1 %v16026_v28 }
 0x806   : > { %3958 = vperm.xlu0 %10581, %v3218_v11   ;;  %4242 = vperm.xlu1 %10575, %v3025_v21  }
 0x80a   : > { %10582 = vset.pattern.permute.xlu0 %v16022_v34  ;;  %10576 = vset.pattern.permute.xlu1 %v16020_v15 }
 0x80b   : > { %5045 = vperm.xlu0 %10582, %v11979_v40   ;;  %4850 = vperm.xlu1 %10576, %v3025_v21   ;;  %v2997_v21 = vfloor.f32 %v12088_v23 }
 0x80d   : > { %v12107_v54 = vsub.f32 %v12088_v23, %v2997_v21 }
 0x80f   : > { %10585 = vset.pattern.permute.xlu0 %v16024_v42  ;;  %10578 = vset.pattern.permute.xlu1 %v16024_v42 }
 0x810   : > { %3090 = vperm.xlu0 %10585, %v11987_v53   ;;  %3093 = vperm.xlu1 %10578, %v11979_v40  }
 0x814   : > { %3477 = vperm.xlu0 %10585, %v11994_v56   ;;  %10580 = vset.pattern.permute.xlu1 %v16026_v28 }
 0x815   : > { %3829 = vperm.xlu1 %10580, %v11979_v40  }
 0x818   : > { %3618 = vperm.xlu0 %10585, %v11999_v55  }
 0x819   : > { %10583 = vset.pattern.permute.xlu1 %v16020_v15 }
 0x81a   : > { %4566 = vperm.xlu1 %10583, %v3218_v11  }
 0x81c   : > { %10592 = vset.pattern.permute.xlu0 %v16026_v28 }
 0x81d   : > { %4117 = vperm.xlu0 %10592, %v11994_v56  }
 0x81e   : > { %10584 = vset.pattern.permute.xlu1 %v16022_v34 }
 0x81f   : > { %5174 = vperm.xlu1 %10584, %v3218_v11   ;;  %v2454_v11 = vpop.f32.mrb[25].mxu1 }
 0x820   : > { %v2617_v35 = vmul.f32 %v9199_v25, %v2454_v11  ;;  %v9856_v31 = vpop.f32.mrb[26].mxu1  ;;  %v12142_v11 = vpop.f32.mrb[16].mxu0 }
 0x821   : > { %4114 = vperm.xlu0 %10592, %v12010_v3  }
 0x822   : > { %9911 = vmatprep.mubr.msk.f32.mxu0 %vm2637_vm12, %v2617_v35 }
 0x823   : > { %10586 = vset.pattern.permute.xlu1 %v16024_v42 }
 0x824   : > { %3251 = vperm.xlu1 %10586, %v3217_v61  }
 0x825   : > { %10599 = vset.pattern.permute.xlu0 %v16022_v34 }
 0x826   : > { %5466 = vperm.xlu0 %10599, %v12014_v37  }
 0x828   : > { %10587 = vset.pattern.permute.xlu1 %v16026_v28 }
 0x829   : > { %3826 = vperm.xlu1 %10587, %v11987_v53  }
 0x82a   : > { %10600 = vset.pattern.permute.xlu0 %v16024_v42 }
 0x82b   : > { %3099 = vperm.xlu0 %10600, %v12019_v17  }
 0x82d   : > { %3954 = vperm.xlu1 %10587, %v3217_v61  }
 0x82f   : > { %3266 = vperm.xlu0 %10600, %v12031_v7  }
 0x831   : > { %10588 = vset.pattern.permute.xlu1 %v16020_v15 }
 0x832   : > { %4434 = vperm.xlu1 %10588, %v11987_v53  }
 0x833   : > { %10601 = vset.pattern.permute.xlu0 %v16026_v28 }
 0x834   : > { %3835 = vperm.xlu0 %10601, %v12019_v17  }
 0x836   : > { %10589 = vset.pattern.permute.xlu1 %v16022_v34 }
 0x837   : > { %5042 = vperm.xlu1 %10589, %v11987_v53   ;;  %v2457_v53 = vpop.f32.mrb[27].mxu1 }
 0x838   : > { %3966 = vperm.xlu0 %10601, %v12031_v7   ;;  %v2618_v9 = vmul.f32 %v9200_v24, %v2457_v53  ;;  %v9859_v0 = vpop.f32.mrb[28].mxu1  ;;  %v5973_v24 = vld [vmem:[%s728_s0 + $0x8] sm:$0xff]  ;;  %s16842_s0 = sld [smem:[#allocation251_spill]] }
 0x839   : > { %v2470_v18 = vpop.f32.mrb[29].mxu1  ;;  %v2623_v43 = vmul.f32 %v9859_v0, %v9211_v20  ;;  %v10387_v35 = vpack.c.bf16 %v5973_v24, %v5972_v41  ;;  %v12264_v41 = vand.u32 127, %v1901_v48 }
 0x83a   : > { %9912 = vmatmul.mubr.msk.f32.gmra.mrb[26].mxu0 %vm2637_vm12, %v2618_v9  ;;  %v2621_v32 = vmul.f32 %v9207_v47, %v2470_v18  ;;  %v9860_v36 = vpop.f32.mrb[30].mxu1 }
 0x83b   : > { %10590 = vset.pattern.permute.xlu1 %v16020_v15  ;;  %9914 = vmatprep.mubr.msk.f32.mxu0 %vm2637_vm12, %v2619_v39  ;;  %v2473_v62 = vpop.f32.mrb[31].mxu1  ;;  %v2624_v63 = vmul.f32 %v9860_v36, %v9212_v45  ;;  %v12156_v39 = vpop.f32.mrb[17].mxu0 }
 0x83c   : > { %4562 = vperm.xlu1 %10590, %v3217_v61   ;;  %10602 = vset.pattern.permute.xlu0 %v16022_v34  ;;  %v2622_v44 = vmul.f32 %v9208_v10, %v2473_v62  ;;  %v9863_v14 = vpop.f32.mrb[32].mxu1 }
 0x83d   : > { %5051 = vperm.xlu0 %10602, %v12019_v17   ;;  %v2486_v26 = vpop.f32.mrb[33].mxu1  ;;  %v2627_v25 = vmul.f32 %v9863_v14, %v9219_v46  ;;  %10388 = vmatprep.subr.bf16.mxu0 %v10387_v35 }
 0x83e   : > { %v2625_v29 = vmul.f32 %v9215_v12, %v2486_v26  ;;  %v9864_v5 = vpop.f32.mrb[34].mxu1  ;;  %10390 = vmatpush3.bf16.msra.mxu0 %v10387_v35  ;;  %s15436_s28 = scalar_lea.vmem %s16842_s0, %s9154_s1 }
 0x83f   : > { %v2489_v49 = vpop.f32.mrb[35].mxu1 }
 0x840   : > { %10591 = vset.pattern.permute.xlu1 %v16022_v34  ;;  %v2626_v2 = vmul.f32 %v9216_v57, %v2489_v49  ;;  %v12245_v57 = vpop.f32.mrb[18].mxu0 }
 0x841   : > { %5170 = vperm.xlu1 %10591, %v3217_v61   ;;  %10605 = vset.pattern.permute.xlu0 %v16026_v28  ;;  %v2620_v61 = vmul.f32 %v9856_v31, %v9204_v19  ;;  %v2628_v31 = vmul.f32 %v9864_v5, %v9220_v22  ;;  %v10496_v19 = vtrunc.f32 %v2997_v21  ;;  %v12254_v22 = vpop.f32.mrb[19].mxu0 }
 0x842   : > { %3832 = vperm.xlu0 %10605, %v12056_v52  }
 0x843   : > { %9915 = vmatmul.mubr.msk.f32.gmra.mrb[28].mxu0 %vm2637_vm12, %v2620_v61  ;;  %v12160_v53 = vcvt.f32.s32 %v10496_v19  ;;  %v12186_v61 = vadd.s32 1, %v12114_v27 }
 0x844   : > { %9917 = vmatprep.mubr.msk.f32.mxu0 %vm2637_vm12, %v2621_v32 }
 0x845   : > { %10593 = vset.pattern.permute.xlu1 %v16026_v28  ;;  %16154 = vst [vmem:[#allocation12_spill] sm:$0xff] %v12160_v53 }
 0x846   : > { %4254 = vperm.xlu1 %10593, %v11999_v55   ;;  %10607 = vset.pattern.permute.xlu0 %v16022_v34 }
 0x847   : > { %5048 = vperm.xlu0 %10607, %v12056_v52   ;;  %9918 = vmatmul.mubr.msk.f32.gmra.mrb[30].mxu0 %vm2637_vm12, %v2622_v44 }
 0x848   : > { %9920 = vmatprep.mubr.msk.f32.mxu0 %vm2637_vm12, %v2623_v43 }
 0x84a   : > { %10594 = vset.pattern.permute.xlu1 %v16022_v34 }
 0x84b   : > { %5333 = vperm.xlu1 %10594, %v11994_v56   ;;  %10609 = vset.pattern.permute.xlu0 %v16024_v42 }
 0x84c   : > { %3483 = vperm.xlu0 %10609, %v12071_v1   ;;  %9921 = vmatmul.mubr.msk.f32.gmra.mrb[32].mxu0 %vm2637_vm12, %v2624_v63 }
 0x84d   : > { %9923 = vmatprep.mubr.msk.f32.mxu0 %vm2637_vm12, %v2625_v29  ;;  %v3443_v29 = vadd.s32 1, %v12056_v52 }
 0x84f   : > { %5470 = vperm.xlu1 %10594, %v11999_v55  }
 0x850   : > { %3628 = vperm.xlu0 %10609, %v12078_v6   ;;  %9924 = vmatmul.mubr.msk.f32.gmra.mrb[34].mxu0 %vm2637_vm12, %v2626_v2 }
 0x851   : > { %9926 = vmatprep.mubr.msk.f32.mxu0 %vm2637_vm12, %v2627_v25 }
 0x853   : > { %10595 = vset.pattern.permute.xlu1 %v16024_v42 }
 0x854   : > { %3474 = vperm.xlu1 %10595, %v12010_v3   ;;  %10610 = vset.pattern.permute.xlu0 %v16026_v28 }
 0x855   : > { %4123 = vperm.xlu0 %10610, %v12071_v1   ;;  %9927 = vmatmul.mubr.msk.f32.gmra.mrb[36].mxu0 %vm2637_vm12, %v2628_v31  ;;  %v2510_v31 = vld [vmem:[%s16000_s13 + $0x48] sm:$0xff] }
 0x858   : > { %3613 = vperm.xlu1 %10595, %v12014_v37  }
 0x859   : > { %10619 = vset.pattern.permute.xlu0 %v16022_v34 }
 0x85a   : > { %5474 = vperm.xlu0 %10619, %v12107_v54  }
 0x85c   : > { %10596 = vset.pattern.permute.xlu1 %v16026_v28 }
 0x85d   : > { %4250 = vperm.xlu1 %10596, %v12014_v37  }
 0x85e   : > { %10620 = vset.pattern.permute.xlu0 %v16024_v42 }
 0x85f   : > { %3105 = vperm.xlu0 %10620, %v12114_v27  }
 0x861   : > { %10597 = vset.pattern.permute.xlu1 %v16022_v34 }
 0x862   : > { %5330 = vperm.xlu1 %10597, %v12010_v3  }
 0x863   : > { %3276 = vperm.xlu0 %10620, %v12129_v59  }
 0x866   : > { %10598 = vset.pattern.permute.xlu1 %v16020_v15 }
 0x867   : > { %4858 = vperm.xlu1 %10598, %v12014_v37   ;;  %10621 = vset.pattern.permute.xlu0 %v16026_v28  ;;  %v2507_v37 = vld [vmem:[%s16000_s13 + $0x30] sm:$0xff] }
 0x868   : > { %3841 = vperm.xlu0 %10621, %v12114_v27   ;;  %v2965_v0 = vadd.f32 %v11975_v38, %v2507_v37 }
 0x86a   : > { %v2999_v32 = vfloor.f32 %v2965_v0 }
 0x86b   : > { %4443 = vperm.xlu1 %10598, %v12019_v17   ;;  %v2508_v17 = vld [vmem:[%s16000_s13 + $0x38] sm:$0xff] }
 0x86c   : > { %3974 = vperm.xlu0 %10621, %v12129_v59   ;;  %v2966_v58 = vadd.f32 %v11970_v51, %v2508_v17  ;;  %v12217_v38 = vsub.f32 %v2965_v0, %v2999_v32  ;;  %v10500_v25 = vtrunc.f32 %v2999_v32 }
 0x86e   : > { %v3000_v4 = vfloor.f32 %v2966_v58  ;;  %v12267_v24 = vcvt.f32.s32 %v10500_v25 }
 0x86f   : > { %4574 = vperm.xlu1 %10598, %v12031_v7  }
 0x870   : > { %10622 = vset.pattern.permute.xlu0 %v16022_v34  ;;  %v12190_v51 = vsub.f32 %v2966_v58, %v3000_v4  ;;  %v10502_v43 = vtrunc.f32 %v3000_v4  ;;  %16167 = vst [vmem:[#allocation25_spill] sm:$0xff] %v12267_v24  ;;  %v2968_v58 = vadd.f32 %v12043_v30, %v2510_v31 }
 0x871   : > { %5057 = vperm.xlu0 %10622, %v12114_v27  }
 0x872   : > { %16157 = vst [vmem:[#allocation15_spill] sm:$0xff] %v12190_v51  ;;  %v12227_v44 = vcvt.f32.s32 %v10502_v43  ;;  %v12236_v12 = vsub.f32 1.0, %v12190_v51 }
 0x873   : > { %10603 = vset.pattern.permute.xlu1 %v16022_v34 }
 0x874   : > { %5182 = vperm.xlu1 %10603, %v12031_v7   ;;  %v12295_v30 = vadd.s32 1, %v12227_v44 }
 0x875   : > { %10625 = vset.pattern.permute.xlu0 %v16026_v28 }
 0x876   : > { %v12168_v23 = vpop.permute.xlu1 %4246  ;;  %v12170_v21 = vpop.permute.xlu0 %3608  ;;  %3838 = vperm.xlu0 %10625, %v12160_v53  }
 0x877   : > { %16155 = vst [vmem:[#allocation13_spill] sm:$0xff] %v12170_v21 }
 0x878   : > { %10604 = vset.pattern.permute.xlu1 %v16024_v42 }
 0x879   : > { %3096 = vperm.xlu1 %10604, %v12056_v52  }
 0x87a   : > { %10627 = vset.pattern.permute.xlu0 %v16022_v34 }
 0x87b   : > { %v12177_v7 = vpop.permute.xlu1 %5462  ;;  %v12179_v9 = vpop.permute.xlu0 %5458  ;;  %5054 = vperm.xlu0 %10627, %v12160_v53  }
 0x87d   : > { %3261 = vperm.xlu1 %10604, %v12183_v60  }
 0x87f   : > { %10629 = vset.pattern.permute.xlu0 %v16024_v42 }
 0x880   : > { %v12192_v47 = vpop.permute.xlu0 %3256  ;;  %v12194_v20 = vpop.permute.xlu1 %3603  ;;  %3489 = vperm.xlu0 %10629, %v12186_v61  }
 0x881   : > { %16158 = vst [vmem:[#allocation16_spill] sm:$0xff] %v12192_v47  ;;  %16159 = vst [vmem:[#allocation17_spill] sm:$0xff] %v12194_v20  ;;  %10606 = vset.pattern.permute.xlu1 %v16026_v28 }
 0x882   : > { %3962 = vperm.xlu1 %10606, %v12183_v60  }
 0x884   : > { %3638 = vperm.xlu0 %10629, %v12190_v51  }
 0x885   : > { %v12204_v10 = vpop.permute.xlu0 %3958  ;;  %v12206_v18 = vpop.permute.xlu1 %4242 }
 0x886   : > { %10608 = vset.pattern.permute.xlu1 %v16022_v34 }
 0x887   : > { %5178 = vperm.xlu1 %10608, %v12183_v60  }
 0x888   : > { %10630 = vset.pattern.permute.xlu0 %v16026_v28 }
 0x889   : > { %4129 = vperm.xlu0 %10630, %v12186_v61  }
 0x88a   : > { %v12212_v36 = vpop.permute.xlu0 %5045  ;;  %v12214_v45 = vpop.permute.xlu1 %4850 }
 0x88b   : > { %16160 = vst [vmem:[#allocation18_spill] sm:$0xff] %v12214_v45  ;;  %10611 = vset.pattern.permute.xlu1 %v16026_v28  ;;  %vm5138_vm11 = vcmp.eq.s32.totalorder %v12264_v41, %v12212_v36  ;;  %v16185_v36 = vmov 0  }
 0x88c   : > { %4262 = vperm.xlu1 %10611, %v12078_v6  }
 0x88d   : > { %10639 = vset.pattern.permute.xlu0 %v16022_v34 }
 0x88e   : > { %5482 = vperm.xlu0 %10639, %v12217_v38  }
 0x88f   : > { %v12222_v62 = vpop.permute.xlu0 %3090  ;;  %v12224_v8 = vpop.permute.xlu1 %3093 }
 0x890   : > { %16161 = vst [vmem:[#allocation19_spill] sm:$0xff] %v12222_v62  ;;  %16162 = vst [vmem:[#allocation20_spill] sm:$0xff] %v12224_v8  ;;  %10612 = vset.pattern.permute.xlu1 %v16020_v15 }
 0x891   : > { %4731 = vperm.xlu1 %10612, %v12071_v1  }
 0x892   : > { %10640 = vset.pattern.permute.xlu0 %v16024_v42 }
 0x893   : > { %v12231_v50 = vpop.permute.xlu0 %3477  ;;  %3111 = vperm.xlu0 %10640, %v12227_v44  }
 0x894   : > { %16163 = vst [vmem:[#allocation21_spill] sm:$0xff] %v12231_v50  ;;  %v3830_v63 = vpop.permute.xlu1 %3829 }
 0x895   : > { %10613 = vset.pattern.permute.xlu1 %v16022_v34  ;;  %vm3922_vm15 = vcmp.eq.s32.totalorder %v12264_v41, %v3830_v63 }
 0x896   : > { %5339 = vperm.xlu1 %10613, %v12071_v1   ;;  %v4082_v0 = vsel %vm3922_vm15, %v12204_v10, 0.0 }
 0x897   : > { %v12239_v14 = vpop.permute.xlu0 %3618  ;;  %3286 = vperm.xlu0 %10640, %v12236_v12  }
 0x898   : > { %16164 = vst [vmem:[#allocation22_spill] sm:$0xff] %v12239_v14 }
 0x899   : > { %v12242_v46 = vpop.permute.xlu1 %4566 }
 0x89a   : > { %16165 = vst [vmem:[#allocation23_spill] sm:$0xff] %v12242_v46  ;;  %5478 = vperm.xlu1 %10613, %v12078_v6  }
 0x89b   : > { %10641 = vset.pattern.permute.xlu0 %v16026_v28 }
 0x89c   : > { %v4118_v26 = vpop.permute.xlu0 %4117  ;;  %3847 = vperm.xlu0 %10641, %v12227_v44  }
 0x89d   : > { %vm4210_vm13 = vcmp.eq.s32.totalorder %v12264_v41, %v4118_v26 }
 0x89e   : > { %v12250_v5 = vpop.permute.xlu1 %5174  ;;  %10614 = vset.pattern.permute.xlu1 %v16024_v42  ;;  %v4370_v48 = vsel %vm4210_vm13, %v12168_v23, 0.0  ;;  %v3002_v23 = vfloor.f32 %v2968_v58 }
 0x89f   : > { %3480 = vperm.xlu1 %10614, %v3443_v29   ;;  %v4402_v63 = vadd.f32 %v4370_v48, %v4082_v0 }
 0x8a0   : > { %v4115_v1 = vpop.permute.xlu0 %4114  ;;  %3982 = vperm.xlu0 %10641, %v12236_v12  }
 0x8a1   : > { %vm4209_vm14 = vcmp.eq.s32.totalorder %v12264_v41, %v4115_v1  ;;  %v12303_v1 = vsub.f32 %v2968_v58, %v3002_v23 }
 0x8a2   : > { %v4369_v4 = vsel %vm4209_vm14, %v12206_v18, 0.0  ;;  %v2509_v18 = vld [vmem:[%s16000_s13 + $0x40] sm:$0xff] }
 0x8a3   : > { %v12256_v49 = vpop.permute.xlu1 %3251  ;;  %3623 = vperm.xlu1 %10614, %v12107_v54   ;;  %16171 = vst [vmem:[#allocation29_spill] sm:$0xff] %v12303_v1 }
 0x8a4   : > { %16166 = vst [vmem:[#allocation24_spill] sm:$0xff] %v12256_v49  ;;  %10642 = vset.pattern.permute.xlu0 %v16022_v34 }
 0x8a5   : > { %v12260_v2 = vpop.permute.xlu0 %5466  ;;  %5063 = vperm.xlu0 %10642, %v12227_v44  }
 0x8a7   : > { %10615 = vset.pattern.permute.xlu1 %v16026_v28 }
 0x8a8   : > { %v3827_v35 = vpop.permute.xlu1 %3826  ;;  %4120 = vperm.xlu1 %10615, %v3443_v29  }
 0x8a9   : > { %10645 = vset.pattern.permute.xlu0 %v16026_v28  ;;  %vm3921_vm0 = vcmp.eq.s32.totalorder %v12264_v41, %v3827_v35  ;;  %v2967_v35 = vadd.f32 %v12053_v33, %v2509_v18  ;;  %v10506_v33 = vtrunc.f32 %v3002_v23 }
 0x8aa   : > { %v12275_v19 = vpop.permute.xlu0 %3099  ;;  %3844 = vperm.xlu0 %10645, %v12267_v24  }
 0x8ab   : > { %16168 = vst [vmem:[#allocation26_spill] sm:$0xff] %v12275_v19  ;;  %v3001_v48 = vfloor.f32 %v2967_v35  ;;  %v12328_v0 = vcvt.f32.s32 %v10506_v33 }
 0x8ac   : > { %v3955_v17 = vpop.permute.xlu1 %3954  ;;  %4258 = vperm.xlu1 %10615, %v12107_v54  }
 0x8ad   : > { %v4081_v37 = vsel %vm3921_vm0, %v3955_v17, 0.0  ;;  %v10504_v46 = vtrunc.f32 %v3001_v48 }
 0x8ae   : > { %v4401_v32 = vadd.f32 %v4369_v4, %v4081_v37  ;;  %v12285_v43 = vpop.permute.xlu0 %3266  ;;  %10647 = vset.pattern.permute.xlu0 %v16022_v34 }
 0x8af   : > { %16169 = vst [vmem:[#allocation27_spill] sm:$0xff] %v12285_v43  ;;  %5060 = vperm.xlu0 %10647, %v12267_v24  }
 0x8b0   : > { %9933 = vmatprep.mubr.msk.f32.mxu1 %vm820_vm5, %v4401_v32  ;;  %10616 = vset.pattern.permute.xlu1 %v16020_v15 }
 0x8b1   : > { %v12291_v26 = vpop.permute.xlu1 %4434  ;;  %9934 = vmatmul.mubr.msk.f32.vlgmr.msra.gmra.mrb[36].mxu1 %vm820_vm5, %v4402_v63  ;;  %4728 = vperm.xlu1 %10616, %v3443_v29  }
 0x8b2   : > { %16170 = vst [vmem:[#allocation28_spill] sm:$0xff] %v12291_v26 }
 0x8b3   : > { %v12297_v10 = vpop.permute.xlu0 %3835  ;;  %10649 = vset.pattern.permute.xlu0 %v16024_v42 }
 0x8b4   : > { %3495 = vperm.xlu0 %10649, %v12295_v30   ;;  %vm3924_vm0 = vcmp.eq.s32.totalorder %v12264_v41, %v12297_v10 }
 0x8b5   : > { %10617 = vset.pattern.permute.xlu1 %v16022_v34 }
 0x8b6   : > { %v12307_v25 = vpop.permute.xlu1 %5042  ;;  %5336 = vperm.xlu1 %10617, %v3443_v29   ;;  %v12321_v29 = vsub.f32 %v2967_v35, %v3001_v48  ;;  %v12347_v35 = vpop.f32.mrb[20].mxu0  ;;  %v16180_v48 = vmov 1  }
 0x8b7   : > { %v12310_v31 = vpop.permute.xlu0 %3966  ;;  %vm5137_vm8 = vcmp.eq.s32.totalorder %v12264_v41, %v12307_v25  ;;  %v16183_v25 = vmov 2  }
 0x8b8   : > { %3648 = vperm.xlu0 %10649, %v12303_v1  }
 0x8ba   : > { %10618 = vset.pattern.permute.xlu1 %v16020_v15 }
 0x8bb   : > { %v12314_v17 = vpop.permute.xlu1 %4562  ;;  %4866 = vperm.xlu1 %10618, %v12107_v54  }
 0x8bc   : > { %16172 = vst [vmem:[#allocation30_spill] sm:$0xff] %v12314_v17  ;;  %v12317_v58 = vpop.permute.xlu0 %5051  ;;  %10650 = vset.pattern.permute.xlu0 %v16026_v28  ;;  %v12366_v17 = vpop.f32.mrb[21].mxu0 }
 0x8bd   : > { %4135 = vperm.xlu0 %10650, %v12295_v30   ;;  %v12467_v21 = vpop.f32.mrb[22].mxu0 }
 0x8bf   : > { %4449 = vperm.xlu1 %10618, %v12114_v27   ;;  %v12339_v27 = vsub.f32 1.0, %v12303_v1 }
 0x8c0   : > { %v5171_v4 = vpop.permute.xlu1 %5170 }
 0x8c1   : > { %v12324_v37 = vpop.permute.xlu0 %3832  ;;  %10659 = vset.pattern.permute.xlu0 %v16022_v34 }
 0x8c2   : > { %5490 = vperm.xlu0 %10659, %v12321_v29   ;;  %vm3923_vm14 = vcmp.eq.s32.totalorder %v12264_v41, %v12324_v37 }
 0x8c3   : > { %4582 = vperm.xlu1 %10618, %v12129_v59  }
 0x8c5   : > { %v12331_v32 = vpop.permute.xlu1 %4254 }
 0x8c6   : > { %v12333_v63 = vpop.permute.xlu0 %5048  ;;  %10660 = vset.pattern.permute.xlu0 %v16024_v42 }
 0x8c7   : > { %10623 = vset.pattern.permute.xlu1 %v16022_v34  ;;  %3117 = vperm.xlu0 %10660, %v12328_v0   ;;  %v12355_v34 = vsub.f32 1.0, %v12107_v54  ;;  %v16178_v54 = vmov 3  }
 0x8c8   : > { %5190 = vperm.xlu1 %10623, %v12129_v59  }
 0x8c9   : > { %16175 = vst [vmem:[#allocation33_spill] sm:$0xff] %v12355_v34 }
 0x8ca   : > { %v5334_v23 = vpop.permute.xlu1 %5333 }
 0x8cb   : > { %v12342_v18 = vpop.permute.xlu0 %3483  ;;  %3296 = vperm.xlu0 %10660, %v12339_v27   ;;  %vm5426_vm7 = vcmp.eq.s32.totalorder %v12264_v41, %v5334_v23  ;;  %v5297_v23 = vsel %vm5137_vm8, %v5171_v4, 0.0  ;;  %vm5139_vm8 = vcmp.eq.s32.totalorder %v12264_v41, %v12333_v63 }
 0x8cc   : > { %16173 = vst [vmem:[#allocation31_spill] sm:$0xff] %v12342_v18  ;;  %10624 = vset.pattern.permute.xlu1 %v16024_v42  ;;  %v5586_v14 = vsel %vm5426_vm7, %v12177_v7, 0.0 }
 0x8cd   : > { %3102 = vperm.xlu1 %10624, %v12160_v53  }
 0x8ce   : > { %v12349_v33 = vpop.permute.xlu1 %5470 }
 0x8cf   : > { %10661 = vset.pattern.permute.xlu0 %v16026_v28  ;;  %v12352_v15 = vpop.permute.xlu0 %3628 }
 0x8d0   : > { %16174 = vst [vmem:[#allocation32_spill] sm:$0xff] %v12352_v15  ;;  %3853 = vperm.xlu0 %10661, %v12328_v0   ;;  %v12374_v15 = vcvt.f32.s32 %v10504_v46  ;;  %v2970_v46 = vadd.f32 %v12142_v11, %v2512_v16  ;;  %v5298_v16 = vsel %vm5138_vm11, %v12250_v5, 0.0  ;;  %v2511_v5 = vld [vmem:[%s16000_s13 + $0x50] sm:$0xff]  ;;  %vm5140_vm11 = vcmp.eq.s32.totalorder %v12264_v41, %v12317_v58 }
 0x8d1   : > { %3271 = vperm.xlu1 %10624, %v12355_v34   ;;  %v2969_v4 = vadd.f32 %v12156_v39, %v2511_v5 }
 0x8d2   : > { %16179 = vst [vmem:[#allocation36_spill] sm:$0xff] %v12374_v15  ;;  %v3004_v7 = vfloor.f32 %v2970_v46 }
 0x8d3   : > { %v12359_v59 = vpop.permute.xlu1 %3474 }
 0x8d4   : > { %16176 = vst [vmem:[#allocation34_spill] sm:$0xff] %v12359_v59  ;;  %3990 = vperm.xlu0 %10661, %v12339_v27   ;;  %v12362_v42 = vpop.permute.xlu0 %4123  ;;  %v10510_v39 = vtrunc.f32 %v3004_v7 }
 0x8d5   : > { %10626 = vset.pattern.permute.xlu1 %v16026_v28  ;;  %vm4212_vm13 = vcmp.eq.s32.totalorder %v12264_v41, %v12362_v42 }
 0x8d6   : > { %3970 = vperm.xlu1 %10626, %v12355_v34  }
 0x8d7   : > { %v12368_v26 = vpop.permute.xlu1 %3613 }
 0x8d8   : > { %16177 = vst [vmem:[#allocation35_spill] sm:$0xff] %v12368_v26  ;;  %10662 = vset.pattern.permute.xlu0 %v16178_v54  ;;  %v5618_v26 = vadd.f32 %v5586_v14, %v5298_v16 }
 0x8d9   : > { %5069 = vperm.xlu0 %10662, %v12328_v0   ;;  %v12372_v45 = vpop.permute.xlu0 %5474 }
 0x8da   : > { %10628 = vset.pattern.permute.xlu1 %v16178_v54 }
 0x8db   : > { %5186 = vperm.xlu1 %10628, %v12355_v34  }
 0x8dc   : > { %v12378_v28 = vpop.permute.xlu1 %4250 }
 0x8dd   : > { %10665 = vset.pattern.permute.xlu0 %v16180_v48 }
 0x8de   : > { %3850 = vperm.xlu0 %10665, %v12374_v15   ;;  %v12385_v43 = vpop.permute.xlu0 %3105 }
 0x8df   : > { %16181 = vst [vmem:[#allocation37_spill] sm:$0xff] %v12385_v43  ;;  %10631 = vset.pattern.permute.xlu1 %v16180_v48 }
 0x8e0   : > { %4270 = vperm.xlu1 %10631, %v12190_v51  }
 0x8e1   : > { %v5331_v19 = vpop.permute.xlu1 %5330 }
 0x8e2   : > { %vm5425_vm10 = vcmp.eq.s32.totalorder %v12264_v41, %v5331_v19  ;;  %10667 = vset.pattern.permute.xlu0 %v16178_v54  ;;  %v12396_v47 = vpop.permute.xlu0 %3276  ;;  %v12405_v19 = vadd.s32 1, %v12328_v0 }
 0x8e3   : > { %16182 = vst [vmem:[#allocation38_spill] sm:$0xff] %v12396_v47  ;;  %v5585_v43 = vsel %vm5425_vm10, %v12179_v9, 0.0  ;;  %5066 = vperm.xlu0 %10667, %v12374_v15  }
 0x8e4   : > { %v5617_v11 = vadd.f32 %v5585_v43, %v5297_v23  ;;  %10632 = vset.pattern.permute.xlu1 %v16183_v25  ;;  %v12418_v43 = vsub.f32 %v2970_v46, %v3004_v7  ;;  %v3003_v46 = vfloor.f32 %v2969_v4 }
 0x8e5   : > { %4737 = vperm.xlu1 %10632, %v12186_v61  }
 0x8e6   : > { %v12408_v47 = vpop.permute.xlu1 %4858  ;;  %9985 = vmatprep.mubr.msk.f32.mxu0 %vm820_vm5, %v5617_v11  ;;  %16186 = vst [vmem:[#allocation40_spill] sm:$0xff] %v12418_v43  ;;  %v3445_v11 = vadd.s32 1, %v12160_v53  ;;  %v12457_v7 = vsub.f32 1.0, %v12418_v43  ;;  %v10508_v8 = vtrunc.f32 %v3003_v46 }
 0x8e7   : > { %16184 = vst [vmem:[#allocation39_spill] sm:$0xff] %v12408_v47  ;;  %10669 = vset.pattern.permute.xlu0 %v16185_v36  ;;  %9986 = vmatmul.mubr.msk.f32.vlgmr.msra.gmra.mrb[38].mxu0 %vm820_vm5, %v5618_v26  ;;  %v12413_v9 = vpop.permute.xlu0 %3841 }
 0x8e8   : > { %3501 = vperm.xlu0 %10669, %v12405_v19   ;;  %v12488_v50 = vcvt.f32.s32 %v10508_v8 }
 0x8e9   : > { %10633 = vset.pattern.permute.xlu1 %v16178_v54 }
 0x8ea   : > { %v12422_v14 = vpop.permute.xlu1 %4443  ;;  %5345 = vperm.xlu1 %10633, %v12186_v61   ;;  %v12437_v61 = vsub.f32 %v2969_v4, %v3003_v46  ;;  %16193 = vst [vmem:[#allocation47_spill] sm:$0xff] %v12488_v50  ;;  %v2514_v46 = vld [vmem:[%s16000_s13 + $0x68] sm:$0xff] }
 0x8eb   : > { %16187 = vst [vmem:[#allocation41_spill] sm:$0xff] %v12422_v14  ;;  %v12426_v23 = vpop.permute.xlu0 %3974  ;;  %v12446_v14 = vcvt.f32.s32 %v10510_v39  ;;  %v2972_v8 = vadd.f32 %v12245_v57, %v2514_v46 }
 0x8ec   : > { %3658 = vperm.xlu0 %10669, %v12418_v43  }
 0x8ed   : > { %v12511_v34 = vadd.s32 1, %v12446_v14 }
 0x8ee   : > { %v12429_v26 = vpop.permute.xlu1 %4574  ;;  %5486 = vperm.xlu1 %10633, %v12190_v51  }
 0x8ef   : > { %16188 = vst [vmem:[#allocation42_spill] sm:$0xff] %v12429_v26 }
 0x8f0   : > { %10670 = vset.pattern.permute.xlu0 %v16180_v48  ;;  %v12433_v16 = vpop.permute.xlu0 %5057 }
 0x8f1   : > { %4141 = vperm.xlu0 %10670, %v12405_v19  }
 0x8f2   : > { %10634 = vset.pattern.permute.xlu1 %v16185_v36 }
 0x8f3   : > { %v12440_v5 = vpop.permute.xlu1 %5182  ;;  %3486 = vperm.xlu1 %10634, %v3445_v11  }
 0x8f5   : > { %10679 = vset.pattern.permute.xlu0 %v16178_v54  ;;  %v12443_v26 = vpop.permute.xlu0 %3838 }
 0x8f6   : > { %5498 = vperm.xlu0 %10679, %v12437_v61  }
 0x8f7   : > { %3633 = vperm.xlu1 %10634, %v12217_v38  }
 0x8f8   : > { %v12449_v47 = vpop.permute.xlu1 %3096 }
 0x8f9   : > { %16189 = vst [vmem:[#allocation43_spill] sm:$0xff] %v12449_v47 }
 0x8fa   : > { %10680 = vset.pattern.permute.xlu0 %v16185_v36  ;;  %v12452_v4 = vpop.permute.xlu0 %5054 }
 0x8fb   : > { %10635 = vset.pattern.permute.xlu1 %v16180_v48  ;;  %3123 = vperm.xlu0 %10680, %v12446_v14  }
 0x8fc   : > { %v12459_v18 = vpop.permute.xlu1 %3261  ;;  %4126 = vperm.xlu1 %10635, %v3445_v11  }
 0x8fd   : > { %16190 = vst [vmem:[#allocation44_spill] sm:$0xff] %v12459_v18 }
 0x8ff   : > { %3306 = vperm.xlu0 %10680, %v12457_v7   ;;  %v12462_v39 = vpop.permute.xlu0 %3489 }
 0x900   : > { %16191 = vst [vmem:[#allocation45_spill] sm:$0xff] %v12462_v39  ;;  %4266 = vperm.xlu1 %10635, %v12217_v38  }
 0x901   : > { %v12465_v47 = vpop.permute.xlu1 %3962 }
 0x902   : > { %v4083_v42 = vsel %vm3923_vm14, %v12465_v47, 0.0  ;;  %vm3926_vm14 = vcmp.eq.s32.totalorder %v12264_v41, %v12413_v9 }
 0x903   : > { %10681 = vset.pattern.permute.xlu0 %v16180_v48  ;;  %v12470_v49 = vpop.permute.xlu0 %3638 }
 0x904   : > { %16192 = vst [vmem:[#allocation46_spill] sm:$0xff] %v12470_v49  ;;  %10636 = vset.pattern.permute.xlu1 %v16183_v25  ;;  %3859 = vperm.xlu0 %10681, %v12446_v14   ;;  %v12483_v49 = vpop.f32.mrb[23].mxu0 }
 0x905   : > { %4734 = vperm.xlu1 %10636, %v3445_v11  }
 0x906   : > { %v12474_v18 = vpop.permute.xlu1 %5178 }
 0x907   : > { %v5299_v40 = vsel %vm5139_vm8, %v12474_v18, 0.0  ;;  %vm5141_vm8 = vcmp.eq.s32.totalorder %v12264_v41, %v12452_v4 }
 0x908   : > { %3998 = vperm.xlu0 %10681, %v12457_v7   ;;  %v12477_v39 = vpop.permute.xlu0 %4129 }
 0x909   : > { %10637 = vset.pattern.permute.xlu1 %v16178_v54 }
 0x90a   : > { %5342 = vperm.xlu1 %10637, %v3445_v11  }
 0x90b   : > { %v12480_v62 = vpop.permute.xlu1 %4262 }
 0x90c   : > { %10682 = vset.pattern.permute.xlu0 %v16178_v54 }
 0x90d   : > { %v12485_v20 = vpop.permute.xlu0 %5482  ;;  %5075 = vperm.xlu0 %10682, %v12446_v14  }
 0x90e   : > { %10638 = vset.pattern.permute.xlu1 %v16183_v25 }
 0x90f   : > { %4874 = vperm.xlu1 %10638, %v12217_v38  }
 0x910   : > { %v12492_v59 = vpop.permute.xlu1 %4731 }
 0x911   : > { %16194 = vst [vmem:[#allocation48_spill] sm:$0xff] %v12492_v59  ;;  %10685 = vset.pattern.permute.xlu0 %v16180_v48  ;;  %v3006_v59 = vfloor.f32 %v2972_v8 }
 0x912   : > { %v12498_v11 = vpop.permute.xlu0 %3111  ;;  %3856 = vperm.xlu0 %10685, %v12488_v50  }
 0x913   : > { %16195 = vst [vmem:[#allocation49_spill] sm:$0xff] %v12498_v11  ;;  %4455 = vperm.xlu1 %10638, %v12227_v44   ;;  %v2513_v44 = vld [vmem:[%s16000_s13 + $0x60] sm:$0xff]  ;;  %v12522_v57 = vsub.f32 %v2972_v8, %v3006_v59 }
 0x915   : > { %v12503_v51 = vpop.permute.xlu1 %5339  ;;  %16197 = vst [vmem:[#allocation51_spill] sm:$0xff] %v12522_v57 }
 0x916   : > { %v12505_v6 = vpop.permute.xlu0 %3286  ;;  %10687 = vset.pattern.permute.xlu0 %v16178_v54  ;;  %vm5428_vm7 = vcmp.eq.s32.totalorder %v12264_v41, %v12503_v51 }
 0x917   : > { %16196 = vst [vmem:[#allocation50_spill] sm:$0xff] %v12505_v6  ;;  %4590 = vperm.xlu1 %10638, %v12236_v12   ;;  %5072 = vperm.xlu0 %10687, %v12488_v50   ;;  %v12529_v6 = vadd.f32 %v12254_v22, %v2513_v44  ;;  %v10514_v44 = vtrunc.f32 %v3006_v59  ;;  %v4084_v59 = vsel %vm3924_vm0, %v12310_v31, 0.0  ;;  %v12586_v31 = vsub.f32 1.0, %v12522_v57 }
 0x918   : > { %v5588_v56 = vsel %vm5428_vm7, %v12349_v33, 0.0 }
 0x919   : > { %v12513_v11 = vpop.permute.xlu1 %5478  ;;  %v16037_v8 = vfloor.f32 %v12529_v6 }
 0x91b   : > { %v12515_v53 = vpop.permute.xlu0 %3847  ;;  %10643 = vset.pattern.permute.xlu1 %v16178_v54  ;;  %10689 = vset.pattern.permute.xlu0 %v16185_v36  ;;  %v12552_v22 = vsub.f32 %v12529_v6, %v16037_v8 }
 0x91c   : > { %5198 = vperm.xlu1 %10643, %v12236_v12   ;;  %3507 = vperm.xlu0 %10689, %v12511_v34   ;;  %v12540_v12 = vsub.f32 1.0, %v12217_v38  ;;  %v4372_v38 = vsel %vm4212_vm13, %v12331_v32, 0.0  ;;  %v12569_v32 = vcvt.f32.s32 %v10514_v44  ;;  %vm4214_vm13 = vcmp.eq.s32.totalorder %v12264_v41, %v12477_v39 }
 0x91d   : > { %v4374_v39 = vsel %vm4214_vm13, %v12480_v62, 0.0 }
 0x91e   : > { %v12526_v46 = vpop.permute.xlu1 %3480  ;;  %16200 = vst [vmem:[#allocation54_spill] sm:$0xff] %v12540_v12 }
 0x91f   : > { %16198 = vst [vmem:[#allocation52_spill] sm:$0xff] %v12526_v46  ;;  %v12531_v55 = vpop.permute.xlu0 %3982 }
 0x920   : > { %10644 = vset.pattern.permute.xlu1 %v16185_v36  ;;  %3668 = vperm.xlu0 %10689, %v12522_v57  }
 0x921   : > { %3108 = vperm.xlu1 %10644, %v12267_v24  }
 0x922   : > { %v12536_v60 = vpop.permute.xlu1 %3623 }
 0x923   : > { %16199 = vst [vmem:[#allocation53_spill] sm:$0xff] %v12536_v60 }
 0x924   : > { %v12542_v52 = vpop.permute.xlu0 %5063  ;;  %10690 = vset.pattern.permute.xlu0 %v16180_v48 }
 0x925   : > { %3281 = vperm.xlu1 %10644, %v12540_v12   ;;  %4147 = vperm.xlu0 %10690, %v12511_v34  }
 0x927   : > { %v4121_v60 = vpop.permute.xlu1 %4120 }
 0x928   : > { %vm4211_vm15 = vcmp.eq.s32.totalorder %v12264_v41, %v4121_v60  ;;  %v4404_v60 = vadd.f32 %v4372_v38, %v4084_v59 }
 0x929   : > { %v4371_v46 = vsel %vm4211_vm15, %v12378_v28, 0.0  ;;  %v12562_v13 = vpop.permute.xlu0 %3844  ;;  %10646 = vset.pattern.permute.xlu1 %v16180_v48  ;;  %10699 = vset.pattern.permute.xlu0 %v16178_v54  ;;  %v12574_v28 = vpop.f32.mrb[24].mxu0  ;;  %vm3925_vm15 = vcmp.eq.s32.totalorder %v12264_v41, %v12443_v26 }
 0x92a   : > { %v4403_v37 = vadd.f32 %v4371_v46, %v4083_v42  ;;  %3978 = vperm.xlu1 %10646, %v12540_v12   ;;  %5506 = vperm.xlu0 %10699, %v12552_v22   ;;  %v12577_v47 = vpop.f32.mrb[25].mxu0 }
 0x92b   : > { %v12571_v10 = vpop.permute.xlu1 %4258  ;;  %v12588_v46 = vpop.f32.mrb[26].mxu0 }
 0x92c   : > { %9936 = vmatprep.mubr.msk.f32.mxu1 %vm820_vm5, %v4403_v37  ;;  %v12592_v38 = vpop.f32.mrb[27].mxu0 }
 0x92d   : > { %9937 = vmatmul.mubr.msk.f32.gmra.mrb[38].mxu1 %vm820_vm5, %v4404_v60  ;;  %v12594_v42 = vpop.f32.mrb[28].mxu0 }
 0x92e   : > { %v12579_v8 = vpop.permute.xlu0 %5060  ;;  %10648 = vset.pattern.permute.xlu1 %v16178_v54  ;;  %10700 = vset.pattern.permute.xlu0 %v16185_v36  ;;  %v12596_v59 = vpop.f32.mrb[29].mxu0 }
 0x92f   : > { %5194 = vperm.xlu1 %10648, %v12540_v12   ;;  %3129 = vperm.xlu0 %10700, %v12569_v32   ;;  %v12604_v60 = vpop.f32.mrb[30].mxu0 }
 0x930   : > { %v12590_v44 = vpop.permute.xlu1 %4728  ;;  %16203 = vst [vmem:[#allocation57_spill] sm:$0xff] %v12604_v60  ;;  %v12607_v12 = vpop.f32.mrb[31].mxu0 }
 0x931   : > { %16201 = vst [vmem:[#allocation55_spill] sm:$0xff] %v12590_v44  ;;  %16204 = vst [vmem:[#allocation58_spill] sm:$0xff] %v12607_v12  ;;  %v12613_v51 = vpop.f32.mrb[32].mxu0 }
 0x932   : > { %16205 = vst [vmem:[#allocation59_spill] sm:$0xff] %v12613_v51  ;;  %v2930_v33 = vpop.f32.mrb[33].mxu0 }
 0x933   : > { %v12600_v37 = vpop.permute.xlu0 %3495  ;;  %10651 = vset.pattern.permute.xlu1 %v16180_v48  ;;  %3316 = vperm.xlu0 %10700, %v12586_v31  }
 0x934   : > { %16202 = vst [vmem:[#allocation56_spill] sm:$0xff] %v12600_v37  ;;  %4278 = vperm.xlu1 %10651, %v12303_v1   ;;  %v2527_v37 = vld [vmem:[%s16000_s13 + $0xd0] sm:$0xff] }
 0x935   : > { %v5337_v44 = vpop.permute.xlu1 %5336  ;;  %v12629_v58 = vadd.f32 %v2930_v33, %v2527_v37  ;;  %v16210_v37 = vfloor.f32 %v12529_v6 }
 0x936   : > { %vm5427_vm10 = vcmp.eq.s32.totalorder %v12264_v41, %v5337_v44  ;;  %v5300_v44 = vsel %vm5140_vm11, %v12440_v5, 0.0  ;;  %vm5142_vm11 = vcmp.eq.s32.totalorder %v12264_v41, %v12433_v16 }
 0x937   : > { %v5587_v3 = vsel %vm5427_vm10, %v12260_v2, 0.0  ;;  %10701 = vset.pattern.permute.xlu0 %v16180_v48  ;;  %v12623_v63 = vpop.permute.xlu0 %3648  ;;  %v5620_v51 = vadd.f32 %v5588_v56, %v5300_v44  ;;  %16207 = vst [vmem:[#allocation61_spill] sm:$0xff] %v12629_v58  ;;  %v12635_v2 = vpop.f32.mrb[34].mxu0  ;;  %v2529_v56 = vld [vmem:[%s16000_s13 + $0xe0] sm:$0xff] }
 0x938   : > { %16206 = vst [vmem:[#allocation60_spill] sm:$0xff] %v12623_v63  ;;  %v5619_v12 = vadd.f32 %v5587_v3, %v5299_v40  ;;  %10652 = vset.pattern.permute.xlu1 %v16183_v25  ;;  %3865 = vperm.xlu0 %10701, %v12569_v32   ;;  %16209 = vst [vmem:[#allocation63_spill] sm:$0xff] %v12635_v2  ;;  %v16043_v40 = vfloor.f32 %v12629_v58  ;;  %v2940_v3 = vpop.f32.mrb[35].mxu0 }
 0x939   : > { %4743 = vperm.xlu1 %10652, %v12295_v30   ;;  %v12655_v44 = vadd.f32 %v2940_v3, %v2529_v56  ;;  %v3447_v3 = vadd.s32 1, %v12267_v24 }
 0x93a   : > { %v12631_v18 = vpop.permute.xlu1 %4866  ;;  %9988 = vmatprep.mubr.msk.f32.mxu0 %vm820_vm5, %v5619_v12  ;;  %v10512_v12 = vtrunc.f32 %v16210_v37 }
 0x93b   : > { %16208 = vst [vmem:[#allocation62_spill] sm:$0xff] %v12631_v18  ;;  %9989 = vmatmul.mubr.msk.f32.gmra.mrb[40].mxu0 %vm820_vm5, %v5620_v51  ;;  %v12653_v51 = vsub.f32 %v12629_v58, %v16043_v40  ;;  %16213 = vst [vmem:[#allocation66_spill] sm:$0xff] %v12655_v44  ;;  %v12657_v18 = vpop.f32.mrb[36].mxu0  ;;  %v16044_v37 = vfloor.f32 %v12655_v44  ;;  %v2516_v40 = vld [vmem:[%s16000_s13 + $0x78] sm:$0xff] }
 0x93c   : > { %4006 = vperm.xlu0 %10701, %v12586_v31   ;;  %v12642_v5 = vpop.permute.xlu0 %4135  ;;  %16214 = vst [vmem:[#allocation67_spill] sm:$0xff] %v12657_v18  ;;  %v12660_v63 = vpop.f32.mrb[37].mxu0 }
 0x93d   : > { %10653 = vset.pattern.permute.xlu1 %v16178_v54  ;;  %16212 = vst [vmem:[#allocation65_spill] sm:$0xff] %v12653_v51  ;;  %16215 = vst [vmem:[#allocation68_spill] sm:$0xff] %v12660_v63  ;;  %v12674_v56 = vsub.f32 %v12655_v44, %v16044_v37  ;;  %v2974_v37 = vadd.f32 %v12347_v35, %v2516_v40  ;;  %v12696_v51 = vadd.s32 1, %v12569_v32  ;;  %v2515_v35 = vld [vmem:[%s16000_s13 + $0x70] sm:$0xff] }
 0x93e   : > { %v12647_v33 = vpop.permute.xlu1 %4449  ;;  %5351 = vperm.xlu1 %10653, %v12295_v30   ;;  %v12666_v30 = vcvt.f32.s32 %v10512_v12  ;;  %vm4216_vm13 = vcmp.eq.s32.totalorder %v12264_v41, %v12642_v5 }
 0x93f   : > { %16211 = vst [vmem:[#allocation64_spill] sm:$0xff] %v12647_v33  ;;  %16218 = vst [vmem:[#allocation71_spill] sm:$0xff] %v12674_v56  ;;  %v3008_v56 = vfloor.f32 %v2974_v37 }
 0x940   : > { %10702 = vset.pattern.permute.xlu0 %v16178_v54  ;;  %16222 = vst [vmem:[#allocation75_spill] sm:$0xff] %v12696_v51 }
 0x941   : > { %5081 = vperm.xlu0 %10702, %v12569_v32   ;;  %v12663_v6 = vpop.permute.xlu0 %5490 }
 0x942   : > { %16216 = vst [vmem:[#allocation69_spill] sm:$0xff] %v12663_v6  ;;  %v12668_v33 = vpop.permute.xlu1 %4582  ;;  %5494 = vperm.xlu1 %10653, %v12303_v1  }
 0x943   : > { %16217 = vst [vmem:[#allocation70_spill] sm:$0xff] %v12668_v33 }
 0x945   : > { %10705 = vset.pattern.permute.xlu0 %v16180_v48 }
 0x946   : > { %10654 = vset.pattern.permute.xlu1 %v16185_v36  ;;  %3862 = vperm.xlu0 %10705, %v12666_v30   ;;  %v12683_v12 = vpop.permute.xlu0 %3117 }
 0x947   : > { %16219 = vst [vmem:[#allocation72_spill] sm:$0xff] %v12683_v12  ;;  %v12685_v33 = vpop.permute.xlu1 %5190  ;;  %3492 = vperm.xlu1 %10654, %v3447_v3  }
 0x94a   : > { %10707 = vset.pattern.permute.xlu0 %v16178_v54  ;;  %v12689_v1 = vpop.permute.xlu0 %3296 }
 0x94b   : > { %16220 = vst [vmem:[#allocation73_spill] sm:$0xff] %v12689_v1  ;;  %3643 = vperm.xlu1 %10654, %v12321_v29   ;;  %5078 = vperm.xlu0 %10707, %v12666_v30   ;;  %v12705_v1 = vsub.f32 %v2974_v37, %v3008_v56 }
 0x94c   : > { %v12693_v24 = vpop.permute.xlu1 %3102 }
 0x94d   : > { %16221 = vst [vmem:[#allocation74_spill] sm:$0xff] %v12693_v24  ;;  %16223 = vst [vmem:[#allocation76_spill] sm:$0xff] %v12705_v1  ;;  %v2973_v24 = vadd.f32 %v12366_v17, %v2515_v35  ;;  %v10518_v35 = vtrunc.f32 %v3008_v56  ;;  %v12740_v56 = vsub.f32 1.0, %v12705_v1 }
 0x94f   : > { %10655 = vset.pattern.permute.xlu1 %v16180_v48  ;;  %10709 = vset.pattern.permute.xlu0 %v16185_v36  ;;  %v12703_v40 = vpop.permute.xlu0 %3853  ;;  %v3007_v44 = vfloor.f32 %v2973_v24  ;;  %v12729_v58 = vcvt.f32.s32 %v10518_v35  ;;  %16228 = vst [vmem:[#allocation81_spill] sm:$0xff] %v12740_v56 }
 0x950   : > { %v12707_v12 = vpop.permute.xlu1 %3271  ;;  %4132 = vperm.xlu1 %10655, %v3447_v3   ;;  %3513 = vperm.xlu0 %10709, %v12696_v51  }
 0x951   : > { %16224 = vst [vmem:[#allocation77_spill] sm:$0xff] %v12707_v12  ;;  %v12720_v12 = vsub.f32 %v2973_v24, %v3007_v44 }
 0x953   : > { %v12711_v63 = vpop.permute.xlu0 %3990  ;;  %16226 = vst [vmem:[#allocation79_spill] sm:$0xff] %v12720_v12 }
 0x954   : > { %4274 = vperm.xlu1 %10655, %v12321_v29   ;;  %3678 = vperm.xlu0 %10709, %v12705_v1  }
 0x955   : > { %v3971_v18 = vpop.permute.xlu1 %3970 }
 0x958   : > { %10656 = vset.pattern.permute.xlu1 %v16183_v25  ;;  %10710 = vset.pattern.permute.xlu0 %v16180_v48  ;;  %v12717_v37 = vpop.permute.xlu0 %5069 }
 0x959   : > { %16225 = vst [vmem:[#allocation78_spill] sm:$0xff] %v12717_v37  ;;  %4740 = vperm.xlu1 %10656, %v3447_v3   ;;  %4153 = vperm.xlu0 %10710, %v12696_v51  }
 0x95a   : > { %v12722_v17 = vpop.permute.xlu1 %5186 }
 0x95d   : > { %10657 = vset.pattern.permute.xlu1 %v16178_v54  ;;  %10719 = vset.pattern.permute.xlu0 %v16178_v54  ;;  %v12726_v2 = vpop.permute.xlu0 %3850 }
 0x95e   : > { %5348 = vperm.xlu1 %10657, %v3447_v3   ;;  %5514 = vperm.xlu0 %10719, %v12720_v12  }
 0x95f   : > { %v12731_v60 = vpop.permute.xlu1 %4270 }
 0x962   : > { %10658 = vset.pattern.permute.xlu1 %v16183_v25  ;;  %10720 = vset.pattern.permute.xlu0 %v16185_v36  ;;  %v12735_v24 = vpop.permute.xlu0 %5066 }
 0x963   : > { %16227 = vst [vmem:[#allocation80_spill] sm:$0xff] %v12735_v24  ;;  %4882 = vperm.xlu1 %10658, %v12321_v29   ;;  %3135 = vperm.xlu0 %10720, %v12729_v58  }
 0x964   : > { %v12742_v3 = vpop.permute.xlu1 %4737 }
 0x965   : > { %16229 = vst [vmem:[#allocation82_spill] sm:$0xff] %v12742_v3  ;;  %v10516_v3 = vtrunc.f32 %v3007_v44  ;;  %v2518_v44 = vld [vmem:[%s16000_s13 + $0x88] sm:$0xff] }
 0x967   : > { %4461 = vperm.xlu1 %10658, %v12328_v0   ;;  %3326 = vperm.xlu0 %10720, %v12740_v56   ;;  %v12746_v35 = vpop.permute.xlu0 %3501  ;;  %v12770_v37 = vcvt.f32.s32 %v10516_v3 }
 0x968   : > { %16230 = vst [vmem:[#allocation83_spill] sm:$0xff] %v12746_v35 }
 0x969   : > { %v12748_v12 = vpop.permute.xlu1 %5345 }
 0x96a   : > { %vm5430_vm7 = vcmp.eq.s32.totalorder %v12264_v41, %v12748_v12  ;;  %v5301_v12 = vsel %vm5141_vm8, %v12722_v17, 0.0  ;;  %vm5143_vm8 = vcmp.eq.s32.totalorder %v12264_v41, %v12579_v8 }
 0x96b   : > { %4598 = vperm.xlu1 %10658, %v12339_v27   ;;  %10721 = vset.pattern.permute.xlu0 %v16180_v48  ;;  %v12752_v51 = vpop.permute.xlu0 %3658 }
 0x96c   : > { %16231 = vst [vmem:[#allocation84_spill] sm:$0xff] %v12752_v51  ;;  %3871 = vperm.xlu0 %10721, %v12729_v58  }
 0x96d   : > { %v12755_v6 = vpop.permute.xlu1 %5486 }
 0x96f   : > { %10663 = vset.pattern.permute.xlu1 %v16178_v54 }
 0x970   : > { %5206 = vperm.xlu1 %10663, %v12339_v27   ;;  %4014 = vperm.xlu0 %10721, %v12740_v56   ;;  %v12760_v0 = vpop.permute.xlu0 %4141  ;;  %v12775_v56 = vsub.f32 1.0, %v12321_v29 }
 0x972   : > { %v12762_v35 = vpop.permute.xlu1 %3486  ;;  %16235 = vst [vmem:[#allocation88_spill] sm:$0xff] %v12775_v56 }
 0x973   : > { %16232 = vst [vmem:[#allocation85_spill] sm:$0xff] %v12762_v35  ;;  %v4085_v35 = vsel %vm3925_vm15, %v3971_v18, 0.0 }
 0x974   : > { %10664 = vset.pattern.permute.xlu1 %v16185_v36  ;;  %10722 = vset.pattern.permute.xlu0 %v16178_v54 }
 0x975   : > { %3114 = vperm.xlu1 %10664, %v12374_v15   ;;  %5087 = vperm.xlu0 %10722, %v12729_v58   ;;  %v12768_v51 = vpop.permute.xlu0 %5498 }
 0x976   : > { %16233 = vst [vmem:[#allocation86_spill] sm:$0xff] %v12768_v51  ;;  %v12772_v27 = vpop.permute.xlu1 %3633 }
 0x977   : > { %16234 = vst [vmem:[#allocation87_spill] sm:$0xff] %v12772_v27  ;;  %v2976_v27 = vadd.f32 %v12467_v21, %v2518_v44 }
 0x979   : > { %3291 = vperm.xlu1 %10664, %v12775_v56   ;;  %10725 = vset.pattern.permute.xlu0 %v16180_v48  ;;  %v3010_v21 = vfloor.f32 %v2976_v27 }
 0x97a   : > { %3868 = vperm.xlu0 %10725, %v12770_v37   ;;  %v12785_v3 = vpop.permute.xlu0 %3123 }
 0x97b   : > { %16236 = vst [vmem:[#allocation89_spill] sm:$0xff] %v12785_v3  ;;  %v4127_v29 = vpop.permute.xlu1 %4126  ;;  %v4086_v3 = vsel %vm3926_vm14, %v12426_v23, 0.0  ;;  %v2517_v23 = vld [vmem:[%s16000_s13 + $0x80] sm:$0xff]  ;;  %vm3927_vm14 = vcmp.eq.s32.totalorder %v12264_v41, %v12562_v13 }
 0x97c   : > { %vm4213_vm0 = vcmp.eq.s32.totalorder %v12264_v41, %v4127_v29  ;;  %v4406_v26 = vadd.f32 %v4374_v39, %v4086_v3  ;;  %v2975_v3 = vadd.f32 %v12483_v49, %v2517_v23  ;;  %v5590_v39 = vsel %vm5430_vm7, %v12513_v11, 0.0 }
 0x97d   : > { %v4373_v51 = vsel %vm4213_vm0, %v12571_v10, 0.0  ;;  %10666 = vset.pattern.permute.xlu1 %v16180_v48  ;;  %v12806_v10 = vadd.s32 1, %v12729_v58  ;;  %v5302_v23 = vsel %vm5142_vm11, %v12685_v33, 0.0  ;;  %vm3928_vm0 = vcmp.eq.s32.totalorder %v12264_v41, %v12515_v53 }
 0x97e   : > { %v4405_v24 = vadd.f32 %v4373_v51, %v4085_v35  ;;  %3986 = vperm.xlu1 %10666, %v12775_v56   ;;  %10727 = vset.pattern.permute.xlu0 %v16178_v54  ;;  %v12799_v9 = vpop.permute.xlu0 %3306  ;;  %v12817_v51 = vsub.f32 %v2976_v27, %v3010_v21  ;;  %v3009_v49 = vfloor.f32 %v2975_v3  ;;  %v5622_v11 = vadd.f32 %v5590_v39, %v5302_v23 }
 0x97f   : > { %16237 = vst [vmem:[#allocation90_spill] sm:$0xff] %v12799_v9  ;;  %v12801_v62 = vpop.permute.xlu1 %4266  ;;  %5084 = vperm.xlu0 %10727, %v12770_v37   ;;  %v4088_v5 = vsel %vm3928_vm0, %v12531_v55, 0.0  ;;  %vm5144_vm11 = vcmp.eq.s32.totalorder %v12264_v41, %v12542_v52 }
 0x980   : > { %9939 = vmatprep.mubr.msk.f32.mxu1 %vm820_vm5, %v4405_v24 }
 0x981   : > { %9940 = vmatmul.mubr.msk.f32.gmra.mrb[40].mxu1 %vm820_vm5, %v4406_v26 }
 0x982   : > { %10668 = vset.pattern.permute.xlu1 %v16178_v54 }
 0x983   : > { %5202 = vperm.xlu1 %10668, %v12775_v56   ;;  %10729 = vset.pattern.permute.xlu0 %v16185_v36  ;;  %v12815_v18 = vpop.permute.xlu0 %3859 }
 0x984   : > { %v12819_v24 = vpop.permute.xlu1 %4734  ;;  %3519 = vperm.xlu0 %10729, %v12806_v10   ;;  %v12822_v35 = vpop.f32.mrb[36].mxu1 }
 0x985   : > { %16238 = vst [vmem:[#allocation91_spill] sm:$0xff] %v12819_v24  ;;  %16239 = vst [vmem:[#allocation92_spill] sm:$0xff] %v12822_v35  ;;  %v12824_v44 = vpop.f32.mrb[37].mxu1 }
 0x986   : > { %16240 = vst [vmem:[#allocation93_spill] sm:$0xff] %v12824_v44 }
 0x987   : > { %10671 = vset.pattern.permute.xlu1 %v16180_v48  ;;  %v12830_v29 = vpop.permute.xlu0 %3998 }
 0x988   : > { %4286 = vperm.xlu1 %10671, %v12418_v43   ;;  %3688 = vperm.xlu0 %10729, %v12817_v51  }
 0x989   : > { %v5343_v27 = vpop.permute.xlu1 %5342 }
 0x98a   : > { %vm5429_vm10 = vcmp.eq.s32.totalorder %v12264_v41, %v5343_v27  ;;  %v12849_v27 = vsub.f32 %v2975_v3, %v3009_v49 }
 0x98b   : > { %v5589_v26 = vsel %vm5429_vm10, %v12372_v45, 0.0  ;;  %v10522_v45 = vtrunc.f32 %v3010_v21 }
 0x98c   : > { %v5621_v44 = vadd.f32 %v5589_v26, %v5301_v12  ;;  %10672 = vset.pattern.permute.xlu1 %v16183_v25  ;;  %10730 = vset.pattern.permute.xlu0 %v16180_v48  ;;  %v12845_v4 = vpop.permute.xlu0 %5075  ;;  %v3449_v12 = vadd.s32 1, %v12374_v15 }
 0x98d   : > { %4749 = vperm.xlu1 %10672, %v12405_v19   ;;  %4159 = vperm.xlu0 %10730, %v12806_v10   ;;  %v12863_v3 = vcvt.f32.s32 %v10522_v45 }
 0x98e   : > { %v12851_v16 = vpop.permute.xlu1 %4874  ;;  %9991 = vmatprep.mubr.msk.f32.mxu0 %vm820_vm5, %v5621_v44  ;;  %v12873_v44 = vsub.f32 1.0, %v12817_v51 }
 0x98f   : > { %16241 = vst [vmem:[#allocation94_spill] sm:$0xff] %v12851_v16  ;;  %9992 = vmatmul.mubr.msk.f32.gmra.mrb[42].mxu0 %vm820_vm5, %v5622_v11 }
 0x991   : > { %10673 = vset.pattern.permute.xlu1 %v16178_v54  ;;  %10739 = vset.pattern.permute.xlu0 %v16178_v54  ;;  %v12857_v33 = vpop.permute.xlu0 %3856 }
 0x992   : > { %v12859_v17 = vpop.permute.xlu1 %4455  ;;  %5357 = vperm.xlu1 %10673, %v12405_v19   ;;  %5522 = vperm.xlu0 %10739, %v12849_v27  }
 0x993   : > { %16242 = vst [vmem:[#allocation95_spill] sm:$0xff] %v12859_v17 }
 0x996   : > { %v12865_v39 = vpop.permute.xlu1 %4590  ;;  %5502 = vperm.xlu1 %10673, %v12418_v43   ;;  %10740 = vset.pattern.permute.xlu0 %v16185_v36  ;;  %v12869_v21 = vpop.permute.xlu0 %5072 }
 0x997   : > { %16243 = vst [vmem:[#allocation96_spill] sm:$0xff] %v12865_v39  ;;  %3141 = vperm.xlu0 %10740, %v12863_v3   ;;  %v10520_v39 = vtrunc.f32 %v3009_v49 }
 0x999   : > { %v12902_v24 = vcvt.f32.s32 %v10520_v39  ;;  %v2519_v39 = vld [vmem:[%s16000_s13 + $0x90] sm:$0xff] }
 0x99a   : > { %10674 = vset.pattern.permute.xlu1 %v16185_v36 }
 0x99b   : > { %v12877_v19 = vpop.permute.xlu1 %5198  ;;  %3498 = vperm.xlu1 %10674, %v3449_v12   ;;  %3336 = vperm.xlu0 %10740, %v12873_v44   ;;  %v12880_v26 = vpop.permute.xlu0 %3507 }
 0x99c   : > { %16244 = vst [vmem:[#allocation97_spill] sm:$0xff] %v12880_v26 }
 0x99f   : > { %3653 = vperm.xlu1 %10674, %v12437_v61   ;;  %10741 = vset.pattern.permute.xlu0 %v16180_v48  ;;  %v12884_v23 = vpop.permute.xlu0 %3668 }
 0x9a0   : > { %16245 = vst [vmem:[#allocation98_spill] sm:$0xff] %v12884_v23  ;;  %v12886_v11 = vpop.permute.xlu1 %3108  ;;  %3877 = vperm.xlu0 %10741, %v12863_v3  }
 0x9a1   : > { %16246 = vst [vmem:[#allocation99_spill] sm:$0xff] %v12886_v11  ;;  %v2520_v11 = vld [vmem:[%s16000_s13 + $0x98] sm:$0xff] }
 0x9a2   : > { %v2978_v15 = vadd.f32 %v12574_v28, %v2520_v11 }
 0x9a3   : > { %10675 = vset.pattern.permute.xlu1 %v16180_v48 }
 0x9a4   : > { %v12890_v45 = vpop.permute.xlu1 %3281  ;;  %4138 = vperm.xlu1 %10675, %v3449_v12   ;;  %4022 = vperm.xlu0 %10741, %v12873_v44   ;;  %v12893_v35 = vpop.permute.xlu0 %4147 }
 0x9a5   : > { %16247 = vst [vmem:[#allocation100_spill] sm:$0xff] %v12890_v45  ;;  %v12922_v45 = vadd.s32 1, %v12863_v3 }
 0x9a7   : > { %16251 = vst [vmem:[#allocation104_spill] sm:$0xff] %v12922_v45 }
 0x9a8   : > { %4282 = vperm.xlu1 %10675, %v12437_v61   ;;  %10742 = vset.pattern.permute.xlu0 %v16178_v54 }
 0x9a9   : > { %v12897_v17 = vpop.permute.xlu1 %3978  ;;  %5093 = vperm.xlu0 %10742, %v12863_v3   ;;  %v12900_v16 = vpop.permute.xlu0 %5506 }
 0x9aa   : > { %16248 = vst [vmem:[#allocation101_spill] sm:$0xff] %v12900_v16 }
 0x9ac   : > { %10676 = vset.pattern.permute.xlu1 %v16183_v25 }
 0x9ad   : > { %4746 = vperm.xlu1 %10676, %v3449_v12   ;;  %10745 = vset.pattern.permute.xlu0 %v16180_v48 }
 0x9ae   : > { %v12906_v23 = vpop.permute.xlu1 %5194  ;;  %3874 = vperm.xlu0 %10745, %v12902_v24   ;;  %v12909_v49 = vpop.permute.xlu0 %3129 }
 0x9af   : > { %16249 = vst [vmem:[#allocation102_spill] sm:$0xff] %v12909_v49  ;;  %v12925_v49 = vadd.f32 %v12577_v47, %v2519_v39 }
 0x9b1   : > { %10677 = vset.pattern.permute.xlu1 %v16178_v54  ;;  %v3011_v43 = vfloor.f32 %v12925_v49 }
 0x9b2   : > { %5354 = vperm.xlu1 %10677, %v3449_v12   ;;  %10747 = vset.pattern.permute.xlu0 %v16178_v54  ;;  %v12913_v9 = vpop.permute.xlu0 %3316 }
 0x9b3   : > { %16250 = vst [vmem:[#allocation103_spill] sm:$0xff] %v12913_v9  ;;  %v12918_v26 = vpop.permute.xlu1 %4278  ;;  %5090 = vperm.xlu0 %10747, %v12902_v24   ;;  %v12950_v16 = vsub.f32 %v12925_v49, %v3011_v43 }
 0x9b6   : > { %10678 = vset.pattern.permute.xlu1 %v16183_v25 }
 0x9b7   : > { %4890 = vperm.xlu1 %10678, %v12437_v61   ;;  %10749 = vset.pattern.permute.xlu0 %v16185_v36  ;;  %v12930_v12 = vpop.permute.xlu0 %3865 }
 0x9b8   : > { %16252 = vst [vmem:[#allocation105_spill] sm:$0xff] %v12930_v12  ;;  %v12932_v9 = vpop.permute.xlu1 %4743  ;;  %3525 = vperm.xlu0 %10749, %v12922_v45   ;;  %v3012_v12 = vfloor.f32 %v2978_v15 }
 0x9b9   : > { %16253 = vst [vmem:[#allocation106_spill] sm:$0xff] %v12932_v9 }
 0x9ba   : > { %v12939_v47 = vpop.f32.mrb[38].mxu0  ;;  %v10526_v28 = vtrunc.f32 %v3012_v12 }
 0x9bb   : > { %16254 = vst [vmem:[#allocation107_spill] sm:$0xff] %v12939_v47  ;;  %4467 = vperm.xlu1 %10678, %v12446_v14   ;;  %v12942_v39 = vpop.f32.mrb[39].mxu0  ;;  %v12944_v56 = vpop.permute.xlu0 %4006 }
 0x9bc   : > { %16255 = vst [vmem:[#allocation108_spill] sm:$0xff] %v12942_v39  ;;  %16256 = vst [vmem:[#allocation109_spill] sm:$0xff] %v12944_v56  ;;  %10750 = vset.pattern.permute.xlu0 %v16180_v48  ;;  %v12967_v39 = vsub.f32 %v2978_v15, %v3012_v12 }
 0x9bd   : > { %v5352_v9 = vpop.permute.xlu1 %5351  ;;  %4165 = vperm.xlu0 %10750, %v12922_v45   ;;  %v12969_v45 = vcvt.f32.s32 %v10526_v28 }
 0x9be   : > { %v12983_v15 = vsub.f32 1.0, %v12967_v39  ;;  %vm5432_vm7 = vcmp.eq.s32.totalorder %v12264_v41, %v5352_v9  ;;  %v5303_v9 = vsel %vm5143_vm8, %v12906_v23, 0.0  ;;  %v2522_v23 = vld [vmem:[%s16000_s13 + $0xa8] sm:$0xff] }
 0x9bf   : > { %4606 = vperm.xlu1 %10678, %v12457_v7  }
 0x9c0   : > { %v12953_v47 = vpop.permute.xlu0 %5081 }
 0x9c1   : > { %16257 = vst [vmem:[#allocation110_spill] sm:$0xff] %v12953_v47  ;;  %v12955_v14 = vpop.permute.xlu1 %5494  ;;  %10757 = vset.pattern.permute.xlu0 %v16185_v36 }
 0x9c2   : > { %3693 = vperm.xlu0 %10757, %v12950_v16  }
 0x9c3   : > { %10683 = vset.pattern.permute.xlu1 %v16178_v54 }
 0x9c4   : > { %5214 = vperm.xlu1 %10683, %v12457_v7   ;;  %v12979_v7 = vsub.f32 1.0, %v12437_v61  ;;  %v4087_v61 = vsel %vm3927_vm14, %v12897_v17, 0.0  ;;  %vm3930_vm14 = vcmp.eq.s32.totalorder %v12264_v41, %v12703_v40 }
 0x9c5   : > { %v12961_v11 = vpop.permute.xlu0 %3862  ;;  %v4090_v40 = vsel %vm3930_vm14, %v12711_v63, 0.0  ;;  %vm4220_vm14 = vcmp.eq.s32.totalorder %v12264_v41, %v12893_v35 }
 0x9c6   : > { %v12963_v49 = vpop.permute.xlu1 %3492  ;;  %10761 = vset.pattern.permute.xlu0 %v16178_v54  ;;  %16260 = vst [vmem:[#allocation113_spill] sm:$0xff] %v12979_v7 }
 0x9c7   : > { %16258 = vst [vmem:[#allocation111_spill] sm:$0xff] %v12963_v49  ;;  %5530 = vperm.xlu0 %10761, %v12950_v16  }
 0x9c8   : > { %10684 = vset.pattern.permute.xlu1 %v16185_v36 }
 0x9c9   : > { %3120 = vperm.xlu1 %10684, %v12488_v50  }
 0x9ca   : > { %v12973_v47 = vpop.permute.xlu1 %3643  ;;  %v12975_v56 = vpop.permute.xlu0 %5078 }
 0x9cb   : > { %16259 = vst [vmem:[#allocation112_spill] sm:$0xff] %v12973_v47  ;;  %10762 = vset.pattern.permute.xlu0 %v16185_v36  ;;  %v4376_v47 = vsel %vm4216_vm13, %v12731_v60, 0.0  ;;  %vm4218_vm13 = vcmp.eq.s32.totalorder %v12264_v41, %v12760_v0 }
 0x9cc   : > { %3147 = vperm.xlu0 %10762, %v12969_v45   ;;  %v4408_v13 = vadd.f32 %v4376_v47, %v4088_v5  ;;  %v4378_v0 = vsel %vm4218_vm13, %v12918_v26, 0.0  ;;  %vm3932_vm13 = vcmp.eq.s32.totalorder %v12264_v41, %v12815_v18 }
 0x9cd   : > { %3301 = vperm.xlu1 %10684, %v12979_v7   ;;  %v4092_v18 = vsel %vm3932_vm13, %v12830_v29, 0.0 }
 0x9cf   : > { %v4133_v12 = vpop.permute.xlu1 %4132  ;;  %v12988_v28 = vpop.permute.xlu0 %3513 }
 0x9d0   : > { %16261 = vst [vmem:[#allocation114_spill] sm:$0xff] %v12988_v28  ;;  %vm4215_vm15 = vcmp.eq.s32.totalorder %v12264_v41, %v4133_v12  ;;  %3346 = vperm.xlu0 %10762, %v12983_v15  }
 0x9d1   : > { %v4375_v49 = vsel %vm4215_vm15, %v12801_v62, 0.0  ;;  %10686 = vset.pattern.permute.xlu1 %v16180_v48  ;;  %v10524_v62 = vtrunc.f32 %v3011_v43  ;;  %vm3929_vm15 = vcmp.eq.s32.totalorder %v12264_v41, %v12726_v2  ;;  %v4410_v2 = vadd.f32 %v4378_v0, %v4090_v40  ;;  %v16295_v40 = vld [vmem:[#allocation69_spill] sm:$0xff] }
 0x9d2   : > { %v4407_v28 = vadd.f32 %v4375_v49, %v4087_v61  ;;  %3994 = vperm.xlu1 %10686, %v12979_v7   ;;  %v5592_v49 = vsel %vm5432_vm7, %v12755_v6, 0.0  ;;  %v5304_v61 = vsel %vm5144_vm11, %v12877_v19, 0.0 }
 0x9d3   : > { %v13002_v60 = vpop.permute.xlu1 %4274  ;;  %v13004_v12 = vpop.permute.xlu0 %3678  ;;  %v13030_v43 = vcvt.f32.s32 %v10524_v62  ;;  %v5624_v8 = vadd.f32 %v5592_v49, %v5304_v61  ;;  %v2521_v49 = vld [vmem:[%s16000_s13 + $0xa0] sm:$0xff] }
 0x9d4   : > { %16262 = vst [vmem:[#allocation115_spill] sm:$0xff] %v13004_v12  ;;  %9942 = vmatprep.mubr.msk.f32.mxu1 %vm820_vm5, %v4407_v28  ;;  %10763 = vset.pattern.permute.xlu0 %v16180_v48 }
 0x9d5   : > { %9943 = vmatmul.mubr.msk.f32.gmra.mrb[42].mxu1 %vm820_vm5, %v4408_v13  ;;  %3883 = vperm.xlu0 %10763, %v12969_v45   ;;  %v13057_v13 = vadd.s32 1, %v12969_v45 }
 0x9d6   : > { %10688 = vset.pattern.permute.xlu1 %v16178_v54 }
 0x9d7   : > { %5210 = vperm.xlu1 %10688, %v12979_v7  }
 0x9d8   : > { %v13012_v55 = vpop.permute.xlu1 %4740  ;;  %v13014_v53 = vpop.permute.xlu0 %4153 }
 0x9d9   : > { %16263 = vst [vmem:[#allocation116_spill] sm:$0xff] %v13012_v55  ;;  %4030 = vperm.xlu0 %10763, %v12983_v15   ;;  %vm4222_vm13 = vcmp.eq.s32.totalorder %v12264_v41, %v13014_v53 }
 0x9db   : > { %10691 = vset.pattern.permute.xlu1 %v16180_v48 }
 0x9dc   : > { %4294 = vperm.xlu1 %10691, %v12522_v57  }
 0x9dd   : > { %v5349_v17 = vpop.permute.xlu1 %5348  ;;  %10764 = vset.pattern.permute.xlu0 %v16178_v54  ;;  %v13021_v47 = vpop.permute.xlu0 %5514 }
 0x9de   : > { %vm5431_vm10 = vcmp.eq.s32.totalorder %v12264_v41, %v5349_v17  ;;  %5099 = vperm.xlu0 %10764, %v12969_v45   ;;  %v2980_v17 = vadd.f32 %v12588_v46, %v2522_v23  ;;  %v2979_v46 = vadd.f32 %v12592_v38, %v2521_v49 }
 0x9df   : > { %v5591_v28 = vsel %vm5431_vm10, %v12485_v20, 0.0 }
 0x9e0   : > { %v5623_v5 = vadd.f32 %v5591_v28, %v5303_v9  ;;  %10692 = vset.pattern.permute.xlu1 %v16183_v25  ;;  %v3451_v9 = vadd.s32 1, %v12488_v50  ;;  %v3014_v28 = vfloor.f32 %v2980_v17  ;;  %v3013_v23 = vfloor.f32 %v2979_v46 }
 0x9e1   : > { %4755 = vperm.xlu1 %10692, %v12511_v34  }
 0x9e2   : > { %v13037_v6 = vpop.permute.xlu1 %4882  ;;  %10767 = vset.pattern.permute.xlu0 %v16180_v48  ;;  %9994 = vmatprep.mubr.msk.f32.mxu0 %vm820_vm5, %v5623_v5  ;;  %v13041_v52 = vpop.permute.xlu0 %3135  ;;  %v13089_v38 = vsub.f32 %v2979_v46, %v3013_v23 }
 0x9e3   : > { %16264 = vst [vmem:[#allocation117_spill] sm:$0xff] %v13037_v6  ;;  %16265 = vst [vmem:[#allocation118_spill] sm:$0xff] %v13041_v52  ;;  %3880 = vperm.xlu0 %10767, %v13030_v43   ;;  %9995 = vmatmul.mubr.msk.f32.gmra.mrb[44].mxu0 %vm820_vm5, %v5624_v8  ;;  %v13079_v8 = vsub.f32 %v2980_v17, %v3014_v28  ;;  %v10530_v17 = vtrunc.f32 %v3014_v28 }
 0x9e5   : > { %10693 = vset.pattern.permute.xlu1 %v16178_v54  ;;  %v13098_v55 = vcvt.f32.s32 %v10530_v17  ;;  %v13112_v52 = vsub.f32 1.0, %v13079_v8 }
 0x9e6   : > { %v13046_v20 = vpop.permute.xlu1 %4461  ;;  %5363 = vperm.xlu1 %10693, %v12511_v34   ;;  %v13049_v19 = vpop.permute.xlu0 %3326 }
 0x9e7   : > { %16266 = vst [vmem:[#allocation119_spill] sm:$0xff] %v13046_v20  ;;  %16267 = vst [vmem:[#allocation120_spill] sm:$0xff] %v13049_v19  ;;  %10769 = vset.pattern.permute.xlu0 %v16178_v54 }
 0x9e8   : > { %5096 = vperm.xlu0 %10769, %v13030_v43   ;;  %16273 = vst [vmem:[#allocation126_spill] sm:$0xff] %v13112_v52 }
 0x9ea   : > { %v13059_v62 = vpop.permute.xlu1 %4598  ;;  %5510 = vperm.xlu1 %10693, %v12522_v57  }
 0x9eb   : > { %16268 = vst [vmem:[#allocation121_spill] sm:$0xff] %v13059_v62  ;;  %v13063_v34 = vpop.permute.xlu0 %3871 }
 0x9ec   : > { %10771 = vset.pattern.permute.xlu0 %v16185_v36 }
 0x9ed   : > { %3531 = vperm.xlu0 %10771, %v13057_v13  }
 0x9ee   : > { %10694 = vset.pattern.permute.xlu1 %v16185_v36 }
 0x9ef   : > { %v13072_v61 = vpop.permute.xlu1 %5206  ;;  %3504 = vperm.xlu1 %10694, %v3451_v9   ;;  %v13074_v5 = vpop.permute.xlu0 %4014 }
 0x9f1   : > { %10772 = vset.pattern.permute.xlu0 %v16180_v48 }
 0x9f2   : > { %4171 = vperm.xlu0 %10772, %v13057_v13  }
 0x9f3   : > { %3663 = vperm.xlu1 %10694, %v12552_v22  }
 0x9f4   : > { %v13082_v62 = vpop.permute.xlu1 %3114  ;;  %v13084_v20 = vpop.permute.xlu0 %5087 }
 0x9f5   : > { %16269 = vst [vmem:[#allocation122_spill] sm:$0xff] %v13082_v62 }
 0x9f6   : > { %10774 = vset.pattern.permute.xlu0 %v16185_v36 }
 0x9f7   : > { %10695 = vset.pattern.permute.xlu1 %v16180_v48  ;;  %3708 = vperm.xlu0 %10774, %v13079_v8  }
 0x9f8   : > { %v13091_v49 = vpop.permute.xlu1 %3291  ;;  %4144 = vperm.xlu1 %10695, %v3451_v9  }
 0x9f9   : > { %16270 = vst [vmem:[#allocation123_spill] sm:$0xff] %v13091_v49  ;;  %v13093_v6 = vpop.permute.xlu0 %3868 }
 0x9fb   : > { %10783 = vset.pattern.permute.xlu0 %v16178_v54 }
 0x9fc   : > { %4290 = vperm.xlu1 %10695, %v12552_v22   ;;  %5538 = vperm.xlu0 %10783, %v13089_v38  }
 0x9fd   : > { %v13100_v12 = vpop.permute.xlu1 %3986 }
 0x9fe   : > { %v13102_v19 = vpop.permute.xlu0 %5084 }
 0xa00   : > { %10696 = vset.pattern.permute.xlu1 %v16183_v25  ;;  %10784 = vset.pattern.permute.xlu0 %v16185_v36  ;;  %v13106_v46 = vpop.f32.mrb[38].mxu1 }
 0xa01   : > { %16271 = vst [vmem:[#allocation124_spill] sm:$0xff] %v13106_v46  ;;  %4752 = vperm.xlu1 %10696, %v3451_v9   ;;  %3153 = vperm.xlu0 %10784, %v13098_v55   ;;  %v13109_v28 = vpop.f32.mrb[39].mxu1 }
 0xa02   : > { %16272 = vst [vmem:[#allocation125_spill] sm:$0xff] %v13109_v28  ;;  %v13114_v17 = vpop.permute.xlu1 %5202 }
 0xa03   : > { %v13116_v49 = vpop.permute.xlu0 %3519 }
 0xa04   : > { %16274 = vst [vmem:[#allocation127_spill] sm:$0xff] %v13116_v49 }
 0xa05   : > { %10697 = vset.pattern.permute.xlu1 %v16178_v54  ;;  %3356 = vperm.xlu0 %10784, %v13112_v52  }
 0xa06   : > { %5360 = vperm.xlu1 %10697, %v3451_v9  }
 0xa07   : > { %v13120_v62 = vpop.permute.xlu1 %4286  ;;  %v13122_v46 = vpop.permute.xlu0 %3688 }
 0xa08   : > { %16275 = vst [vmem:[#allocation128_spill] sm:$0xff] %v13122_v46  ;;  %v10528_v46 = vtrunc.f32 %v3013_v23 }
 0xa09   : > { %10785 = vset.pattern.permute.xlu0 %v16180_v48 }
 0xa0a   : > { %10698 = vset.pattern.permute.xlu1 %v16183_v25  ;;  %3889 = vperm.xlu0 %10785, %v13098_v55  }
 0xa0b   : > { %4898 = vperm.xlu1 %10698, %v12552_v22  }
 0xa0c   : > { %v13128_v28 = vpop.permute.xlu1 %4749  ;;  %v13130_v49 = vpop.permute.xlu0 %4159 }
 0xa0d   : > { %16276 = vst [vmem:[#allocation129_spill] sm:$0xff] %v13128_v28  ;;  %v13145_v28 = vcvt.f32.s32 %v10528_v46  ;;  %v2524_v46 = vld [vmem:[%s16000_s13 + $0xb8] sm:$0xff] }
 0xa0e   : > { %4038 = vperm.xlu0 %10785, %v13112_v52   ;;  %v13133_v57 = vpop.f32.mrb[40].mxu0 }
 0xa0f   : > { %16277 = vst [vmem:[#allocation130_spill] sm:$0xff] %v13133_v57  ;;  %4473 = vperm.xlu1 %10698, %v12569_v32   ;;  %v13136_v9 = vpop.f32.mrb[41].mxu0  ;;  %16280 = vst [vmem:[#allocation133_spill] sm:$0xff] %v13145_v28 }
 0xa10   : > { %16278 = vst [vmem:[#allocation131_spill] sm:$0xff] %v13136_v9 }
 0xa11   : > { %v13138_v7 = vpop.permute.xlu1 %5357  ;;  %v13140_v50 = vpop.permute.xlu0 %5522 }
 0xa12   : > { %16279 = vst [vmem:[#allocation132_spill] sm:$0xff] %v13140_v50  ;;  %10786 = vset.pattern.permute.xlu0 %v16178_v54  ;;  %vm5434_vm7 = vcmp.eq.s32.totalorder %v12264_v41, %v13138_v7  ;;  %v16294_v7 = vld [vmem:[#allocation78_spill] sm:$0xff] }
 0xa13   : > { %4614 = vperm.xlu1 %10698, %v12586_v31   ;;  %5105 = vperm.xlu0 %10786, %v13098_v55   ;;  %v5594_v0 = vsel %vm5434_vm7, %v12955_v14, 0.0  ;;  %vm5146_vm11 = vcmp.eq.s32.totalorder %v12264_v41, %v16294_v7 }
 0xa15   : > { %v13147_v52 = vpop.permute.xlu1 %5502 }
 0xa16   : > { %v13149_v57 = vpop.permute.xlu0 %3141 }
 0xa17   : > { %16281 = vst [vmem:[#allocation134_spill] sm:$0xff] %v13149_v57  ;;  %10703 = vset.pattern.permute.xlu1 %v16178_v54  ;;  %10789 = vset.pattern.permute.xlu0 %v16180_v48  ;;  %v13172_v57 = vsub.f32 1.0, %v12552_v22 }
 0xa18   : > { %5222 = vperm.xlu1 %10703, %v12586_v31   ;;  %3886 = vperm.xlu0 %10789, %v13145_v28   ;;  %v13169_v31 = vadd.s32 1, %v13098_v55 }
 0xa1a   : > { %v13155_v32 = vpop.permute.xlu1 %3498  ;;  %v13157_v23 = vpop.permute.xlu0 %3336  ;;  %16285 = vst [vmem:[#allocation138_spill] sm:$0xff] %v13169_v31 }
 0xa1b   : > { %16282 = vst [vmem:[#allocation135_spill] sm:$0xff] %v13155_v32  ;;  %16283 = vst [vmem:[#allocation136_spill] sm:$0xff] %v13157_v23  ;;  %v2982_v32 = vadd.f32 %v12594_v42, %v2524_v46 }
 0xa1c   : > { %10704 = vset.pattern.permute.xlu1 %v16185_v36  ;;  %10791 = vset.pattern.permute.xlu0 %v16178_v54 }
 0xa1d   : > { %3126 = vperm.xlu1 %10704, %v12666_v30   ;;  %5102 = vperm.xlu0 %10791, %v13145_v28   ;;  %v3016_v42 = vfloor.f32 %v2982_v32 }
 0xa1e   : > { %v13166_v9 = vpop.permute.xlu1 %3653 }
 0xa1f   : > { %16284 = vst [vmem:[#allocation137_spill] sm:$0xff] %v13166_v9  ;;  %v13174_v23 = vpop.permute.xlu0 %3877  ;;  %v2523_v9 = vld [vmem:[%s16000_s13 + $0xb0] sm:$0xff] }
 0xa20   : > { %16286 = vst [vmem:[#allocation139_spill] sm:$0xff] %v13174_v23  ;;  %v13194_v46 = vadd.f32 %v12596_v59, %v2523_v9  ;;  %v4089_v23 = vsel %vm3929_vm15, %v13100_v12, 0.0  ;;  %v13205_v59 = vsub.f32 %v2982_v32, %v3016_v42  ;;  %v10534_v9 = vtrunc.f32 %v3016_v42 }
 0xa21   : > { %3311 = vperm.xlu1 %10704, %v13172_v57   ;;  %10793 = vset.pattern.permute.xlu0 %v16185_v36  ;;  %vm3931_vm15 = vcmp.eq.s32.totalorder %v12264_v41, %v12857_v33 }
 0xa22   : > { %3537 = vperm.xlu0 %10793, %v13169_v31  }
 0xa23   : > { %v4139_v22 = vpop.permute.xlu1 %4138  ;;  %v13187_v50 = vpop.permute.xlu0 %4022 }
 0xa24   : > { %16287 = vst [vmem:[#allocation140_spill] sm:$0xff] %v13187_v50  ;;  %vm4217_vm0 = vcmp.eq.s32.totalorder %v12264_v41, %v4139_v22  ;;  %v13231_v22 = vcvt.f32.s32 %v10534_v9 }
 0xa25   : > { %v4377_v28 = vsel %vm4217_vm0, %v13002_v60, 0.0  ;;  %10706 = vset.pattern.permute.xlu1 %v16180_v48  ;;  %v3015_v60 = vfloor.f32 %v13194_v46 }
 0xa26   : > { %v4409_v50 = vadd.f32 %v4377_v28, %v4089_v23  ;;  %4002 = vperm.xlu1 %10706, %v13172_v57   ;;  %10794 = vset.pattern.permute.xlu0 %v16180_v48  ;;  %v16291_v23 = vld [vmem:[#allocation80_spill] sm:$0xff] }
 0xa27   : > { %v13202_v26 = vpop.permute.xlu1 %4282  ;;  %4177 = vperm.xlu0 %10794, %v13169_v31   ;;  %v13219_v28 = vsub.f32 %v13194_v46, %v3015_v60  ;;  %vm5145_vm8 = vcmp.eq.s32.totalorder %v12264_v41, %v16291_v23  ;;  %16292 = vst [vmem:[#allocation80_spill] sm:$0xff] %v13231_v22  ;;  %v16296_v23 = vld [vmem:[#allocation75_spill] sm:$0xff] }
 0xa28   : > { %9945 = vmatprep.mubr.msk.f32.mxu1 %vm820_vm5, %v4409_v50  ;;  %v13208_v12 = vpop.permute.xlu0 %5093  ;;  %v5305_v46 = vsel %vm5145_vm8, %v13114_v17, 0.0  ;;  %v13250_v17 = vsub.f32 1.0, %v13205_v59  ;;  %vm5147_vm8 = vcmp.eq.s32.totalorder %v12264_v41, %v12869_v21 }
 0xa29   : > { %16288 = vst [vmem:[#allocation141_spill] sm:$0xff] %v13208_v12  ;;  %9946 = vmatmul.mubr.msk.f32.gmra.mrb[44].mxu1 %vm820_vm5, %v4410_v2  ;;  %16290 = vst [vmem:[#allocation143_spill] sm:$0xff] %v13219_v28  ;;  %v16322_v12 = vld [vmem:[#allocation81_spill] sm:$0xff] }
 0xa2a   : > { %10708 = vset.pattern.permute.xlu1 %v16178_v54  ;;  %16298 = vst [vmem:[#allocation69_spill] sm:$0xff] %v13250_v17 }
 0xa2b   : > { %5218 = vperm.xlu1 %10708, %v13172_v57   ;;  %10796 = vset.pattern.permute.xlu0 %v16185_v36 }
 0xa2c   : > { %v13215_v63 = vpop.permute.xlu1 %4746  ;;  %3718 = vperm.xlu0 %10796, %v13205_v59  }
 0xa2d   : > { %16289 = vst [vmem:[#allocation142_spill] sm:$0xff] %v13215_v63  ;;  %v13221_v50 = vpop.permute.xlu0 %3874  ;;  %v5306_v63 = vsel %vm5146_vm11, %v13072_v61, 0.0  ;;  %vm5148_vm11 = vcmp.eq.s32.totalorder %v12264_v41, %v12845_v4 }
 0xa2e   : > { %v5626_v9 = vadd.f32 %v5594_v0, %v5306_v63 }
 0xa2f   : > { %10711 = vset.pattern.permute.xlu1 %v16180_v48 }
 0xa30   : > { %4302 = vperm.xlu1 %10711, %v12705_v1   ;;  %10805 = vset.pattern.permute.xlu0 %v16178_v54 }
 0xa31   : > { %v5355_v32 = vpop.permute.xlu1 %5354  ;;  %5546 = vperm.xlu0 %10805, %v13219_v28  }
 0xa32   : > { %vm5433_vm10 = vcmp.eq.s32.totalorder %v12264_v41, %v5355_v32  ;;  %v13235_v42 = vpop.permute.xlu0 %5090 }
 0xa33   : > { %16293 = vst [vmem:[#allocation144_spill] sm:$0xff] %v13235_v42  ;;  %v5593_v2 = vsel %vm5433_vm10, %v16295_v40, 0.0  ;;  %v10532_v40 = vtrunc.f32 %v3015_v60 }
 0xa34   : > { %v5625_v28 = vadd.f32 %v5593_v2, %v5305_v46  ;;  %10712 = vset.pattern.permute.xlu1 %v16183_v25 }
 0xa35   : > { %4761 = vperm.xlu1 %10712, %v16296_v23   ;;  %10806 = vset.pattern.permute.xlu0 %v16185_v36 }
 0xa36   : > { %v13245_v14 = vpop.permute.xlu1 %4890  ;;  %3159 = vperm.xlu0 %10806, %v13231_v22   ;;  %9997 = vmatprep.mubr.msk.f32.mxu0 %vm820_vm5, %v5625_v28  ;;  %v3453_v28 = vadd.s32 1, %v12666_v30 }
 0xa37   : > { %16297 = vst [vmem:[#allocation78_spill] sm:$0xff] %v13245_v14  ;;  %9998 = vmatmul.mubr.msk.f32.gmra.mrb[46].mxu0 %vm820_vm5, %v5626_v9  ;;  %v13253_v61 = vpop.permute.xlu0 %3525  ;;  %v16304_v9 = vld [vmem:[#allocation79_spill] sm:$0xff] }
 0xa38   : > { %16299 = vst [vmem:[#allocation75_spill] sm:$0xff] %v13253_v61 }
 0xa39   : > { %10713 = vset.pattern.permute.xlu1 %v16178_v54 }
 0xa3a   : > { %v13256_v63 = vpop.permute.xlu1 %4467  ;;  %5369 = vperm.xlu1 %10713, %v16296_v23   ;;  %3366 = vperm.xlu0 %10806, %v13250_v17  }
 0xa3b   : > { %16300 = vst [vmem:[#allocation145_spill] sm:$0xff] %v13256_v63 }
 0xa3c   : > { %v13260_v32 = vpop.permute.xlu0 %4165 }
 0xa3e   : > { %v13262_v0 = vpop.permute.xlu1 %4606  ;;  %5518 = vperm.xlu1 %10713, %v12705_v1   ;;  %10807 = vset.pattern.permute.xlu0 %v16180_v48 }
 0xa3f   : > { %16301 = vst [vmem:[#allocation146_spill] sm:$0xff] %v13262_v0  ;;  %3895 = vperm.xlu0 %10807, %v13231_v22   ;;  %v13281_v0 = vcvt.f32.s32 %v10532_v40  ;;  %v2526_v40 = vld [vmem:[%s16000_s13 + $0xc8] sm:$0xff] }
 0xa41   : > { %v13268_v7 = vpop.permute.xlu0 %3693  ;;  %16306 = vst [vmem:[#allocation149_spill] sm:$0xff] %v13281_v0 }
 0xa42   : > { %16302 = vst [vmem:[#allocation147_spill] sm:$0xff] %v13268_v7  ;;  %10714 = vset.pattern.permute.xlu1 %v16185_v36 }
 0xa43   : > { %v13271_v46 = vpop.permute.xlu1 %5214  ;;  %3510 = vperm.xlu1 %10714, %v3453_v28   ;;  %4046 = vperm.xlu0 %10807, %v13250_v17  }
 0xa44   : > { %v5308_v21 = vsel %vm5148_vm11, %v13271_v46, 0.0 }
 0xa46   : > { %v13274_v2 = vpop.permute.xlu0 %5530 }
 0xa47   : > { %16303 = vst [vmem:[#allocation148_spill] sm:$0xff] %v13274_v2  ;;  %3673 = vperm.xlu1 %10714, %v16304_v9   ;;  %10808 = vset.pattern.permute.xlu0 %v16178_v54 }
 0xa48   : > { %v13278_v23 = vpop.permute.xlu1 %3120  ;;  %5111 = vperm.xlu0 %10808, %v13231_v22  }
 0xa49   : > { %16305 = vst [vmem:[#allocation79_spill] sm:$0xff] %v13278_v23 }
 0xa4b   : > { %10715 = vset.pattern.permute.xlu1 %v16180_v48  ;;  %v13284_v63 = vpop.permute.xlu0 %3147 }
 0xa4c   : > { %16307 = vst [vmem:[#allocation150_spill] sm:$0xff] %v13284_v63  ;;  %v13286_v14 = vpop.permute.xlu1 %3301  ;;  %4150 = vperm.xlu1 %10715, %v3453_v28   ;;  %10811 = vset.pattern.permute.xlu0 %v16180_v48  ;;  %v13301_v63 = vadd.s32 1, %v13231_v22  ;;  %v2525_v22 = vld [vmem:[%s16000_s13 + $0xc0] sm:$0xff] }
 0xa4d   : > { %16308 = vst [vmem:[#allocation151_spill] sm:$0xff] %v13286_v14  ;;  %3892 = vperm.xlu0 %10811, %v13281_v0   ;;  %v16313_v14 = vld [vmem:[#allocation57_spill] sm:$0xff] }
 0xa4e   : > { %16310 = vst [vmem:[#allocation153_spill] sm:$0xff] %v13301_v63  ;;  %v2984_v23 = vadd.f32 %v16313_v14, %v2526_v40 }
 0xa4f   : > { %v13290_v60 = vpop.permute.xlu0 %3346 }
 0xa50   : > { %16309 = vst [vmem:[#allocation152_spill] sm:$0xff] %v13290_v60  ;;  %4298 = vperm.xlu1 %10715, %v16304_v9  }
 0xa51   : > { %v13293_v7 = vpop.permute.xlu1 %3994  ;;  %10813 = vset.pattern.permute.xlu0 %v16178_v54 }
 0xa52   : > { %5108 = vperm.xlu0 %10813, %v13281_v0  }
 0xa54   : > { %10716 = vset.pattern.permute.xlu1 %v16183_v25  ;;  %v13304_v61 = vpop.f32.mrb[40].mxu1  ;;  %v13306_v60 = vpop.permute.xlu0 %3883 }
 0xa55   : > { %16311 = vst [vmem:[#allocation154_spill] sm:$0xff] %v13304_v61  ;;  %16312 = vst [vmem:[#allocation155_spill] sm:$0xff] %v13306_v60  ;;  %4758 = vperm.xlu1 %10716, %v3453_v28   ;;  %v13309_v2 = vpop.f32.mrb[41].mxu1  ;;  %v3018_v61 = vfloor.f32 %v2984_v23  ;;  %v16316_v60 = vld [vmem:[#allocation58_spill] sm:$0xff] }
 0xa56   : > { %16314 = vst [vmem:[#allocation57_spill] sm:$0xff] %v13309_v2  ;;  %v13311_v17 = vpop.permute.xlu1 %5210  ;;  %10815 = vset.pattern.permute.xlu0 %v16185_v36  ;;  %v2983_v14 = vadd.f32 %v16316_v60, %v2525_v22 }
 0xa57   : > { %3543 = vperm.xlu0 %10815, %v13301_v63   ;;  %v13326_v2 = vsub.f32 %v2984_v23, %v3018_v61  ;;  %v10538_v23 = vtrunc.f32 %v3018_v61 }
 0xa58   : > { %v13318_v0 = vpop.permute.xlu0 %4030  ;;  %v3017_v31 = vfloor.f32 %v2983_v14 }
 0xa59   : > { %16315 = vst [vmem:[#allocation156_spill] sm:$0xff] %v13318_v0  ;;  %10717 = vset.pattern.permute.xlu1 %v16178_v54 }
 0xa5a   : > { %5366 = vperm.xlu1 %10717, %v3453_v28   ;;  %v13336_v22 = vsub.f32 %v2983_v14, %v3017_v31 }
 0xa5b   : > { %v13322_v40 = vpop.permute.xlu1 %4294  ;;  %10816 = vset.pattern.permute.xlu0 %v16180_v48 }
 0xa5c   : > { %4183 = vperm.xlu0 %10816, %v13301_v63  }
 0xa5d   : > { %v13328_v1 = vpop.permute.xlu0 %5099 }
 0xa5e   : > { %16317 = vst [vmem:[#allocation58_spill] sm:$0xff] %v13328_v1  ;;  %10718 = vset.pattern.permute.xlu1 %v16183_v25 }
 0xa5f   : > { %4906 = vperm.xlu1 %10718, %v16304_v9  }
 0xa60   : > { %v13332_v0 = vpop.permute.xlu1 %4755  ;;  %10818 = vset.pattern.permute.xlu0 %v16185_v36 }
 0xa61   : > { %16318 = vst [vmem:[#allocation157_spill] sm:$0xff] %v13332_v0  ;;  %3728 = vperm.xlu0 %10818, %v13326_v2   ;;  %v13347_v0 = vcvt.f32.s32 %v10538_v23 }
 0xa62   : > { %v13338_v28 = vpop.f32.mrb[42].mxu0  ;;  %v13340_v60 = vpop.permute.xlu0 %3880 }
 0xa63   : > { %16319 = vst [vmem:[#allocation158_spill] sm:$0xff] %v13338_v28  ;;  %16320 = vst [vmem:[#allocation159_spill] sm:$0xff] %v13340_v60  ;;  %4479 = vperm.xlu1 %10718, %v12729_v58   ;;  %v13343_v63 = vpop.f32.mrb[43].mxu0  ;;  %v13358_v58 = vsub.f32 1.0, %v13326_v2 }
 0xa64   : > { %16321 = vst [vmem:[#allocation160_spill] sm:$0xff] %v13343_v63 }
 0xa65   : > { %v5364_v1 = vpop.permute.xlu1 %5363  ;;  %10827 = vset.pattern.permute.xlu0 %v16178_v54  ;;  %16324 = vst [vmem:[#allocation161_spill] sm:$0xff] %v13358_v58 }
 0xa66   : > { %5554 = vperm.xlu0 %10827, %v13336_v22   ;;  %vm5436_vm7 = vcmp.eq.s32.totalorder %v12264_v41, %v5364_v1  ;;  %v2528_v1 = vld [vmem:[%s16000_s13 + $0xd8] sm:$0xff] }
 0xa67   : > { %4622 = vperm.xlu1 %10718, %v16322_v12   ;;  %v13350_v14 = vpop.permute.xlu0 %5096 }
 0xa68   : > { %16323 = vst [vmem:[#allocation81_spill] sm:$0xff] %v13350_v14  ;;  %v13374_v14 = vsub.f32 1.0, %v16304_v9  ;;  %v4091_v9 = vsel %vm3931_vm15, %v13293_v7, 0.0  ;;  %vm3933_vm15 = vcmp.eq.s32.totalorder %v12264_v41, %v12961_v11 }
 0xa69   : > { %v13352_v42 = vpop.permute.xlu1 %5510 }
 0xa6a   : > { %10828 = vset.pattern.permute.xlu0 %v16185_v36 }
 0xa6b   : > { %10723 = vset.pattern.permute.xlu1 %v16178_v54  ;;  %3165 = vperm.xlu0 %10828, %v13347_v0  }
 0xa6c   : > { %5230 = vperm.xlu1 %10723, %v16322_v12   ;;  %v13361_v61 = vpop.permute.xlu0 %3531 }
 0xa6d   : > { %16325 = vst [vmem:[#allocation162_spill] sm:$0xff] %v13361_v61 }
 0xa6e   : > { %v13363_v23 = vpop.permute.xlu1 %3504 }
 0xa6f   : > { %16326 = vst [vmem:[#allocation163_spill] sm:$0xff] %v13363_v23  ;;  %3376 = vperm.xlu0 %10828, %v13358_v58   ;;  %v10536_v23 = vtrunc.f32 %v3017_v31 }
 0xa70   : > { %10724 = vset.pattern.permute.xlu1 %v16185_v36 }
 0xa71   : > { %3132 = vperm.xlu1 %10724, %v12770_v37   ;;  %v13368_v63 = vpop.permute.xlu0 %4171 }
 0xa72   : > { %v13370_v28 = vpop.permute.xlu1 %3663 }
 0xa73   : > { %16327 = vst [vmem:[#allocation164_spill] sm:$0xff] %v13370_v28  ;;  %10829 = vset.pattern.permute.xlu0 %v16180_v48  ;;  %v4380_v28 = vsel %vm4220_vm14, %v13120_v62, 0.0 }
 0xa74   : > { %3901 = vperm.xlu0 %10829, %v13347_v0   ;;  %v4412_v60 = vadd.f32 %v4380_v28, %v4092_v18 }
 0xa75   : > { %3321 = vperm.xlu1 %10724, %v13374_v14  }
 0xa76   : > { %v13378_v12 = vpop.permute.xlu0 %3708 }
 0xa77   : > { %16328 = vst [vmem:[#allocation165_spill] sm:$0xff] %v13378_v12  ;;  %v4145_v61 = vpop.permute.xlu1 %4144 }
 0xa78   : > { %vm4219_vm0 = vcmp.eq.s32.totalorder %v12264_v41, %v4145_v61  ;;  %4054 = vperm.xlu0 %10829, %v13358_v58   ;;  %v5307_v61 = vsel %vm5147_vm8, %v13311_v17, 0.0  ;;  %vm5149_vm8 = vcmp.eq.s32.totalorder %v12264_v41, %v12975_v56 }
 0xa79   : > { %v4379_v12 = vsel %vm4219_vm0, %v13202_v26, 0.0  ;;  %10726 = vset.pattern.permute.xlu1 %v16180_v48  ;;  %v13402_v26 = vcvt.f32.s32 %v10536_v23  ;;  %v16333_v23 = vld [vmem:[#allocation86_spill] sm:$0xff] }
 0xa7a   : > { %v4411_v35 = vadd.f32 %v4379_v12, %v4091_v9  ;;  %4010 = vperm.xlu1 %10726, %v13374_v14   ;;  %v13433_v9 = vadd.s32 1, %v13347_v0 }
 0xa7b   : > { %v13394_v33 = vpop.permute.xlu1 %4290  ;;  %v13396_v62 = vpop.permute.xlu0 %5538 }
 0xa7c   : > { %16329 = vst [vmem:[#allocation166_spill] sm:$0xff] %v13396_v62  ;;  %9948 = vmatprep.mubr.msk.f32.mxu1 %vm820_vm5, %v4411_v35  ;;  %10830 = vset.pattern.permute.xlu0 %v16178_v54  ;;  %16334 = vst [vmem:[#allocation86_spill] sm:$0xff] %v13433_v9  ;;  %v16335_v35 = vld [vmem:[#allocation59_spill] sm:$0xff] }
 0xa7d   : > { %9949 = vmatmul.mubr.msk.f32.gmra.mrb[46].mxu1 %vm820_vm5, %v4412_v60  ;;  %5117 = vperm.xlu0 %10830, %v13347_v0   ;;  %v5596_v60 = vsel %vm5436_vm7, %v13147_v52, 0.0 }
 0xa7e   : > { %10728 = vset.pattern.permute.xlu1 %v16178_v54  ;;  %v5628_v18 = vadd.f32 %v5596_v60, %v5308_v21 }
 0xa7f   : > { %5226 = vperm.xlu1 %10728, %v13374_v14  }
 0xa80   : > { %v13406_v29 = vpop.permute.xlu1 %4752  ;;  %v13408_v31 = vpop.permute.xlu0 %3153 }
 0xa81   : > { %16330 = vst [vmem:[#allocation167_spill] sm:$0xff] %v13406_v29  ;;  %16331 = vst [vmem:[#allocation168_spill] sm:$0xff] %v13408_v31  ;;  %10832 = vset.pattern.permute.xlu0 %v16180_v48 }
 0xa82   : > { %3898 = vperm.xlu0 %10832, %v13402_v26  }
 0xa83   : > { %10731 = vset.pattern.permute.xlu1 %v16180_v48 }
 0xa84   : > { %4310 = vperm.xlu1 %10731, %v12817_v51   ;;  %v13415_v7 = vpop.permute.xlu0 %3356 }
 0xa85   : > { %16332 = vst [vmem:[#allocation169_spill] sm:$0xff] %v13415_v7  ;;  %v5361_v28 = vpop.permute.xlu1 %5360 }
 0xa86   : > { %vm5435_vm10 = vcmp.eq.s32.totalorder %v12264_v41, %v5361_v28  ;;  %10834 = vset.pattern.permute.xlu0 %v16178_v54  ;;  %v2986_v28 = vadd.f32 %v16335_v35, %v2528_v1 }
 0xa87   : > { %v5595_v12 = vsel %vm5435_vm10, %v16333_v23, 0.0  ;;  %5114 = vperm.xlu0 %10834, %v13402_v26  }
 0xa88   : > { %v5627_v52 = vadd.f32 %v5595_v12, %v5307_v61  ;;  %10732 = vset.pattern.permute.xlu1 %v16183_v25  ;;  %v3020_v60 = vfloor.f32 %v2986_v28 }
 0xa89   : > { %4767 = vperm.xlu1 %10732, %v12806_v10   ;;  %v13436_v4 = vpop.permute.xlu0 %3889 }
 0xa8a   : > { %v13439_v17 = vpop.permute.xlu1 %4898  ;;  %10000 = vmatprep.mubr.msk.f32.mxu0 %vm820_vm5, %v5627_v52  ;;  %v13453_v1 = vsub.f32 %v2986_v28, %v3020_v60  ;;  %v10542_v23 = vtrunc.f32 %v3020_v60  ;;  %v3455_v52 = vadd.s32 1, %v12770_v37 }
 0xa8b   : > { %16336 = vst [vmem:[#allocation59_spill] sm:$0xff] %v13439_v17  ;;  %10836 = vset.pattern.permute.xlu0 %v16185_v36  ;;  %10001 = vmatmul.mubr.msk.f32.gmra.mrb[48].mxu0 %vm820_vm5, %v5628_v18  ;;  %v16348_v17 = vld [vmem:[#allocation61_spill] sm:$0xff] }
 0xa8c   : > { %3549 = vperm.xlu0 %10836, %v13433_v9   ;;  %v13462_v18 = vcvt.f32.s32 %v10542_v23  ;;  %v13472_v28 = vsub.f32 1.0, %v13453_v1  ;;  %v16349_v29 = vfloor.f32 %v16348_v17  ;;  %v2530_v17 = vld [vmem:[%s16000_s13 + $0xe8] sm:$0xff] }
 0xa8d   : > { %10733 = vset.pattern.permute.xlu1 %v16178_v54  ;;  %v13446_v46 = vpop.permute.xlu0 %4038 }
 0xa8e   : > { %16337 = vst [vmem:[#allocation170_spill] sm:$0xff] %v13446_v46  ;;  %v13448_v61 = vpop.permute.xlu1 %4473  ;;  %5375 = vperm.xlu1 %10733, %v12806_v10   ;;  %16341 = vst [vmem:[#allocation174_spill] sm:$0xff] %v13462_v18  ;;  %v10540_v7 = vtrunc.f32 %v16349_v29 }
 0xa8f   : > { %16338 = vst [vmem:[#allocation171_spill] sm:$0xff] %v13448_v61  ;;  %16343 = vst [vmem:[#allocation176_spill] sm:$0xff] %v13472_v28 }
 0xa90   : > { %10837 = vset.pattern.permute.xlu0 %v16180_v48  ;;  %v13494_v58 = vcvt.f32.s32 %v10540_v7  ;;  %v13511_v7 = vadd.s32 1, %v13462_v18 }
 0xa91   : > { %4189 = vperm.xlu0 %10837, %v13433_v9  }
 0xa92   : > { %v13455_v12 = vpop.permute.xlu1 %4614  ;;  %5526 = vperm.xlu1 %10733, %v12817_v51   ;;  %v13458_v21 = vpop.permute.xlu0 %5105  ;;  %16353 = vst [vmem:[#allocation183_spill] sm:$0xff] %v13511_v7 }
 0xa93   : > { %16339 = vst [vmem:[#allocation172_spill] sm:$0xff] %v13455_v12  ;;  %16340 = vst [vmem:[#allocation173_spill] sm:$0xff] %v13458_v21 }
 0xa95   : > { %10839 = vset.pattern.permute.xlu0 %v16185_v36 }
 0xa96   : > { %10734 = vset.pattern.permute.xlu1 %v16185_v36  ;;  %3738 = vperm.xlu0 %10839, %v13453_v1  }
 0xa97   : > { %v13466_v10 = vpop.permute.xlu1 %5222  ;;  %3516 = vperm.xlu1 %10734, %v3455_v52   ;;  %v13468_v35 = vpop.permute.xlu0 %3886 }
 0xa98   : > { %16342 = vst [vmem:[#allocation175_spill] sm:$0xff] %v13468_v35 }
 0xa9a   : > { %3171 = vperm.xlu0 %10839, %v13462_v18  }
 0xa9b   : > { %3683 = vperm.xlu1 %10734, %v12849_v27  }
 0xa9c   : > { %v13475_v60 = vpop.permute.xlu1 %3126  ;;  %v13477_v23 = vpop.permute.xlu0 %5102 }
 0xa9d   : > { %16344 = vst [vmem:[#allocation177_spill] sm:$0xff] %v13475_v60  ;;  %16345 = vst [vmem:[#allocation178_spill] sm:$0xff] %v13477_v23 }
 0xa9e   : > { %3386 = vperm.xlu0 %10839, %v13472_v28  }
 0xa9f   : > { %10735 = vset.pattern.permute.xlu1 %v16180_v48 }
 0xaa0   : > { %v13481_v12 = vpop.permute.xlu1 %3311  ;;  %4156 = vperm.xlu1 %10735, %v3455_v52  }
 0xaa1   : > { %16346 = vst [vmem:[#allocation179_spill] sm:$0xff] %v13481_v12  ;;  %v13483_v61 = vpop.permute.xlu0 %3537 }
 0xaa2   : > { %16347 = vst [vmem:[#allocation180_spill] sm:$0xff] %v13483_v61  ;;  %10847 = vset.pattern.permute.xlu0 %v16180_v48 }
 0xaa3   : > { %3907 = vperm.xlu0 %10847, %v13462_v18  }
 0xaa4   : > { %4306 = vperm.xlu1 %10735, %v12849_v27  }
 0xaa5   : > { %v13490_v31 = vpop.permute.xlu1 %4002 }
 0xaa6   : > { %v13492_v60 = vpop.permute.xlu0 %4177  ;;  %v4093_v53 = vsel %vm3933_vm15, %v13490_v31, 0.0  ;;  %v16374_v31 = vld [vmem:[#allocation67_spill] sm:$0xff]  ;;  %vm3935_vm15 = vcmp.eq.s32.totalorder %v12264_v41, %v13093_v6 }
 0xaa7   : > { %4062 = vperm.xlu0 %10847, %v13472_v28   ;;  %v16354_v28 = vld [vmem:[#allocation63_spill] sm:$0xff] }
 0xaa8   : > { %10736 = vset.pattern.permute.xlu1 %v16183_v25  ;;  %v13498_v61 = vpop.f32.mrb[42].mxu1 }
 0xaa9   : > { %16350 = vst [vmem:[#allocation61_spill] sm:$0xff] %v13498_v61  ;;  %4764 = vperm.xlu1 %10736, %v3455_v52   ;;  %v13500_v12 = vpop.f32.mrb[43].mxu1  ;;  %v2988_v61 = vadd.f32 %v16354_v28, %v2530_v17 }
 0xaaa   : > { %16351 = vst [vmem:[#allocation181_spill] sm:$0xff] %v13500_v12  ;;  %v13502_v29 = vpop.permute.xlu1 %5218 }
 0xaab   : > { %3904 = vperm.xlu0 %10847, %v13494_v58   ;;  %v13508_v62 = vpop.permute.xlu0 %3718  ;;  %v3022_v23 = vfloor.f32 %v2988_v61 }
 0xaac   : > { %16352 = vst [vmem:[#allocation182_spill] sm:$0xff] %v13508_v62 }
 0xaad   : > { %10737 = vset.pattern.permute.xlu1 %v16178_v54  ;;  %v13529_v28 = vsub.f32 %v2988_v61, %v3022_v23  ;;  %v10546_v17 = vtrunc.f32 %v3022_v23 }
 0xaae   : > { %5372 = vperm.xlu1 %10737, %v3455_v52  }
 0xaaf   : > { %v13515_v21 = vpop.permute.xlu1 %4302  ;;  %10850 = vset.pattern.permute.xlu0 %v16185_v36  ;;  %v13541_v35 = vcvt.f32.s32 %v10546_v17 }
 0xab0   : > { %3555 = vperm.xlu0 %10850, %v13511_v7   ;;  %v13519_v12 = vpop.permute.xlu0 %5546 }
 0xab1   : > { %16355 = vst [vmem:[#allocation63_spill] sm:$0xff] %v13519_v12  ;;  %16361 = vst [vmem:[#allocation189_spill] sm:$0xff] %v13541_v35 }
 0xab2   : > { %10738 = vset.pattern.permute.xlu1 %v16183_v25 }
 0xab3   : > { %4914 = vperm.xlu1 %10738, %v12849_v27  }
 0xab4   : > { %v13523_v62 = vpop.permute.xlu1 %4761  ;;  %10851 = vset.pattern.permute.xlu0 %v16180_v48 }
 0xab5   : > { %16356 = vst [vmem:[#allocation184_spill] sm:$0xff] %v13523_v62  ;;  %4195 = vperm.xlu0 %10851, %v13511_v7   ;;  %v13527_v52 = vpop.permute.xlu0 %3159 }
 0xab6   : > { %16357 = vst [vmem:[#allocation185_spill] sm:$0xff] %v13527_v52  ;;  %v13531_v9 = vpop.f32.mrb[44].mxu0 }
 0xab7   : > { %16358 = vst [vmem:[#allocation186_spill] sm:$0xff] %v13531_v9  ;;  %4485 = vperm.xlu1 %10738, %v12863_v3   ;;  %v13534_v12 = vpop.f32.mrb[45].mxu0  ;;  %v13549_v3 = vsub.f32 1.0, %v13529_v28 }
 0xab8   : > { %16359 = vst [vmem:[#allocation187_spill] sm:$0xff] %v13534_v12 }
 0xab9   : > { %v13536_v46 = vpop.permute.xlu1 %5369  ;;  %10852 = vset.pattern.permute.xlu0 %v16185_v36  ;;  %v13539_v62 = vpop.permute.xlu0 %3366  ;;  %16362 = vst [vmem:[#allocation190_spill] sm:$0xff] %v13549_v3 }
 0xaba   : > { %16360 = vst [vmem:[#allocation188_spill] sm:$0xff] %v13539_v62  ;;  %3748 = vperm.xlu0 %10852, %v13529_v28   ;;  %v16367_v62 = vld [vmem:[#allocation66_spill] sm:$0xff]  ;;  %vm5438_vm7 = vcmp.eq.s32.totalorder %v12264_v41, %v13536_v46 }
 0xabb   : > { %4630 = vperm.xlu1 %10738, %v12873_v44   ;;  %v16368_v52 = vfloor.f32 %v16367_v62  ;;  %v16377_v46 = vld [vmem:[#allocation110_spill] sm:$0xff] }
 0xabc   : > { %vm5150_vm11 = vcmp.eq.s32.totalorder %v12264_v41, %v16377_v46 }
 0xabd   : > { %v13545_v61 = vpop.permute.xlu1 %5518  ;;  %v10544_v7 = vtrunc.f32 %v16368_v52  ;;  %v16372_v52 = vld [vmem:[#allocation109_spill] sm:$0xff] }
 0xabe   : > { %3177 = vperm.xlu0 %10852, %v13541_v35   ;;  %v13551_v23 = vpop.permute.xlu0 %3895 }
 0xabf   : > { %16363 = vst [vmem:[#allocation191_spill] sm:$0xff] %v13551_v23  ;;  %10743 = vset.pattern.permute.xlu1 %v16178_v54 }
 0xac0   : > { %5238 = vperm.xlu1 %10743, %v12873_v44   ;;  %v13569_v44 = vsub.f32 1.0, %v12849_v27  ;;  %v4382_v27 = vsel %vm4222_vm13, %v13322_v40, 0.0  ;;  %vm3936_vm13 = vcmp.eq.s32.totalorder %v12264_v41, %v13063_v34 }
 0xac2   : > { %v13555_v12 = vpop.permute.xlu1 %3510  ;;  %3396 = vperm.xlu0 %10852, %v13549_v3   ;;  %v13558_v17 = vpop.permute.xlu0 %4046 }
 0xac3   : > { %16364 = vst [vmem:[#allocation192_spill] sm:$0xff] %v13555_v12  ;;  %16365 = vst [vmem:[#allocation193_spill] sm:$0xff] %v13558_v17  ;;  %v13576_v17 = vcvt.f32.s32 %v10544_v7 }
 0xac4   : > { %10744 = vset.pattern.permute.xlu1 %v16185_v36 }
 0xac5   : > { %3138 = vperm.xlu1 %10744, %v12902_v24  }
 0xac6   : > { %v13562_v9 = vpop.permute.xlu1 %3673  ;;  %10856 = vset.pattern.permute.xlu0 %v16180_v48 }
 0xac7   : > { %16366 = vst [vmem:[#allocation194_spill] sm:$0xff] %v13562_v9  ;;  %3913 = vperm.xlu0 %10856, %v13541_v35   ;;  %v13571_v12 = vpop.permute.xlu0 %5111  ;;  %v16370_v9 = vld [vmem:[#allocation105_spill] sm:$0xff] }
 0xac8   : > { %16369 = vst [vmem:[#allocation66_spill] sm:$0xff] %v13571_v12  ;;  %vm3934_vm14 = vcmp.eq.s32.totalorder %v12264_v41, %v16370_v9  ;;  %v2532_v9 = vld [vmem:[%s16000_s13 + $0xf8] sm:$0xff] }
 0xac9   : > { %3331 = vperm.xlu1 %10744, %v13569_v44  }
 0xacb   : > { %v4151_v23 = vpop.permute.xlu1 %4150  ;;  %4070 = vperm.xlu0 %10856, %v13549_v3   ;;  %v4094_v3 = vsel %vm3934_vm14, %v16372_v52, 0.0  ;;  %v5598_v52 = vsel %vm5438_vm7, %v13352_v42, 0.0  ;;  %vm4224_vm14 = vcmp.eq.s32.totalorder %v12264_v41, %v13130_v49 }
 0xacc   : > { %vm4221_vm0 = vcmp.eq.s32.totalorder %v12264_v41, %v4151_v23  ;;  %v13585_v62 = vpop.permute.xlu0 %3892  ;;  %v4414_v11 = vadd.f32 %v4382_v27, %v4094_v3  ;;  %v2990_v23 = vadd.f32 %v16374_v31, %v2532_v9  ;;  %v16378_v31 = vld [vmem:[#allocation101_spill] sm:$0xff] }
 0xacd   : > { %16371 = vst [vmem:[#allocation105_spill] sm:$0xff] %v13585_v62  ;;  %v4381_v7 = vsel %vm4221_vm0, %v13394_v33, 0.0  ;;  %10746 = vset.pattern.permute.xlu1 %v16180_v48  ;;  %v13600_v33 = vadd.s32 1, %v13541_v35 }
 0xace   : > { %v4413_v12 = vadd.f32 %v4381_v7, %v4093_v53  ;;  %4018 = vperm.xlu1 %10746, %v13569_v44  }
 0xacf   : > { %v13595_v40 = vpop.permute.xlu1 %4298  ;;  %3910 = vperm.xlu0 %10856, %v13576_v17   ;;  %16373 = vst [vmem:[#allocation109_spill] sm:$0xff] %v13600_v33 }
 0xad0   : > { %9951 = vmatprep.mubr.msk.f32.mxu1 %vm820_vm5, %v4413_v12  ;;  %v3024_v12 = vfloor.f32 %v2990_v23 }
 0xad1   : > { %9952 = vmatmul.mubr.msk.f32.gmra.mrb[48].mxu1 %vm820_vm5, %v4414_v11  ;;  %v13604_v62 = vpop.permute.xlu0 %5108  ;;  %v5309_v11 = vsel %vm5149_vm8, %v13502_v29, 0.0  ;;  %vm5151_vm8 = vcmp.eq.s32.totalorder %v12264_v41, %v13102_v19 }
 0xad2   : > { %10748 = vset.pattern.permute.xlu1 %v16178_v54  ;;  %v13619_v53 = vsub.f32 %v2990_v23, %v3024_v12  ;;  %v10550_v9 = vtrunc.f32 %v3024_v12 }
 0xad3   : > { %5234 = vperm.xlu1 %10748, %v13569_v44   ;;  %10858 = vset.pattern.permute.xlu0 %v16185_v36 }
 0xad4   : > { %v13609_v3 = vpop.permute.xlu1 %4758  ;;  %3561 = vperm.xlu0 %10858, %v13600_v33   ;;  %v13636_v56 = vcvt.f32.s32 %v10550_v9 }
 0xad5   : > { %16375 = vst [vmem:[#allocation67_spill] sm:$0xff] %v13609_v3 }
 0xad6   : > { %v13612_v27 = vpop.permute.xlu0 %3543  ;;  %16379 = vst [vmem:[#allocation110_spill] sm:$0xff] %v13636_v56 }
 0xad7   : > { %16376 = vst [vmem:[#allocation195_spill] sm:$0xff] %v13612_v27  ;;  %10751 = vset.pattern.permute.xlu1 %v16180_v48  ;;  %v5310_v27 = vsel %vm5150_vm11, %v13466_v10, 0.0  ;;  %v2531_v10 = vld [vmem:[%s16000_s13 + $0xf0] sm:$0xff]  ;;  %vm5152_vm11 = vcmp.eq.s32.totalorder %v12264_v41, %v13084_v20  ;;  %v16418_v20 = vld [vmem:[#allocation4_spill] sm:$0xff] }
 0xad8   : > { %4318 = vperm.xlu1 %10751, %v12967_v39   ;;  %10859 = vset.pattern.permute.xlu0 %v16180_v48  ;;  %v5630_v12 = vadd.f32 %v5598_v52, %v5310_v27  ;;  %v16383_v27 = vld [vmem:[#allocation104_spill] sm:$0xff] }
 0xad9   : > { %v5367_v7 = vpop.permute.xlu1 %5366  ;;  %4201 = vperm.xlu0 %10859, %v13600_v33  }
 0xada   : > { %vm5437_vm10 = vcmp.eq.s32.totalorder %v12264_v41, %v5367_v7  ;;  %v16385_v7 = vld [vmem:[#allocation68_spill] sm:$0xff] }
 0xadb   : > { %v5597_v3 = vsel %vm5437_vm10, %v16378_v31, 0.0  ;;  %v13630_v23 = vpop.permute.xlu0 %4183  ;;  %v13657_v9 = vadd.f32 %v16385_v7, %v2531_v10  ;;  %v3457_v7 = vadd.s32 1, %v12902_v24 }
 0xadc   : > { %v5629_v33 = vadd.f32 %v5597_v3, %v5309_v11  ;;  %10752 = vset.pattern.permute.xlu1 %v16185_v36 }
 0xadd   : > { %3698 = vperm.xlu1 %10752, %v12967_v39   ;;  %10860 = vset.pattern.permute.xlu0 %v16185_v36  ;;  %v16097_v11 = vfloor.f32 %v13657_v9 }
 0xade   : > { %v13638_v42 = vpop.permute.xlu1 %4906  ;;  %10003 = vmatprep.mubr.msk.f32.mxu0 %vm820_vm5, %v5629_v33  ;;  %3758 = vperm.xlu0 %10860, %v13619_v53   ;;  %v13654_v33 = vsub.f32 1.0, %v13619_v53 }
 0xadf   : > { %16380 = vst [vmem:[#allocation101_spill] sm:$0xff] %v13638_v42  ;;  %10004 = vmatmul.mubr.msk.f32.gmra.mrb[50].mxu0 %vm820_vm5, %v5630_v12  ;;  %v10548_v12 = vtrunc.f32 %v16097_v11 }
 0xae0   : > { %v13646_v29 = vpop.permute.xlu0 %3728  ;;  %16384 = vst [vmem:[#allocation104_spill] sm:$0xff] %v13654_v33 }
 0xae1   : > { %16381 = vst [vmem:[#allocation196_spill] sm:$0xff] %v13646_v29  ;;  %10753 = vset.pattern.permute.xlu1 %v16183_v25  ;;  %v13692_v29 = vadd.s32 1, %v13636_v56 }
 0xae2   : > { %v13649_v3 = vpop.permute.xlu1 %4479  ;;  %4773 = vperm.xlu1 %10753, %v16383_v27   ;;  %3183 = vperm.xlu0 %10860, %v13636_v56  }
 0xae3   : > { %16382 = vst [vmem:[#allocation197_spill] sm:$0xff] %v13649_v3  ;;  %v13679_v3 = vcvt.f32.s32 %v10548_v12  ;;  %16393 = vst [vmem:[#allocation204_spill] sm:$0xff] %v13692_v29 }
 0xae5   : > { %v13659_v52 = vpop.permute.xlu0 %5554 }
 0xae6   : > { %16386 = vst [vmem:[#allocation68_spill] sm:$0xff] %v13659_v52  ;;  %v13661_v46 = vpop.permute.xlu1 %4622  ;;  %10754 = vset.pattern.permute.xlu1 %v16178_v54  ;;  %3406 = vperm.xlu0 %10860, %v13654_v33  }
 0xae7   : > { %16387 = vst [vmem:[#allocation198_spill] sm:$0xff] %v13661_v46  ;;  %5381 = vperm.xlu1 %10754, %v16383_v27  }
 0xaea   : > { %10864 = vset.pattern.permute.xlu0 %v16180_v48  ;;  %v13668_v31 = vpop.permute.xlu0 %3165 }
 0xaeb   : > { %16388 = vst [vmem:[#allocation199_spill] sm:$0xff] %v13668_v31  ;;  %v13672_v10 = vpop.permute.xlu1 %5230  ;;  %5534 = vperm.xlu1 %10754, %v12967_v39   ;;  %3919 = vperm.xlu0 %10864, %v13636_v56  }
 0xaee   : > { %v13677_v46 = vpop.permute.xlu0 %3376 }
 0xaef   : > { %16389 = vst [vmem:[#allocation200_spill] sm:$0xff] %v13677_v46  ;;  %10755 = vset.pattern.permute.xlu1 %v16185_v36  ;;  %4078 = vperm.xlu0 %10864, %v13654_v33  }
 0xaf0   : > { %v13683_v27 = vpop.permute.xlu1 %3132  ;;  %3522 = vperm.xlu1 %10755, %v3457_v7  }
 0xaf1   : > { %16390 = vst [vmem:[#allocation201_spill] sm:$0xff] %v13683_v27 }
 0xaf3   : > { %3916 = vperm.xlu0 %10864, %v13679_v3   ;;  %v13686_v11 = vpop.permute.xlu0 %3901 }
 0xaf4   : > { %16391 = vst [vmem:[#allocation202_spill] sm:$0xff] %v13686_v11  ;;  %v13688_v42 = vpop.permute.xlu1 %3321  ;;  %10756 = vset.pattern.permute.xlu1 %v16180_v48 }
 0xaf5   : > { %16392 = vst [vmem:[#allocation203_spill] sm:$0xff] %v13688_v42  ;;  %4162 = vperm.xlu1 %10756, %v3457_v7  }
 0xaf7   : > { %10866 = vset.pattern.permute.xlu0 %v16185_v36  ;;  %v13695_v12 = vpop.permute.xlu0 %4054 }
 0xaf8   : > { %16394 = vst [vmem:[#allocation205_spill] sm:$0xff] %v13695_v12  ;;  %3567 = vperm.xlu0 %10866, %v13692_v29   ;;  %v16402_v12 = vld [vmem:[#allocation65_spill] sm:$0xff] }
 0xaf9   : > { %v4011_v46 = vpop.permute.xlu1 %4010  ;;  %4314 = vperm.xlu1 %10756, %v12950_v16  }
 0xafc   : > { %v13699_v31 = vpop.f32.mrb[44].mxu1  ;;  %10867 = vset.pattern.permute.xlu0 %v16180_v48  ;;  %v13702_v42 = vpop.permute.xlu0 %5117 }
 0xafd   : > { %16395 = vst [vmem:[#allocation206_spill] sm:$0xff] %v13699_v31  ;;  %16396 = vst [vmem:[#allocation207_spill] sm:$0xff] %v13702_v42  ;;  %10758 = vset.pattern.permute.xlu1 %v16183_v25  ;;  %v13705_v27 = vpop.f32.mrb[45].mxu1  ;;  %4207 = vperm.xlu0 %10867, %v13692_v29  }
 0xafe   : > { %16397 = vst [vmem:[#allocation208_spill] sm:$0xff] %v13705_v27  ;;  %v13708_v33 = vpop.permute.xlu1 %5226  ;;  %4770 = vperm.xlu1 %10758, %v3457_v7  }
 0xb01   : > { %10873 = vset.pattern.permute.xlu0 %v16178_v54  ;;  %v13711_v52 = vpop.permute.xlu0 %3898 }
 0xb02   : > { %16398 = vst [vmem:[#allocation209_spill] sm:$0xff] %v13711_v52  ;;  %10759 = vset.pattern.permute.xlu1 %v16178_v54  ;;  %5120 = vperm.xlu0 %10873, %v13494_v58  }
 0xb03   : > { %v13715_v31 = vpop.permute.xlu1 %4310  ;;  %5378 = vperm.xlu1 %10759, %v3457_v7  }
 0xb06   : > { %5123 = vperm.xlu0 %10873, %v13462_v18   ;;  %v13718_v42 = vpop.permute.xlu0 %5114 }
 0xb07   : > { %16399 = vst [vmem:[#allocation210_spill] sm:$0xff] %v13718_v42  ;;  %10760 = vset.pattern.permute.xlu1 %v16183_v25 }
 0xb08   : > { %v13721_v27 = vpop.permute.xlu1 %4767  ;;  %4922 = vperm.xlu1 %10760, %v12950_v16  }
 0xb09   : > { %16400 = vst [vmem:[#allocation211_spill] sm:$0xff] %v13721_v27 }
 0xb0a   : > { %v13724_v29 = vpop.f32.mrb[46].mxu0  ;;  %5562 = vperm.xlu0 %10873, %v16402_v12  }
 0xb0b   : > { %16401 = vst [vmem:[#allocation212_spill] sm:$0xff] %v13724_v29  ;;  %v13727_v52 = vpop.f32.mrb[47].mxu0  ;;  %v13729_v11 = vpop.permute.xlu0 %3549 }
 0xb0c   : > { %16403 = vst [vmem:[#allocation65_spill] sm:$0xff] %v13727_v52  ;;  %16404 = vst [vmem:[#allocation213_spill] sm:$0xff] %v13729_v11  ;;  %4491 = vperm.xlu1 %10760, %v12969_v45   ;;  %v16407_v45 = vld [vmem:[#allocation71_spill] sm:$0xff] }
 0xb0d   : > { %v5376_v7 = vpop.permute.xlu1 %5375 }
 0xb0e   : > { %5126 = vperm.xlu0 %10873, %v13576_v17   ;;  %vm5440_vm7 = vcmp.eq.s32.totalorder %v12264_v41, %v5376_v7 }
 0xb10   : > { %4638 = vperm.xlu1 %10760, %v12983_v15   ;;  %v13734_v42 = vpop.permute.xlu0 %4189 }
 0xb11   : > { %v13736_v27 = vpop.permute.xlu1 %5526 }
 0xb12   : > { %5129 = vperm.xlu0 %10873, %v13541_v35   ;;  %v13754_v35 = vsub.f32 1.0, %v12950_v16  ;;  %v4384_v16 = vsel %vm4224_vm14, %v13515_v21, 0.0 }
 0xb14   : > { %10765 = vset.pattern.permute.xlu1 %v16178_v54 }
 0xb15   : > { %5246 = vperm.xlu1 %10765, %v12983_v15   ;;  %v13741_v52 = vpop.permute.xlu0 %3738 }
 0xb16   : > { %16405 = vst [vmem:[#allocation214_spill] sm:$0xff] %v13741_v52  ;;  %v13743_v29 = vpop.permute.xlu1 %3516  ;;  %5570 = vperm.xlu0 %10873, %v16407_v45   ;;  %v16411_v52 = vfloor.f32 %v13657_v9 }
 0xb17   : > { %16406 = vst [vmem:[#allocation215_spill] sm:$0xff] %v13743_v29 }
 0xb18   : > { %v13761_v29 = vsub.f32 %v13657_v9, %v16411_v52  ;;  %v4095_v9 = vsel %vm3935_vm15, %v4011_v46, 0.0  ;;  %v16414_v46 = vld [vmem:[#allocation5_spill] sm:$0xff]  ;;  %vm3937_vm15 = vcmp.eq.s32.totalorder %v12264_v41, %v13221_v50  ;;  %v16460_v50 = vld [vmem:[#allocation51_spill] sm:$0xff] }
 0xb19   : > { %10766 = vset.pattern.permute.xlu1 %v16185_v36  ;;  %v13747_v11 = vpop.permute.xlu0 %3171 }
 0xb1a   : > { %16408 = vst [vmem:[#allocation71_spill] sm:$0xff] %v13747_v11  ;;  %v13749_v18 = vpop.permute.xlu1 %3683  ;;  %3144 = vperm.xlu1 %10766, %v13030_v43   ;;  %5132 = vperm.xlu0 %10873, %v13679_v3  }
 0xb1b   : > { %16409 = vst [vmem:[#allocation216_spill] sm:$0xff] %v13749_v18 }
 0xb1d   : > { %v13756_v15 = vpop.permute.xlu0 %3386 }
 0xb1e   : > { %16410 = vst [vmem:[#allocation217_spill] sm:$0xff] %v13756_v15  ;;  %3341 = vperm.xlu1 %10766, %v13754_v35   ;;  %5135 = vperm.xlu0 %10873, %v13636_v56   ;;  %v4096_v15 = vsel %vm3936_vm13, %v13074_v5, 0.0  ;;  %v16412_v5 = vld [vmem:[#allocation8_spill] sm:$0xff]  ;;  %vm4226_vm13 = vcmp.eq.s32.totalorder %v12264_v41, %v13260_v32 }
 0xb1f   : > { %v4157_v11 = vpop.permute.xlu1 %4156  ;;  %v4416_v49 = vadd.f32 %v4384_v16, %v4096_v15  ;;  %v5311_v15 = vsel %vm5151_vm8, %v13708_v33, 0.0  ;;  %v16415_v16 = vld [vmem:[#allocation6_spill] sm:$0xff] }
 0xb20   : > { %vm4223_vm0 = vcmp.eq.s32.totalorder %v12264_v41, %v4157_v11  ;;  %v5600_v11 = vsel %vm5440_vm7, %v13545_v61, 0.0  ;;  %v16420_v33 = vld [vmem:[#allocation10_spill] sm:$0xff] }
 0xb21   : > { %v4383_v52 = vsel %vm4223_vm0, %v13595_v40, 0.0 }
 0xb22   : > { %v4415_v18 = vadd.f32 %v4383_v52, %v4095_v9  ;;  %10768 = vset.pattern.permute.xlu1 %v16180_v48  ;;  %5578 = vperm.xlu0 %10873, %v13761_v29   ;;  %v13777_v34 = vpop.permute.xlu0 %3907  ;;  %v5312_v52 = vsel %vm5152_vm11, %v13672_v10, 0.0 }
 0xb23   : > { %v13779_v56 = vpop.permute.xlu1 %4306  ;;  %4026 = vperm.xlu1 %10768, %v13754_v35  }
 0xb24   : > { %9954 = vmatprep.mubr.msk.f32.mxu1 %vm820_vm5, %v4415_v18 }
 0xb25   : > { %9955 = vmatmul.mubr.msk.f32.gmra.mrb[50].mxu1 %vm820_vm5, %v4416_v49 }
 0xb26   : > { %10887 = vset.pattern.permute.xlu0 %v16183_v25  ;;  %v13785_v6 = vpop.permute.xlu0 %4062 }
 0xb27   : > { %10770 = vset.pattern.permute.xlu1 %v16178_v54  ;;  %4722 = vperm.xlu0 %10887, %v16412_v5   ;;  %v5632_v5 = vadd.f32 %v5600_v11, %v5312_v52  ;;  %v16427_v52 = vld [vmem:[#allocation12_spill] sm:$0xff] }
 0xb28   : > { %v13789_v21 = vpop.permute.xlu1 %4764  ;;  %5242 = vperm.xlu1 %10770, %v13754_v35  }
 0xb29   : > { %16413 = vst [vmem:[#allocation8_spill] sm:$0xff] %v13789_v21 }
 0xb2a   : > { %v13792_v40 = vpop.permute.xlu0 %3904 }
 0xb2b   : > { %4437 = vperm.xlu0 %10887, %v16414_v46  }
 0xb2c   : > { %10773 = vset.pattern.permute.xlu1 %v16180_v48 }
 0xb2d   : > { %v5373_v18 = vpop.permute.xlu1 %5372  ;;  %4326 = vperm.xlu1 %10773, %v13079_v8  }
 0xb2e   : > { %vm5439_vm10 = vcmp.eq.s32.totalorder %v12264_v41, %v5373_v18  ;;  %v16423_v18 = vld [vmem:[#allocation14_spill] sm:$0xff] }
 0xb2f   : > { %v5599_v7 = vsel %vm5439_vm10, %v13021_v47, 0.0  ;;  %4725 = vperm.xlu0 %10887, %v16415_v16   ;;  %v13807_v9 = vpop.permute.xlu0 %3555  ;;  %v16425_v16 = vld [vmem:[#allocation7_spill] sm:$0xff] }
 0xb30   : > { %16416 = vst [vmem:[#allocation5_spill] sm:$0xff] %v13807_v9  ;;  %v5631_v49 = vadd.f32 %v5599_v7, %v5311_v15  ;;  %v3459_v15 = vadd.s32 1, %v13030_v43 }
 0xb31   : > { %10775 = vset.pattern.permute.xlu1 %v16183_v25 }
 0xb32   : > { %v13811_v19 = vpop.permute.xlu1 %4914  ;;  %4779 = vperm.xlu1 %10775, %v13057_v13   ;;  %10006 = vmatprep.mubr.msk.f32.mxu0 %vm820_vm5, %v5631_v49 }
 0xb33   : > { %16417 = vst [vmem:[#allocation6_spill] sm:$0xff] %v13811_v19  ;;  %10007 = vmatmul.mubr.msk.f32.gmra.mrb[52].mxu0 %vm820_vm5, %v5632_v5  ;;  %4854 = vperm.xlu0 %10887, %v16418_v20   ;;  %v16429_v20 = vld [vmem:[#allocation33_spill] sm:$0xff] }
 0xb34   : > { %v13817_v47 = vpop.permute.xlu0 %4195 }
 0xb36   : > { %v13819_v61 = vpop.permute.xlu1 %4485  ;;  %10776 = vset.pattern.permute.xlu1 %v16178_v54 }
 0xb37   : > { %16419 = vst [vmem:[#allocation4_spill] sm:$0xff] %v13819_v61  ;;  %5387 = vperm.xlu1 %10776, %v13057_v13   ;;  %4440 = vperm.xlu0 %10887, %v16420_v33   ;;  %v16433_v61 = vld [vmem:[#allocation25_spill] sm:$0xff] }
 0xb39   : > { %v13824_v10 = vpop.permute.xlu0 %3748 }
 0xb3a   : > { %16421 = vst [vmem:[#allocation10_spill] sm:$0xff] %v13824_v10  ;;  %v13826_v46 = vpop.permute.xlu1 %4630  ;;  %v16436_v10 = vld [vmem:[#allocation54_spill] sm:$0xff] }
 0xb3b   : > { %16422 = vst [vmem:[#allocation218_spill] sm:$0xff] %v13826_v46  ;;  %5542 = vperm.xlu1 %10776, %v13079_v8   ;;  %4570 = vperm.xlu0 %10887, %v16423_v18  }
 0xb3d   : > { %v13830_v11 = vpop.permute.xlu0 %3177 }
 0xb3e   : > { %16424 = vst [vmem:[#allocation14_spill] sm:$0xff] %v13830_v11  ;;  %v16438_v11 = vld [vmem:[#allocation15_spill] sm:$0xff] }
 0xb3f   : > { %v13833_v7 = vpop.permute.xlu1 %5238  ;;  %10777 = vset.pattern.permute.xlu1 %v16185_v36  ;;  %4862 = vperm.xlu0 %10887, %v16425_v16   ;;  %v16432_v16 = vld [vmem:[#allocation11_spill] sm:$0xff] }
 0xb40   : > { %3528 = vperm.xlu1 %10777, %v3459_v15  }
 0xb41   : > { %v13837_v13 = vpop.permute.xlu0 %3396 }
 0xb42   : > { %16426 = vst [vmem:[#allocation7_spill] sm:$0xff] %v13837_v13 }
 0xb43   : > { %4446 = vperm.xlu0 %10887, %v16427_v52  }
 0xb44   : > { %v13840_v49 = vpop.permute.xlu1 %3138  ;;  %10778 = vset.pattern.permute.xlu1 %v16180_v48 }
 0xb45   : > { %16428 = vst [vmem:[#allocation12_spill] sm:$0xff] %v13840_v49  ;;  %4168 = vperm.xlu1 %10778, %v3459_v15  }
 0xb46   : > { %v13843_v5 = vpop.permute.xlu0 %3913 }
 0xb47   : > { %4578 = vperm.xlu0 %10887, %v16429_v20  }
 0xb48   : > { %v13846_v33 = vpop.permute.xlu1 %3331 }
 0xb49   : > { %16430 = vst [vmem:[#allocation33_spill] sm:$0xff] %v13846_v33  ;;  %4322 = vperm.xlu1 %10778, %v13089_v38   ;;  %v16444_v33 = vld [vmem:[#allocation88_spill] sm:$0xff] }
 0xb4a   : > { %v13849_v18 = vpop.permute.xlu0 %4070 }
 0xb4b   : > { %16431 = vst [vmem:[#allocation219_spill] sm:$0xff] %v13849_v18  ;;  %4870 = vperm.xlu0 %10887, %v16432_v16  }
 0xb4d   : > { %v4019_v46 = vpop.permute.xlu1 %4018  ;;  %10779 = vset.pattern.permute.xlu1 %v16185_v36 }
 0xb4e   : > { %3703 = vperm.xlu1 %10779, %v13089_v38   ;;  %v13854_v52 = vpop.permute.xlu0 %3910 }
 0xb4f   : > { %4452 = vperm.xlu0 %10887, %v16433_v61  }
 0xb50   : > { %v13857_v19 = vpop.f32.mrb[46].mxu1 }
 0xb51   : > { %16434 = vst [vmem:[#allocation11_spill] sm:$0xff] %v13857_v19  ;;  %v13859_v20 = vpop.f32.mrb[47].mxu1  ;;  %v16439_v19 = vld [vmem:[#allocation36_spill] sm:$0xff] }
 0xb52   : > { %16435 = vst [vmem:[#allocation25_spill] sm:$0xff] %v13859_v20  ;;  %v13861_v21 = vpop.permute.xlu1 %5234  ;;  %10780 = vset.pattern.permute.xlu1 %v16183_v25 }
 0xb53   : > { %4776 = vperm.xlu1 %10780, %v3459_v15   ;;  %4586 = vperm.xlu0 %10887, %v16436_v10   ;;  %v13865_v16 = vpop.permute.xlu0 %3561 }
 0xb54   : > { %16437 = vst [vmem:[#allocation54_spill] sm:$0xff] %v13865_v16 }
 0xb57   : > { %v13867_v13 = vpop.permute.xlu1 %4318  ;;  %10781 = vset.pattern.permute.xlu1 %v16178_v54  ;;  %4878 = vperm.xlu0 %10887, %v16438_v11  }
 0xb58   : > { %5384 = vperm.xlu1 %10781, %v3459_v15   ;;  %v13871_v61 = vpop.permute.xlu0 %4201 }
 0xb5b   : > { %4458 = vperm.xlu0 %10887, %v16439_v19   ;;  %v16447_v19 = vld [vmem:[#allocation29_spill] sm:$0xff] }
 0xb5c   : > { %v13874_v20 = vpop.permute.xlu1 %3698  ;;  %10782 = vset.pattern.permute.xlu1 %v16183_v25 }
 0xb5d   : > { %16440 = vst [vmem:[#allocation15_spill] sm:$0xff] %v13874_v20  ;;  %4930 = vperm.xlu1 %10782, %v13089_v38   ;;  %v13878_v10 = vpop.permute.xlu0 %3758  ;;  %v16448_v20 = vld [vmem:[#allocation126_spill] sm:$0xff] }
 0xb5e   : > { %16441 = vst [vmem:[#allocation36_spill] sm:$0xff] %v13878_v10  ;;  %v13880_v16 = vpop.f32.mrb[48].mxu0  ;;  %v16450_v10 = vld [vmem:[#allocation47_spill] sm:$0xff] }
 0xb5f   : > { %16442 = vst [vmem:[#allocation220_spill] sm:$0xff] %v13880_v16  ;;  %v13882_v9 = vpop.f32.mrb[49].mxu0  ;;  %4594 = vperm.xlu0 %10887, %v16444_v33  }
 0xb60   : > { %16443 = vst [vmem:[#allocation221_spill] sm:$0xff] %v13882_v9 }
 0xb61   : > { %v13885_v11 = vpop.permute.xlu1 %4773  ;;  %4497 = vperm.xlu1 %10782, %v13098_v55   ;;  %v13888_v15 = vpop.permute.xlu0 %3183  ;;  %v16452_v55 = vld [vmem:[#allocation113_spill] sm:$0xff] }
 0xb62   : > { %16445 = vst [vmem:[#allocation88_spill] sm:$0xff] %v13885_v11  ;;  %16446 = vst [vmem:[#allocation222_spill] sm:$0xff] %v13888_v15  ;;  %v16455_v11 = vld [vmem:[#allocation133_spill] sm:$0xff] }
 0xb63   : > { %4886 = vperm.xlu0 %10887, %v16447_v19  }
 0xb65   : > { %4646 = vperm.xlu1 %10782, %v16448_v20   ;;  %v13892_v49 = vpop.permute.xlu0 %3406 }
 0xb66   : > { %16449 = vst [vmem:[#allocation29_spill] sm:$0xff] %v13892_v49  ;;  %v5382_v18 = vpop.permute.xlu1 %5381  ;;  %v16456_v49 = vld [vmem:[#allocation40_spill] sm:$0xff] }
 0xb67   : > { %4464 = vperm.xlu0 %10887, %v16450_v10   ;;  %v13910_v10 = vsub.f32 1.0, %v13089_v38  ;;  %v4097_v38 = vsel %vm3937_vm15, %v4019_v46, 0.0  ;;  %vm5442_vm7 = vcmp.eq.s32.totalorder %v12264_v41, %v5382_v18  ;;  %v16464_v18 = vld [vmem:[#allocation132_spill] sm:$0xff] }
 0xb69   : > { %10787 = vset.pattern.permute.xlu1 %v16178_v54 }
 0xb6a   : > { %v13896_v9 = vpop.permute.xlu1 %5534  ;;  %5254 = vperm.xlu1 %10787, %v16448_v20   ;;  %v13899_v33 = vpop.permute.xlu0 %3919 }
 0xb6b   : > { %16451 = vst [vmem:[#allocation126_spill] sm:$0xff] %v13899_v33  ;;  %4602 = vperm.xlu0 %10887, %v16452_v55   ;;  %v16458_v55 = vld [vmem:[#allocation139_spill] sm:$0xff] }
 0xb6c   : > { %vm3938_vm14 = vcmp.eq.s32.totalorder %v12264_v41, %v16458_v55 }
 0xb6e   : > { %10788 = vset.pattern.permute.xlu1 %v16185_v36  ;;  %v13903_v19 = vpop.permute.xlu0 %4078 }
 0xb6f   : > { %16453 = vst [vmem:[#allocation47_spill] sm:$0xff] %v13903_v19  ;;  %v13905_v16 = vpop.permute.xlu1 %3522  ;;  %3150 = vperm.xlu1 %10788, %v16455_v11   ;;  %4894 = vperm.xlu0 %10887, %v16456_v49   ;;  %v4386_v49 = vsel %vm4226_vm13, %v13715_v31, 0.0 }
 0xb70   : > { %16454 = vst [vmem:[#allocation113_spill] sm:$0xff] %v13905_v16  ;;  %v16459_v16 = vld [vmem:[#allocation140_spill] sm:$0xff] }
 0xb71   : > { %v4098_v19 = vsel %vm3938_vm14, %v16459_v16, 0.0  ;;  %v16462_v16 = vld [vmem:[#allocation144_spill] sm:$0xff]  ;;  %vm4228_vm14 = vcmp.eq.s32.totalorder %v12264_v41, %v13368_v63 }
 0xb72   : > { %v13914_v20 = vpop.permute.xlu0 %3916  ;;  %v4418_v55 = vadd.f32 %v4386_v49, %v4098_v19  ;;  %vm5153_vm8 = vcmp.eq.s32.totalorder %v12264_v41, %v16462_v16  ;;  %v16463_v19 = vld [vmem:[#allocation141_spill] sm:$0xff] }
 0xb73   : > { %16457 = vst [vmem:[#allocation133_spill] sm:$0xff] %v13914_v20  ;;  %3351 = vperm.xlu1 %10788, %v13910_v10   ;;  %4470 = vperm.xlu0 %10887, %v12666_v30   ;;  %vm5154_vm11 = vcmp.eq.s32.totalorder %v12264_v41, %v16463_v19  ;;  %v3461_v19 = vadd.s32 1, %v16455_v11 }
 0xb74   : > { %v4163_v15 = vpop.permute.xlu1 %4162  ;;  %v5314_v49 = vsel %vm5154_vm11, %v13833_v7, 0.0 }
 0xb75   : > { %vm4225_vm0 = vcmp.eq.s32.totalorder %v12264_v41, %v4163_v15  ;;  %v5602_v15 = vsel %vm5442_vm7, %v13736_v27, 0.0 }
 0xb76   : > { %v4385_v32 = vsel %vm4225_vm0, %v13779_v56, 0.0 }
 0xb77   : > { %v4417_v20 = vadd.f32 %v4385_v32, %v4097_v38  ;;  %10790 = vset.pattern.permute.xlu1 %v16180_v48  ;;  %4610 = vperm.xlu0 %10887, %v13172_v57   ;;  %v13928_v30 = vpop.permute.xlu0 %3567 }
 0xb78   : > { %v13930_v33 = vpop.permute.xlu1 %4314  ;;  %4034 = vperm.xlu1 %10790, %v13910_v10  }
 0xb79   : > { %9957 = vmatprep.mubr.msk.f32.mxu1 %vm820_vm5, %v4417_v20 }
 0xb7a   : > { %9958 = vmatmul.mubr.msk.f32.gmra.mrb[52].mxu1 %vm820_vm5, %v4418_v55  ;;  %v5634_v55 = vadd.f32 %v5602_v15, %v5314_v49  ;;  %v16475_v49 = vld [vmem:[#allocation143_spill] sm:$0xff] }
 0xb7b   : > { %4902 = vperm.xlu0 %10887, %v16460_v50   ;;  %v16466_v50 = vld [vmem:[#allocation138_spill] sm:$0xff] }
 0xb7c   : > { %10792 = vset.pattern.permute.xlu1 %v16178_v54  ;;  %v13937_v56 = vpop.permute.xlu0 %4207 }
 0xb7d   : > { %v13939_v31 = vpop.permute.xlu1 %4770  ;;  %5250 = vperm.xlu1 %10792, %v13910_v10  }
 0xb7e   : > { %16461 = vst [vmem:[#allocation40_spill] sm:$0xff] %v13939_v31 }
 0xb7f   : > { %4476 = vperm.xlu0 %10887, %v12770_v37   ;;  %v5313_v37 = vsel %vm5153_vm8, %v13861_v21, 0.0 }
 0xb81   : > { %10795 = vset.pattern.permute.xlu1 %v16180_v48  ;;  %v13945_v57 = vpop.permute.xlu0 %5120 }
 0xb82   : > { %v5379_v46 = vpop.permute.xlu1 %5378  ;;  %4334 = vperm.xlu1 %10795, %v13205_v59  }
 0xb83   : > { %vm5441_vm10 = vcmp.eq.s32.totalorder %v12264_v41, %v5379_v46  ;;  %4618 = vperm.xlu0 %10887, %v13374_v14   ;;  %v16467_v14 = vld [vmem:[#allocation76_spill] sm:$0xff] }
 0xb84   : > { %v5601_v20 = vsel %vm5441_vm10, %v16464_v18, 0.0 }
 0xb85   : > { %v5633_v38 = vadd.f32 %v5601_v20, %v5313_v37  ;;  %v13958_v32 = vpop.permute.xlu0 %5123 }
 0xb86   : > { %10797 = vset.pattern.permute.xlu1 %v16183_v25 }
 0xb87   : > { %v13961_v27 = vpop.permute.xlu1 %4922  ;;  %4785 = vperm.xlu1 %10797, %v16466_v50   ;;  %10009 = vmatprep.mubr.msk.f32.mxu0 %vm820_vm5, %v5633_v38 }
 0xb88   : > { %16465 = vst [vmem:[#allocation139_spill] sm:$0xff] %v13961_v27  ;;  %4910 = vperm.xlu0 %10887, %v16467_v14   ;;  %10010 = vmatmul.mubr.msk.f32.gmra.mrb[54].mxu0 %vm820_vm5, %v5634_v55 }
 0xb89   : > { %v13967_v21 = vpop.permute.xlu0 %5562 }
 0xb8b   : > { %v13969_v46 = vpop.permute.xlu1 %4491  ;;  %10798 = vset.pattern.permute.xlu1 %v16178_v54 }
 0xb8c   : > { %16468 = vst [vmem:[#allocation140_spill] sm:$0xff] %v13969_v46  ;;  %4482 = vperm.xlu0 %10887, %v12902_v24   ;;  %5393 = vperm.xlu1 %10798, %v16466_v50  }
 0xb8d   : > { %v13974_v7 = vpop.permute.xlu0 %5126 }
 0xb8e   : > { %16469 = vst [vmem:[#allocation51_spill] sm:$0xff] %v13974_v7 }
 0xb8f   : > { %v13976_v16 = vpop.permute.xlu1 %4638 }
 0xb90   : > { %16470 = vst [vmem:[#allocation144_spill] sm:$0xff] %v13976_v16  ;;  %4626 = vperm.xlu0 %10887, %v13569_v44   ;;  %5550 = vperm.xlu1 %10798, %v13205_v59  }
 0xb91   : > { %v13980_v15 = vpop.permute.xlu0 %5129 }
 0xb92   : > { %16471 = vst [vmem:[#allocation141_spill] sm:$0xff] %v13980_v15  ;;  %v16484_v15 = vld [vmem:[#allocation80_spill] sm:$0xff] }
 0xb94   : > { %4918 = vperm.xlu0 %10887, %v12817_v51   ;;  %v13984_v37 = vpop.permute.xlu1 %5246  ;;  %10799 = vset.pattern.permute.xlu1 %v16185_v36 }
 0xb95   : > { %3534 = vperm.xlu1 %10799, %v3461_v19   ;;  %v13987_v24 = vpop.permute.xlu0 %5570 }
 0xb96   : > { %16472 = vst [vmem:[#allocation132_spill] sm:$0xff] %v13987_v24  ;;  %v16491_v24 = vld [vmem:[#allocation159_spill] sm:$0xff] }
 0xb97   : > { %vm3939_vm15 = vcmp.eq.s32.totalorder %v12264_v41, %v16491_v24  ;;  %v14098_v24 = vsub.f32 1.0, %v16407_v45 }
 0xb98   : > { %4488 = vperm.xlu0 %10887, %v13030_v43  }
 0xb99   : > { %v13990_v18 = vpop.permute.xlu1 %3144  ;;  %10800 = vset.pattern.permute.xlu1 %v16180_v48  ;;  %v13993_v44 = vpop.permute.xlu0 %5132 }
 0xb9a   : > { %16473 = vst [vmem:[#allocation138_spill] sm:$0xff] %v13993_v44  ;;  %4174 = vperm.xlu1 %10800, %v3461_v19  }
 0xb9c   : > { %4634 = vperm.xlu0 %10887, %v13754_v35  }
 0xb9d   : > { %v13996_v20 = vpop.permute.xlu1 %3341  ;;  %v13998_v51 = vpop.permute.xlu0 %5135 }
 0xb9e   : > { %16474 = vst [vmem:[#allocation76_spill] sm:$0xff] %v13998_v51  ;;  %4330 = vperm.xlu1 %10800, %v16475_v49  }
 0xba0   : > { %4926 = vperm.xlu0 %10887, %v12967_v39  }
 0xba1   : > { %v14002_v38 = vpop.permute.xlu0 %5578 }
 0xba2   : > { %16476 = vst [vmem:[#allocation143_spill] sm:$0xff] %v14002_v38  ;;  %v4027_v43 = vpop.permute.xlu1 %4026  ;;  %10801 = vset.pattern.permute.xlu1 %v16185_v36 }
 0xba3   : > { %3713 = vperm.xlu1 %10801, %v16475_v49   ;;  %v4099_v7 = vsel %vm3939_vm15, %v4027_v43, 0.0  ;;  %vm4230_vm15 = vcmp.eq.s32.totalorder %v12264_v41, %v13492_v60 }
 0xba4   : > { %4494 = vperm.xlu0 %10887, %v16455_v11   ;;  %v14007_v55 = vpop.f32.mrb[48].mxu1 }
 0xba5   : > { %16477 = vst [vmem:[#allocation223_spill] sm:$0xff] %v14007_v55  ;;  %v14009_v35 = vpop.f32.mrb[49].mxu1 }
 0xba6   : > { %16478 = vst [vmem:[#allocation224_spill] sm:$0xff] %v14009_v35  ;;  %v14011_v50 = vpop.permute.xlu0 %4722  ;;  %v16479_v35 = vld [vmem:[#allocation149_spill] sm:$0xff] }
 0xba7   : > { %v14013_v14 = vpop.permute.xlu1 %5242  ;;  %10802 = vset.pattern.permute.xlu1 %v16183_v25 }
 0xba8   : > { %4642 = vperm.xlu0 %10887, %v13910_v10   ;;  %4782 = vperm.xlu1 %10802, %v3461_v19  }
 0xbaa   : > { %v14017_v39 = vpop.permute.xlu0 %4437 }
 0xbac   : > { %4934 = vperm.xlu0 %10887, %v13079_v8   ;;  %v14020_v51 = vpop.permute.xlu1 %4326  ;;  %10803 = vset.pattern.permute.xlu1 %v16178_v54  ;;  %v3239_v8 = vsub.f32 1.0, %v16475_v49 }
 0xbad   : > { %5390 = vperm.xlu1 %10803, %v3461_v19  }
 0xbae   : > { %v14023_v11 = vpop.permute.xlu0 %4725 }
 0xbb0   : > { %4500 = vperm.xlu0 %10887, %v16479_v35  }
 0xbb1   : > { %v14026_v55 = vpop.permute.xlu1 %4779  ;;  %10804 = vset.pattern.permute.xlu1 %v16183_v25 }
 0xbb2   : > { %16480 = vst [vmem:[#allocation149_spill] sm:$0xff] %v14026_v55  ;;  %4938 = vperm.xlu1 %10804, %v16475_v49   ;;  %v14030_v10 = vpop.f32.mrb[50].mxu0  ;;  %v14032_v38 = vpop.permute.xlu0 %4854  ;;  %v16486_v55 = vld [vmem:[#allocation69_spill] sm:$0xff] }
 0xbb3   : > { %16481 = vst [vmem:[#allocation225_spill] sm:$0xff] %v14030_v10  ;;  %16482 = vst [vmem:[#allocation226_spill] sm:$0xff] %v14032_v38  ;;  %v14035_v44 = vpop.f32.mrb[51].mxu0  ;;  %v16490_v10 = vld [vmem:[#allocation155_spill] sm:$0xff] }
 0xbb4   : > { %16483 = vst [vmem:[#allocation227_spill] sm:$0xff] %v14035_v44  ;;  %4650 = vperm.xlu0 %10887, %v3239_v8   ;;  %v14051_v44 = vsub.f32 1.0, %v13336_v22  ;;  %vm3940_vm13 = vcmp.eq.s32.totalorder %v12264_v41, %v16490_v10  ;;  %v16493_v10 = vld [vmem:[#allocation156_spill] sm:$0xff] }
 0xbb6   : > { %v5388_v19 = vpop.permute.xlu1 %5387  ;;  %4503 = vperm.xlu1 %10804, %v16484_v15   ;;  %v14038_v16 = vpop.permute.xlu0 %4440 }
 0xbb7   : > { %16485 = vst [vmem:[#allocation80_spill] sm:$0xff] %v14038_v16  ;;  %vm5444_vm7 = vcmp.eq.s32.totalorder %v12264_v41, %v5388_v19 }
 0xbb8   : > { %4942 = vperm.xlu0 %10887, %v13205_v59  }
 0xbba   : > { %v14041_v46 = vpop.permute.xlu1 %5542  ;;  %4654 = vperm.xlu1 %10804, %v16486_v55   ;;  %v14044_v27 = vpop.permute.xlu0 %4570 }
 0xbbb   : > { %16487 = vst [vmem:[#allocation69_spill] sm:$0xff] %v14044_v27  ;;  %v4100_v27 = vsel %vm3940_vm13, %v16493_v10, 0.0  ;;  %v16500_v10 = vld [vmem:[#allocation58_spill] sm:$0xff] }
 0xbbc   : > { %4506 = vperm.xlu0 %10887, %v13402_v26   ;;  %vm5156_vm11 = vcmp.eq.s32.totalorder %v12264_v41, %v16500_v10 }
 0xbbe   : > { %10809 = vset.pattern.permute.xlu1 %v16178_v54  ;;  %v14048_v49 = vpop.permute.xlu0 %4862 }
 0xbbf   : > { %16488 = vst [vmem:[#allocation228_spill] sm:$0xff] %v14048_v49  ;;  %v14053_v15 = vpop.permute.xlu1 %3528  ;;  %5262 = vperm.xlu1 %10809, %v16486_v55   ;;  %v4388_v55 = vsel %vm4228_vm14, %v13867_v13, 0.0 }
 0xbc0   : > { %4658 = vperm.xlu0 %10887, %v14051_v44   ;;  %v4420_v16 = vadd.f32 %v4388_v55, %v4100_v27  ;;  %v16499_v55 = vld [vmem:[#allocation81_spill] sm:$0xff] }
 0xbc1   : > { %vm5155_vm8 = vcmp.eq.s32.totalorder %v12264_v41, %v16499_v55 }
 0xbc2   : > { %v14057_v59 = vpop.permute.xlu0 %4446  ;;  %v5315_v19 = vsel %vm5155_vm8, %v14013_v14, 0.0 }
 0xbc3   : > { %16489 = vst [vmem:[#allocation229_spill] sm:$0xff] %v14057_v59  ;;  %10810 = vset.pattern.permute.xlu1 %v16185_v36 }
 0xbc4   : > { %v4169_v31 = vpop.permute.xlu1 %4168  ;;  %3156 = vperm.xlu1 %10810, %v16479_v35   ;;  %4950 = vperm.xlu0 %10887, %v13326_v2  }
 0xbc5   : > { %vm4227_vm0 = vcmp.eq.s32.totalorder %v12264_v41, %v4169_v31  ;;  %v14082_v31 = vsub.f32 1.0, %v16402_v12 }
 0xbc6   : > { %v4387_v59 = vsel %vm4227_vm0, %v13930_v33, 0.0  ;;  %v14071_v49 = vpop.permute.xlu0 %4578  ;;  %vm3942_vm0 = vcmp.eq.s32.totalorder %v12264_v41, %v13436_v4 }
 0xbc7   : > { %16492 = vst [vmem:[#allocation155_spill] sm:$0xff] %v14071_v49  ;;  %v4419_v63 = vadd.f32 %v4387_v59, %v4099_v7 }
 0xbc8   : > { %v14074_v38 = vpop.permute.xlu1 %4322  ;;  %3361 = vperm.xlu1 %10810, %v3239_v8   ;;  %4512 = vperm.xlu0 %10887, %v13494_v58  }
 0xbc9   : > { %9960 = vmatprep.mubr.msk.f32.mxu1 %vm820_vm5, %v4419_v63  ;;  %v16501_v63 = vld [vmem:[#allocation148_spill] sm:$0xff] }
 0xbca   : > { %9961 = vmatmul.mubr.msk.f32.gmra.mrb[54].mxu1 %vm820_vm5, %v4420_v16  ;;  %v14079_v13 = vpop.permute.xlu0 %4870 }
 0xbcb   : > { %16494 = vst [vmem:[#allocation159_spill] sm:$0xff] %v14079_v13 }
 0xbcc   : > { %10812 = vset.pattern.permute.xlu1 %v16180_v48  ;;  %4666 = vperm.xlu0 %10887, %v14082_v31  }
 0xbcd   : > { %v14086_v33 = vpop.permute.xlu1 %3703  ;;  %4042 = vperm.xlu1 %10812, %v3239_v8  }
 0xbce   : > { %v14088_v27 = vpop.permute.xlu0 %4452 }
 0xbcf   : > { %16495 = vst [vmem:[#allocation156_spill] sm:$0xff] %v14088_v27 }
 0xbd0   : > { %4958 = vperm.xlu0 %10887, %v13453_v1  }
 0xbd1   : > { %10814 = vset.pattern.permute.xlu1 %v16178_v54 }
 0xbd2   : > { %v14092_v7 = vpop.permute.xlu1 %4776  ;;  %5258 = vperm.xlu1 %10814, %v3239_v8   ;;  %v14094_v16 = vpop.permute.xlu0 %4586  ;;  %v5604_v8 = vsel %vm5444_vm7, %v13896_v9, 0.0 }
 0xbd3   : > { %16496 = vst [vmem:[#allocation230_spill] sm:$0xff] %v14092_v7  ;;  %16497 = vst [vmem:[#allocation231_spill] sm:$0xff] %v14094_v16 }
 0xbd4   : > { %4518 = vperm.xlu0 %10887, %v13576_v17  }
 0xbd6   : > { %10817 = vset.pattern.permute.xlu1 %v16180_v48  ;;  %v14102_v43 = vpop.permute.xlu0 %4878 }
 0xbd7   : > { %16498 = vst [vmem:[#allocation232_spill] sm:$0xff] %v14102_v43  ;;  %v5385_v59 = vpop.permute.xlu1 %5384  ;;  %4342 = vperm.xlu1 %10817, %v13326_v2   ;;  %v5316_v43 = vsel %vm5156_vm11, %v13984_v37, 0.0  ;;  %v14132_v37 = vsub.f32 1.0, %v13761_v29 }
 0xbd8   : > { %vm5443_vm10 = vcmp.eq.s32.totalorder %v12264_v41, %v5385_v59  ;;  %4674 = vperm.xlu0 %10887, %v14098_v24   ;;  %v5636_v13 = vadd.f32 %v5604_v8, %v5316_v43  ;;  %v16504_v59 = vld [vmem:[#allocation153_spill] sm:$0xff] }
 0xbd9   : > { %v5603_v7 = vsel %vm5443_vm10, %v16501_v63, 0.0 }
 0xbda   : > { %v5635_v16 = vadd.f32 %v5603_v7, %v5315_v19  ;;  %v14115_v27 = vpop.permute.xlu0 %4458 }
 0xbdb   : > { %16502 = vst [vmem:[#allocation81_spill] sm:$0xff] %v14115_v27  ;;  %10819 = vset.pattern.permute.xlu1 %v16183_v25 }
 0xbdc   : > { %v14118_v9 = vpop.permute.xlu1 %4930  ;;  %4791 = vperm.xlu1 %10819, %v16504_v59   ;;  %10012 = vmatprep.mubr.msk.f32.mxu0 %vm820_vm5, %v5635_v16 }
 0xbdd   : > { %16503 = vst [vmem:[#allocation58_spill] sm:$0xff] %v14118_v9  ;;  %10013 = vmatmul.mubr.msk.f32.gmra.mrb[56].mxu0 %vm820_vm5, %v5636_v13  ;;  %4966 = vperm.xlu0 %10887, %v13529_v28   ;;  %v3463_v13 = vadd.s32 1, %v16479_v35 }
 0xbde   : > { %v14124_v14 = vpop.permute.xlu0 %4594 }
 0xbdf   : > { %16505 = vst [vmem:[#allocation148_spill] sm:$0xff] %v14124_v14  ;;  %v16518_v14 = vld [vmem:[#allocation170_spill] sm:$0xff] }
 0xbe0   : > { %v14126_v55 = vpop.permute.xlu1 %4497  ;;  %10820 = vset.pattern.permute.xlu1 %v16178_v54  ;;  %v4102_v60 = vsel %vm3942_vm0, %v16518_v14, 0.0  ;;  %vm4232_vm0 = vcmp.eq.s32.totalorder %v12264_v41, %v13630_v23 }
 0xbe1   : > { %16506 = vst [vmem:[#allocation153_spill] sm:$0xff] %v14126_v55  ;;  %5399 = vperm.xlu1 %10820, %v16504_v59   ;;  %4524 = vperm.xlu0 %10887, %v13679_v3  }
 0xbe2   : > { %v14134_v7 = vpop.permute.xlu0 %4886 }
 0xbe3   : > { %16507 = vst [vmem:[#allocation233_spill] sm:$0xff] %v14134_v7 }
 0xbe4   : > { %v14136_v16 = vpop.permute.xlu1 %4646 }
 0xbe5   : > { %16508 = vst [vmem:[#allocation234_spill] sm:$0xff] %v14136_v16  ;;  %10821 = vset.pattern.permute.xlu1 %v16185_v36  ;;  %4682 = vperm.xlu0 %10887, %v14132_v37  }
 0xbe6   : > { %3540 = vperm.xlu1 %10821, %v3463_v13   ;;  %v4465_v43 = vpop.permute.xlu0 %4464 }
 0xbe7   : > { %vm4539_vm13 = vcmp.eq.s32.totalorder %v12264_v41, %v4465_v43 }
 0xbe9   : > { %v14141_v8 = vpop.permute.xlu1 %5254  ;;  %4974 = vperm.xlu0 %10887, %v13619_v53  }
 0xbea   : > { %10822 = vset.pattern.permute.xlu1 %v16180_v48  ;;  %v4603_v10 = vpop.permute.xlu0 %4602 }
 0xbeb   : > { %v14146_v19 = vsel %vm4539_vm13, %v4603_v10, 0.0  ;;  %4180 = vperm.xlu1 %10822, %v3463_v13  }
 0xbec   : > { %16509 = vst [vmem:[#allocation235_spill] sm:$0xff] %v14146_v19 }
 0xbed   : > { %10892 = vset.pattern.permute.xlu0 %v16178_v54 }
 0xbee   : > { %v14149_v35 = vpop.permute.xlu1 %3150  ;;  %v14151_v63 = vpop.permute.xlu0 %4894 }
 0xbef   : > { %16510 = vst [vmem:[#allocation236_spill] sm:$0xff] %v14151_v63  ;;  %4338 = vperm.xlu1 %10822, %v13336_v22  }
 0xbf2   : > { %v14154_v59 = vpop.permute.xlu1 %3351  ;;  %v4471_v16 = vpop.permute.xlu0 %4470 }
 0xbf3   : > { %10823 = vset.pattern.permute.xlu1 %v16185_v36  ;;  %vm4541_vm14 = vcmp.eq.s32.totalorder %v12264_v41, %v4471_v16 }
 0xbf4   : > { %3723 = vperm.xlu1 %10823, %v13336_v22  }
 0xbf6   : > { %v4611_v43 = vpop.permute.xlu0 %4610 }
 0xbf7   : > { %v14159_v10 = vsel %vm4541_vm14, %v4611_v43, 0.0  ;;  %v4035_v55 = vpop.permute.xlu1 %4034 }
 0xbf8   : > { %16511 = vst [vmem:[#allocation237_spill] sm:$0xff] %v14159_v10  ;;  %10824 = vset.pattern.permute.xlu1 %v16183_v25  ;;  %v14162_v9 = vpop.f32.mrb[50].mxu1 }
 0xbf9   : > { %16512 = vst [vmem:[#allocation238_spill] sm:$0xff] %v14162_v9  ;;  %4788 = vperm.xlu1 %10824, %v3463_v13   ;;  %v14164_v63 = vpop.f32.mrb[51].mxu1 }
 0xbfa   : > { %16513 = vst [vmem:[#allocation239_spill] sm:$0xff] %v14164_v63 }
 0xbfc   : > { %v5251_v19 = vpop.permute.xlu1 %5250 }
 0xbfd   : > { %10825 = vset.pattern.permute.xlu1 %v16178_v54 }
 0xbfe   : > { %5396 = vperm.xlu1 %10825, %v3463_v13  }
 0xc01   : > { %v14167_v7 = vpop.permute.xlu1 %4334 }
 0xc02   : > { %10826 = vset.pattern.permute.xlu1 %v16183_v25 }
 0xc03   : > { %4946 = vperm.xlu1 %10826, %v13336_v22   ;;  %v16517_v22 = vld [vmem:[#allocation175_spill] sm:$0xff] }
 0xc04   : > { %vm3941_vm7 = vcmp.eq.s32.totalorder %v12264_v41, %v16517_v22 }
 0xc06   : > { %v14171_v16 = vpop.permute.xlu1 %4785  ;;  %v14173_v43 = vpop.f32.mrb[52].mxu0 }
 0xc07   : > { %16514 = vst [vmem:[#allocation240_spill] sm:$0xff] %v14171_v16  ;;  %16515 = vst [vmem:[#allocation241_spill] sm:$0xff] %v14173_v43  ;;  %4509 = vperm.xlu1 %10826, %v13347_v0   ;;  %v14176_v9 = vpop.f32.mrb[53].mxu0  ;;  %v4101_v43 = vsel %vm3941_vm7, %v4035_v55, 0.0  ;;  %v16522_v55 = vld [vmem:[#allocation173_spill] sm:$0xff] }
 0xc08   : > { %16516 = vst [vmem:[#allocation242_spill] sm:$0xff] %v14176_v9  ;;  %v4390_v9 = vsel %vm4230_vm15, %v14020_v51, 0.0  ;;  %vm5158_vm14 = vcmp.eq.s32.totalorder %v12264_v41, %v16522_v55 }
 0xc09   : > { %v4422_v49 = vadd.f32 %v4390_v9, %v4102_v60  ;;  %v3465_v9 = vadd.s32 1, %v13402_v26 }
 0xc0b   : > { %v5394_v10 = vpop.permute.xlu1 %5393  ;;  %10831 = vset.pattern.permute.xlu1 %v16185_v36 }
 0xc0c   : > { %3162 = vperm.xlu1 %10831, %v13402_v26   ;;  %vm5446_vm10 = vcmp.eq.s32.totalorder %v12264_v41, %v5394_v10  ;;  %v5318_v10 = vsel %vm5158_vm14, %v14141_v8, 0.0 }
 0xc0d   : > { %v5606_v14 = vsel %vm5446_vm10, %v14041_v46, 0.0 }
 0xc0e   : > { %v5638_v26 = vadd.f32 %v5606_v14, %v5318_v10  ;;  %v14259_v10 = vadd.s32 1, %v13494_v58 }
 0xc0f   : > { %v14180_v13 = vpop.permute.xlu1 %5550 }
 0xc10   : > { %3371 = vperm.xlu1 %10831, %v14051_v44  }
 0xc14   : > { %v14183_v63 = vpop.permute.xlu1 %3534  ;;  %10833 = vset.pattern.permute.xlu1 %v16180_v48 }
 0xc15   : > { %4050 = vperm.xlu1 %10833, %v14051_v44  }
 0xc19   : > { %v4175_v0 = vpop.permute.xlu1 %4174  ;;  %10835 = vset.pattern.permute.xlu1 %v16178_v54 }
 0xc1a   : > { %vm4229_vm8 = vcmp.eq.s32.totalorder %v12264_v41, %v4175_v0  ;;  %5266 = vperm.xlu1 %10835, %v14051_v44   ;;  %v16519_v44 = vld [vmem:[#allocation86_spill] sm:$0xff] }
 0xc1b   : > { %v4389_v16 = vsel %vm4229_vm8, %v14074_v38, 0.0 }
 0xc1c   : > { %v4421_v27 = vadd.f32 %v4389_v16, %v4101_v43  ;;  %v16523_v43 = vld [vmem:[#allocation166_spill] sm:$0xff] }
 0xc1d   : > { %v14199_v4 = vpop.permute.xlu1 %4330 }
 0xc1e   : > { %9963 = vmatprep.mubr.msk.f32.mxu1 %vm820_vm5, %v4421_v27  ;;  %10838 = vset.pattern.permute.xlu1 %v16180_v48 }
 0xc1f   : > { %9964 = vmatmul.mubr.msk.f32.gmra.mrb[56].mxu1 %vm820_vm5, %v4422_v49  ;;  %4350 = vperm.xlu1 %10838, %v13453_v1   ;;  %v16521_v49 = vld [vmem:[#allocation178_spill] sm:$0xff] }
 0xc20   : > { %vm5157_vm11 = vcmp.eq.s32.totalorder %v12264_v41, %v16521_v49 }
 0xc21   : > { %v5317_v16 = vsel %vm5157_vm11, %v5251_v19, 0.0  ;;  %vm5159_vm11 = vcmp.eq.s32.totalorder %v12264_v41, %v13604_v62 }
 0xc22   : > { %v14205_v51 = vpop.permute.xlu1 %3713 }
 0xc23   : > { %10840 = vset.pattern.permute.xlu1 %v16183_v25 }
 0xc24   : > { %4797 = vperm.xlu1 %10840, %v16519_v44  }
 0xc27   : > { %v14209_v38 = vpop.permute.xlu1 %4782 }
 0xc28   : > { %16520 = vst [vmem:[#allocation175_spill] sm:$0xff] %v14209_v38  ;;  %10841 = vset.pattern.permute.xlu1 %v16178_v54 }
 0xc29   : > { %5405 = vperm.xlu1 %10841, %v16519_v44  }
 0xc2c   : > { %v5391_v27 = vpop.permute.xlu1 %5390 }
 0xc2d   : > { %vm5445_vm13 = vcmp.eq.s32.totalorder %v12264_v41, %v5391_v27  ;;  %10842 = vset.pattern.permute.xlu1 %v16185_v36 }
 0xc2e   : > { %v5605_v0 = vsel %vm5445_vm13, %v16523_v43, 0.0  ;;  %3546 = vperm.xlu1 %10842, %v3465_v9  }
 0xc2f   : > { %v5637_v22 = vadd.f32 %v5605_v0, %v5317_v16 }
 0xc31   : > { %v14224_v60 = vpop.permute.xlu1 %4938  ;;  %10015 = vmatprep.mubr.msk.f32.mxu0 %vm820_vm5, %v5637_v22 }
 0xc32   : > { %16524 = vst [vmem:[#allocation170_spill] sm:$0xff] %v14224_v60  ;;  %10843 = vset.pattern.permute.xlu1 %v16180_v48  ;;  %10016 = vmatmul.mubr.msk.f32.gmra.mrb[58].mxu0 %vm820_vm5, %v5638_v26  ;;  %v16534_v60 = vld [vmem:[#allocation193_spill] sm:$0xff] }
 0xc33   : > { %4186 = vperm.xlu1 %10843, %v3465_v9  }
 0xc35   : > { %v14229_v46 = vpop.permute.xlu1 %4503 }
 0xc36   : > { %16525 = vst [vmem:[#allocation86_spill] sm:$0xff] %v14229_v46 }
 0xc37   : > { %4346 = vperm.xlu1 %10843, %v16402_v12  }
 0xc39   : > { %v14232_v19 = vpop.permute.xlu1 %4654 }
 0xc3a   : > { %16526 = vst [vmem:[#allocation178_spill] sm:$0xff] %v14232_v19 }
 0xc3b   : > { %10844 = vset.pattern.permute.xlu1 %v16185_v36 }
 0xc3c   : > { %3733 = vperm.xlu1 %10844, %v16402_v12  }
 0xc3e   : > { %v5263_v8 = vpop.permute.xlu1 %5262 }
 0xc40   : > { %10845 = vset.pattern.permute.xlu1 %v16183_v25 }
 0xc41   : > { %4794 = vperm.xlu1 %10845, %v3465_v9  }
 0xc43   : > { %v14237_v44 = vpop.permute.xlu1 %3156 }
 0xc45   : > { %10846 = vset.pattern.permute.xlu1 %v16178_v54 }
 0xc46   : > { %5402 = vperm.xlu1 %10846, %v3465_v9  }
 0xc47   : > { %v14240_v27 = vpop.permute.xlu1 %3361 }
 0xc4a   : > { %10848 = vset.pattern.permute.xlu1 %v16185_v36 }
 0xc4b   : > { %3168 = vperm.xlu1 %10848, %v13494_v58  }
 0xc4c   : > { %v4043_v49 = vpop.permute.xlu1 %4042 }
 0xc4d   : > { %v14244_v14 = vpop.f32.mrb[52].mxu1 }
 0xc4e   : > { %16527 = vst [vmem:[#allocation173_spill] sm:$0xff] %v14244_v14  ;;  %v14246_v55 = vpop.f32.mrb[53].mxu1  ;;  %v16532_v14 = vld [vmem:[#allocation191_spill] sm:$0xff] }
 0xc4f   : > { %16528 = vst [vmem:[#allocation166_spill] sm:$0xff] %v14246_v55  ;;  %3381 = vperm.xlu1 %10848, %v14082_v31   ;;  %vm3944_vm15 = vcmp.eq.s32.totalorder %v12264_v41, %v16532_v14 }
 0xc50   : > { %v4104_v14 = vsel %vm3944_vm15, %v16534_v60, 0.0  ;;  %v16536_v60 = vld [vmem:[#allocation66_spill] sm:$0xff] }
 0xc51   : > { %v5259_v16 = vpop.permute.xlu1 %5258  ;;  %vm5160_vm14 = vcmp.eq.s32.totalorder %v12264_v41, %v16536_v60 }
 0xc53   : > { %10849 = vset.pattern.permute.xlu1 %v16180_v48 }
 0xc54   : > { %4058 = vperm.xlu1 %10849, %v14082_v31  }
 0xc56   : > { %v14251_v43 = vpop.permute.xlu1 %4342 }
 0xc58   : > { %4358 = vperm.xlu1 %10849, %v13529_v28  }
 0xc5b   : > { %v14254_v9 = vpop.permute.xlu1 %4791  ;;  %v14256_v0 = vpop.f32.mrb[54].mxu0 }
 0xc5c   : > { %16529 = vst [vmem:[#allocation243_spill] sm:$0xff] %v14254_v9  ;;  %16530 = vst [vmem:[#allocation244_spill] sm:$0xff] %v14256_v0  ;;  %10853 = vset.pattern.permute.xlu1 %v16185_v36  ;;  %v14262_v22 = vpop.f32.mrb[55].mxu0  ;;  %v4392_v0 = vsel %vm4232_vm0, %v14167_v7, 0.0  ;;  %vm4234_vm0 = vcmp.eq.s32.totalorder %v12264_v41, %v13734_v42 }
 0xc5d   : > { %16531 = vst [vmem:[#allocation245_spill] sm:$0xff] %v14262_v22  ;;  %3552 = vperm.xlu1 %10853, %v14259_v10   ;;  %v16533_v22 = vld [vmem:[#allocation105_spill] sm:$0xff]  ;;  %v4424_v38 = vadd.f32 %v4392_v0, %v4104_v14  ;;  %v14304_v0 = vadd.s32 1, %v13576_v17 }
 0xc5e   : > { %vm3943_vm7 = vcmp.eq.s32.totalorder %v12264_v41, %v16533_v22  ;;  %v5320_v22 = vsel %vm5160_vm14, %v5263_v8, 0.0  ;;  %vm3947_vm14 = vcmp.eq.s32.totalorder %v12264_v41, %v13792_v40 }
 0xc5f   : > { %v4103_v19 = vsel %vm3943_vm7, %v4043_v49, 0.0 }
 0xc60   : > { %v5400_v26 = vpop.permute.xlu1 %5399 }
 0xc61   : > { %10854 = vset.pattern.permute.xlu1 %v16180_v48  ;;  %vm5448_vm10 = vcmp.eq.s32.totalorder %v12264_v41, %v5400_v26 }
 0xc62   : > { %4192 = vperm.xlu1 %10854, %v14259_v10  }
 0xc65   : > { %v14267_v55 = vpop.permute.xlu1 %3540 }
 0xc66   : > { %4354 = vperm.xlu1 %10854, %v16407_v45  }
 0xc6a   : > { %v4181_v58 = vpop.permute.xlu1 %4180  ;;  %10855 = vset.pattern.permute.xlu1 %v16185_v36 }
 0xc6b   : > { %vm4231_vm8 = vcmp.eq.s32.totalorder %v12264_v41, %v4181_v58  ;;  %3743 = vperm.xlu1 %10855, %v16407_v45  }
 0xc6c   : > { %v4391_v46 = vsel %vm4231_vm8, %v14199_v4, 0.0 }
 0xc6d   : > { %v4423_v9 = vadd.f32 %v4391_v46, %v4103_v19  ;;  %v5319_v46 = vsel %vm5159_vm11, %v5259_v16, 0.0  ;;  %v16537_v19 = vld [vmem:[#allocation63_spill] sm:$0xff]  ;;  %vm3948_vm11 = vcmp.eq.s32.totalorder %v12264_v41, %v13777_v34 }
 0xc6e   : > { %v14282_v23 = vpop.permute.xlu1 %4338 }
 0xc6f   : > { %9966 = vmatprep.mubr.msk.f32.mxu1 %vm820_vm5, %v4423_v9  ;;  %3174 = vperm.xlu1 %10855, %v13576_v17  }
 0xc70   : > { %9967 = vmatmul.mubr.msk.f32.gmra.mrb[58].mxu1 %vm820_vm5, %v4424_v38  ;;  %v5608_v38 = vsel %vm5448_vm10, %v14180_v13, 0.0 }
 0xc71   : > { %v5640_v58 = vadd.f32 %v5608_v38, %v5320_v22  ;;  %v16543_v22 = vld [vmem:[#allocation161_spill] sm:$0xff] }
 0xc73   : > { %v14287_v7 = vpop.permute.xlu1 %3723  ;;  %3391 = vperm.xlu1 %10855, %v14098_v24  }
 0xc77   : > { %10857 = vset.pattern.permute.xlu1 %v16180_v48 }
 0xc78   : > { %v14291_v49 = vpop.permute.xlu1 %4788  ;;  %4066 = vperm.xlu1 %10857, %v14098_v24  }
 0xc79   : > { %16535 = vst [vmem:[#allocation191_spill] sm:$0xff] %v14291_v49 }
 0xc7c   : > { %4366 = vperm.xlu1 %10857, %v13619_v53  }
 0xc7d   : > { %v5397_v4 = vpop.permute.xlu1 %5396 }
 0xc7e   : > { %vm5447_vm13 = vcmp.eq.s32.totalorder %v12264_v41, %v5397_v4 }
 0xc7f   : > { %v5607_v9 = vsel %vm5447_vm13, %v16537_v19, 0.0  ;;  %vm4236_vm13 = vcmp.eq.s32.totalorder %v12264_v41, %v13817_v47 }
 0xc80   : > { %v5639_v26 = vadd.f32 %v5607_v9, %v5319_v46  ;;  %10861 = vset.pattern.permute.xlu1 %v16185_v36  ;;  %v14334_v46 = vadd.s32 1, %v13679_v3 }
 0xc81   : > { %3558 = vperm.xlu1 %10861, %v14304_v0  }
 0xc82   : > { %v14308_v62 = vpop.permute.xlu1 %4946  ;;  %10018 = vmatprep.mubr.msk.f32.mxu0 %vm820_vm5, %v5639_v26 }
 0xc83   : > { %16538 = vst [vmem:[#allocation105_spill] sm:$0xff] %v14308_v62  ;;  %10019 = vmatmul.mubr.msk.f32.gmra.mrb[60].mxu0 %vm820_vm5, %v5640_v58 }
 0xc85   : > { %10862 = vset.pattern.permute.xlu1 %v16180_v48 }
 0xc86   : > { %v14313_v13 = vpop.permute.xlu1 %4509  ;;  %4198 = vperm.xlu1 %10862, %v14304_v0  }
 0xc87   : > { %16539 = vst [vmem:[#allocation193_spill] sm:$0xff] %v14313_v13 }
 0xc8a   : > { %4362 = vperm.xlu1 %10862, %v13761_v29  }
 0xc8b   : > { %v14317_v17 = vpop.permute.xlu1 %3162 }
 0xc8e   : > { %10863 = vset.pattern.permute.xlu1 %v16185_v36 }
 0xc8f   : > { %v14320_v8 = vpop.permute.xlu1 %3371  ;;  %3753 = vperm.xlu1 %10863, %v13761_v29  }
 0xc93   : > { %3180 = vperm.xlu1 %10863, %v13679_v3   ;;  %v10917_v3 = vld [vmem:[%s16001_s14] sm:$0xff]  }
 0xc94   : > { %v4051_v16 = vpop.permute.xlu1 %4050  ;;  %10033 = vmatprep.subr.bf16.mxu1 %v10917_v3 }
 0xc95   : > { %10034 = vmatpush3.bf16.msra.mxu1 %v10917_v3  ;;  %v16547_v3 = vld [vmem:[#allocation209_spill] sm:$0xff] }
 0xc96   : > { %vm3945_vm7 = vcmp.eq.s32.totalorder %v12264_v41, %v16547_v3 }
 0xc97   : > { %3401 = vperm.xlu1 %10863, %v14132_v37  }
 0xc99   : > { %v5267_v14 = vpop.permute.xlu1 %5266 }
 0xc9b   : > { %10865 = vset.pattern.permute.xlu1 %v16180_v48 }
 0xc9c   : > { %4074 = vperm.xlu1 %10865, %v14132_v37  }
 0xc9d   : > { %v14327_v4 = vpop.f32.mrb[54].mxu1 }
 0xc9e   : > { %16540 = vst [vmem:[#allocation66_spill] sm:$0xff] %v14327_v4  ;;  %v14329_v38 = vpop.permute.xlu1 %4350  ;;  %v14331_v60 = vpop.f32.mrb[55].mxu1 }
 0xc9f   : > { %16541 = vst [vmem:[#allocation63_spill] sm:$0xff] %v14331_v60  ;;  %v16546_v60 = vld [vmem:[#allocation202_spill] sm:$0xff] }
 0xca0   : > { %10868 = vset.pattern.permute.xlu1 %v16185_v36  ;;  %vm3946_vm15 = vcmp.eq.s32.totalorder %v12264_v41, %v16546_v60 }
 0xca1   : > { %3564 = vperm.xlu1 %10868, %v14334_v46  }
 0xca3   : > { %v14338_v19 = vpop.permute.xlu1 %4797 }
 0xca4   : > { %16542 = vst [vmem:[#allocation246_spill] sm:$0xff] %v14338_v19 }
 0xca5   : > { %10869 = vset.pattern.permute.xlu1 %v16180_v48  ;;  %v10942_v48 = vld [vmem:[%s15995_s8] sm:$0xf] }
 0xca6   : > { %4204 = vperm.xlu1 %10869, %v14334_v46   ;;  %10487 = vmatprep.subr.msk.bf16.mxu1 %vm1859_vm9, %v10942_v48  ;;  %v16548_v48 = vld [vmem:[#allocation205_spill] sm:$0xff] }
 0xca8   : > { %v14342_v9 = vpop.permute.xlu1 %5405 }
 0xcaa   : > { %10870 = vset.pattern.permute.xlu1 %v16183_v25 }
 0xcab   : > { %4662 = vperm.xlu1 %10870, %v16543_v22  }
 0xcad   : > { %v14349_v26 = vpop.permute.xlu1 %3546 }
 0xcaf   : > { %10871 = vset.pattern.permute.xlu1 %v16178_v54 }
 0xcb0   : > { %v14352_v36 = vpop.f32.mrb[56].mxu0  ;;  %5270 = vperm.xlu1 %10871, %v16543_v22   ;;  %v4394_v22 = vsel %vm4234_vm0, %v14251_v43, 0.0  ;;  %v16550_v43 = vld [vmem:[#allocation174_spill] sm:$0xff]  ;;  %vm3950_vm0 = vcmp.eq.s32.totalorder %v12264_v41, %v13843_v5  ;;  %v16565_v5 = vld [vmem:[#allocation219_spill] sm:$0xff] }
 0xcb1   : > { %16544 = vst [vmem:[#allocation161_spill] sm:$0xff] %v14352_v36  ;;  %v14359_v58 = vpop.f32.mrb[57].mxu0  ;;  %v4105_v36 = vsel %vm3945_vm7, %v4051_v16, 0.0  ;;  %vm4238_vm7 = vcmp.eq.s32.totalorder %v12264_v41, %v13871_v61 }
 0xcb2   : > { %16545 = vst [vmem:[#allocation247_spill] sm:$0xff] %v14359_v58  ;;  %v4187_v4 = vpop.permute.xlu1 %4186  ;;  %v4106_v58 = vsel %vm3946_vm15, %v16548_v48, 0.0  ;;  %v14399_v48 = vpop.permute.xlu0 %4902 }
 0xcb3   : > { %vm4233_vm8 = vcmp.eq.s32.totalorder %v12264_v41, %v4187_v4  ;;  %v4426_v60 = vadd.f32 %v4394_v22, %v4106_v58  ;;  %v16552_v4 = vld [vmem:[#allocation68_spill] sm:$0xff] }
 0xcb4   : > { %v4393_v13 = vsel %vm4233_vm8, %v14282_v23, 0.0  ;;  %5558 = vperm.xlu1 %10871, %v13326_v2   ;;  %vm3949_vm8 = vcmp.eq.s32.totalorder %v12264_v41, %v13854_v52 }
 0xcb5   : > { %v4425_v19 = vadd.f32 %v4393_v13, %v4105_v36  ;;  %v16551_v13 = vld [vmem:[#allocation210_spill] sm:$0xff]  ;;  %v16553_v36 = vld [vmem:[#allocation183_spill] sm:$0xff] }
 0xcb6   : > { %v4347_v62 = vpop.permute.xlu1 %4346  ;;  %vm5161_vm9 = vcmp.eq.s32.totalorder %v12264_v41, %v16551_v13 }
 0xcb7   : > { %9969 = vmatprep.mubr.msk.f32.mxu1 %vm820_vm5, %v4425_v19  ;;  %v5321_v16 = vsel %vm5161_vm9, %v5267_v14, 0.0 }
 0xcb8   : > { %9970 = vmatmul.mubr.msk.f32.gmra.mrb[60].mxu1 %vm820_vm5, %v4426_v60  ;;  %10872 = vset.pattern.permute.xlu1 %v16183_v25  ;;  %v16554_v60 = vld [vmem:[#allocation176_spill] sm:$0xff] }
 0xcb9   : > { %4800 = vperm.xlu1 %10872, %v14259_v10  }
 0xcbb   : > { %v14376_v42 = vpop.permute.xlu1 %3733 }
 0xcbd   : > { %10874 = vset.pattern.permute.xlu1 %v16178_v54 }
 0xcbe   : > { %5408 = vperm.xlu1 %10874, %v14259_v10  }
 0xcc0   : > { %v14380_v2 = vpop.permute.xlu1 %4794 }
 0xcc1   : > { %16549 = vst [vmem:[#allocation202_spill] sm:$0xff] %v14380_v2  ;;  %v4110_v2 = vsel %vm3950_vm0, %v16565_v5, 0.0  ;;  %v16574_v5 = vld [vmem:[#allocation126_spill] sm:$0xff] }
 0xcc2   : > { %10875 = vset.pattern.permute.xlu1 %v16183_v25 }
 0xcc3   : > { %4515 = vperm.xlu1 %10875, %v16550_v43  }
 0xcc5   : > { %v5403_v23 = vpop.permute.xlu1 %5402 }
 0xcc6   : > { %vm5449_vm10 = vcmp.eq.s32.totalorder %v12264_v41, %v5403_v23  ;;  %v4396_v23 = vsel %vm4236_vm13, %v14329_v38, 0.0  ;;  %vm4240_vm13 = vcmp.eq.s32.totalorder %v12264_v41, %v13937_v56  ;;  %v16579_v56 = vld [vmem:[#allocation52_spill] sm:$0xff] }
 0xcc7   : > { %v5609_v19 = vsel %vm5449_vm10, %v16552_v4, 0.0  ;;  %4803 = vperm.xlu1 %10875, %v16553_v36   ;;  %v4108_v4 = vsel %vm3948_vm11, %v13785_v6, 0.0  ;;  %vm3952_vm11 = vcmp.eq.s32.totalorder %v12264_v41, %v16574_v5  ;;  %v16578_v5 = vld [vmem:[#allocation19_spill] sm:$0xff] }
 0xcc8   : > { %v5641_v58 = vadd.f32 %v5609_v19, %v5321_v16  ;;  %v4428_v34 = vadd.f32 %v4396_v23, %v4108_v4 }
 0xcca   : > { %v14389_v3 = vpop.permute.xlu1 %3168  ;;  %10021 = vmatprep.mubr.msk.f32.mxu0 %vm820_vm5, %v5641_v58 }
 0xccb   : > { %4954 = vperm.xlu1 %10875, %v16402_v12   ;;  %v14406_v12 = vpop.permute.xlu0 %4476 }
 0xcce   : > { %v14393_v10 = vpop.permute.xlu1 %3381 }
 0xccf   : > { %10876 = vset.pattern.permute.xlu1 %v16178_v54 }
 0xcd0   : > { %5274 = vperm.xlu1 %10876, %v14082_v31  }
 0xcd3   : > { %v4059_v22 = vpop.permute.xlu1 %4058 }
 0xcd4   : > { %5411 = vperm.xlu1 %10876, %v16553_v36   ;;  %v4107_v13 = vsel %vm3947_vm14, %v4059_v22, 0.0  ;;  %v14418_v36 = vpop.permute.xlu0 %4618 }
 0xcd7   : > { %v4359_v14 = vpop.permute.xlu1 %4358 }
 0xcd8   : > { %10877 = vset.pattern.permute.xlu1 %v16183_v25 }
 0xcd9   : > { %4670 = vperm.xlu1 %10877, %v16554_v60  }
 0xcdc   : > { %v14402_v43 = vpop.permute.xlu1 %3552 }
 0xcdd   : > { %10878 = vset.pattern.permute.xlu1 %v16178_v54 }
 0xcde   : > { %5278 = vperm.xlu1 %10878, %v16554_v60  }
 0xce1   : > { %v4193_v31 = vpop.permute.xlu1 %4192 }
 0xce2   : > { %vm4235_vm15 = vcmp.eq.s32.totalorder %v12264_v41, %v4193_v31  ;;  %5566 = vperm.xlu1 %10878, %v13453_v1   ;;  %v14426_v1 = vpop.permute.xlu0 %4910  ;;  %v16558_v31 = vld [vmem:[#allocation109_spill] sm:$0xff] }
 0xce3   : > { %v4395_v16 = vsel %vm4235_vm15, %v4347_v62, 0.0  ;;  %v16555_v62 = vld [vmem:[#allocation189_spill] sm:$0xff] }
 0xce4   : > { %v4427_v19 = vadd.f32 %v4395_v16, %v4107_v13 }
 0xce5   : > { %v4355_v58 = vpop.permute.xlu1 %4354 }
 0xce6   : > { %9972 = vmatprep.mubr.msk.f32.mxu1 %vm820_vm5, %v4427_v19  ;;  %10879 = vset.pattern.permute.xlu1 %v16183_v25  ;;  %v14433_v47 = vpop.permute.xlu0 %4482 }
 0xce7   : > { %9973 = vmatmul.mubr.msk.f32.gmra.mrb[62].mxu1 %vm820_vm5, %v4428_v34  ;;  %4806 = vperm.xlu1 %10879, %v14304_v0  }
 0xcea   : > { %v14424_v40 = vpop.permute.xlu1 %3743  ;;  %v14443_v13 = vpop.permute.xlu0 %4626 }
 0xceb   : > { %10880 = vset.pattern.permute.xlu1 %v16178_v54  ;;  %16559 = vst [vmem:[#allocation174_spill] sm:$0xff] %v14443_v13 }
 0xcec   : > { %5414 = vperm.xlu1 %10880, %v14304_v0  }
 0xcee   : > { %v14430_v6 = vpop.permute.xlu1 %3174  ;;  %v14447_v16 = vpop.permute.xlu0 %4918 }
 0xcef   : > { %16560 = vst [vmem:[#allocation210_spill] sm:$0xff] %v14447_v16  ;;  %v16606_v16 = vld [vmem:[#allocation56_spill] sm:$0xff] }
 0xcf0   : > { %10881 = vset.pattern.permute.xlu1 %v16183_v25 }
 0xcf1   : > { %4521 = vperm.xlu1 %10881, %v16555_v62   ;;  %v4398_v62 = vsel %vm4238_vm7, %v4359_v14, 0.0  ;;  %vm3185_vm7 = vcmp.eq.s32.totalorder %v12264_v41, %v16578_v5 }
 0xcf2   : > { %v14436_v38 = vpop.f32.mrb[56].mxu1  ;;  %v14438_v22 = vpop.permute.xlu1 %3391  ;;  %v4430_v49 = vadd.f32 %v4398_v62, %v4110_v2  ;;  %v16568_v2 = vld [vmem:[#allocation110_spill] sm:$0xff] }
 0xcf3   : > { %16556 = vst [vmem:[#allocation209_spill] sm:$0xff] %v14436_v38  ;;  %v14440_v60 = vpop.f32.mrb[57].mxu1  ;;  %v14453_v19 = vpop.permute.xlu0 %4488  ;;  %v16564_v38 = vld [vmem:[#allocation190_spill] sm:$0xff] }
 0xcf4   : > { %16557 = vst [vmem:[#allocation205_spill] sm:$0xff] %v14440_v60  ;;  %16561 = vst [vmem:[#allocation68_spill] sm:$0xff] %v14453_v19 }
 0xcf5   : > { %4809 = vperm.xlu1 %10881, %v16558_v31  }
 0xcf7   : > { %v4067_v23 = vpop.permute.xlu1 %4066 }
 0xcf9   : > { %4962 = vperm.xlu1 %10881, %v16407_v45  }
 0xcfb   : > { %v4367_v0 = vpop.permute.xlu1 %4366 }
 0xcfd   : > { %10882 = vset.pattern.permute.xlu1 %v16178_v54 }
 0xcfe   : > { %5282 = vperm.xlu1 %10882, %v14098_v24  }
 0xd00   : > { %v14450_v4 = vpop.permute.xlu1 %3558 }
 0xd02   : > { %5417 = vperm.xlu1 %10882, %v16558_v31   ;;  %v4109_v31 = vsel %vm3949_vm8, %v4067_v23, 0.0  ;;  %vm3571_vm8 = vcmp.eq.s32.totalorder %v12264_v41, %v16579_v56  ;;  %v16586_v56 = vld [vmem:[#allocation31_spill] sm:$0xff] }
 0xd05   : > { %v4199_v45 = vpop.permute.xlu1 %4198  ;;  %v14459_v34 = vpop.f32.mrb[58].mxu0 }
 0xd06   : > { %16562 = vst [vmem:[#allocation183_spill] sm:$0xff] %v14459_v34  ;;  %vm4237_vm9 = vcmp.eq.s32.totalorder %v12264_v41, %v4199_v45  ;;  %v14464_v24 = vpop.f32.mrb[59].mxu0  ;;  %10883 = vset.pattern.permute.xlu1 %v16183_v25  ;;  %v14469_v34 = vpop.permute.xlu0 %4634 }
 0xd07   : > { %16563 = vst [vmem:[#allocation176_spill] sm:$0xff] %v14464_v24  ;;  %v4397_v60 = vsel %vm4237_vm9, %v4355_v58, 0.0  ;;  %4678 = vperm.xlu1 %10883, %v16564_v38   ;;  %16566 = vst [vmem:[#allocation189_spill] sm:$0xff] %v14469_v34  ;;  %v16576_v24 = vld [vmem:[#allocation21_spill] sm:$0xff] }
 0xd08   : > { %v4429_v61 = vadd.f32 %v4397_v60, %v4109_v31  ;;  %v16573_v31 = vld [vmem:[#allocation34_spill] sm:$0xff]  ;;  %vm3570_vm0 = vcmp.eq.s32.totalorder %v12264_v41, %v16576_v24 }
 0xd09   : > { %v4363_v19 = vpop.permute.xlu1 %4362  ;;  %vm3569_vm10 = vcmp.eq.s32.totalorder %v12264_v41, %v16573_v31 }
 0xd0a   : > { %9975 = vmatprep.mubr.msk.f32.mxu1 %vm820_vm5, %v4429_v61  ;;  %v14477_v14 = vpop.permute.xlu0 %4926 }
 0xd0b   : > { %9976 = vmatmul.mubr.msk.f32.gmra.mrb[64].mxu1 %vm820_vm5, %v4430_v49  ;;  %10884 = vset.pattern.permute.xlu1 %v16178_v54  ;;  %16567 = vst [vmem:[#allocation109_spill] sm:$0xff] %v14477_v14  ;;  %v16570_v49 = vld [vmem:[#allocation204_spill] sm:$0xff] }
 0xd0c   : > { %5286 = vperm.xlu1 %10884, %v16564_v38   ;;  %v16582_v14 = vld [vmem:[#allocation20_spill] sm:$0xff] }
 0xd0d   : > { %vm3186_vm9 = vcmp.eq.s32.totalorder %v12264_v41, %v16582_v14  ;;  %v16589_v14 = vld [vmem:[#allocation16_spill] sm:$0xff] }
 0xd0e   : > { %v14475_v52 = vpop.permute.xlu1 %3753  ;;  %v14484_v60 = vpop.permute.xlu0 %4494 }
 0xd0f   : > { %16569 = vst [vmem:[#allocation190_spill] sm:$0xff] %v14484_v60  ;;  %v16580_v60 = vld [vmem:[#allocation47_spill] sm:$0xff] }
 0xd10   : > { %5574 = vperm.xlu1 %10884, %v13529_v28  }
 0xd12   : > { %v14480_v58 = vpop.permute.xlu1 %3180  ;;  %v14489_v38 = vpop.permute.xlu0 %4642 }
 0xd13   : > { %16571 = vst [vmem:[#allocation219_spill] sm:$0xff] %v14489_v38 }
 0xd14   : > { %10885 = vset.pattern.permute.xlu1 %v16183_v25 }
 0xd15   : > { %4527 = vperm.xlu1 %10885, %v16568_v2   ;;  %v16575_v2 = vld [vmem:[#allocation133_spill] sm:$0xff] }
 0xd16   : > { %v14486_v23 = vpop.permute.xlu1 %3401  ;;  %v14495_v28 = vpop.permute.xlu0 %4934  ;;  %vm3951_vm14 = vcmp.eq.s32.totalorder %v12264_v41, %v16575_v2  ;;  %v4112_v2 = vsel %vm3952_vm11, %v16580_v60, 0.0  ;;  %v16587_v60 = vld [vmem:[#allocation35_spill] sm:$0xff] }
 0xd17   : > { %16572 = vst [vmem:[#allocation110_spill] sm:$0xff] %v14495_v28 }
 0xd19   : > { %4815 = vperm.xlu1 %10885, %v16570_v49  }
 0xd1b   : > { %v4075_v45 = vpop.permute.xlu1 %4074 }
 0xd1c   : > { %v4111_v28 = vsel %vm3951_vm14, %v4075_v45, 0.0 }
 0xd1d   : > { %4970 = vperm.xlu1 %10885, %v13761_v29   ;;  %v4400_v29 = vsel %vm4240_vm13, %v4367_v0, 0.0  ;;  %v14516_v0 = vpop.permute.xlu0 %4500 }
 0xd1e   : > { %16581 = vst [vmem:[#allocation204_spill] sm:$0xff] %v14516_v0  ;;  %v4432_v34 = vadd.f32 %v4400_v29, %v4112_v2  ;;  %v3410_v29 = vsel %vm3186_vm9, %v16589_v14, 0.0  ;;  %v16590_v2 = vld [vmem:[#allocation43_spill] sm:$0xff]  ;;  %v16595_v0 = vld [vmem:[#allocation26_spill] sm:$0xff]  ;;  %v16597_v14 = vld [vmem:[#allocation45_spill] sm:$0xff]  ;;  %vm3576_vm9 = vcmp.eq.s32.totalorder %v12264_v41, %v16606_v16 }
 0xd1f   : > { %vm3187_vm11 = vcmp.eq.s32.totalorder %v12264_v41, %v16590_v2  ;;  %vm3188_vm14 = vcmp.eq.s32.totalorder %v12264_v41, %v16595_v0  ;;  %v16598_v2 = vld [vmem:[#allocation53_spill] sm:$0xff]  ;;  %v16618_v16 = vld [vmem:[#allocation122_spill] sm:$0xff] }
 0xd20   : > { %v14492_v62 = vpop.permute.xlu1 %3564 }
 0xd21   : > { %10886 = vset.pattern.permute.xlu1 %v16178_v54 }
 0xd22   : > { %5290 = vperm.xlu1 %10886, %v14132_v37   ;;  %v16577_v37 = vld [vmem:[#allocation17_spill] sm:$0xff] }
 0xd23   : > { %v3761_v31 = vsel %vm3569_vm10, %v16577_v37, 0.0  ;;  %v16584_v37 = vld [vmem:[#allocation13_spill] sm:$0xff]  ;;  %vm3572_vm10 = vcmp.eq.s32.totalorder %v12264_v41, %v16586_v56 }
 0xd24   : > { %v3762_v45 = vsel %vm3570_vm0, %v16584_v37, 0.0  ;;  %v16593_v37 = vld [vmem:[#allocation22_spill] sm:$0xff]  ;;  %vm3574_vm0 = vcmp.eq.s32.totalorder %v12264_v41, %v16597_v14 }
 0xd25   : > { %v4205_v61 = vpop.permute.xlu1 %4204  ;;  %v3764_v56 = vsel %vm3572_vm10, %v16593_v37, 0.0  ;;  %v16604_v14 = vld [vmem:[#allocation38_spill] sm:$0xff] }
 0xd26   : > { %vm4239_vm15 = vcmp.eq.s32.totalorder %v12264_v41, %v4205_v61  ;;  %5423 = vperm.xlu1 %10886, %v16570_v49   ;;  %v16583_v49 = vld [vmem:[#allocation24_spill] sm:$0xff] }
 0xd27   : > { %v4399_v38 = vsel %vm4239_vm15, %v4363_v19, 0.0  ;;  %v3409_v24 = vsel %vm3185_vm7, %v16583_v49, 0.0  ;;  %v16592_v49 = vld [vmem:[#allocation44_spill] sm:$0xff] }
 0xd28   : > { %v4431_v61 = vadd.f32 %v4399_v38, %v4111_v28  ;;  %v3793_v19 = vadd.f32 %v3761_v31, %v3409_v24  ;;  %v3763_v38 = vsel %vm3571_vm8, %v16587_v60, 0.0  ;;  %v16588_v28 = vld [vmem:[#allocation104_spill] sm:$0xff]  ;;  %v16591_v31 = vld [vmem:[#allocation85_spill] sm:$0xff]  ;;  %v3411_v24 = vsel %vm3187_vm11, %v16592_v49, 0.0  ;;  %v16601_v49 = vld [vmem:[#allocation111_spill] sm:$0xff] }
 0xd29   : > { %vm3573_vm13 = vcmp.eq.s32.totalorder %v12264_v41, %v16591_v31  ;;  %v3795_v60 = vadd.f32 %v3763_v38, %v3411_v24  ;;  %vm3575_vm8 = vcmp.eq.s32.totalorder %v12264_v41, %v16601_v49  ;;  %v16602_v24 = vld [vmem:[#allocation77_spill] sm:$0xff]  ;;  %v16608_v49 = vld [vmem:[#allocation207_spill] sm:$0xff]  ;;  %vm5450_vm11 = vcmp.eq.s32.totalorder %v12264_v41, %v14342_v9  ;;  %v16612_v9 = vld [vmem:[#allocation46_spill] sm:$0xff] }
 0xd2a   : > { %10888 = vset.pattern.permute.xlu1 %v16183_v25  ;;  %9978 = vmatprep.mubr.msk.f32.mxu1 %vm820_vm5, %v4431_v61  ;;  %v14524_v5 = vpop.permute.xlu1 %4662  ;;  %v3794_v61 = vadd.f32 %v3762_v45, %v3410_v29  ;;  %v3765_v31 = vsel %vm3573_vm13, %v16598_v2, 0.0  ;;  %v16600_v29 = vld [vmem:[#allocation74_spill] sm:$0xff]  ;;  %v16605_v2 = vld [vmem:[#allocation32_spill] sm:$0xff]  ;;  %vm5162_vm10 = vcmp.eq.s32.totalorder %v12264_v41, %v16608_v49  ;;  %v16613_v49 = vld [vmem:[#allocation49_spill] sm:$0xff] }
 0xd2b   : > { %16585 = vst [vmem:[#allocation34_spill] sm:$0xff] %v14524_v5  ;;  %4686 = vperm.xlu1 %10888, %v16588_v28   ;;  %9979 = vmatmul.mubr.msk.f32.gmra.mrb[66].mxu1 %vm820_vm5, %v4432_v34  ;;  %v14539_v5 = vpop.permute.xlu0 %4650  ;;  %v16596_v34 = vld [vmem:[#allocation37_spill] sm:$0xff]  ;;  %vm3189_vm7 = vcmp.eq.s32.totalorder %v12264_v41, %v16600_v29  ;;  %v16607_v29 = vld [vmem:[#allocation87_spill] sm:$0xff] }
 0xd2c   : > { %10035 = vmatprep.mubr.msk.f32.mxu1 %vm820_vm5, %v3793_v19  ;;  %16594 = vst [vmem:[#allocation126_spill] sm:$0xff] %v14539_v5  ;;  %vm3190_vm15 = vcmp.eq.s32.totalorder %v12264_v41, %v16596_v34  ;;  %v16599_v19 = vld [vmem:[#allocation27_spill] sm:$0xff]  ;;  %v3413_v37 = vsel %vm3189_vm7, %v16602_v24, 0.0  ;;  %v16603_v34 = vld [vmem:[#allocation9_spill] sm:$0xff]  ;;  %v3766_v5 = vsel %vm3574_vm0, %v16605_v2, 0.0  ;;  %v3767_v13 = vsel %vm3575_vm8, %v16607_v29, 0.0 }
 0xd2d   : > { %v3412_v38 = vsel %vm3188_vm14, %v16599_v19, 0.0  ;;  %v3797_v19 = vadd.f32 %v3765_v31, %v3413_v37  ;;  %v3768_v2 = vsel %vm3576_vm9, %v16612_v9, 0.0  ;;  %vm3193_vm8 = vcmp.eq.s32.totalorder %v12264_v41, %v16618_v16  ;;  %v16629_v16 = vld [vmem:[#allocation90_spill] sm:$0xff] }
 0xd2e   : > { %v3796_v0 = vadd.f32 %v3764_v56, %v3412_v38  ;;  %v16609_v56 = vld [vmem:[#allocation99_spill] sm:$0xff] }
 0xd2f   : > { %10889 = vset.pattern.permute.xlu1 %v16178_v54  ;;  %10036 = vmatmul.mubr.msk.f32.vlgmr.msra.gmra.mrb[68].mxu1 %vm820_vm5, %v3794_v61  ;;  %v5271_v45 = vpop.permute.xlu1 %5270  ;;  %v3414_v61 = vsel %vm3190_vm15, %v16604_v14, 0.0  ;;  %vm3191_vm13 = vcmp.eq.s32.totalorder %v12264_v41, %v16609_v56  ;;  %v14573_v31 = vpop.permute.xlu0 %4942  ;;  %vm3192_vm15 = vcmp.eq.s32.totalorder %v12264_v41, %v16613_v49 }
 0xd30   : > { %5294 = vperm.xlu1 %10889, %v16588_v28   ;;  %10038 = vmatprep.mubr.msk.f32.mxu1 %vm820_vm5, %v3795_v60  ;;  %v16610_v60 = vld [vmem:[#allocation135_spill] sm:$0xff]  ;;  %v5322_v38 = vsel %vm5162_vm10, %v5271_v45, 0.0  ;;  %v3798_v37 = vadd.f32 %v3766_v5, %v3414_v61  ;;  %v16614_v45 = vld [vmem:[#allocation72_spill] sm:$0xff] }
 0xd31   : > { %10236 = vmatpush3.bf16.msra.mxu1 %v16603_v34  ;;  %vm3577_vm14 = vcmp.eq.s32.totalorder %v12264_v41, %v16610_v60  ;;  %vm3194_vm0 = vcmp.eq.s32.totalorder %v12264_v41, %v16614_v45  ;;  %v16616_v5 = vld [vmem:[#allocation112_spill] sm:$0xff]  ;;  %v16623_v45 = vld [vmem:[#allocation89_spill] sm:$0xff] }
 0xd32   : > { %v3769_v61 = vsel %vm3577_vm14, %v16616_v5, 0.0  ;;  %vm3196_vm10 = vcmp.eq.s32.totalorder %v12264_v41, %v16623_v45  ;;  %v16627_v5 = vld [vmem:[#allocation192_spill] sm:$0xff] }
 0xd33   : > { %10039 = vmatmul.mubr.msk.f32.gmra.mrb[70].mxu1 %vm820_vm5, %v3796_v0  ;;  %v5559_v28 = vpop.permute.xlu1 %5558  ;;  %v16611_v0 = vld [vmem:[#allocation100_spill] sm:$0xff]  ;;  %v14604_v49 = vpop.permute.xlu0 %4506  ;;  %vm3581_vm14 = vcmp.eq.s32.totalorder %v12264_v41, %v16627_v5 }
 0xd34   : > { %v5610_v24 = vsel %vm5450_vm11, %v5559_v28, 0.0  ;;  %10890 = vset.pattern.permute.xlu1 %v16183_v25  ;;  %10041 = vmatprep.mubr.msk.f32.mxu1 %vm820_vm5, %v3797_v19  ;;  %v3415_v34 = vsel %vm3191_vm13, %v16611_v0, 0.0  ;;  %v16615_v25 = vld [vmem:[#allocation83_spill] sm:$0xff]  ;;  %v16617_v19 = vld [vmem:[#allocation50_spill] sm:$0xff]  ;;  %v16621_v0 = vld [vmem:[#allocation73_spill] sm:$0xff] }
 0xd35   : > { %v5642_v14 = vadd.f32 %v5610_v24, %v5322_v38  ;;  %4812 = vperm.xlu1 %10890, %v14334_v46   ;;  %v3799_v29 = vadd.f32 %v3767_v13, %v3415_v34  ;;  %vm3578_vm7 = vcmp.eq.s32.totalorder %v12264_v41, %v16615_v25  ;;  %v3416_v28 = vsel %vm3192_vm15, %v16617_v19, 0.0  ;;  %v16619_v13 = vld [vmem:[#allocation163_spill] sm:$0xff]  ;;  %v16633_v45 = vld [vmem:[#allocation164_spill] sm:$0xff] }
 0xd36   : > { %vm3579_vm9 = vcmp.eq.s32.totalorder %v12264_v41, %v16619_v13  ;;  %v3800_v60 = vadd.f32 %v3768_v2, %v3416_v28  ;;  %v16620_v38 = vld [vmem:[#allocation123_spill] sm:$0xff]  ;;  %v3418_v34 = vsel %vm3194_vm0, %v16621_v0, 0.0  ;;  %v16625_v2 = vld [vmem:[#allocation137_spill] sm:$0xff]  ;;  %v3420_v13 = vsel %vm3196_vm10, %v16629_v16, 0.0 }
 0xd37   : > { %10022 = vmatmul.mubr.msk.f32.gmra.mrb[62].mxu0 %vm820_vm5, %v5642_v14  ;;  %10042 = vmatmul.mubr.msk.f32.gmra.mrb[72].mxu1 %vm820_vm5, %v3798_v37  ;;  %v3417_v24 = vsel %vm3193_vm8, %v16620_v38, 0.0  ;;  %v16622_v37 = vld [vmem:[#allocation60_spill] sm:$0xff]  ;;  %v3771_v25 = vsel %vm3579_vm9, %v16625_v2, 0.0  ;;  %v16636_v2 = vld [vmem:[#allocation179_spill] sm:$0xff] }
 0xd38   : > { %10044 = vmatprep.mubr.msk.f32.mxu1 %vm820_vm5, %v3799_v29  ;;  %v14598_v56 = vpop.permute.xlu1 %4800  ;;  %v3770_v14 = vsel %vm3578_vm7, %v16622_v37, 0.0  ;;  %v3801_v9 = vadd.f32 %v3769_v61, %v3417_v24  ;;  %v16624_v29 = vld [vmem:[#allocation97_spill] sm:$0xff]  ;;  %v16630_v38 = vld [vmem:[#allocation84_spill] sm:$0xff]  ;;  %v16632_v37 = vld [vmem:[#allocation114_spill] sm:$0xff] }
 0xd39   : > { %10891 = vset.pattern.permute.xlu1 %v16178_v54  ;;  %vm3580_vm11 = vcmp.eq.s32.totalorder %v12264_v41, %v16624_v29  ;;  %v16626_v54 = vld [vmem:[#allocation79_spill] sm:$0xff]  ;;  %v3802_v61 = vadd.f32 %v3770_v14, %v3418_v34  ;;  %vm3582_vm0 = vcmp.eq.s32.totalorder %v12264_v41, %v16632_v37  ;;  %v16634_v34 = vld [vmem:[#allocation177_spill] sm:$0xff]  ;;  %v14634_v29 = vpop.permute.xlu0 %4658  ;;  %v16641_v37 = vld [vmem:[#allocation194_spill] sm:$0xff] }
 0xd3a   : > { %5420 = vperm.xlu1 %10891, %v14334_v46   ;;  %vm3195_vm13 = vcmp.eq.s32.totalorder %v12264_v41, %v16626_v54  ;;  %v16628_v46 = vld [vmem:[#allocation151_spill] sm:$0xff]  ;;  %v3772_v24 = vsel %vm3580_vm11, %v16630_v38, 0.0  ;;  %vm3197_vm7 = vcmp.eq.s32.totalorder %v12264_v41, %v16634_v34 }
 0xd3b   : > { %10045 = vmatmul.mubr.msk.f32.gmra.mrb[74].mxu1 %vm820_vm5, %v3800_v60  ;;  %v3419_v19 = vsel %vm3195_vm13, %v16628_v46, 0.0  ;;  %v16631_v60 = vld [vmem:[#allocation102_spill] sm:$0xff]  ;;  %v16635_v14 = vld [vmem:[#allocation215_spill] sm:$0xff] }
 0xd3c   : > { %10047 = vmatprep.mubr.msk.f32.mxu1 %vm820_vm5, %v3801_v9  ;;  %v3803_v0 = vadd.f32 %v3771_v25, %v3419_v19  ;;  %vm3198_vm15 = vcmp.eq.s32.totalorder %v12264_v41, %v16631_v60  ;;  %v3773_v9 = vsel %vm3581_vm14, %v16633_v45, 0.0  ;;  %vm3583_vm8 = vcmp.eq.s32.totalorder %v12264_v41, %v16635_v14  ;;  %v16637_v54 = vld [vmem:[#allocation103_spill] sm:$0xff]  ;;  %v16638_v46 = vld [vmem:[#allocation98_spill] sm:$0xff] }
 0xd3d   : > { %v14619_v28 = vpop.permute.xlu1 %5408  ;;  %v3421_v25 = vsel %vm3197_vm7, %v16636_v2, 0.0  ;;  %v3422_v5 = vsel %vm3198_vm15, %v16637_v54, 0.0  ;;  %v3774_v19 = vsel %vm3582_vm0, %v16638_v46, 0.0  ;;  %v16640_v60 = vld [vmem:[#allocation127_spill] sm:$0xff]  ;;  %v3775_v45 = vsel %vm3583_vm8, %v16641_v37, 0.0  ;;  %v14660_v37 = vpop.permute.xlu0 %4950 }
 0xd3e   : > { %5582 = vperm.xlu1 %10891, %v13619_v53   ;;  %v3804_v53 = vadd.f32 %v3772_v24, %v3420_v13  ;;  %v3805_v16 = vadd.f32 %v3773_v9, %v3421_v25  ;;  %vm3584_vm10 = vcmp.eq.s32.totalorder %v12264_v41, %v16640_v60  ;;  %v16643_v13 = vld [vmem:[#allocation201_spill] sm:$0xff]  ;;  %v3806_v9 = vadd.f32 %v3774_v19, %v3422_v5  ;;  %v16646_v14 = vld [vmem:[#allocation203_spill] sm:$0xff]  ;;  %v16647_v25 = vld [vmem:[#allocation120_spill] sm:$0xff] }
 0xd3f   : > { %10048 = vmatmul.mubr.msk.f32.gmra.mrb[76].mxu1 %vm820_vm5, %v3802_v61  ;;  %v16639_v61 = vld [vmem:[#allocation118_spill] sm:$0xff]  ;;  %vm3199_vm11 = vcmp.eq.s32.totalorder %v12264_v41, %v16643_v13  ;;  %v16644_v24 = vld [vmem:[#allocation113_spill] sm:$0xff]  ;;  %v16648_v46 = vld [vmem:[#allocation115_spill] sm:$0xff]  ;;  %vm3587_vm7 = vcmp.eq.s32.totalorder %v12264_v41, %v14053_v15  ;;  %vm4843_vm8 = vcmp.eq.s32.totalorder %v12264_v41, %v14598_v56 }
 0xd40   : > { %10050 = vmatprep.mubr.msk.f32.mxu1 %vm820_vm5, %v3803_v0  ;;  %vm3200_vm9 = vcmp.eq.s32.totalorder %v12264_v41, %v16639_v61  ;;  %vm3585_vm13 = vcmp.eq.s32.totalorder %v12264_v41, %v16644_v24  ;;  %v3423_v2 = vsel %vm3199_vm11, %v16646_v14, 0.0  ;;  %v3776_v61 = vsel %vm3584_vm10, %v16648_v46, 0.0  ;;  %v16649_v13 = vld [vmem:[#allocation134_spill] sm:$0xff]  ;;  %v16650_v24 = vld [vmem:[#allocation75_spill] sm:$0xff]  ;;  %v16652_v5 = vld [vmem:[#allocation12_spill] sm:$0xff] }
 0xd41   : > { %v3424_v54 = vsel %vm3200_vm9, %v16647_v25, 0.0  ;;  %v3807_v60 = vadd.f32 %v3775_v45, %v3423_v2  ;;  %vm3202_vm14 = vcmp.eq.s32.totalorder %v12264_v41, %v16649_v13  ;;  %vm3586_vm15 = vcmp.eq.s32.totalorder %v12264_v41, %v16650_v24  ;;  %v16653_v45 = vld [vmem:[#allocation33_spill] sm:$0xff]  ;;  %v16654_v2 = vld [vmem:[#allocation136_spill] sm:$0xff] }
 0xd42   : > { %v14640_v38 = vpop.permute.xlu1 %4515  ;;  %vm3201_vm0 = vcmp.eq.s32.totalorder %v12264_v41, %v16652_v5  ;;  %v3808_v19 = vadd.f32 %v3776_v61, %v3424_v54  ;;  %v3426_v25 = vsel %vm3202_vm14, %v16654_v2, 0.0  ;;  %v16655_v46 = vld [vmem:[#allocation128_spill] sm:$0xff]  ;;  %v16657_v5 = vld [vmem:[#allocation147_spill] sm:$0xff]  ;;  %vm3203_vm10 = vcmp.eq.s32.totalorder %v12264_v41, %v13990_v18  ;;  %v14690_v54 = vpop.permute.xlu0 %4512  ;;  %v16658_v61 = vld [vmem:[#allocation162_spill] sm:$0xff] }
 0xd43   : > { %v14647_v34 = vpop.f32.mrb[58].mxu1  ;;  %10051 = vmatmul.mubr.msk.f32.gmra.mrb[78].mxu1 %vm820_vm5, %v3804_v53  ;;  %v3425_v14 = vsel %vm3201_vm0, %v16653_v45, 0.0  ;;  %v3778_v13 = vsel %vm3586_vm15, %v16655_v46, 0.0  ;;  %vm3589_vm11 = vcmp.eq.s32.totalorder %v12264_v41, %v14183_v63  ;;  %vm5451_vm14 = vcmp.eq.s32.totalorder %v12264_v41, %v14619_v28  ;;  %v16660_v45 = vld [vmem:[#allocation168_spill] sm:$0xff]  ;;  %v16661_v18 = vld [vmem:[#allocation15_spill] sm:$0xff] }
 0xd44   : > { %16642 = vst [vmem:[#allocation133_spill] sm:$0xff] %v14647_v34  ;;  %v14654_v0 = vpop.f32.mrb[59].mxu1  ;;  %10053 = vmatprep.mubr.msk.f32.mxu1 %vm820_vm5, %v3805_v16  ;;  %v3779_v34 = vsel %vm3587_vm7, %v16657_v5, 0.0  ;;  %v3810_v56 = vadd.f32 %v3778_v13, %v3426_v25  ;;  %vm3206_vm15 = vcmp.eq.s32.totalorder %v12264_v41, %v16660_v45  ;;  %v16662_v2 = vld [vmem:[#allocation180_spill] sm:$0xff]  ;;  %v16663_v25 = vld [vmem:[#allocation185_spill] sm:$0xff]  ;;  %v3781_v46 = vsel %vm3589_vm11, %v14086_v33, 0.0 }
 0xd45   : > { %16645 = vst [vmem:[#allocation21_spill] sm:$0xff] %v14654_v0  ;;  %v16651_v0 = vld [vmem:[#allocation216_spill] sm:$0xff]  ;;  %vm3590_vm0 = vcmp.eq.s32.totalorder %v12264_v41, %v16662_v2  ;;  %vm3208_vm7 = vcmp.eq.s32.totalorder %v12264_v41, %v16663_v25  ;;  %v5611_v28 = vsel %vm5451_vm14, %v13967_v21, 0.0  ;;  %v16664_v13 = vld [vmem:[#allocation195_spill] sm:$0xff]  ;;  %vm3593_vm14 = vcmp.eq.s32.totalorder %v12264_v41, %v14349_v26 }
 0xd46   : > { %v14662_v53 = vpop.permute.xlu1 %4803  ;;  %v3777_v16 = vsel %vm3585_vm13, %v16651_v0, 0.0  ;;  %vm3588_vm13 = vcmp.eq.s32.totalorder %v12264_v41, %v16658_v61  ;;  %vm3592_vm11 = vcmp.eq.s32.totalorder %v12264_v41, %v16664_v13  ;;  %v14727_v5 = vpop.permute.xlu0 %4666  ;;  %v16667_v61 = vld [vmem:[#allocation188_spill] sm:$0xff]  ;;  %v16669_v45 = vld [vmem:[#allocation199_spill] sm:$0xff]  ;;  %v3785_v26 = vsel %vm3593_vm14, %v14287_v7, 0.0 }
 0xd47   : > { %10054 = vmatmul.mubr.msk.f32.gmra.mrb[80].mxu1 %vm820_vm5, %v3806_v9  ;;  %v3809_v24 = vadd.f32 %v3777_v16, %v3425_v14  ;;  %v16656_v9 = vld [vmem:[#allocation150_spill] sm:$0xff]  ;;  %v16659_v16 = vld [vmem:[#allocation152_spill] sm:$0xff]  ;;  %v3780_v63 = vsel %vm3588_vm13, %v16661_v18, 0.0  ;;  %vm3207_vm13 = vcmp.eq.s32.totalorder %v12264_v41, %v14237_v44  ;;  %vm3211_vm14 = vcmp.eq.s32.totalorder %v12264_v41, %v14389_v3 }
 0xd48   : > { %10056 = vmatprep.mubr.msk.f32.mxu1 %vm820_vm5, %v3807_v60  ;;  %vm3204_vm9 = vcmp.eq.s32.totalorder %v12264_v41, %v16656_v9  ;;  %v3427_v60 = vsel %vm3203_vm10, %v13996_v20, 0.0  ;;  %vm3591_vm10 = vcmp.eq.s32.totalorder %v12264_v41, %v14267_v55  ;;  %v16666_v9 = vld [vmem:[#allocation165_spill] sm:$0xff]  ;;  %v3431_v18 = vsel %vm3207_vm13, %v14240_v27, 0.0  ;;  %v16672_v7 = vld [vmem:[#allocation196_spill] sm:$0xff] }
 0xd49   : > { %v3811_v14 = vadd.f32 %v3779_v34, %v3427_v60  ;;  %v3782_v21 = vsel %vm3590_vm0, %v16666_v9, 0.0  ;;  %v3432_v60 = vsel %vm3208_vm7, %v16667_v61, 0.0  ;;  %vm4844_vm7 = vcmp.eq.s32.totalorder %v12264_v41, %v14662_v53  ;;  %v16676_v9 = vld [vmem:[#allocation214_spill] sm:$0xff] }
 0xd4a   : > { %v4955_v0 = vpop.permute.xlu1 %4954  ;;  %v16677_v61 = vld [vmem:[#allocation14_spill] sm:$0xff] }
 0xd4b   : > { %v14683_v15 = vsel %vm4843_vm8, %v4955_v0, 0.0  ;;  %10057 = vmatmul.mubr.msk.f32.gmra.mrb[82].mxu1 %vm820_vm5, %v3808_v19  ;;  %v3428_v19 = vsel %vm3204_vm9, %v16659_v16, 0.0  ;;  %vm5163_vm8 = vcmp.eq.s32.totalorder %v12264_v41, %v13945_v57  ;;  %vm3205_vm9 = vcmp.eq.s32.totalorder %v12264_v41, %v14149_v35  ;;  %v16665_v57 = vld [vmem:[#allocation169_spill] sm:$0xff]  ;;  %v16668_v16 = vld [vmem:[#allocation182_spill] sm:$0xff] }
 0xd4c   : > { %10059 = vmatprep.mubr.msk.f32.mxu1 %vm820_vm5, %v3809_v24  ;;  %v3812_v33 = vadd.f32 %v3780_v63, %v3428_v19  ;;  %v3429_v24 = vsel %vm3205_vm9, %v14154_v59, 0.0  ;;  %v3430_v35 = vsel %vm3206_vm15, %v16665_v57, 0.0  ;;  %v3784_v19 = vsel %vm3592_vm11, %v16668_v16, 0.0  ;;  %v16670_v63 = vld [vmem:[#allocation213_spill] sm:$0xff] }
 0xd4d   : > { %v3813_v55 = vadd.f32 %v3781_v46, %v3429_v24  ;;  %vm3210_vm15 = vcmp.eq.s32.totalorder %v12264_v41, %v16669_v45  ;;  %vm3594_vm0 = vcmp.eq.s32.totalorder %v12264_v41, %v16670_v63  ;;  %v3816_v44 = vadd.f32 %v3784_v19, %v3432_v60  ;;  %v16671_v46 = vld [vmem:[#allocation200_spill] sm:$0xff]  ;;  %v16673_v24 = vld [vmem:[#allocation71_spill] sm:$0xff]  ;;  %v16675_v57 = vld [vmem:[#allocation217_spill] sm:$0xff] }
 0xd4e   : > { %vm3595_vm9 = vcmp.eq.s32.totalorder %v12264_v41, %v14402_v43  ;;  %v3786_v53 = vsel %vm3594_vm0, %v16672_v7, 0.0  ;;  %vm3212_vm11 = vcmp.eq.s32.totalorder %v12264_v41, %v16673_v24  ;;  %vm3214_vm0 = vcmp.eq.s32.totalorder %v12264_v41, %v16677_v61  ;;  %v16678_v60 = vld [vmem:[#allocation54_spill] sm:$0xff] }
 0xd4f   : > { %10060 = vmatmul.mubr.msk.f32.gmra.mrb[84].mxu1 %vm820_vm5, %v3810_v56  ;;  %v5275_v20 = vpop.permute.xlu1 %5274  ;;  %v3783_v56 = vsel %vm3591_vm10, %v14205_v51, 0.0  ;;  %v3814_v51 = vadd.f32 %v3782_v21, %v3430_v35  ;;  %vm4556_vm10 = vcmp.eq.s32.totalorder %v12264_v41, %v14640_v38  ;;  %v3787_v38 = vsel %vm3595_vm9, %v14376_v42, 0.0  ;;  %v16684_v7 = vld [vmem:[#allocation18_spill] sm:$0xff] }
 0xd50   : > { %v5323_v34 = vsel %vm5163_vm8, %v5275_v20, 0.0  ;;  %10062 = vmatprep.mubr.msk.f32.mxu1 %vm820_vm5, %v3811_v14  ;;  %v3815_v14 = vadd.f32 %v3783_v56, %v3431_v18  ;;  %v3434_v20 = vsel %vm3210_vm15, %v16671_v46, 0.0  ;;  %vm3209_vm8 = vcmp.eq.s32.totalorder %v12264_v41, %v14317_v17  ;;  %v16680_v18 = vld [vmem:[#allocation10_spill] sm:$0xff] }
 0xd51   : > { %v5643_v0 = vadd.f32 %v5611_v28, %v5323_v34  ;;  %v4959_v28 = vpop.permute.xlu0 %4958  ;;  %v3433_v34 = vsel %vm3209_vm8, %v14320_v8, 0.0  ;;  %vm3597_vm15 = vcmp.eq.s32.totalorder %v12264_v41, %v14450_v4  ;;  %v3818_v8 = vadd.f32 %v3786_v53, %v3434_v20  ;;  %v10918_v4 = vld [vmem:[%s16002_s15] sm:$0xff]   ;;  %v16688_v24 = vld [vmem:[#allocation226_spill] sm:$0xff] }
 0xd52   : > { %v5004_v13 = vsel %vm4844_vm7, %v4959_v28, 0.0  ;;  %v3817_v17 = vadd.f32 %v3785_v26, %v3433_v34  ;;  %v3436_v35 = vsel %vm3212_vm11, %v16675_v57, 0.0  ;;  %vm3598_vm7 = vcmp.eq.s32.totalorder %v12264_v41, %v16678_v60  ;;  %10131 = vmatprep.subr.bf16.mxu0 %v10918_v4 }
 0xd53   : > { %10024 = vmatprep.mubr.msk.f32.mxu0 %vm820_vm5, %v5643_v0  ;;  %10063 = vmatmul.mubr.msk.f32.gmra.mrb[86].mxu1 %vm820_vm5, %v3812_v33  ;;  %v14732_v59 = vpop.permute.xlu1 %5411  ;;  %v16674_v0 = vld [vmem:[#allocation5_spill] sm:$0xff]  ;;  %v3789_v3 = vsel %vm3597_vm15, %v14424_v40, 0.0  ;;  %vm3213_vm8 = vcmp.eq.s32.totalorder %v12264_v41, %v14430_v6  ;;  %vm3599_vm9 = vcmp.eq.s32.totalorder %v12264_v41, %v14492_v62  ;;  %v16679_v40 = vld [vmem:[#allocation7_spill] sm:$0xff]  ;;  %vm5164_vm11 = vcmp.eq.s32.totalorder %v12264_v41, %v13958_v32  ;;  %v16681_v62 = vld [vmem:[#allocation222_spill] sm:$0xff] }
 0xd54   : > { %10065 = vmatprep.mubr.msk.f32.mxu1 %vm820_vm5, %v3813_v55  ;;  %vm3596_vm13 = vcmp.eq.s32.totalorder %v12264_v41, %v16674_v0  ;;  %v3435_v55 = vsel %vm3211_vm14, %v14393_v10, 0.0  ;;  %v10919_v10 = vld [vmem:[%s16002_s15 + $0x8] sm:$0xff]   ;;  %v3438_v19 = vsel %vm3214_vm0, %v16679_v40, 0.0  ;;  %v3790_v63 = vsel %vm3598_vm7, %v16680_v18, 0.0  ;;  %10132 = vmatpush3.bf16.msra.mxu0 %v10918_v4  ;;  %v16699_v40 = vld [vmem:[#allocation42_spill] sm:$0xff] }
 0xd55   : > { %v3788_v21 = vsel %vm3596_vm13, %v16676_v9, 0.0  ;;  %v3819_v42 = vadd.f32 %v3787_v38, %v3435_v55  ;;  %vm3216_vm13 = vcmp.eq.s32.totalorder %v12264_v41, %v16681_v62  ;;  %vm3600_vm14 = vcmp.eq.s32.totalorder %v12264_v41, %v13928_v30  ;;  %10133 = vmatprep.subr.bf16.mxu0 %v10919_v10  ;;  %v16682_v30 = vld [vmem:[#allocation29_spill] sm:$0xff]  ;;  %v16701_v18 = vld [vmem:[#allocation62_spill] sm:$0xff]  ;;  %v16703_v62 = vld [vmem:[#allocation159_spill] sm:$0xff] }
 0xd56   : > { %v14751_v2 = vpop.f32.mrb[60].mxu0  ;;  %v3820_v16 = vadd.f32 %v3788_v21, %v3436_v35  ;;  %vm4817_vm15 = vcmp.eq.s32.totalorder %v12264_v41, %v14011_v50  ;;  %vm3215_vm0 = vcmp.eq.s32.totalorder %v12264_v41, %v14480_v58  ;;  %v3822_v32 = vadd.f32 %v3790_v63, %v3438_v19  ;;  %v16685_v58 = vld [vmem:[#allocation28_spill] sm:$0xff]  ;;  %v16690_v38 = vld [vmem:[#allocation69_spill] sm:$0xff]  ;;  %v16691_v35 = vld [vmem:[#allocation23_spill] sm:$0xff] }
 0xd57   : > { %v14754_v25 = vpop.f32.mrb[61].mxu0  ;;  %10066 = vmatmul.mubr.msk.f32.gmra.mrb[88].mxu1 %vm820_vm5, %v3814_v51  ;;  %v3437_v51 = vsel %vm3213_vm8, %v14438_v22, 0.0  ;;  %v3791_v22 = vsel %vm3599_vm9, %v14475_v52, 0.0  ;;  %v3439_v26 = vsel %vm3215_vm0, %v14486_v23, 0.0  ;;  %v3440_v46 = vsel %vm3216_vm13, %v16682_v30, 0.0  ;;  %v16683_v52 = vld [vmem:[#allocation36_spill] sm:$0xff] }
 0xd58   : > { %10068 = vmatprep.mubr.msk.f32.mxu1 %vm820_vm5, %v3815_v14  ;;  %v4671_v27 = vpop.permute.xlu1 %4670  ;;  %v3821_v6 = vadd.f32 %v3789_v3, %v3437_v51  ;;  %v3792_v20 = vsel %vm3600_vm14, %v16683_v52, 0.0  ;;  %v3823_v28 = vadd.f32 %v3791_v22, %v3439_v26  ;;  %10134 = vmatpush3.bf16.msra.mxu0 %v10919_v10  ;;  %v4977_v50 = vsel %vm4817_vm15, %v16684_v7, 0.0  ;;  %v16686_v23 = vld [vmem:[#allocation30_spill] sm:$0xff]  ;;  %v16696_v3 = vld [vmem:[#allocation229_spill] sm:$0xff]  ;;  %v16698_v10 = vld [vmem:[#allocation155_spill] sm:$0xff] }
 0xd59   : > { %v4716_v33 = vsel %vm4556_vm10, %v4671_v27, 0.0  ;;  %vm5452_vm10 = vcmp.eq.s32.totalorder %v12264_v41, %v14732_v59  ;;  %vm4529_vm7 = vcmp.eq.s32.totalorder %v12264_v41, %v16685_v58  ;;  %v3824_v34 = vadd.f32 %v3792_v20, %v3440_v46  ;;  %v16697_v4 = vld [vmem:[#allocation41_spill] sm:$0xff]  ;;  %v16706_v26 = vld [vmem:[#allocation231_spill] sm:$0xff]  ;;  %v16707_v46 = vld [vmem:[#allocation70_spill] sm:$0xff] }
 0xd5a   : > { %v14771_v43 = vadd.f32 %v5004_v13, %v4716_v33  ;;  %v4689_v53 = vsel %vm4529_vm7, %v16686_v23, 0.0  ;;  %vm4530_vm8 = vcmp.eq.s32.totalorder %v12264_v41, %v14017_v39  ;;  %vm4818_vm9 = vcmp.eq.s32.totalorder %v12264_v41, %v14023_v11  ;;  %v16687_v13 = vld [vmem:[#allocation55_spill] sm:$0xff]  ;;  %v16692_v39 = vld [vmem:[#allocation48_spill] sm:$0xff]  ;;  %v16709_v7 = vld [vmem:[#allocation94_spill] sm:$0xff] }
 0xd5b   : > { %10069 = vmatmul.mubr.msk.f32.gmra.mrb[90].mxu1 %vm820_vm5, %v3816_v44  ;;  %v5009_v33 = vadd.f32 %v4977_v50, %v4689_v53  ;;  %v4978_v0 = vsel %vm4818_vm9, %v16688_v24, 0.0  ;;  %v4690_v9 = vsel %vm4530_vm8, %v16691_v35, 0.0  ;;  %vm4820_vm13 = vcmp.eq.s32.totalorder %v12264_v41, %v16692_v39  ;;  %v16693_v11 = vld [vmem:[#allocation39_spill] sm:$0xff]  ;;  %v16710_v23 = vld [vmem:[#allocation142_spill] sm:$0xff]  ;;  %v16717_v39 = vld [vmem:[#allocation117_spill] sm:$0xff] }
 0xd5c   : > { %10071 = vmatprep.mubr.msk.f32.mxu1 %vm820_vm5, %v3817_v17  ;;  %v16689_v17 = vld [vmem:[#allocation80_spill] sm:$0xff]  ;;  %v5010_v55 = vadd.f32 %v4978_v0, %v4690_v9  ;;  %vm4533_vm15 = vcmp.eq.s32.totalorder %v12264_v41, %v16696_v3  ;;  %vm4532_vm0 = vcmp.eq.s32.totalorder %v12264_v41, %v16697_v4  ;;  %v16713_v24 = vld [vmem:[#allocation95_spill] sm:$0xff]  ;;  %v16716_v9 = vld [vmem:[#allocation129_spill] sm:$0xff] }
 0xd5d   : > { %v5279_v56 = vpop.permute.xlu1 %5278  ;;  %v4692_v19 = vsel %vm4532_vm0, %v16699_v40, 0.0  ;;  %v16714_v0 = vld [vmem:[#allocation148_spill] sm:$0xff]  ;;  %vm4826_vm0 = vcmp.eq.s32.totalorder %v12264_v41, %v16716_v9  ;;  %v16721_v3 = vld [vmem:[#allocation121_spill] sm:$0xff] }
 0xd5e   : > { %v5324_v14 = vsel %vm5164_vm11, %v5279_v56, 0.0  ;;  %vm4531_vm11 = vcmp.eq.s32.totalorder %v12264_v41, %v16689_v17  ;;  %v16694_v56 = vld [vmem:[#allocation91_spill] sm:$0xff]  ;;  %v16737_v9 = vld [vmem:[#allocation101_spill] sm:$0xff] }
 0xd5f   : > { %10072 = vmatmul.mubr.msk.f32.gmra.mrb[92].mxu1 %vm820_vm5, %v3818_v8  ;;  %v4691_v8 = vsel %vm4531_vm11, %v16690_v38, 0.0  ;;  %vm4821_vm14 = vcmp.eq.s32.totalorder %v12264_v41, %v16694_v56  ;;  %v16715_v38 = vld [vmem:[#allocation96_spill] sm:$0xff] }
 0xd60   : > { %10074 = vmatprep.mubr.msk.f32.mxu1 %vm820_vm5, %v3819_v42  ;;  %v16695_v42 = vld [vmem:[#allocation228_spill] sm:$0xff]  ;;  %v4981_v63 = vsel %vm4821_vm14, %v16701_v18, 0.0  ;;  %v16725_v18 = vld [vmem:[#allocation51_spill] sm:$0xff] }
 0xd61   : > { %v5567_v45 = vpop.permute.xlu1 %5566  ;;  %v4980_v60 = vsel %vm4820_vm13, %v16695_v42, 0.0  ;;  %vm4825_vm13 = vcmp.eq.s32.totalorder %v12264_v41, %v16710_v23 }
 0xd62   : > { %v5612_v44 = vsel %vm5452_vm10, %v5567_v45, 0.0  ;;  %vm4819_vm10 = vcmp.eq.s32.totalorder %v12264_v41, %v16687_v13  ;;  %v16700_v45 = vld [vmem:[#allocation82_spill] sm:$0xff] }
 0xd63   : > { %v5644_v59 = vadd.f32 %v5612_v44, %v5324_v14  ;;  %10075 = vmatmul.mubr.msk.f32.gmra.mrb[94].mxu1 %vm820_vm5, %v3820_v16  ;;  %v4979_v21 = vsel %vm4819_vm10, %v16693_v11, 0.0  ;;  %v4693_v16 = vsel %vm4533_vm15, %v16698_v10, 0.0  ;;  %vm4822_vm7 = vcmp.eq.s32.totalorder %v12264_v41, %v16700_v45  ;;  %v16702_v14 = vld [vmem:[#allocation116_spill] sm:$0xff]  ;;  %v16722_v10 = vld [vmem:[#allocation157_spill] sm:$0xff] }
 0xd64   : > { %10077 = vmatprep.mubr.msk.f32.mxu1 %vm820_vm5, %v3821_v6  ;;  %v5011_v61 = vadd.f32 %v4979_v21, %v4691_v8  ;;  %v5012_v6 = vadd.f32 %v4980_v60, %v4692_v19  ;;  %vm4823_vm8 = vcmp.eq.s32.totalorder %v12264_v41, %v16702_v14  ;;  %v5013_v44 = vadd.f32 %v4981_v63, %v4693_v16  ;;  %v16720_v60 = vld [vmem:[#allocation119_spill] sm:$0xff]  ;;  %v16724_v19 = vld [vmem:[#allocation78_spill] sm:$0xff]  ;;  %v16727_v14 = vld [vmem:[#allocation236_spill] sm:$0xff] }
 0xd65   : > { %10025 = vmatmul.mubr.msk.f32.gmra.mrb[64].mxu0 %vm820_vm5, %v5644_v59  ;;  %v4982_v22 = vsel %vm4822_vm7, %v16703_v62, 0.0  ;;  %v16704_v59 = vld [vmem:[#allocation156_spill] sm:$0xff]  ;;  %v4983_v50 = vsel %vm4823_vm8, %v16709_v7, 0.0  ;;  %vm4536_vm15 = vcmp.eq.s32.totalorder %v12264_v41, %v16713_v24  ;;  %v4985_v11 = vsel %vm4825_vm13, %v16717_v39, 0.0  ;;  %v16723_v16 = vld [vmem:[#allocation67_spill] sm:$0xff] }
 0xd66   : > { %v14822_v27 = vpop.permute.xlu1 %4806  ;;  %vm4535_vm9 = vcmp.eq.s32.totalorder %v12264_v41, %v16704_v59  ;;  %v4696_v8 = vsel %vm4536_vm15, %v16715_v38, 0.0  ;;  %vm4538_vm8 = vcmp.eq.s32.totalorder %v12264_v41, %v16720_v60  ;;  %vm5165_vm13 = vcmp.eq.s32.totalorder %v12264_v41, %v16725_v18  ;;  %v16728_v62 = vld [vmem:[#allocation132_spill] sm:$0xff]  ;;  %v16731_v7 = vld [vmem:[#allocation59_spill] sm:$0xff]  ;;  %v16742_v60 = vld [vmem:[#allocation198_spill] sm:$0xff] }
 0xd67   : > { %10078 = vmatmul.mubr.msk.f32.gmra.mrb[96].mxu1 %vm820_vm5, %v3822_v32  ;;  %v16705_v32 = vld [vmem:[#allocation64_spill] sm:$0xff]  ;;  %v4695_v30 = vsel %vm4535_vm9, %v16706_v26, 0.0  ;;  %v4698_v4 = vsel %vm4538_vm8, %v16721_v3, 0.0  ;;  %v16735_v24 = vld [vmem:[#allocation171_spill] sm:$0xff] }
 0xd68   : > { %10080 = vmatprep.mubr.msk.f32.mxu1 %vm820_vm5, %v3823_v28  ;;  %vm4534_vm10 = vcmp.eq.s32.totalorder %v12264_v41, %v16705_v32  ;;  %v16708_v28 = vld [vmem:[#allocation106_spill] sm:$0xff]  ;;  %v5015_v53 = vadd.f32 %v4983_v50, %v4695_v30  ;;  %v16729_v32 = vld [vmem:[#allocation145_spill] sm:$0xff]  ;;  %vm4542_vm8 = vcmp.eq.s32.totalorder %v12264_v41, %v16735_v24  ;;  %v16747_v18 = vld [vmem:[#allocation68_spill] sm:$0xff] }
 0xd69   : > { %v4694_v52 = vsel %vm4534_vm10, %v16707_v46, 0.0  ;;  %vm4824_vm11 = vcmp.eq.s32.totalorder %v12264_v41, %v16708_v28  ;;  %vm4828_vm10 = vcmp.eq.s32.totalorder %v12264_v41, %v16722_v10  ;;  %v10920_v30 = vld [vmem:[%s16002_s15 + $0x10] sm:$0xff]   ;;  %v16758_v24 = vld [vmem:[#allocation141_spill] sm:$0xff] }
 0xd6a   : > { %v5014_v58 = vadd.f32 %v4982_v22, %v4694_v52  ;;  %v16730_v46 = vld [vmem:[#allocation146_spill] sm:$0xff]  ;;  %10135 = vmatprep.subr.bf16.mxu0 %v10920_v30 }
 0xd6b   : > { %10081 = vmatmul.mubr.msk.f32.gmra.mrb[98].mxu1 %vm820_vm5, %v3824_v34  ;;  %v5415_v57 = vpop.permute.xlu1 %5414  ;;  %v16711_v34 = vld [vmem:[#allocation232_spill] sm:$0xff]  ;;  %10136 = vmatpush3.bf16.msra.mxu0 %v10920_v30  ;;  %v16752_v30 = vld [vmem:[#allocation139_spill] sm:$0xff] }
 0xd6c   : > { %10083 = vmatprep.mubr.msk.f32.mxu1 %vm820_vm5, %v5009_v33  ;;  %v4984_v13 = vsel %vm4824_vm11, %v16711_v34, 0.0  ;;  %v16712_v33 = vld [vmem:[#allocation81_spill] sm:$0xff]  ;;  %vm5453_vm9 = vcmp.eq.s32.totalorder %v12264_v41, %v5415_v57  ;;  %vm4829_vm11 = vcmp.eq.s32.totalorder %v12264_v41, %v16723_v16  ;;  %v16726_v57 = vld [vmem:[#allocation235_spill] sm:$0xff]  ;;  %v16744_v16 = vld [vmem:[#allocation88_spill] sm:$0xff] }
 0xd6d   : > { %vm4537_vm14 = vcmp.eq.s32.totalorder %v12264_v41, %v16712_v33  ;;  %v5016_v21 = vadd.f32 %v4984_v13, %v4696_v8  ;;  %v5613_v22 = vsel %vm5453_vm9, %v16728_v62, 0.0  ;;  %v4989_v50 = vsel %vm4829_vm11, %v16731_v7, 0.0  ;;  %v16734_v34 = vld [vmem:[#allocation237_spill] sm:$0xff]  ;;  %v10921_v8 = vld [vmem:[%s16002_s15 + $0x18] sm:$0xff]   ;;  %v16750_v62 = vld [vmem:[#allocation218_spill] sm:$0xff] }
 0xd6e   : > { %v4697_v17 = vsel %vm4537_vm14, %v16714_v0, 0.0  ;;  %vm4540_vm14 = vcmp.eq.s32.totalorder %v12264_v41, %v16729_v32  ;;  %v5021_v13 = vadd.f32 %v4989_v50, %v16734_v34  ;;  %vm4545_vm11 = vcmp.eq.s32.totalorder %v12264_v41, %v14433_v47  ;;  %10137 = vmatprep.subr.bf16.mxu0 %v10921_v8  ;;  %v16745_v47 = vld [vmem:[#allocation230_spill] sm:$0xff]  ;;  %v16755_v50 = vld [vmem:[#allocation109_spill] sm:$0xff] }
 0xd6f   : > { %10084 = vmatmul.mubr.msk.f32.gmra.mrb[100].mxu1 %vm820_vm5, %v5010_v55  ;;  %v16718_v55 = vld [vmem:[#allocation167_spill] sm:$0xff]  ;;  %v5017_v56 = vadd.f32 %v4985_v11, %v4697_v17  ;;  %v4700_v52 = vsel %vm4540_vm14, %v16730_v46, 0.0  ;;  %v16736_v17 = vld [vmem:[#allocation172_spill] sm:$0xff]  ;;  %10138 = vmatpush3.bf16.msra.mxu0 %v10921_v8  ;;  %vm4834_vm14 = vcmp.eq.s32.totalorder %v12264_v41, %v16744_v16  ;;  %v16769_v16 = vld [vmem:[#allocation202_spill] sm:$0xff] }
 0xd70   : > { %10086 = vmatprep.mubr.msk.f32.mxu1 %vm820_vm5, %v5011_v61  ;;  %v14857_v51 = vpop.permute.xlu1 %4521  ;;  %vm4827_vm7 = vcmp.eq.s32.totalorder %v12264_v41, %v16718_v55  ;;  %v16719_v61 = vld [vmem:[#allocation233_spill] sm:$0xff]  ;;  %v4702_v38 = vsel %vm4542_vm8, %v16736_v17, 0.0  ;;  %v16739_v11 = vld [vmem:[#allocation40_spill] sm:$0xff]  ;;  %v16759_v17 = vld [vmem:[#allocation190_spill] sm:$0xff] }
 0xd71   : > { %v4986_v42 = vsel %vm4826_vm0, %v16719_v61, 0.0  ;;  %v4987_v45 = vsel %vm4827_vm7, %v16724_v19, 0.0  ;;  %vm4543_vm7 = vcmp.eq.s32.totalorder %v12264_v41, %v14406_v12  ;;  %v16738_v12 = vld [vmem:[#allocation211_spill] sm:$0xff]  ;;  %v16741_v61 = vld [vmem:[#allocation174_spill] sm:$0xff] }
 0xd72   : > { %v5018_v40 = vadd.f32 %v4986_v42, %v4698_v4  ;;  %v4703_v0 = vsel %vm4543_vm7, %v14418_v36, 0.0  ;;  %vm4832_vm9 = vcmp.eq.s32.totalorder %v12264_v41, %v16738_v12  ;;  %v4705_v42 = vsel %vm4545_vm11, %v16741_v61, 0.0  ;;  %v16746_v19 = vld [vmem:[#allocation210_spill] sm:$0xff]  ;;  %v16764_v61 = vld [vmem:[#allocation153_spill] sm:$0xff] }
 0xd73   : > { %10087 = vmatmul.mubr.msk.f32.gmra.mrb[102].mxu1 %vm820_vm5, %v5012_v6  ;;  %v5019_v6 = vadd.f32 %v4987_v45, %v16726_v57  ;;  %v4994_v45 = vsel %vm4834_vm14, %v16746_v19, 0.0  ;;  %v16749_v57 = vld [vmem:[#allocation189_spill] sm:$0xff]  ;;  %vm4549_vm14 = vcmp.eq.s32.totalorder %v12264_v41, %v16759_v17  ;;  %v16770_v19 = vld [vmem:[#allocation126_spill] sm:$0xff] }
 0xd74   : > { %10089 = vmatprep.mubr.msk.f32.mxu1 %vm820_vm5, %v5013_v44  ;;  %v14873_v20 = vpop.permute.xlu1 %4809  ;;  %v4988_v44 = vsel %vm4828_vm10, %v16727_v14, 0.0  ;;  %vm4833_vm10 = vcmp.eq.s32.totalorder %v12264_v41, %v16739_v11 }
 0xd75   : > { %v5020_v28 = vadd.f32 %v4988_v44, %v4700_v52  ;;  %v16753_v52 = vld [vmem:[#allocation149_spill] sm:$0xff] }
 0xd77   : > { %10090 = vmatmul.mubr.msk.f32.gmra.mrb[104].mxu1 %vm820_vm5, %v5014_v58  ;;  %v16732_v58 = vld [vmem:[#allocation184_spill] sm:$0xff] }
 0xd78   : > { %10092 = vmatprep.mubr.msk.f32.mxu1 %vm820_vm5, %v5015_v53  ;;  %v14889_v35 = vpop.permute.xlu1 %4962  ;;  %vm4830_vm15 = vcmp.eq.s32.totalorder %v12264_v41, %v16732_v58  ;;  %v16733_v53 = vld [vmem:[#allocation8_spill] sm:$0xff] }
 0xd79   : > { %vm4831_vm0 = vcmp.eq.s32.totalorder %v12264_v41, %v16733_v53  ;;  %v4990_v33 = vsel %vm4830_vm15, %v14399_v48, 0.0  ;;  %vm4835_vm15 = vcmp.eq.s32.totalorder %v12264_v41, %v16745_v47  ;;  %v16756_v53 = vld [vmem:[#allocation144_spill] sm:$0xff] }
 0xd7a   : > { %v5022_v48 = vadd.f32 %v4990_v33, %v4702_v38  ;;  %v4991_v39 = vsel %vm4831_vm0, %v16737_v9, 0.0  ;;  %vm4547_vm0 = vcmp.eq.s32.totalorder %v12264_v41, %v16747_v18  ;;  %v4995_v46 = vsel %vm4835_vm15, %v16752_v30, 0.0  ;;  %v16760_v38 = vld [vmem:[#allocation191_spill] sm:$0xff] }
 0xd7b   : > { %10093 = vmatmul.mubr.msk.f32.gmra.mrb[106].mxu1 %vm820_vm5, %v5016_v21  ;;  %v5023_v36 = vadd.f32 %v4991_v39, %v4703_v0  ;;  %v4992_v21 = vsel %vm4832_vm9, %v14426_v1, 0.0  ;;  %v16743_v1 = vld [vmem:[#allocation6_spill] sm:$0xff]  ;;  %vm4836_vm9 = vcmp.eq.s32.totalorder %v12264_v41, %v16753_v52  ;;  %vm4839_vm15 = vcmp.eq.s32.totalorder %v12264_v41, %v16760_v38  ;;  %v16761_v39 = vld [vmem:[#allocation219_spill] sm:$0xff]  ;;  %v16775_v52 = vld [vmem:[#allocation193_spill] sm:$0xff] }
 0xd7c   : > { %10095 = vmatprep.mubr.msk.f32.mxu1 %vm820_vm5, %v5017_v56  ;;  %v16740_v56 = vld [vmem:[#allocation197_spill] sm:$0xff]  ;;  %v4993_v10 = vsel %vm4833_vm10, %v16743_v1, 0.0  ;;  %v4996_v58 = vsel %vm4836_vm9, %v16755_v50, 0.0  ;;  %v4709_v12 = vsel %vm4549_vm14, %v16761_v39, 0.0 }
 0xd7d   : > { %v5283_v63 = vpop.permute.xlu1 %5282 }
 0xd7e   : > { %v5325_v59 = vsel %vm5165_vm13, %v5283_v63, 0.0  ;;  %vm4544_vm13 = vcmp.eq.s32.totalorder %v12264_v41, %v16740_v56  ;;  %v16748_v63 = vld [vmem:[#allocation4_spill] sm:$0xff] }
 0xd7f   : > { %v5645_v26 = vadd.f32 %v5613_v22, %v5325_v59  ;;  %10096 = vmatmul.mubr.msk.f32.gmra.mrb[108].mxu1 %vm820_vm5, %v5018_v40  ;;  %v4704_v3 = vsel %vm4544_vm13, %v16742_v60, 0.0  ;;  %v5025_v40 = vadd.f32 %v4993_v10, %v4705_v42  ;;  %vm4546_vm7 = vcmp.eq.s32.totalorder %v12264_v41, %v16748_v63  ;;  %v16751_v59 = vld [vmem:[#allocation175_spill] sm:$0xff]  ;;  %v16766_v60 = vld [vmem:[#allocation170_spill] sm:$0xff]  ;;  %v16768_v10 = vld [vmem:[#allocation204_spill] sm:$0xff] }
 0xd80   : > { %10098 = vmatprep.mubr.msk.f32.mxu1 %vm820_vm5, %v5019_v6  ;;  %v5024_v4 = vadd.f32 %v4992_v21, %v4704_v3  ;;  %v4707_v6 = vsel %vm4547_vm0, %v16749_v57, 0.0  ;;  %v4706_v22 = vsel %vm4546_vm7, %v16750_v62, 0.0  ;;  %vm4837_vm8 = vcmp.eq.s32.totalorder %v12264_v41, %v16751_v59  ;;  %v16763_v21 = vld [vmem:[#allocation110_spill] sm:$0xff]  ;;  %v16765_v42 = vld [vmem:[#allocation243_spill] sm:$0xff] }
 0xd81   : > { %10027 = vmatprep.mubr.msk.f32.mxu0 %vm820_vm5, %v5645_v26  ;;  %v5418_v23 = vpop.permute.xlu1 %5417  ;;  %v5026_v26 = vadd.f32 %v4994_v45, %v4706_v22  ;;  %v5027_v7 = vadd.f32 %v4995_v46, %v4707_v6  ;;  %vm5166_vm13 = vcmp.eq.s32.totalorder %v12264_v41, %v16758_v24  ;;  %vm4550_vm7 = vcmp.eq.s32.totalorder %v12264_v41, %v16764_v61  ;;  %v16771_v57 = vld [vmem:[#allocation86_spill] sm:$0xff]  ;;  %v4519_v6 = vpop.permute.xlu0 %4518  ;;  %v16778_v61 = vld [vmem:[#allocation143_spill] sm:$0xff] }
 0xd82   : > { %vm5454_vm11 = vcmp.eq.s32.totalorder %v12264_v41, %v5418_v23  ;;  %v16762_v23 = vld [vmem:[#allocation240_spill] sm:$0xff]  ;;  %v4999_v3 = vsel %vm4839_vm15, %v16766_v60, 0.0  ;;  %vm4551_vm9 = vcmp.eq.s32.totalorder %v12264_v41, %v16768_v10  ;;  %v16773_v22 = vld [vmem:[#allocation178_spill] sm:$0xff]  ;;  %vm4554_vm15 = vcmp.eq.s32.totalorder %v12264_v41, %v16775_v52 }
 0xd83   : > { %10099 = vmatmul.mubr.msk.f32.gmra.mrb[110].mxu1 %vm820_vm5, %v5020_v28  ;;  %v16754_v28 = vld [vmem:[#allocation140_spill] sm:$0xff]  ;;  %vm4838_vm0 = vcmp.eq.s32.totalorder %v12264_v41, %v16762_v23  ;;  %v4711_v45 = vsel %vm4551_vm9, %v16770_v19, 0.0  ;;  %v16774_v46 = vld [vmem:[#allocation246_spill] sm:$0xff]  ;;  %vm4558_vm9 = vcmp.eq.s32.totalorder %v12264_v41, %v14857_v51 }
 0xd84   : > { %10101 = vmatprep.mubr.msk.f32.mxu1 %vm820_vm5, %v5021_v13  ;;  %vm4548_vm10 = vcmp.eq.s32.totalorder %v12264_v41, %v16754_v28  ;;  %v16757_v13 = vld [vmem:[#allocation58_spill] sm:$0xff]  ;;  %v4998_v56 = vsel %vm4838_vm0, %v16763_v21, 0.0  ;;  %v5031_v63 = vadd.f32 %v4999_v3, %v4711_v45  ;;  %vm4842_vm14 = vcmp.eq.s32.totalorder %v12264_v41, %v16774_v46 }
 0xd85   : > { %v4708_v34 = vsel %vm4548_vm10, %v16756_v53, 0.0  ;;  %v4997_v33 = vsel %vm4837_vm8, %v16757_v13, 0.0  ;;  %vm4840_vm8 = vcmp.eq.s32.totalorder %v12264_v41, %v16765_v42  ;;  %vm4841_vm10 = vcmp.eq.s32.totalorder %v12264_v41, %v16769_v16  ;;  %v4675_v53 = vpop.permute.xlu0 %4674 }
 0xd86   : > { %v14951_v55 = vpop.permute.xlu1 %4678  ;;  %v5028_v9 = vadd.f32 %v4996_v58, %v4708_v34  ;;  %v5000_v18 = vsel %vm4840_vm8, %v14573_v31, 0.0  ;;  %vm4555_vm0 = vcmp.eq.s32.totalorder %v12264_v41, %v14690_v54  ;;  %vm4845_vm8 = vcmp.eq.s32.totalorder %v12264_v41, %v14822_v27 }
 0xd87   : > { %10102 = vmatmul.mubr.msk.f32.gmra.mrb[112].mxu1 %vm820_vm5, %v5022_v48  ;;  %v4715_v58 = vsel %vm4555_vm0, %v14727_v5, 0.0 }
 0xd88   : > { %10104 = vmatprep.mubr.msk.f32.mxu1 %vm820_vm5, %v5023_v36  ;;  %v5029_v36 = vadd.f32 %v4997_v33, %v4709_v12  ;;  %v5035_v13 = vadd.f32 %v14683_v15, %v4715_v58  ;;  %v5005_v33 = vsel %vm4845_vm8, %v14889_v35, 0.0  ;;  %v4718_v15 = vsel %vm4558_vm9, %v14951_v55, 0.0  ;;  %v16785_v58 = vld [vmem:[#allocation57_spill] sm:$0xff] }
 0xd89   : > { %v4967_v24 = vpop.permute.xlu0 %4966 }
 0xd8b   : > { %v14970_v14 = vpop.f32.mrb[60].mxu1  ;;  %10105 = vmatmul.mubr.msk.f32.gmra.mrb[114].mxu1 %vm820_vm5, %v5024_v4  ;;  %v5287_v44 = vpop.permute.xlu1 %5286  ;;  %v16767_v4 = vld [vmem:[#allocation234_spill] sm:$0xff] }
 0xd8c   : > { %v14976_v32 = vpop.f32.mrb[61].mxu1  ;;  %10107 = vmatprep.mubr.msk.f32.mxu1 %vm820_vm5, %v5025_v40  ;;  %v5326_v8 = vsel %vm5166_vm13, %v5287_v44, 0.0  ;;  %v4710_v1 = vsel %vm4550_vm7, %v16767_v4, 0.0  ;;  %v16772_v44 = vld [vmem:[#allocation105_spill] sm:$0xff]  ;;  %vm4553_vm13 = vcmp.eq.s32.totalorder %v12264_v41, %v14604_v49  ;;  %v5002_v49 = vsel %vm4842_vm14, %v14660_v37, 0.0  ;;  %v16779_v4 = vld [vmem:[#allocation76_spill] sm:$0xff] }
 0xd8d   : > { %v5030_v40 = vadd.f32 %v4998_v56, %v4710_v1  ;;  %v5001_v62 = vsel %vm4841_vm10, %v16772_v44, 0.0  ;;  %v4713_v30 = vsel %vm4553_vm13, %v14634_v29, 0.0  ;;  %vm4557_vm7 = vcmp.eq.s32.totalorder %v12264_v41, %v4519_v6  ;;  %v4525_v17 = vpop.permute.xlu0 %4524  ;;  %v16781_v44 = vld [vmem:[#allocation93_spill] sm:$0xff] }
 0xd8e   : > { %v5033_v28 = vadd.f32 %v5001_v62, %v4713_v30  ;;  %v4717_v37 = vsel %vm4557_vm7, %v4675_v53, 0.0  ;;  %vm4846_vm10 = vcmp.eq.s32.totalorder %v12264_v41, %v14873_v20  ;;  %vm5168_vm9 = vcmp.eq.s32.totalorder %v12264_v41, %v16779_v4 }
 0xd8f   : > { %10108 = vmatmul.mubr.msk.f32.gmra.mrb[116].mxu1 %vm820_vm5, %v5026_v26  ;;  %v5575_v0 = vpop.permute.xlu1 %5574  ;;  %v5037_v5 = vadd.f32 %v5005_v33, %v4717_v37  ;;  %v5006_v27 = vsel %vm4846_vm10, %v4967_v24, 0.0  ;;  %v16788_v24 = vld [vmem:[#allocation206_spill] sm:$0xff] }
 0xd90   : > { %v5614_v48 = vsel %vm5454_vm11, %v5575_v0, 0.0  ;;  %10110 = vmatprep.mubr.msk.f32.mxu1 %vm820_vm5, %v5027_v7  ;;  %vm4552_vm11 = vcmp.eq.s32.totalorder %v12264_v41, %v16771_v57  ;;  %v16776_v7 = vld [vmem:[#allocation34_spill] sm:$0xff]  ;;  %v5038_v35 = vadd.f32 %v5006_v27, %v4718_v15  ;;  %v16780_v57 = vld [vmem:[#allocation92_spill] sm:$0xff] }
 0xd91   : > { %v5646_v11 = vadd.f32 %v5614_v48, %v5326_v8  ;;  %v4712_v59 = vsel %vm4552_vm11, %v16773_v22, 0.0  ;;  %v4714_v50 = vsel %vm4554_vm15, %v16776_v7, 0.0  ;;  %v4683_v8 = vpop.permute.xlu0 %4682  ;;  %vm4559_vm11 = vcmp.eq.s32.totalorder %v12264_v41, %v4525_v17  ;;  %v16784_v7 = vld [vmem:[#allocation154_spill] sm:$0xff] }
 0xd92   : > { %v5032_v31 = vadd.f32 %v5000_v18, %v4712_v59  ;;  %v5034_v34 = vadd.f32 %v5002_v49, %v4714_v50  ;;  %v16782_v59 = vld [vmem:[#allocation124_spill] sm:$0xff] }
 0xd93   : > { %10028 = vmatmul.mubr.msk.f32.gmra.mrb[66].mxu0 %vm820_vm5, %v5646_v11  ;;  %10111 = vmatmul.mubr.msk.f32.gmra.mrb[118].mxu1 %vm820_vm5, %v5028_v9 }
 0xd94   : > { %10113 = vmatprep.mubr.msk.f32.mxu1 %vm820_vm5, %v5029_v36  ;;  %v4528_v47 = vpop.permute.xlu1 %4527  ;;  %v16777_v36 = vld [vmem:[#allocation138_spill] sm:$0xff] }
 0xd95   : > { %vm4560_vm13 = vcmp.eq.s32.totalorder %v12264_v41, %v4528_v47  ;;  %v4975_v48 = vpop.permute.xlu0 %4974  ;;  %vm5167_vm0 = vcmp.eq.s32.totalorder %v12264_v41, %v16777_v36 }
 0xd97   : > { %10114 = vmatmul.mubr.msk.f32.gmra.mrb[120].mxu1 %vm820_vm5, %v5030_v40 }
 0xd98   : > { %10116 = vmatprep.mubr.msk.f32.mxu1 %vm820_vm5, %v5031_v63  ;;  %v4816_v26 = vpop.permute.xlu1 %4815 }
 0xd99   : > { %vm4848_vm14 = vcmp.eq.s32.totalorder %v12264_v41, %v4816_v26 }
 0xd9a   : > { %v5008_v39 = vsel %vm4848_vm14, %v4975_v48, 0.0 }
 0xd9b   : > { %10117 = vmatmul.mubr.msk.f32.gmra.mrb[122].mxu1 %vm820_vm5, %v5032_v31  ;;  %v16783_v31 = vld [vmem:[#allocation125_spill] sm:$0xff] }
 0xd9c   : > { %10119 = vmatprep.mubr.msk.f32.mxu1 %vm820_vm5, %v5033_v28  ;;  %v4971_v29 = vpop.permute.xlu1 %4970 }
 0xd9f   : > { %10120 = vmatmul.mubr.msk.f32.gmra.mrb[124].mxu1 %vm820_vm5, %v5034_v34 }
 0xda0   : > { %10122 = vmatprep.mubr.msk.f32.mxu1 %vm820_vm5, %v5035_v13  ;;  %v16786_v13 = vld [vmem:[#allocation61_spill] sm:$0xff] }
 0xda1   : > { %v5291_v54 = vpop.permute.xlu1 %5290 }
 0xda2   : > { %v5327_v56 = vsel %vm5167_vm0, %v5291_v54, 0.0  ;;  %v16787_v54 = vld [vmem:[#allocation181_spill] sm:$0xff] }
 0xda3   : > { %10123 = vmatmul.mubr.msk.f32.gmra.mrb[126].mxu1 %vm820_vm5, %v14771_v43  ;;  %v4719_v43 = vsel %vm4559_vm11, %v4683_v8, 0.0 }
 0xda4   : > { %10125 = vmatprep.mubr.msk.f32.mxu1 %vm820_vm5, %v5037_v5 }
 0xda5   : > { %v5424_v0 = vpop.permute.xlu1 %5423 }
 0xda6   : > { %vm5456_vm8 = vcmp.eq.s32.totalorder %v12264_v41, %v5424_v0  ;;  %v16789_v0 = vld [vmem:[#allocation208_spill] sm:$0xff] }
 0xda7   : > { %10126 = vmatmul.mubr.msk.f32.gmra.mrb[128].mxu1 %vm820_vm5, %v5038_v35 }
 0xdaa   : > { %v4687_v51 = vpop.permute.xlu1 %4686 }
 0xdab   : > { %v4720_v55 = vsel %vm4560_vm13, %v4687_v51, 0.0 }
 0xdac   : > { %v5040_v23 = vadd.f32 %v5008_v39, %v4720_v55  ;;  %v16791_v55 = vld [vmem:[#allocation25_spill] sm:$0xff] }
 0xdaf   : > { %v5295_v38 = vpop.permute.xlu1 %5294 }
 0xdb0   : > { %v5328_v10 = vsel %vm5168_vm9, %v5295_v38, 0.0  ;;  %v16790_v38 = vld [vmem:[#allocation11_spill] sm:$0xff] }
 0xdb4   : > { %v4813_v20 = vpop.permute.xlu1 %4812 }
 0xdb5   : > { %vm4847_vm15 = vcmp.eq.s32.totalorder %v12264_v41, %v4813_v20 }
 0xdb6   : > { %v5007_v9 = vsel %vm4847_vm15, %v4971_v29, 0.0 }
 0xdb7   : > { %v5039_v12 = vadd.f32 %v5007_v9, %v4719_v43  ;;  %v16792_v9 = vld [vmem:[#allocation223_spill] sm:$0xff] }
 0xdb9   : > { %10128 = vmatprep.mubr.msk.f32.mxu1 %vm820_vm5, %v5039_v12  ;;  %v5421_v11 = vpop.permute.xlu1 %5420 }
 0xdba   : > { %vm5455_vm7 = vcmp.eq.s32.totalorder %v12264_v41, %v5421_v11  ;;  %v15059_v21 = vpop.f32.mrb[62].mxu1  ;;  %10129 = vmatmul.mubr.msk.f32.gmra.mrb[130].mxu1 %vm820_vm5, %v5040_v23  ;;  %v16793_v23 = vld [vmem:[#allocation224_spill] sm:$0xff] }
 0xdbb   : > { %v5615_v42 = vsel %vm5455_vm7, %v16778_v61, 0.0  ;;  %v15063_v60 = vpop.f32.mrb[63].mxu1 }
 0xdbc   : > { %v5647_v3 = vadd.f32 %v5615_v42, %v5327_v56  ;;  %v16794_v56 = vld [vmem:[#allocation238_spill] sm:$0xff] }
 0xdbd   : > { %v5583_v1 = vpop.permute.xlu1 %5582 }
 0xdbe   : > { %v5616_v16 = vsel %vm5456_vm8, %v5583_v1, 0.0  ;;  %10030 = vmatprep.mubr.msk.f32.mxu0 %vm820_vm5, %v5647_v3  ;;  %v16795_v3 = vld [vmem:[#allocation239_spill] sm:$0xff] }
 0xdbf   : > { %v5648_v47 = vadd.f32 %v5616_v16, %v5328_v10  ;;  %v16796_v10 = vld [vmem:[#allocation173_spill] sm:$0xff] }
 0xdc1   : > { %10031 = vmatmul.mubr.msk.f32.gmra.mrb[68].mxu0 %vm820_vm5, %v5648_v47  ;;  %vm7809_vm5 = vcmask 31744  }
 0xdde   : > { %v15070_v40 = vpop.f32.mrb[64].mxu1 }
 0xddf   : > { %v15072_v19 = vpop.f32.mrb[65].mxu1 }
 0xdfe   : > { %v15074_v45 = vpop.f32.mrb[66].mxu1 }
 0xdff   : > { %v15076_v18 = vpop.f32.mrb[67].mxu1 }
 0xe02   : > { %v10037_v63 = vpop.f32.mrb[68].mxu1 }
 0xe03   : > { %v6849_v6 = vmul.f32 %v10037_v63, %v16780_v57  ;;  %v6529_v41 = vpop.f32.mrb[69].mxu1  ;;  %v16797_v63 = vld [vmem:[#allocation166_spill] sm:$0xff] }
 0xe04   : > { %v6848_v62 = vmul.f32 %v6529_v41, %v16781_v44  ;;  %v16798_v41 = vld [vmem:[#allocation66_spill] sm:$0xff] }
 0xe06   : > { %v10040_v22 = vpop.f32.mrb[70].mxu1  ;;  %10139 = vmatprep.mubr.msk.f32.mxu0 %vm2637_vm12, %v6848_v62 }
 0xe07   : > { %v6851_v26 = vmul.f32 %v10040_v22, %v16782_v59  ;;  %v6539_v30 = vpop.f32.mrb[71].mxu1  ;;  %10140 = vmatmul.mubr.msk.f32.vlgmr.msra.gmra.mrb[70].mxu0 %vm2637_vm12, %v6849_v6  ;;  %v16799_v22 = vld [vmem:[#allocation63_spill] sm:$0xff] }
 0xe08   : > { %v6850_v46 = vmul.f32 %v6539_v30, %v16783_v31  ;;  %v16800_v30 = vld [vmem:[#allocation209_spill] sm:$0xff] }
 0xe0a   : > { %v15084_v52 = vpop.f32.mrb[62].mxu0  ;;  %v10043_v28 = vpop.f32.mrb[72].mxu1  ;;  %10142 = vmatprep.mubr.msk.f32.mxu0 %vm2637_vm12, %v6850_v46 }
 0xe0b   : > { %v6853_v50 = vmul.f32 %v10043_v28, %v16784_v7  ;;  %v15088_v49 = vpop.f32.mrb[63].mxu0  ;;  %v6549_v29 = vpop.f32.mrb[73].mxu1  ;;  %10143 = vmatmul.mubr.msk.f32.gmra.mrb[72].mxu0 %vm2637_vm12, %v6851_v26  ;;  %v16801_v28 = vld [vmem:[#allocation205_spill] sm:$0xff] }
 0xe0c   : > { %v6852_v53 = vmul.f32 %v6549_v29, %v16785_v58  ;;  %v16802_v29 = vld [vmem:[#allocation133_spill] sm:$0xff] }
 0xe0e   : > { %v10046_v34 = vpop.f32.mrb[74].mxu1  ;;  %10145 = vmatprep.mubr.msk.f32.mxu0 %vm2637_vm12, %v6852_v53 }
 0xe0f   : > { %v6855_v33 = vmul.f32 %v10046_v34, %v16786_v13  ;;  %v6559_v37 = vpop.f32.mrb[75].mxu1  ;;  %10146 = vmatmul.mubr.msk.f32.gmra.mrb[74].mxu0 %vm2637_vm12, %v6853_v50  ;;  %v16803_v34 = vld [vmem:[#allocation21_spill] sm:$0xff] }
 0xe10   : > { %v6854_v5 = vmul.f32 %v6559_v37, %v16787_v54 }
 0xe12   : > { %v10049_v15 = vpop.f32.mrb[76].mxu1  ;;  %10148 = vmatprep.mubr.msk.f32.mxu0 %vm2637_vm12, %v6854_v5 }
 0xe13   : > { %v6857_v27 = vmul.f32 %v10049_v15, %v16788_v24  ;;  %v6569_v35 = vpop.f32.mrb[77].mxu1  ;;  %10149 = vmatmul.mubr.msk.f32.gmra.mrb[76].mxu0 %vm2637_vm12, %v6855_v33 }
 0xe14   : > { %v6856_v17 = vmul.f32 %v6569_v35, %v16789_v0 }
 0xe16   : > { %v10052_v51 = vpop.f32.mrb[78].mxu1  ;;  %10151 = vmatprep.mubr.msk.f32.mxu0 %vm2637_vm12, %v6856_v17 }
 0xe17   : > { %v6859_v8 = vmul.f32 %v10052_v51, %v16790_v38  ;;  %v6579_v20 = vpop.f32.mrb[79].mxu1  ;;  %10152 = vmatmul.mubr.msk.f32.gmra.mrb[78].mxu0 %vm2637_vm12, %v6857_v27 }
 0xe18   : > { %v6858_v43 = vmul.f32 %v6579_v20, %v16791_v55 }
 0xe1a   : > { %v10055_v48 = vpop.f32.mrb[80].mxu1  ;;  %10154 = vmatprep.mubr.msk.f32.mxu0 %vm2637_vm12, %v6858_v43  ;;  %v16804_v43 = vld [vmem:[#allocation107_spill] sm:$0xff] }
 0xe1b   : > { %v6861_v39 = vmul.f32 %v10055_v48, %v16792_v9  ;;  %v6589_v12 = vpop.f32.mrb[81].mxu1  ;;  %10155 = vmatmul.mubr.msk.f32.gmra.mrb[80].mxu0 %vm2637_vm12, %v6859_v8  ;;  %v16805_v9 = vld [vmem:[#allocation108_spill] sm:$0xff] }
 0xe1c   : > { %v6860_v11 = vmul.f32 %v6589_v12, %v16793_v23  ;;  %v16806_v12 = vld [vmem:[#allocation130_spill] sm:$0xff] }
 0xe1e   : > { %v10058_v36 = vpop.f32.mrb[82].mxu1  ;;  %10157 = vmatprep.mubr.msk.f32.mxu0 %vm2637_vm12, %v6860_v11  ;;  %v16807_v11 = vld [vmem:[#allocation131_spill] sm:$0xff] }
 0xe1f   : > { %v6863_v61 = vmul.f32 %v10058_v36, %v16794_v56  ;;  %v6599_v42 = vpop.f32.mrb[83].mxu1  ;;  %10158 = vmatmul.mubr.msk.f32.gmra.mrb[82].mxu0 %vm2637_vm12, %v6861_v39  ;;  %v16808_v56 = vld [vmem:[#allocation158_spill] sm:$0xff] }
 0xe20   : > { %v6862_v4 = vmul.f32 %v6599_v42, %v16795_v3  ;;  %v16809_v3 = vld [vmem:[#allocation160_spill] sm:$0xff] }
 0xe22   : > { %v10061_v1 = vpop.f32.mrb[84].mxu1  ;;  %10160 = vmatprep.mubr.msk.f32.mxu0 %vm2637_vm12, %v6862_v4 }
 0xe23   : > { %v6865_v16 = vmul.f32 %v10061_v1, %v16796_v10  ;;  %v6609_v47 = vpop.f32.mrb[85].mxu1  ;;  %10161 = vmatmul.mubr.msk.f32.gmra.mrb[84].mxu0 %vm2637_vm12, %v6863_v61  ;;  %v16810_v10 = vld [vmem:[#allocation186_spill] sm:$0xff] }
 0xe24   : > { %v6864_v57 = vmul.f32 %v6609_v47, %v16797_v63  ;;  %v16811_v63 = vld [vmem:[#allocation187_spill] sm:$0xff] }
 0xe26   : > { %v10064_v6 = vpop.f32.mrb[86].mxu1  ;;  %10163 = vmatprep.mubr.msk.f32.mxu0 %vm2637_vm12, %v6864_v57 }
 0xe27   : > { %v6867_v44 = vmul.f32 %v10064_v6, %v16798_v41  ;;  %v6619_v62 = vpop.f32.mrb[87].mxu1  ;;  %10164 = vmatmul.mubr.msk.f32.gmra.mrb[86].mxu0 %vm2637_vm12, %v6865_v16  ;;  %v16812_v41 = vld [vmem:[#allocation212_spill] sm:$0xff] }
 0xe28   : > { %v6866_v59 = vmul.f32 %v6619_v62, %v16799_v22  ;;  %v16813_v22 = vld [vmem:[#allocation65_spill] sm:$0xff] }
 0xe2a   : > { %v10067_v26 = vpop.f32.mrb[88].mxu1  ;;  %10166 = vmatprep.mubr.msk.f32.mxu0 %vm2637_vm12, %v6866_v59 }
 0xe2b   : > { %v6869_v31 = vmul.f32 %v10067_v26, %v16800_v30  ;;  %v6629_v46 = vpop.f32.mrb[89].mxu1  ;;  %10167 = vmatmul.mubr.msk.f32.gmra.mrb[88].mxu0 %vm2637_vm12, %v6867_v44  ;;  %v16814_v30 = vld [vmem:[#allocation220_spill] sm:$0xff] }
 0xe2c   : > { %v6868_v7 = vmul.f32 %v6629_v46, %v16801_v28  ;;  %v16815_v28 = vld [vmem:[#allocation221_spill] sm:$0xff] }
 0xe2e   : > { %v10070_v50 = vpop.f32.mrb[90].mxu1  ;;  %10169 = vmatprep.mubr.msk.f32.mxu0 %vm2637_vm12, %v6868_v7 }
 0xe2f   : > { %v6871_v58 = vmul.f32 %v10070_v50, %v16802_v29  ;;  %v6639_v53 = vpop.f32.mrb[91].mxu1  ;;  %10170 = vmatmul.mubr.msk.f32.gmra.mrb[90].mxu0 %vm2637_vm12, %v6869_v31  ;;  %v16816_v29 = vld [vmem:[#allocation225_spill] sm:$0xff] }
 0xe30   : > { %v6870_v13 = vmul.f32 %v6639_v53, %v16803_v34  ;;  %v16817_v34 = vld [vmem:[#allocation227_spill] sm:$0xff] }
 0xe32   : > { %v10073_v33 = vpop.f32.mrb[92].mxu1  ;;  %10172 = vmatprep.mubr.msk.f32.mxu0 %vm2637_vm12, %v6870_v13 }
 0xe33   : > { %v6873_v37 = vmul.f32 %v10073_v33, %v14970_v14  ;;  %v6649_v54 = vpop.f32.mrb[93].mxu1  ;;  %10173 = vmatmul.mubr.msk.f32.gmra.mrb[92].mxu0 %vm2637_vm12, %v6871_v58 }
 0xe34   : > { %v6872_v5 = vmul.f32 %v6649_v54, %v14976_v32 }
 0xe36   : > { %v10076_v15 = vpop.f32.mrb[94].mxu1  ;;  %10175 = vmatprep.mubr.msk.f32.mxu0 %vm2637_vm12, %v6872_v5 }
 0xe37   : > { %v6875_v24 = vmul.f32 %v10076_v15, %v15059_v21  ;;  %v6659_v27 = vpop.f32.mrb[95].mxu1  ;;  %10176 = vmatmul.mubr.msk.f32.gmra.mrb[94].mxu0 %vm2637_vm12, %v6873_v37  ;;  %v16818_v37 = vld [vmem:[#allocation241_spill] sm:$0xff]  ;;  %v16819_v15 = vld [vmem:[#allocation242_spill] sm:$0xff] }
 0xe38   : > { %v6874_v35 = vmul.f32 %v6659_v27, %v15063_v60  ;;  %v15136_v0 = vpop.f32.mrb[64].mxu0 }
 0xe39   : > { %v15138_v17 = vpop.f32.mrb[65].mxu0 }
 0xe3a   : > { %v10079_v14 = vpop.f32.mrb[96].mxu1  ;;  %10178 = vmatprep.mubr.msk.f32.mxu0 %vm2637_vm12, %v6874_v35  ;;  %v16820_v35 = vld [vmem:[#allocation244_spill] sm:$0xff] }
 0xe3b   : > { %v6877_v51 = vmul.f32 %v10079_v14, %v15070_v40  ;;  %v6669_v32 = vpop.f32.mrb[97].mxu1  ;;  %10179 = vmatmul.mubr.msk.f32.gmra.mrb[96].mxu0 %vm2637_vm12, %v6875_v24 }
 0xe3c   : > { %v6876_v38 = vmul.f32 %v6669_v32, %v15072_v19  ;;  %v16821_v32 = vld [vmem:[#allocation245_spill] sm:$0xff] }
 0xe3e   : > { %v10082_v21 = vpop.f32.mrb[98].mxu1  ;;  %10181 = vmatprep.mubr.msk.f32.mxu0 %vm2637_vm12, %v6876_v38 }
 0xe3f   : > { %v6879_v8 = vmul.f32 %v10082_v21, %v15074_v45  ;;  %v6679_v60 = vpop.f32.mrb[99].mxu1  ;;  %10182 = vmatmul.mubr.msk.f32.gmra.mrb[98].mxu0 %vm2637_vm12, %v6877_v51 }
 0xe40   : > { %v6878_v20 = vmul.f32 %v6679_v60, %v15076_v18  ;;  %v16822_v60 = vld [vmem:[#allocation161_spill] sm:$0xff] }
 0xe42   : > { %v10085_v55 = vpop.f32.mrb[100].mxu1  ;;  %10184 = vmatprep.mubr.msk.f32.mxu0 %vm2637_vm12, %v6878_v20 }
 0xe43   : > { %v6881_v40 = vmul.f32 %v10085_v55, %v16804_v43  ;;  %v6689_v48 = vpop.f32.mrb[101].mxu1  ;;  %10185 = vmatmul.mubr.msk.f32.gmra.mrb[100].mxu0 %vm2637_vm12, %v6879_v8 }
 0xe44   : > { %v6880_v19 = vmul.f32 %v6689_v48, %v16805_v9 }
 0xe46   : > { %v10088_v39 = vpop.f32.mrb[102].mxu1  ;;  %10187 = vmatprep.mubr.msk.f32.mxu0 %vm2637_vm12, %v6880_v19  ;;  %v16824_v19 = vld [vmem:[#allocation183_spill] sm:$0xff] }
 0xe47   : > { %v6883_v45 = vmul.f32 %v10088_v39, %v16806_v12  ;;  %v6699_v23 = vpop.f32.mrb[103].mxu1  ;;  %10188 = vmatmul.mubr.msk.f32.gmra.mrb[102].mxu0 %vm2637_vm12, %v6881_v40  ;;  %v16823_v40 = vld [vmem:[#allocation247_spill] sm:$0xff] }
 0xe48   : > { %v6882_v18 = vmul.f32 %v6699_v23, %v16807_v11 }
 0xe4a   : > { %v10091_v36 = vpop.f32.mrb[104].mxu1  ;;  %10190 = vmatprep.mubr.msk.f32.mxu0 %vm2637_vm12, %v6882_v18 }
 0xe4b   : > { %v6885_v61 = vmul.f32 %v10091_v36, %v16808_v56  ;;  %v6709_v42 = vpop.f32.mrb[105].mxu1  ;;  %10191 = vmatmul.mubr.msk.f32.gmra.mrb[104].mxu0 %vm2637_vm12, %v6883_v45  ;;  %v16825_v45 = vld [vmem:[#allocation176_spill] sm:$0xff] }
 0xe4c   : > { %v6884_v4 = vmul.f32 %v6709_v42, %v16809_v3 }
 0xe4e   : > { %v10094_v1 = vpop.f32.mrb[106].mxu1  ;;  %10193 = vmatprep.mubr.msk.f32.mxu0 %vm2637_vm12, %v6884_v4 }
 0xe4f   : > { %v6887_v16 = vmul.f32 %v10094_v1, %v16810_v10  ;;  %v6719_v47 = vpop.f32.mrb[107].mxu1  ;;  %10194 = vmatmul.mubr.msk.f32.gmra.mrb[106].mxu0 %vm2637_vm12, %v6885_v61 }
 0xe50   : > { %v6886_v57 = vmul.f32 %v6719_v47, %v16811_v63 }
 0xe52   : > { %v10097_v6 = vpop.f32.mrb[108].mxu1  ;;  %10196 = vmatprep.mubr.msk.f32.mxu0 %vm2637_vm12, %v6886_v57 }
 0xe53   : > { %v6889_v44 = vmul.f32 %v10097_v6, %v16812_v41  ;;  %v6729_v62 = vpop.f32.mrb[109].mxu1  ;;  %10197 = vmatmul.mubr.msk.f32.gmra.mrb[108].mxu0 %vm2637_vm12, %v6887_v16 }
 0xe54   : > { %v6888_v59 = vmul.f32 %v6729_v62, %v16813_v22  ;;  %v15222_v62 = vld [vmem:[%s15216_s24] sm:$0xff] }
 0xe56   : > { %v10100_v26 = vpop.f32.mrb[110].mxu1  ;;  %10199 = vmatprep.mubr.msk.f32.mxu0 %vm2637_vm12, %v6888_v59 }
 0xe57   : > { %v6891_v31 = vmul.f32 %v10100_v26, %v16814_v30  ;;  %v6739_v46 = vpop.f32.mrb[111].mxu1  ;;  %10200 = vmatmul.mubr.msk.f32.gmra.mrb[110].mxu0 %vm2637_vm12, %v6889_v44  ;;  %v15219_v44 = vld [vmem:[%s15216_s24 + $0x8] sm:$0xff] }
 0xe58   : > { %v6890_v7 = vmul.f32 %v6739_v46, %v16815_v28  ;;  %v15236_v46 = vld [vmem:[%s15216_s24 + $0x10] sm:$0xff] }
 0xe5a   : > { %v10103_v50 = vpop.f32.mrb[112].mxu1  ;;  %10202 = vmatprep.mubr.msk.f32.mxu0 %vm2637_vm12, %v6890_v7  ;;  %v15418_v7 = vld [vmem:[%s15216_s24 + $0xe0] sm:$0xff] }
 0xe5b   : > { %v6893_v58 = vmul.f32 %v10103_v50, %v16816_v29  ;;  %v6749_v53 = vpop.f32.mrb[113].mxu1  ;;  %10203 = vmatmul.mubr.msk.f32.gmra.mrb[112].mxu0 %vm2637_vm12, %v6891_v31  ;;  %v15233_v31 = vld [vmem:[%s15216_s24 + $0x18] sm:$0xff]  ;;  %16838 = vst [vmem:[#allocation43_spill] sm:$0xff] %v15418_v7  ;;  %v7522_v7 = vld [vmem:[%s15436_s28 + $0x8] sm:$0xff] }
 0xe5c   : > { %v6892_v13 = vmul.f32 %v6749_v53, %v16817_v34  ;;  %v15250_v53 = vld [vmem:[%s15216_s24 + $0x20] sm:$0xff] }
 0xe5e   : > { %v10106_v33 = vpop.f32.mrb[114].mxu1  ;;  %10205 = vmatprep.mubr.msk.f32.mxu0 %vm2637_vm12, %v6892_v13 }
 0xe5f   : > { %v6895_v54 = vmul.f32 %v10106_v33, %v16818_v37  ;;  %v6759_v5 = vpop.f32.mrb[115].mxu1  ;;  %10206 = vmatmul.mubr.msk.f32.gmra.mrb[114].mxu0 %vm2637_vm12, %v6893_v58  ;;  %v15247_v58 = vld [vmem:[%s15216_s24 + $0x28] sm:$0xff] }
 0xe60   : > { %v6894_v24 = vmul.f32 %v6759_v5, %v16819_v15  ;;  %v15264_v5 = vld [vmem:[%s15216_s24 + $0x30] sm:$0xff]  ;;  %v15415_v37 = vld [vmem:[%s15216_s24 + $0xe8] sm:$0xff] }
 0xe61   : > { %16837 = vst [vmem:[#allocation16_spill] sm:$0xff] %v15415_v37 }
 0xe62   : > { %v10109_v27 = vpop.f32.mrb[116].mxu1  ;;  %10208 = vmatprep.mubr.msk.f32.mxu0 %vm2637_vm12, %v6894_v24 }
 0xe63   : > { %v6897_v14 = vmul.f32 %v10109_v27, %v16820_v35  ;;  %v6769_v51 = vpop.f32.mrb[117].mxu1  ;;  %10209 = vmatmul.mubr.msk.f32.gmra.mrb[116].mxu0 %vm2637_vm12, %v6895_v54  ;;  %v15261_v54 = vld [vmem:[%s15216_s24 + $0x38] sm:$0xff] }
 0xe64   : > { %v6896_v38 = vmul.f32 %v6769_v51, %v16821_v32  ;;  %v15278_v51 = vld [vmem:[%s15216_s24 + $0x40] sm:$0xff]  ;;  %v15429_v35 = vld [vmem:[%s15216_s24 + $0xf8] sm:$0xff] }
 0xe65   : > { %16841 = vst [vmem:[#allocation22_spill] sm:$0xff] %v15429_v35  ;;  %v7526_v35 = vld [vmem:[%s15436_s28 + $0x28] sm:$0xff] }
 0xe66   : > { %v10029_v21 = vpop.f32.mrb[66].mxu0  ;;  %v10112_v8 = vpop.f32.mrb[118].mxu1  ;;  %10211 = vmatprep.mubr.msk.f32.mxu0 %vm2637_vm12, %v6896_v38 }
 0xe67   : > { %v6899_v20 = vmul.f32 %v10112_v8, %v16822_v60  ;;  %v6276_v55 = vpop.f32.mrb[67].mxu0  ;;  %v6779_v43 = vpop.f32.mrb[119].mxu1  ;;  %10212 = vmatmul.mubr.msk.f32.gmra.mrb[118].mxu0 %vm2637_vm12, %v6897_v14  ;;  %v15275_v14 = vld [vmem:[%s15216_s24 + $0x48] sm:$0xff]  ;;  %v15289_v60 = vld [vmem:[%s15216_s24 + $0x58] sm:$0xff] }
 0xe68   : > { %v6898_v48 = vmul.f32 %v6779_v43, %v16823_v40  ;;  %v15390_v43 = vld [vmem:[%s15216_s24 + $0xc0] sm:$0xff]  ;;  %v15401_v8 = vld [vmem:[%s15216_s24 + $0xd8] sm:$0xff] }
 0xe69   : > { %16830 = vst [vmem:[#allocation47_spill] sm:$0xff] %v15390_v43  ;;  %16833 = vst [vmem:[#allocation13_spill] sm:$0xff] %v15401_v8  ;;  %v7523_v43 = vld [vmem:[%s15436_s28 + $0x10] sm:$0xff] }
 0xe6a   : > { %v10115_v9 = vpop.f32.mrb[120].mxu1  ;;  %10214 = vmatprep.mubr.msk.f32.mxu0 %vm2637_vm12, %v6898_v48  ;;  %v15439_v48 = vld [vmem:[%s15216_s24 + $0xf0] sm:$0xff] }
 0xe6b   : > { %v6901_v39 = vmul.f32 %v10115_v9, %v16824_v19  ;;  %v6789_v12 = vpop.f32.mrb[121].mxu1  ;;  %10215 = vmatmul.mubr.msk.f32.gmra.mrb[120].mxu0 %vm2637_vm12, %v6899_v20  ;;  %v15292_v20 = vld [vmem:[%s15216_s24 + $0x50] sm:$0xff]  ;;  %v15303_v9 = vld [vmem:[%s15216_s24 + $0x68] sm:$0xff]  ;;  %v15306_v19 = vld [vmem:[%s15216_s24 + $0x60] sm:$0xff]  ;;  %16843 = vst [vmem:[#allocation26_spill] sm:$0xff] %v15439_v48 }
 0xe6c   : > { %v6900_v23 = vmul.f32 %v6789_v12, %v16825_v45 }
 0xe6e   : > { %v10118_v11 = vpop.f32.mrb[122].mxu1  ;;  %10217 = vmatprep.mubr.msk.f32.mxu0 %vm2637_vm12, %v6900_v23  ;;  %v15387_v23 = vld [vmem:[%s15216_s24 + $0xc8] sm:$0xff] }
 0xe6f   : > { %v6903_v18 = vmul.f32 %v10118_v11, %v14751_v2  ;;  %v6799_v36 = vpop.f32.mrb[123].mxu1  ;;  %10218 = vmatmul.mubr.msk.f32.gmra.mrb[122].mxu0 %vm2637_vm12, %v6901_v39  ;;  %v15317_v11 = vld [vmem:[%s15216_s24 + $0x78] sm:$0xff]  ;;  %16829 = vst [vmem:[#allocation52_spill] sm:$0xff] %v15387_v23 }
 0xe70   : > { %v6902_v56 = vmul.f32 %v6799_v36, %v14754_v25  ;;  %v7524_v23 = vld [vmem:[%s15436_s28 + $0x18] sm:$0xff] }
 0xe72   : > { %v10121_v61 = vpop.f32.mrb[124].mxu1  ;;  %10220 = vmatprep.mubr.msk.f32.mxu0 %vm2637_vm12, %v6902_v56  ;;  %v15376_v56 = vld [vmem:[%s15216_s24 + $0xb0] sm:$0xff] }
 0xe73   : > { %v6905_v42 = vmul.f32 %v10121_v61, %v15084_v52  ;;  %v6809_v3 = vpop.f32.mrb[125].mxu1  ;;  %10221 = vmatmul.mubr.msk.f32.gmra.mrb[124].mxu0 %vm2637_vm12, %v6903_v18  ;;  %v15320_v18 = vld [vmem:[%s15216_s24 + $0x70] sm:$0xff] }
 0xe74   : > { %v6904_v4 = vmul.f32 %v6809_v3, %v15088_v49  ;;  %v15331_v3 = vld [vmem:[%s15216_s24 + $0x88] sm:$0xff] }
 0xe76   : > { %v10124_v1 = vpop.f32.mrb[126].mxu1  ;;  %10223 = vmatprep.mubr.msk.f32.mxu0 %vm2637_vm12, %v6904_v4  ;;  %v15334_v4 = vld [vmem:[%s15216_s24 + $0x80] sm:$0xff] }
 0xe77   : > { %v6907_v2 = vmul.f32 %v10124_v1, %v15136_v0  ;;  %v6819_v10 = vpop.f32.mrb[127].mxu1  ;;  %10224 = vmatmul.mubr.msk.f32.gmra.mrb[126].mxu0 %vm2637_vm12, %v6905_v42 }
 0xe78   : > { %v6906_v25 = vmul.f32 %v6819_v10, %v15138_v17 }
 0xe7a   : > { %v10127_v16 = vpop.f32.mrb[128].mxu1  ;;  %10226 = vmatprep.mubr.msk.f32.mxu0 %vm2637_vm12, %v6906_v25  ;;  %v15373_v25 = vld [vmem:[%s15216_s24 + $0xb8] sm:$0xff] }
 0xe7b   : > { %v6909_v52 = vmul.f32 %v10127_v16, %v10029_v21  ;;  %v6829_v47 = vpop.f32.mrb[129].mxu1  ;;  %10227 = vmatmul.mubr.msk.f32.gmra.mrb[128].mxu0 %vm2637_vm12, %v6907_v2  ;;  %v15345_v16 = vld [vmem:[%s15216_s24 + $0x98] sm:$0xff]  ;;  %16827 = vst [vmem:[#allocation17_spill] sm:$0xff] %v15373_v25 }
 0xe7c   : > { %v6908_v49 = vmul.f32 %v6829_v47, %v6276_v55 }
 0xe7e   : > { %10229 = vmatprep.mubr.msk.f32.mxu0 %vm2637_vm12, %v6908_v49 }
 0xe7f   : > { %10230 = vmatmul.mubr.msk.f32.gmra.mrb[130].mxu0 %vm2637_vm12, %v6909_v52  ;;  %v15348_v52 = vld [vmem:[%s15216_s24 + $0x90] sm:$0xff] }
 0xe8d   : > { %v10130_v0 = vpop.f32.mrb[130].mxu1 }
 0xe8e   : > { %v6839_v63 = vpop.f32.mrb[131].mxu1 }
 0xe94   : > { %v10032_v57 = vpop.f32.mrb[68].mxu0 }
 0xe95   : > { %v6911_v6 = vmul.f32 %v10130_v0, %v10032_v57  ;;  %v6286_v41 = vpop.f32.mrb[69].mxu0  ;;  %v15359_v57 = vld [vmem:[%s15216_s24 + $0xa8] sm:$0xff] }
 0xe96   : > { %v6910_v17 = vmul.f32 %v6839_v63, %v6286_v41 }
 0xe98   : > { %10232 = vmatprep.mubr.msk.f32.mxu0 %vm2637_vm12, %v6910_v17  ;;  %v15404_v17 = vld [vmem:[%s15216_s24 + $0xd0] sm:$0xff] }
 0xe99   : > { %10233 = vmatmul.mubr.msk.f32.gmra.mrb[132].mxu0 %vm2637_vm12, %v6911_v6  ;;  %v15362_v6 = vld [vmem:[%s15216_s24 + $0xa0] sm:$0xff]  ;;  %16834 = vst [vmem:[#allocation31_spill] sm:$0xff] %v15404_v17 }
 0xeda   : > { %v15224_v22 = vpop.f32.mrb[70].mxu0 }
 0xedb   : > { %v15228_v26 = vpop.f32.mrb[71].mxu0 }
 0xede   : > { %v15238_v28 = vpop.f32.mrb[72].mxu0 }
 0xedf   : > { %v15242_v50 = vpop.f32.mrb[73].mxu0 }
 0xee2   : > { %v15252_v34 = vpop.f32.mrb[74].mxu0 }
 0xee3   : > { %v15256_v33 = vpop.f32.mrb[75].mxu0 }
 0xee6   : > { %v15266_v15 = vpop.f32.mrb[76].mxu0 }
 0xee7   : > { %v15270_v27 = vpop.f32.mrb[77].mxu0 }
 0xeea   : > { %v15280_v32 = vpop.f32.mrb[78].mxu0 }
 0xeeb   : > { %v15284_v21 = vpop.f32.mrb[79].mxu0 }
 0xeee   : > { %v15294_v55 = vpop.f32.mrb[80].mxu0 }
 0xeef   : > { %v15298_v40 = vpop.f32.mrb[81].mxu0 }
 0xef2   : > { %v15308_v39 = vpop.f32.mrb[82].mxu0 }
 0xef3   : > { %v15312_v45 = vpop.f32.mrb[83].mxu0 }
 0xef6   : > { %v15322_v36 = vpop.f32.mrb[84].mxu0 }
 0xef7   : > { %v15326_v61 = vpop.f32.mrb[85].mxu0 }
 0xefa   : > { %v15336_v1 = vpop.f32.mrb[86].mxu0 }
 0xefb   : > { %v15340_v10 = vpop.f32.mrb[87].mxu0 }
 0xefe   : > { %v15350_v47 = vpop.f32.mrb[88].mxu0 }
 0xeff   : > { %v15354_v0 = vpop.f32.mrb[89].mxu0 }
 0xf02   : > { %v15364_v41 = vpop.f32.mrb[90].mxu0 }
 0xf03   : > { %v15368_v2 = vpop.f32.mrb[91].mxu0 }
 0xf06   : > { %v15378_v63 = vpop.f32.mrb[92].mxu0 }
 0xf07   : > { %16828 = vst [vmem:[#allocation19_spill] sm:$0xff] %v15378_v63  ;;  %v15382_v12 = vpop.f32.mrb[93].mxu0 }
 0xf0a   : > { %v15392_v49 = vpop.f32.mrb[94].mxu0 }
 0xf0b   : > { %16831 = vst [vmem:[#allocation20_spill] sm:$0xff] %v15392_v49  ;;  %v15396_v38 = vpop.f32.mrb[95].mxu0 }
 0xf0c   : > { %16832 = vst [vmem:[#allocation24_spill] sm:$0xff] %v15396_v38 }
 0xf0e   : > { %v15406_v24 = vpop.f32.mrb[96].mxu0 }
 0xf0f   : > { %16835 = vst [vmem:[#allocation35_spill] sm:$0xff] %v15406_v24  ;;  %v15410_v13 = vpop.f32.mrb[97].mxu0 }
 0xf10   : > { %16836 = vst [vmem:[#allocation104_spill] sm:$0xff] %v15410_v13 }
 0xf12   : > { %v15420_v29 = vpop.f32.mrb[98].mxu0 }
 0xf13   : > { %16839 = vst [vmem:[#allocation85_spill] sm:$0xff] %v15420_v29  ;;  %v15424_v59 = vpop.f32.mrb[99].mxu0 }
 0xf14   : > { %16840 = vst [vmem:[#allocation44_spill] sm:$0xff] %v15424_v59  ;;  %v7521_v59 = vld [vmem:[%s15436_s28] sm:$0xff] }
 0xf16   : > { %v15441_v42 = vpop.f32.mrb[100].mxu0 }
 0xf17   : > { %16844 = vst [vmem:[#allocation37_spill] sm:$0xff] %v15441_v42  ;;  %v15445_v30 = vpop.f32.mrb[101].mxu0 }
 0xf1a   : > { %v10189_v8 = vpop.f32.mrb[102].mxu0 }
 0xf1b   : > { %v7586_v24 = vsub.f32 %v10189_v8, %v7522_v7  ;;  %v7330_v17 = vpop.f32.mrb[103].mxu0  ;;  %v7525_v8 = vld [vmem:[%s15436_s28 + $0x20] sm:$0xff] }
 0xf1c   : > { %v7585_v13 = vsub.f32 %v7330_v17, %v7521_v59  ;;  %v7527_v17 = vld [vmem:[%s15436_s28 + $0x30] sm:$0xff] }
 0xf1d   : > { %v7650_v49 = vand.u32 2147483647, %v7586_v24 }
 0xf1e   : > { %v7649_v38 = vand.u32 2147483647, %v7585_v13  ;;  %v10192_v25 = vpop.f32.mrb[104].mxu0 }
 0xf1f   : > { %v7588_v63 = vsub.f32 %v10192_v25, %v7524_v23  ;;  %7715 = vrot.lane.b32.xlu1 %v7650_v49, %s10962_s27  ;;  %v7340_v37 = vpop.f32.mrb[105].mxu0  ;;  %v7528_v25 = vld [vmem:[%s15436_s28 + $0x38] sm:$0xff] }
 0xf20   : > { %v7587_v29 = vsub.f32 %v7340_v37, %v7523_v43  ;;  %7713 = vrot.lane.b32.xlu0 %v7649_v38, %s10962_s27 }
 0xf21   : > { %v7652_v7 = vand.u32 2147483647, %v7588_v63 }
 0xf22   : > { %v7651_v42 = vand.u32 2147483647, %v7587_v29  ;;  %v10195_v59 = vpop.f32.mrb[106].mxu0 }
 0xf23   : > { %v7590_v24 = vsub.f32 %v10195_v59, %v7526_v35  ;;  %7719 = vrot.lane.b32.xlu1 %v7652_v7, %s10962_s27  ;;  %v7350_v13 = vpop.f32.mrb[107].mxu0  ;;  %v7530_v35 = vld [vmem:[%s15436_s28 + $0x48] sm:$0xff]  ;;  %v7529_v59 = vld [vmem:[%s15436_s28 + $0x40] sm:$0xff] }
 0xf24   : > { %v7589_v23 = vsub.f32 %v7350_v13, %v7525_v8  ;;  %7717 = vrot.lane.b32.xlu0 %v7651_v42, %s10962_s27 }
 0xf25   : > { %v7654_v49 = vand.u32 2147483647, %v7590_v24 }
 0xf26   : > { %v7653_v37 = vand.u32 2147483647, %v7589_v23  ;;  %v10198_v43 = vpop.f32.mrb[108].mxu0 }
 0xf27   : > { %v7592_v38 = vsub.f32 %v10198_v43, %v7528_v25  ;;  %7723 = vrot.lane.b32.xlu1 %v7654_v49, %s10962_s27  ;;  %v7360_v29 = vpop.f32.mrb[109].mxu0  ;;  %v7532_v25 = vld [vmem:[%s15436_s28 + $0x58] sm:$0xff]  ;;  %v7531_v43 = vld [vmem:[%s15436_s28 + $0x50] sm:$0xff] }
 0xf28   : > { %v7591_v63 = vsub.f32 %v7360_v29, %v7527_v17  ;;  %7721 = vrot.lane.b32.xlu0 %v7653_v37, %s10962_s27 }
 0xf29   : > { %v7656_v7 = vand.u32 2147483647, %v7592_v38 }
 0xf2a   : > { %v7655_v8 = vand.u32 2147483647, %v7591_v63  ;;  %v10201_v13 = vpop.f32.mrb[110].mxu0 }
 0xf2b   : > { %v7594_v42 = vsub.f32 %v10201_v13, %v7530_v35  ;;  %7727 = vrot.lane.b32.xlu1 %v7656_v7, %s10962_s27  ;;  %v7370_v24 = vpop.f32.mrb[111].mxu0  ;;  %v7534_v35 = vld [vmem:[%s15436_s28 + $0x68] sm:$0xff]  ;;  %v7533_v13 = vld [vmem:[%s15436_s28 + $0x60] sm:$0xff] }
 0xf2c   : > { %v7593_v23 = vsub.f32 %v7370_v24, %v7529_v59  ;;  %7725 = vrot.lane.b32.xlu0 %v7655_v8, %s10962_s27 }
 0xf2d   : > { %v7658_v49 = vand.u32 2147483647, %v7594_v42 }
 0xf2e   : > { %v7657_v17 = vand.u32 2147483647, %v7593_v23  ;;  %v10204_v29 = vpop.f32.mrb[112].mxu0 }
 0xf2f   : > { %v7596_v37 = vsub.f32 %v10204_v29, %v7532_v25  ;;  %7731 = vrot.lane.b32.xlu1 %v7658_v49, %s10962_s27  ;;  %v7380_v38 = vpop.f32.mrb[113].mxu0  ;;  %v7536_v25 = vld [vmem:[%s15436_s28 + $0x78] sm:$0xff]  ;;  %v7535_v29 = vld [vmem:[%s15436_s28 + $0x70] sm:$0xff] }
 0xf30   : > { %v7595_v63 = vsub.f32 %v7380_v38, %v7531_v43  ;;  %7729 = vrot.lane.b32.xlu0 %v7657_v17, %s10962_s27 }
 0xf31   : > { %v7660_v7 = vand.u32 2147483647, %v7596_v37 }
 0xf32   : > { %v7659_v59 = vand.u32 2147483647, %v7595_v63  ;;  %v10207_v24 = vpop.f32.mrb[114].mxu0 }
 0xf33   : > { %v7598_v8 = vsub.f32 %v10207_v24, %v7534_v35  ;;  %7735 = vrot.lane.b32.xlu1 %v7660_v7, %s10962_s27  ;;  %v7390_v42 = vpop.f32.mrb[115].mxu0  ;;  %v7538_v35 = vld [vmem:[%s15436_s28 + $0x88] sm:$0xff]  ;;  %v7537_v24 = vld [vmem:[%s15436_s28 + $0x80] sm:$0xff] }
 0xf34   : > { %v7597_v23 = vsub.f32 %v7390_v42, %v7533_v13  ;;  %7733 = vrot.lane.b32.xlu0 %v7659_v59, %s10962_s27 }
 0xf35   : > { %v7662_v49 = vand.u32 2147483647, %v7598_v8 }
 0xf36   : > { %v7661_v43 = vand.u32 2147483647, %v7597_v23  ;;  %v10210_v38 = vpop.f32.mrb[116].mxu0 }
 0xf37   : > { %v7600_v17 = vsub.f32 %v10210_v38, %v7536_v25  ;;  %7739 = vrot.lane.b32.xlu1 %v7662_v49, %s10962_s27  ;;  %v7400_v37 = vpop.f32.mrb[117].mxu0  ;;  %v7540_v25 = vld [vmem:[%s15436_s28 + $0x98] sm:$0xff]  ;;  %v7539_v38 = vld [vmem:[%s15436_s28 + $0x90] sm:$0xff] }
 0xf38   : > { %v7599_v63 = vsub.f32 %v7400_v37, %v7535_v29  ;;  %7737 = vrot.lane.b32.xlu0 %v7661_v43, %s10962_s27 }
 0xf39   : > { %v7664_v7 = vand.u32 2147483647, %v7600_v17 }
 0xf3a   : > { %v7663_v13 = vand.u32 2147483647, %v7599_v63  ;;  %v10213_v42 = vpop.f32.mrb[118].mxu0 }
 0xf3b   : > { %v7602_v59 = vsub.f32 %v10213_v42, %v7538_v35  ;;  %7743 = vrot.lane.b32.xlu1 %v7664_v7, %s10962_s27  ;;  %v7410_v8 = vpop.f32.mrb[119].mxu0  ;;  %v7542_v35 = vld [vmem:[%s15436_s28 + $0xa8] sm:$0xff]  ;;  %v7541_v42 = vld [vmem:[%s15436_s28 + $0xa0] sm:$0xff] }
 0xf3c   : > { %v7601_v23 = vsub.f32 %v7410_v8, %v7537_v24  ;;  %7741 = vrot.lane.b32.xlu0 %v7663_v13, %s10962_s27 }
 0xf3d   : > { %v7666_v49 = vand.u32 2147483647, %v7602_v59 }
 0xf3e   : > { %v7665_v29 = vand.u32 2147483647, %v7601_v23  ;;  %v10216_v37 = vpop.f32.mrb[120].mxu0 }
 0xf3f   : > { %v7604_v43 = vsub.f32 %v10216_v37, %v7540_v25  ;;  %7747 = vrot.lane.b32.xlu1 %v7666_v49, %s10962_s27  ;;  %v7420_v17 = vpop.f32.mrb[121].mxu0  ;;  %v7544_v25 = vld [vmem:[%s15436_s28 + $0xb8] sm:$0xff]  ;;  %v7543_v37 = vld [vmem:[%s15436_s28 + $0xb0] sm:$0xff] }
 0xf40   : > { %v7603_v63 = vsub.f32 %v7420_v17, %v7539_v38  ;;  %7745 = vrot.lane.b32.xlu0 %v7665_v29, %s10962_s27 }
 0xf41   : > { %v7668_v7 = vand.u32 2147483647, %v7604_v43 }
 0xf42   : > { %v7667_v24 = vand.u32 2147483647, %v7603_v63  ;;  %v10219_v8 = vpop.f32.mrb[122].mxu0 }
 0xf43   : > { %v7606_v13 = vsub.f32 %v10219_v8, %v7542_v35  ;;  %7751 = vrot.lane.b32.xlu1 %v7668_v7, %s10962_s27  ;;  %v7430_v59 = vpop.f32.mrb[123].mxu0  ;;  %v7546_v35 = vld [vmem:[%s15436_s28 + $0xc8] sm:$0xff]  ;;  %v7545_v8 = vld [vmem:[%s15436_s28 + $0xc0] sm:$0xff] }
 0xf44   : > { %v7605_v23 = vsub.f32 %v7430_v59, %v7541_v42  ;;  %7749 = vrot.lane.b32.xlu0 %v7667_v24, %s10962_s27 }
 0xf45   : > { %v7670_v49 = vand.u32 2147483647, %v7606_v13 }
 0xf46   : > { %v7669_v38 = vand.u32 2147483647, %v7605_v23  ;;  %v10222_v17 = vpop.f32.mrb[124].mxu0 }
 0xf47   : > { %v7608_v29 = vsub.f32 %v10222_v17, %v7544_v25  ;;  %7755 = vrot.lane.b32.xlu1 %v7670_v49, %s10962_s27  ;;  %v7440_v43 = vpop.f32.mrb[125].mxu0  ;;  %v7548_v25 = vld [vmem:[%s15436_s28 + $0xd8] sm:$0xff]  ;;  %v7547_v17 = vld [vmem:[%s15436_s28 + $0xd0] sm:$0xff] }
 0xf48   : > { %v7607_v63 = vsub.f32 %v7440_v43, %v7543_v37  ;;  %7753 = vrot.lane.b32.xlu0 %v7669_v38, %s10962_s27 }
 0xf49   : > { %v7672_v7 = vand.u32 2147483647, %v7608_v29 }
 0xf4a   : > { %v7671_v42 = vand.u32 2147483647, %v7607_v63  ;;  %v10225_v59 = vpop.f32.mrb[126].mxu0 }
 0xf4b   : > { %v7610_v24 = vsub.f32 %v10225_v59, %v7546_v35  ;;  %7759 = vrot.lane.b32.xlu1 %v7672_v7, %s10962_s27  ;;  %v7450_v13 = vpop.f32.mrb[127].mxu0  ;;  %v7550_v35 = vld [vmem:[%s15436_s28 + $0xe8] sm:$0xff]  ;;  %v7549_v59 = vld [vmem:[%s15436_s28 + $0xe0] sm:$0xff] }
 0xf4c   : > { %v7609_v23 = vsub.f32 %v7450_v13, %v7545_v8  ;;  %7757 = vrot.lane.b32.xlu0 %v7671_v42, %s10962_s27 }
 0xf4d   : > { %v7674_v49 = vand.u32 2147483647, %v7610_v24 }
 0xf4e   : > { %v7673_v37 = vand.u32 2147483647, %v7609_v23  ;;  %v10228_v43 = vpop.f32.mrb[128].mxu0 }
 0xf4f   : > { %v7612_v38 = vsub.f32 %v10228_v43, %v7548_v25  ;;  %7763 = vrot.lane.b32.xlu1 %v7674_v49, %s10962_s27  ;;  %v7460_v29 = vpop.f32.mrb[129].mxu0 }
 0xf50   : > { %v7611_v63 = vsub.f32 %v7460_v29, %v7547_v17  ;;  %7761 = vrot.lane.b32.xlu0 %v7673_v37, %s10962_s27  ;;  %v7552_v17 = vld [vmem:[%s15436_s28 + $0xf8] sm:$0xff]  ;;  %v7551_v37 = vld [vmem:[%s15436_s28 + $0xf0] sm:$0xff] }
 0xf51   : > { %v7676_v7 = vand.u32 2147483647, %v7612_v38 }
 0xf52   : > { %v7675_v8 = vand.u32 2147483647, %v7611_v63  ;;  %v10231_v13 = vpop.f32.mrb[130].mxu0 }
 0xf53   : > { %v7614_v42 = vsub.f32 %v10231_v13, %v7550_v35  ;;  %7767 = vrot.lane.b32.xlu1 %v7676_v7, %s10962_s27  ;;  %v7470_v24 = vpop.f32.mrb[131].mxu0  ;;  %v16845_v7 = vsub.f32 %v15228_v26, %v15222_v62  ;;  %v16846_v13 = vsub.f32 %v15224_v22, %v15219_v44  ;;  %v16848_v26 = vsub.f32 %v15238_v28, %v15233_v31 }
 0xf54   : > { %v7613_v23 = vsub.f32 %v7470_v24, %v7549_v59  ;;  %7765 = vrot.lane.b32.xlu0 %v7675_v8, %s10962_s27 }
 0xf55   : > { %v7678_v25 = vand.u32 2147483647, %v7614_v42  ;;  %v7617_v59 = vand.u32 2147483647, %v16845_v7  ;;  %v7618_v42 = vand.u32 2147483647, %v16846_v13  ;;  %v16853_v13 = vsub.f32 %v15284_v21, %v15278_v51 }
 0xf56   : > { %v7677_v49 = vand.u32 2147483647, %v7613_v23  ;;  %v16856_v21 = vsub.f32 %v15294_v55, %v15289_v60 }
 0xf57   : > { %7771 = vrot.lane.b32.xlu1 %v7678_v25, %s10962_s27 }
 0xf58   : > { %7769 = vrot.lane.b32.xlu0 %v7677_v49, %s10962_s27 }
 0xf6c   : > { %v10234_v43 = vpop.f32.mrb[132].mxu0 }
 0xf6d   : > { %v7616_v38 = vsub.f32 %v10234_v43, %v7552_v17  ;;  %v7480_v29 = vpop.f32.mrb[133].mxu0  ;;  %v7620_v17 = vand.u32 2147483647, %v16848_v26  ;;  %v16849_v43 = vsub.f32 %v15256_v33, %v15250_v53  ;;  %v16852_v33 = vsub.f32 %v15266_v15, %v15261_v54 }
 0xf6e   : > { %v7615_v63 = vsub.f32 %v7480_v29, %v7551_v37  ;;  %v16857_v26 = vsub.f32 %v15312_v45, %v15306_v19  ;;  %v16860_v45 = vsub.f32 %v15322_v36, %v15317_v11 }
 0xf6f   : > { %v7680_v48 = vand.u32 2147483647, %v7616_v38  ;;  %v7621_v38 = vand.u32 2147483647, %v16849_v43 }
 0xf70   : > { %v7679_v35 = vand.u32 2147483647, %v7615_v63 }
 0xf71   : > { %7775 = vrot.lane.b32.xlu1 %v7680_v48, %s10962_s27  ;;  %v16847_v48 = vsub.f32 %v15242_v50, %v15236_v46  ;;  %v16850_v50 = vsub.f32 %v15252_v34, %v15247_v58 }
 0xf72   : > { %7773 = vrot.lane.b32.xlu0 %v7679_v35, %s10962_s27  ;;  %v16851_v35 = vsub.f32 %v15270_v27, %v15264_v5  ;;  %v16854_v27 = vsub.f32 %v15280_v32, %v15275_v14 }
 0xf73   : > { %v7619_v49 = vand.u32 2147483647, %v16847_v48  ;;  %v7622_v29 = vand.u32 2147483647, %v16850_v50  ;;  %v16861_v50 = vsub.f32 %v15340_v10, %v15334_v4  ;;  %v16864_v10 = vsub.f32 %v15350_v47, %v15345_v16 }
 0xf74   : > { %v7623_v7 = vand.u32 2147483647, %v16851_v35 }
 0xf91   : > { %v7716_v8 = vpop.permute.xlu1 %7715 }
 0xf92   : > { %v7714_v24 = vpop.permute.xlu0 %7713  ;;  %v7811_v25 = vsel %vm7809_vm5, %v7618_v42, %v7716_v8  ;;  %v7625_v42 = vand.u32 2147483647, %v16853_v13 }
 0xf93   : > { %v7810_v23 = vsel %vm7809_vm5, %v7617_v59, %v7714_v24  ;;  %v7624_v59 = vand.u32 2147483647, %v16852_v33  ;;  %v7626_v24 = vand.u32 2147483647, %v16854_v27  ;;  %v16865_v33 = vsub.f32 %v15368_v2, %v15362_v6  ;;  %v16868_v6 = vld [vmem:[#allocation19_spill] sm:$0xff] }
 0xf94   : > { %10237 = vmatprep.mubr.msk.f32.mxu1 %vm866_vm6, %v7810_v23 }
 0xf95   : > { %10238 = vmatmul.mubr.msk.f32.vlgmr.msra.gmra.mrb[132].mxu1 %vm866_vm6, %v7811_v25  ;;  %v7720_v62 = vpop.permute.xlu1 %7719  ;;  %v16855_v25 = vsub.f32 %v15298_v40, %v15292_v20  ;;  %v16858_v40 = vsub.f32 %v15308_v39, %v15303_v9 }
 0xf96   : > { %v7718_v44 = vpop.permute.xlu0 %7717  ;;  %v7813_v37 = vsel %vm7809_vm5, %v7620_v17, %v7720_v62  ;;  %v7629_v17 = vand.u32 2147483647, %v16857_v26  ;;  %v16878_v26 = vld [vmem:[#allocation31_spill] sm:$0xff] }
 0xf97   : > { %v7812_v22 = vsel %vm7809_vm5, %v7619_v49, %v7718_v44  ;;  %v7627_v48 = vand.u32 2147483647, %v16855_v25  ;;  %v7628_v49 = vand.u32 2147483647, %v16856_v21  ;;  %v7630_v44 = vand.u32 2147483647, %v16858_v40 }
 0xf98   : > { %10240 = vmatprep.mubr.msk.f32.mxu1 %vm866_vm6, %v7812_v22 }
 0xf99   : > { %10241 = vmatmul.mubr.msk.f32.gmra.mrb[134].mxu1 %vm866_vm6, %v7813_v37  ;;  %v7724_v46 = vpop.permute.xlu1 %7723  ;;  %v16859_v37 = vsub.f32 %v15326_v61, %v15320_v18  ;;  %v16862_v61 = vsub.f32 %v15336_v1, %v15331_v3 }
 0xf9a   : > { %v7722_v31 = vpop.permute.xlu0 %7721  ;;  %v7815_v63 = vsel %vm7809_vm5, %v7622_v29, %v7724_v46  ;;  %v7633_v29 = vand.u32 2147483647, %v16861_v50  ;;  %v16886_v50 = vld [vmem:[#allocation85_spill] sm:$0xff] }
 0xf9b   : > { %v7814_v28 = vsel %vm7809_vm5, %v7621_v38, %v7722_v31  ;;  %v7631_v43 = vand.u32 2147483647, %v16859_v37  ;;  %v7632_v38 = vand.u32 2147483647, %v16860_v45  ;;  %v7634_v31 = vand.u32 2147483647, %v16862_v61 }
 0xf9c   : > { %10243 = vmatprep.mubr.msk.f32.mxu1 %vm866_vm6, %v7814_v28  ;;  %v16883_v45 = vld [vmem:[#allocation44_spill] sm:$0xff] }
 0xf9d   : > { %10244 = vmatmul.mubr.msk.f32.gmra.mrb[136].mxu1 %vm866_vm6, %v7815_v63  ;;  %v7728_v53 = vpop.permute.xlu1 %7727  ;;  %v16863_v63 = vsub.f32 %v15354_v0, %v15348_v52  ;;  %v16866_v0 = vsub.f32 %v15364_v41, %v15359_v57 }
 0xf9e   : > { %v7726_v58 = vpop.permute.xlu0 %7725  ;;  %v7817_v8 = vsel %vm7809_vm5, %v7624_v59, %v7728_v53  ;;  %v7637_v59 = vand.u32 2147483647, %v16865_v33 }
 0xf9f   : > { %v7816_v34 = vsel %vm7809_vm5, %v7623_v7, %v7726_v58  ;;  %v7635_v35 = vand.u32 2147483647, %v16863_v63  ;;  %v7636_v7 = vand.u32 2147483647, %v16864_v10  ;;  %v7638_v58 = vand.u32 2147483647, %v16866_v0 }
 0xfa0   : > { %10246 = vmatprep.mubr.msk.f32.mxu1 %vm866_vm6, %v7816_v34  ;;  %v16891_v10 = vld [vmem:[#allocation37_spill] sm:$0xff] }
 0xfa1   : > { %10247 = vmatmul.mubr.msk.f32.gmra.mrb[138].mxu1 %vm866_vm6, %v7817_v8  ;;  %v7732_v5 = vpop.permute.xlu1 %7731  ;;  %v16867_v8 = vsub.f32 %v15382_v12, %v15376_v56  ;;  %v16874_v56 = vld [vmem:[#allocation20_spill] sm:$0xff]  ;;  %v8350_v0 = vld [vmem:[%s16005_s18 + $0x88] sm:$0xff] }
 0xfa2   : > { %v7730_v54 = vpop.permute.xlu0 %7729  ;;  %v7819_v23 = vsel %vm7809_vm5, %v7626_v24, %v7732_v5 }
 0xfa3   : > { %v7818_v15 = vsel %vm7809_vm5, %v7625_v42, %v7730_v54  ;;  %v7639_v13 = vand.u32 2147483647, %v16867_v8  ;;  %v16869_v42 = vld [vmem:[#allocation17_spill] sm:$0xff]  ;;  %v16871_v54 = vld [vmem:[#allocation24_spill] sm:$0xff]  ;;  %v8352_v8 = vld [vmem:[%s16005_s18 + $0x98] sm:$0xff] }
 0xfa4   : > { %10249 = vmatprep.mubr.msk.f32.mxu1 %vm866_vm6, %v7818_v15  ;;  %v16870_v5 = vsub.f32 %v16868_v6, %v16869_v42  ;;  %v16872_v15 = vld [vmem:[#allocation47_spill] sm:$0xff]  ;;  %v8335_v6 = vld [vmem:[%s16005_s18 + $0x10] sm:$0xff] }
 0xfa5   : > { %10250 = vmatmul.mubr.msk.f32.gmra.mrb[140].mxu1 %vm866_vm6, %v7819_v23  ;;  %v7736_v51 = vpop.permute.xlu1 %7735  ;;  %v16873_v23 = vsub.f32 %v16871_v54, %v16872_v15  ;;  %v8336_v42 = vld [vmem:[%s16005_s18 + $0x18] sm:$0xff]  ;;  %v8338_v54 = vld [vmem:[%s16005_s18 + $0x28] sm:$0xff] }
 0xfa6   : > { %v7734_v14 = vpop.permute.xlu0 %7733  ;;  %v7821_v62 = vsel %vm7809_vm5, %v7628_v49, %v7736_v51  ;;  %v7640_v27 = vand.u32 2147483647, %v16870_v5  ;;  %v8353_v5 = vld [vmem:[%s16005_s18 + $0xa0] sm:$0xff] }
 0xfa7   : > { %v7820_v32 = vsel %vm7809_vm5, %v7627_v48, %v7734_v14  ;;  %v7641_v25 = vand.u32 2147483647, %v16873_v23  ;;  %v16875_v48 = vld [vmem:[#allocation52_spill] sm:$0xff] }
 0xfa8   : > { %10252 = vmatprep.mubr.msk.f32.mxu1 %vm866_vm6, %v7820_v32  ;;  %v16876_v51 = vsub.f32 %v16874_v56, %v16875_v48  ;;  %v9222_v23 = vld [vmem:[%s16004_s17] sm:$0xff]   ;;  %v9300_v56 = vld [vmem:[%s16004_s17 + $0x8] sm:$0xff]  }
 0xfa9   : > { %10253 = vmatmul.mubr.msk.f32.gmra.mrb[142].mxu1 %vm866_vm6, %v7821_v62  ;;  %v7740_v20 = vpop.permute.xlu1 %7739  ;;  %v16877_v62 = vld [vmem:[#allocation104_spill] sm:$0xff] }
 0xfaa   : > { %v7738_v60 = vpop.permute.xlu0 %7737  ;;  %v7823_v22 = vsel %vm7809_vm5, %v7630_v44, %v7740_v20  ;;  %v7642_v21 = vand.u32 2147483647, %v16876_v51  ;;  %v16880_v44 = vld [vmem:[#allocation35_spill] sm:$0xff] }
 0xfab   : > { %v7822_v55 = vsel %vm7809_vm5, %v7629_v17, %v7738_v60  ;;  %v16879_v17 = vsub.f32 %v16877_v62, %v16878_v26  ;;  %v16881_v60 = vld [vmem:[#allocation13_spill] sm:$0xff]  ;;  %v9301_v62 = vld [vmem:[%s16004_s17 + $0x10] sm:$0xff]  }
 0xfac   : > { %10255 = vmatprep.mubr.msk.f32.mxu1 %vm866_vm6, %v7822_v55  ;;  %v16882_v55 = vsub.f32 %v16880_v44, %v16881_v60  ;;  %v9232_v44 = vunpack.c.h.bf16 %v9301_v62 }
 0xfad   : > { %10256 = vmatmul.mubr.msk.f32.gmra.mrb[144].mxu1 %vm866_vm6, %v7823_v22  ;;  %v7744_v19 = vpop.permute.xlu1 %7743  ;;  %v7643_v20 = vand.u32 2147483647, %v16879_v17 }
 0xfae   : > { %v7742_v9 = vpop.permute.xlu0 %7741  ;;  %v7825_v46 = vsel %vm7809_vm5, %v7632_v38, %v7744_v19  ;;  %v7644_v22 = vand.u32 2147483647, %v16882_v55  ;;  %v16884_v38 = vld [vmem:[#allocation43_spill] sm:$0xff]  ;;  %v9231_v55 = vunpack.c.l.bf16 %v9301_v62 }
 0xfaf   : > { %v7824_v39 = vsel %vm7809_vm5, %v7631_v43, %v7742_v9  ;;  %v16885_v9 = vsub.f32 %v16883_v45, %v16884_v38 }
 0xfb0   : > { %10258 = vmatprep.mubr.msk.f32.mxu1 %vm866_vm6, %v7824_v39 }
 0xfb1   : > { %10259 = vmatmul.mubr.msk.f32.gmra.mrb[146].mxu1 %vm866_vm6, %v7825_v46  ;;  %v7748_v18 = vpop.permute.xlu1 %7747  ;;  %v7645_v39 = vand.u32 2147483647, %v16885_v9 }
 0xfb2   : > { %v7746_v11 = vpop.permute.xlu0 %7745  ;;  %v7827_v28 = vsel %vm7809_vm5, %v7634_v31, %v7748_v18 }
 0xfb3   : > { %v7826_v36 = vsel %vm7809_vm5, %v7633_v29, %v7746_v11  ;;  %v16887_v29 = vld [vmem:[#allocation16_spill] sm:$0xff] }
 0xfb4   : > { %10261 = vmatprep.mubr.msk.f32.mxu1 %vm866_vm6, %v7826_v36  ;;  %v16888_v18 = vsub.f32 %v16886_v50, %v16887_v29 }
 0xfb5   : > { %10262 = vmatmul.mubr.msk.f32.gmra.mrb[148].mxu1 %vm866_vm6, %v7827_v28  ;;  %v7752_v4 = vpop.permute.xlu1 %7751  ;;  %v16889_v28 = vld [vmem:[#allocation26_spill] sm:$0xff] }
 0xfb6   : > { %v7750_v3 = vpop.permute.xlu0 %7749  ;;  %v7829_v53 = vsel %vm7809_vm5, %v7636_v7, %v7752_v4  ;;  %v7646_v61 = vand.u32 2147483647, %v16888_v18  ;;  %v16890_v63 = vsub.f32 %v15445_v30, %v16889_v28  ;;  %v16892_v7 = vld [vmem:[#allocation22_spill] sm:$0xff]  ;;  %v8349_v30 = vld [vmem:[%s16005_s18 + $0x80] sm:$0xff]  ;;  %v9304_v28 = vld [vmem:[%s16004_s17 + $0x28] sm:$0xff]  }
 0xfb7   : > { %v7828_v1 = vsel %vm7809_vm5, %v7635_v35, %v7750_v3  ;;  %v16893_v3 = vsub.f32 %v16891_v10, %v16892_v7  ;;  %v9244_v7 = vunpack.c.h.bf16 %v9304_v28 }
 0xfb8   : > { %10264 = vmatprep.mubr.msk.f32.mxu1 %vm866_vm6, %v7828_v1  ;;  %v7647_v35 = vand.u32 2147483647, %v16890_v63 }
 0xfb9   : > { %10265 = vmatmul.mubr.msk.f32.gmra.mrb[150].mxu1 %vm866_vm6, %v7829_v53  ;;  %v7756_v52 = vpop.permute.xlu1 %7755  ;;  %v7648_v1 = vand.u32 2147483647, %v16893_v3 }
 0xfba   : > { %v7754_v16 = vpop.permute.xlu0 %7753  ;;  %v7831_v34 = vsel %vm7809_vm5, %v7638_v58, %v7756_v52  ;;  %v10924_v52 = vld [vmem:[%s16003_s16 + $0x4] ss:$8 sps:$4 sm:$0xff]  }
 0xfbb   : > { %v7830_v47 = vsel %vm7809_vm5, %v7637_v59, %v7754_v16  ;;  %8303 = vmatprep.mubr.bf16.mxu0 %v10924_v52  ;;  %v8333_v58 = vld [vmem:[%s16005_s18] sm:$0xff]  ;;  %v10423_v16 = vpack.c.bf16 %v8350_v0, %v8349_v30 }
 0xfbc   : > { %10267 = vmatprep.mubr.msk.f32.mxu1 %vm866_vm6, %v7830_v47  ;;  %v8334_v47 = vld [vmem:[%s16005_s18 + $0x8] sm:$0xff] }
 0xfbd   : > { %10268 = vmatmul.mubr.msk.f32.gmra.mrb[152].mxu1 %vm866_vm6, %v7831_v34  ;;  %v7760_v2 = vpop.permute.xlu1 %7759  ;;  %v8351_v34 = vld [vmem:[%s16005_s18 + $0x90] sm:$0xff]  ;;  %10424 = vmatprep.subr.bf16.mxu1 %v10423_v16 }
 0xfbe   : > { %v7758_v57 = vpop.permute.xlu0 %7757  ;;  %v7833_v24 = vsel %vm7809_vm5, %v7640_v27, %v7760_v2  ;;  %v10427_v2 = vpack.c.bf16 %v8352_v8, %v8351_v34  ;;  %v8354_v27 = vld [vmem:[%s16005_s18 + $0xa8] sm:$0xff] }
 0xfbf   : > { %v7832_v41 = vsel %vm7809_vm5, %v7639_v13, %v7758_v57  ;;  %v10425_v13 = vpack.c.bf16 %v8334_v47, %v8333_v58  ;;  %v10429_v57 = vpack.c.bf16 %v8336_v42, %v8335_v6  ;;  %v9306_v47 = vld [vmem:[%s16004_s17 + $0x38] sm:$0xff]  }
 0xfc0   : > { %10270 = vmatprep.mubr.msk.f32.mxu1 %vm866_vm6, %v7832_v41  ;;  %v10431_v41 = vpack.c.bf16 %v8354_v27, %v8353_v5  ;;  %v9252_v6 = vunpack.c.h.bf16 %v9306_v47  ;;  %v9251_v5 = vunpack.c.l.bf16 %v9306_v47  ;;  %v9307_v27 = vld [vmem:[%s16004_s17 + $0x40] sm:$0xff]  }
 0xfc1   : > { %10271 = vmatmul.mubr.msk.f32.gmra.mrb[154].mxu1 %vm866_vm6, %v7833_v24  ;;  %v7764_v12 = vpop.permute.xlu1 %7763  ;;  %v8337_v24 = vld [vmem:[%s16005_s18 + $0x20] sm:$0xff] }
 0xfc2   : > { %v7762_v49 = vpop.permute.xlu0 %7761  ;;  %v7835_v32 = vsel %vm7809_vm5, %v7642_v21, %v7764_v12  ;;  %10426 = vmatpush3.bf16.msra.mxu1 %v10425_v13  ;;  %v10433_v15 = vpack.c.bf16 %v8338_v54, %v8337_v24  ;;  %v9223_v12 = vunpack.c.l.bf16 %v9222_v23 }
 0xfc3   : > { %v7834_v14 = vsel %vm7809_vm5, %v7641_v25, %v7762_v49  ;;  %10428 = vmatprep.subr.bf16.mxu1 %v10427_v2  ;;  %v9224_v25 = vunpack.c.h.bf16 %v9222_v23  ;;  %v9228_v49 = vunpack.c.h.bf16 %v9300_v56 }
 0xfc4   : > { %10273 = vmatprep.mubr.msk.f32.mxu1 %vm866_vm6, %v7834_v14 }
 0xfc5   : > { %10274 = vmatmul.mubr.msk.f32.gmra.mrb[156].mxu1 %vm866_vm6, %v7835_v32  ;;  %v7768_v40 = vpop.permute.xlu1 %7767  ;;  %v9227_v32 = vunpack.c.l.bf16 %v9300_v56 }
 0xfc6   : > { %v7766_v37 = vpop.permute.xlu0 %7765  ;;  %v7837_v19 = vsel %vm7809_vm5, %v7644_v22, %v7768_v40  ;;  %10430 = vmatpush3.bf16.msra.mxu1 %v10429_v57  ;;  %v9302_v22 = vld [vmem:[%s16004_s17 + $0x18] sm:$0xff]  }
 0xfc7   : > { %v7836_v43 = vsel %vm7809_vm5, %v7643_v20, %v7766_v37  ;;  %10432 = vmatprep.subr.bf16.mxu1 %v10431_v41  ;;  %v9236_v38 = vunpack.c.h.bf16 %v9302_v22 }
 0xfc8   : > { %10276 = vmatprep.mubr.msk.f32.mxu1 %vm866_vm6, %v7836_v43 }
 0xfc9   : > { %10277 = vmatmul.mubr.msk.f32.gmra.mrb[158].mxu1 %vm866_vm6, %v7837_v19  ;;  %v7772_v46 = vpop.permute.xlu1 %7771 }
 0xfca   : > { %v7770_v31 = vpop.permute.xlu0 %7769  ;;  %v7839_v36 = vsel %vm7809_vm5, %v7646_v61, %v7772_v46  ;;  %10434 = vmatpush3.bf16.msra.mxu1 %v10433_v15  ;;  %v9303_v46 = vld [vmem:[%s16004_s17 + $0x20] sm:$0xff]   ;;  %v9256_v15 = vunpack.c.h.bf16 %v9307_v27 }
 0xfcb   : > { %v7838_v11 = vsel %vm7809_vm5, %v7645_v39, %v7770_v31  ;;  %v9235_v39 = vunpack.c.l.bf16 %v9302_v22  ;;  %v9240_v31 = vunpack.c.h.bf16 %v9303_v46 }
 0xfcc   : > { %10279 = vmatprep.mubr.msk.f32.mxu1 %vm866_vm6, %v7838_v11 }
 0xfcd   : > { %10280 = vmatmul.mubr.msk.f32.gmra.mrb[160].mxu1 %vm866_vm6, %v7839_v36  ;;  %v9239_v36 = vunpack.c.l.bf16 %v9303_v46  ;;  %v9310_v46 = vld [vmem:[%s16004_s17 + $0x58] sm:$0xff]  }
 0xfe3   : > { %v7776_v4 = vpop.permute.xlu1 %7775 }
 0xfe4   : > { %v7774_v53 = vpop.permute.xlu0 %7773  ;;  %v7841_v59 = vsel %vm7809_vm5, %v7648_v1, %v7776_v4  ;;  %v9243_v1 = vunpack.c.l.bf16 %v9304_v28  ;;  %v9268_v28 = vunpack.c.h.bf16 %v9310_v46 }
 0xfe5   : > { %v7840_v33 = vsel %vm7809_vm5, %v7647_v35, %v7774_v53  ;;  %v9305_v53 = vld [vmem:[%s16004_s17 + $0x30] sm:$0xff]  }
 0xfe6   : > { %10282 = vmatprep.mubr.msk.f32.mxu1 %vm866_vm6, %v7840_v33  ;;  %v9248_v0 = vunpack.c.h.bf16 %v9305_v53  ;;  %v9247_v16 = vunpack.c.l.bf16 %v9305_v53 }
 0xfe7   : > { %10283 = vmatmul.mubr.msk.f32.gmra.mrb[162].mxu1 %vm866_vm6, %v7841_v59 }
0x1068   : > { %v10239_v48 = vpop.f32.mrb[132].mxu1 }
0x1069   : > { %v15718_v51 = vmul.f32 %v10239_v48, %v9224_v25  ;;  %v7974_v21 = vpop.f32.mrb[133].mxu1  ;;  %v9255_v25 = vunpack.c.l.bf16 %v9307_v27 }
0x106a   : > { %v15720_v14 = vmul.f32 %v9223_v12, %v7974_v21  ;;  %v9308_v12 = vld [vmem:[%s16004_s17 + $0x48] sm:$0xff]  }
0x106c   : > { %v10393_v26 = vpack.c.bf16 %v15718_v51, %v15720_v14  ;;  %v10242_v17 = vpop.f32.mrb[134].mxu1 }
0x106d   : > { %v15727_v20 = vmul.f32 %v10242_v17, %v9228_v49  ;;  %v7984_v40 = vpop.f32.mrb[135].mxu1  ;;  %v9259_v17 = vunpack.c.l.bf16 %v9308_v12 }
0x106e   : > { %v15729_v60 = vmul.f32 %v9227_v32, %v7984_v40  ;;  %v9260_v32 = vunpack.c.h.bf16 %v9308_v12  ;;  %v9309_v40 = vld [vmem:[%s16004_s17 + $0x50] sm:$0xff]  }
0x1070   : > { %v10397_v37 = vpack.c.bf16 %v15727_v20, %v15729_v60  ;;  %v10245_v43 = vpop.f32.mrb[136].mxu1 }
0x1071   : > { %v15736_v19 = vmul.f32 %v10245_v43, %v9232_v44  ;;  %v7994_v45 = vpop.f32.mrb[137].mxu1 }
0x1072   : > { %v15738_v9 = vmul.f32 %v9231_v55, %v7994_v45  ;;  %v9264_v45 = vunpack.c.h.bf16 %v9309_v40 }
0x1074   : > { %v10401_v50 = vpack.c.bf16 %v15736_v19, %v15738_v9  ;;  %v10248_v29 = vpop.f32.mrb[138].mxu1 }
0x1075   : > { %v15745_v18 = vmul.f32 %v10248_v29, %v9236_v38  ;;  %v8004_v61 = vpop.f32.mrb[139].mxu1 }
0x1076   : > { %v15747_v11 = vmul.f32 %v9235_v39, %v8004_v61  ;;  %v9263_v39 = vunpack.c.l.bf16 %v9309_v40  ;;  %v8355_v40 = vld [vmem:[%s16005_s18 + $0xb0] sm:$0xff] }
0x1078   : > { %v10405_v63 = vpack.c.bf16 %v15745_v18, %v15747_v11  ;;  %v10251_v35 = vpop.f32.mrb[140].mxu1  ;;  %v9314_v11 = vld [vmem:[%s16004_s17 + $0x78] sm:$0xff]  }
0x1079   : > { %v15754_v4 = vmul.f32 %v10251_v35, %v9240_v31  ;;  %v8014_v10 = vpop.f32.mrb[141].mxu1 }
0x107a   : > { %v15756_v3 = vmul.f32 %v9239_v36, %v8014_v10  ;;  %v9267_v10 = vunpack.c.l.bf16 %v9310_v46  ;;  %v8341_v46 = vld [vmem:[%s16005_s18 + $0x40] sm:$0xff] }
0x107c   : > { %v10409_v33 = vpack.c.bf16 %v15754_v4, %v15756_v3  ;;  %v10254_v59 = vpop.f32.mrb[142].mxu1  ;;  %v9283_v4 = vunpack.c.l.bf16 %v9314_v11 }
0x107d   : > { %v15763_v52 = vmul.f32 %v10254_v59, %v9244_v7  ;;  %v8024_v30 = vpop.f32.mrb[143].mxu1  ;;  %v9311_v7 = vld [vmem:[%s16004_s17 + $0x60] sm:$0xff]  }
0x107e   : > { %v15765_v58 = vmul.f32 %v9243_v1, %v8024_v30  ;;  %v9271_v30 = vunpack.c.l.bf16 %v9311_v7 }
0x1080   : > { %v10413_v34 = vpack.c.bf16 %v15763_v52, %v15765_v58  ;;  %v10257_v8 = vpop.f32.mrb[144].mxu1  ;;  %v8365_v52 = vld [vmem:[%s16005_s18 + $0x100] sm:$0xff]  ;;  %v8366_v58 = vld [vmem:[%s16005_s18 + $0x108] sm:$0xff] }
0x1081   : > { %v15772_v13 = vmul.f32 %v10257_v8, %v9248_v0  ;;  %v8034_v2 = vpop.f32.mrb[145].mxu1  ;;  %v9312_v0 = vld [vmem:[%s16004_s17 + $0x68] sm:$0xff]  }
0x1082   : > { %v15774_v42 = vmul.f32 %v9247_v16, %v8034_v2  ;;  %v9275_v2 = vunpack.c.l.bf16 %v9312_v0 }
0x1084   : > { %v10417_v57 = vpack.c.bf16 %v15772_v13, %v15774_v42  ;;  %v10260_v41 = vpop.f32.mrb[146].mxu1  ;;  %v10455_v42 = vpack.c.bf16 %v8366_v58, %v8365_v52  ;;  %v8314_v52 = vld [vmem:[#allocation2 + $0x8] sm:$0x80]  ;;  %v8319_v58 = vld [vmem:[#allocation2 + $0x50] sm:$0x1] }
0x1085   : > { %v15781_v24 = vmul.f32 %v10260_v41, %v9252_v6  ;;  %v8044_v54 = vpop.f32.mrb[147].mxu1  ;;  %v9313_v6 = vld [vmem:[%s16004_s17 + $0x70] sm:$0xff]  }
0x1086   : > { %v15783_v23 = vmul.f32 %v9251_v5, %v8044_v54  ;;  %v9279_v54 = vunpack.c.l.bf16 %v9313_v6 }
0x1088   : > { %v10421_v56 = vpack.c.bf16 %v15781_v24, %v15783_v23  ;;  %v10263_v48 = vpop.f32.mrb[148].mxu1  ;;  %v8340_v23 = vld [vmem:[%s16005_s18 + $0x38] sm:$0xff] }
0x1089   : > { %v8214_v21 = vmul.f32 %v10263_v48, %v9256_v15  ;;  %v8054_v49 = vpop.f32.mrb[149].mxu1 }
0x108a   : > { %v8213_v62 = vmul.f32 %v9255_v25, %v8054_v49 }
0x108c   : > { %v10391_v44 = vpack.c.bf16 %v8214_v21, %v8213_v62  ;;  %v10266_v55 = vpop.f32.mrb[150].mxu1  ;;  %v10922_v62 = vld [vmem:[%s16003_s16] ss:$8 sps:$4 sm:$0xff]  }
0x108d   : > { %v8216_v22 = vmul.f32 %v10266_v55, %v9260_v32  ;;  %v8064_v43 = vpop.f32.mrb[151].mxu1  ;;  %v8368_v32 = vld [vmem:[%s16005_s18 + $0x118] sm:$0xff]  ;;  %v8339_v55 = vld [vmem:[%s16005_s18 + $0x30] sm:$0xff] }
0x108e   : > { %v8215_v38 = vmul.f32 %v9259_v17, %v8064_v43  ;;  %10392 = vmatprep.subr.bf16.mxu0 %v10391_v44  ;;  %v8356_v44 = vld [vmem:[%s16005_s18 + $0xb8] sm:$0xff]  ;;  %v8370_v43 = vld [vmem:[%s16005_s18 + $0x128] sm:$0xff] }
0x108f   : > { %10394 = vmatpush3.bf16.msra.mxu0 %v10393_v26  ;;  %v9272_v26 = vunpack.c.h.bf16 %v9311_v7  ;;  %v10435_v24 = vpack.c.bf16 %v8356_v44, %v8355_v40  ;;  %v8360_v7 = vld [vmem:[%s16005_s18 + $0xd8] sm:$0xff] }
0x1090   : > { %v10395_v29 = vpack.c.bf16 %v8216_v22, %v8215_v38  ;;  %v10269_v61 = vpop.f32.mrb[152].mxu1  ;;  %v8369_v22 = vld [vmem:[%s16005_s18 + $0x120] sm:$0xff] }
0x1091   : > { %v8218_v31 = vmul.f32 %v10269_v61, %v9264_v45  ;;  %v8074_v36 = vpop.f32.mrb[153].mxu1  ;;  %v8357_v45 = vld [vmem:[%s16005_s18 + $0xc0] sm:$0xff]  ;;  %10436 = vmatprep.subr.bf16.mxu1 %v10435_v24  ;;  %v10463_v38 = vpack.c.bf16 %v8370_v43, %v8369_v22 }
0x1092   : > { %v8217_v35 = vmul.f32 %v9263_v39, %v8074_v36  ;;  %10396 = vmatprep.subr.bf16.mxu0 %v10395_v29  ;;  %v8358_v39 = vld [vmem:[%s16005_s18 + $0xc8] sm:$0xff]  ;;  %v8371_v36 = vld [vmem:[%s16005_s18 + $0x130] sm:$0xff] }
0x1093   : > { %10398 = vmatpush3.bf16.msra.mxu0 %v10397_v37  ;;  %v9276_v37 = vunpack.c.h.bf16 %v9312_v0  ;;  %v8342_v29 = vld [vmem:[%s16005_s18 + $0x48] sm:$0xff]  ;;  %v10439_v61 = vpack.c.bf16 %v8358_v39, %v8357_v45 }
0x1094   : > { %v10399_v1 = vpack.c.bf16 %v8218_v31, %v8217_v35  ;;  %v10272_v53 = vpop.f32.mrb[154].mxu1  ;;  %v10441_v31 = vpack.c.bf16 %v8342_v29, %v8341_v46  ;;  %v8359_v35 = vld [vmem:[%s16005_s18 + $0xd0] sm:$0xff]  ;;  %v8362_v0 = vld [vmem:[%s16005_s18 + $0xe8] sm:$0xff] }
0x1095   : > { %v8220_v51 = vmul.f32 %v10272_v53, %v9268_v28  ;;  %v8084_v14 = vpop.f32.mrb[155].mxu1  ;;  %v8372_v28 = vld [vmem:[%s16005_s18 + $0x138] sm:$0xff] }
0x1096   : > { %v8219_v59 = vmul.f32 %v9267_v10, %v8084_v14  ;;  %10400 = vmatprep.subr.bf16.mxu0 %v10399_v1  ;;  %v10467_v10 = vpack.c.bf16 %v8372_v28, %v8371_v36  ;;  %v8343_v1 = vld [vmem:[%s16005_s18 + $0x50] sm:$0xff]  ;;  %v8344_v53 = vld [vmem:[%s16005_s18 + $0x58] sm:$0xff]  ;;  %v8373_v14 = vld [vmem:[%s16005_s18 + $0x140] sm:$0xff] }
0x1097   : > { %10402 = vmatpush3.bf16.msra.mxu0 %v10401_v50  ;;  %v9280_v50 = vunpack.c.h.bf16 %v9313_v6  ;;  %v8364_v6 = vld [vmem:[%s16005_s18 + $0xf8] sm:$0xff] }
0x1098   : > { %v10403_v16 = vpack.c.bf16 %v8220_v51, %v8219_v59  ;;  %v10275_v47 = vpop.f32.mrb[156].mxu1  ;;  %v10443_v51 = vpack.c.bf16 %v8360_v7, %v8359_v35  ;;  %v8361_v59 = vld [vmem:[%s16005_s18 + $0xe0] sm:$0xff]  ;;  %v10926_v7 = vld [vmem:[%s16002_s15 + $0x8] sm:$0xff]  }
0x1099   : > { %v8222_v20 = vmul.f32 %v10275_v47, %v9272_v26  ;;  %v8094_v60 = vpop.f32.mrb[157].mxu1  ;;  %v8374_v26 = vld [vmem:[%s16005_s18 + $0x148] sm:$0xff]  ;;  %v8375_v47 = vld [vmem:[%s16005_s18 + $0x150] sm:$0xff] }
0x109a   : > { %v8221_v8 = vmul.f32 %v9271_v30, %v8094_v60  ;;  %10404 = vmatprep.subr.bf16.mxu0 %v10403_v16  ;;  %v10471_v30 = vpack.c.bf16 %v8374_v26, %v8373_v14  ;;  %v10445_v16 = vpack.c.bf16 %v8344_v53, %v8343_v1  ;;  %v10447_v60 = vpack.c.bf16 %v8362_v0, %v8361_v59  ;;  %v10927_v1 = vld [vmem:[%s16002_s15 + $0x10] sm:$0xff]   ;;  %v10928_v53 = vld [vmem:[%s16002_s15 + $0x18] sm:$0xff]  }
0x109b   : > { %10406 = vmatpush3.bf16.msra.mxu0 %v10405_v63  ;;  %v9284_v63 = vunpack.c.h.bf16 %v9314_v11 }
0x109c   : > { %v10407_v5 = vpack.c.bf16 %v8222_v20, %v8221_v8  ;;  %v10278_v27 = vpop.f32.mrb[158].mxu1  ;;  %v8376_v20 = vld [vmem:[%s16005_s18 + $0x158] sm:$0xff]  ;;  %v8346_v8 = vld [vmem:[%s16005_s18 + $0x68] sm:$0xff] }
0x109d   : > { %v8224_v19 = vmul.f32 %v10278_v27, %v9276_v37  ;;  %v8104_v9 = vpop.f32.mrb[159].mxu1  ;;  %v8345_v37 = vld [vmem:[%s16005_s18 + $0x60] sm:$0xff] }
0x109e   : > { %v8223_v41 = vmul.f32 %v9275_v2, %v8104_v9  ;;  %10408 = vmatprep.subr.bf16.mxu0 %v10407_v5  ;;  %v8363_v2 = vld [vmem:[%s16005_s18 + $0xf0] sm:$0xff]  ;;  %v10475_v5 = vpack.c.bf16 %v8376_v20, %v8375_v47  ;;  %v10449_v27 = vpack.c.bf16 %v8346_v8, %v8345_v37  ;;  %v8378_v9 = vld [vmem:[%s16005_s18 + $0x168] sm:$0xff]  ;;  %v9143_v47 = vld [vmem:[%s16006_s19] ss:$0 sm:$0xff] }
0x109f   : > { %10410 = vmatpush3.bf16.msra.mxu0 %v10409_v33 }
0x10a0   : > { %v10411_v15 = vpack.c.bf16 %v8224_v19, %v8223_v41  ;;  %v10281_v25 = vpop.f32.mrb[160].mxu1  ;;  %v8377_v19 = vld [vmem:[%s16005_s18 + $0x160] sm:$0xff]  ;;  %v8347_v41 = vld [vmem:[%s16005_s18 + $0x70] sm:$0xff] }
0x10a1   : > { %v8226_v12 = vmul.f32 %v10281_v25, %v9280_v50  ;;  %v8114_v48 = vpop.f32.mrb[161].mxu1  ;;  %v10451_v50 = vpack.c.bf16 %v8364_v6, %v8363_v2 }
0x10a2   : > { %v8225_v21 = vmul.f32 %v9279_v54, %v8114_v48  ;;  %10412 = vmatprep.subr.bf16.mxu0 %v10411_v15  ;;  %v8348_v54 = vld [vmem:[%s16005_s18 + $0x78] sm:$0xff]  ;;  %v10479_v15 = vpack.c.bf16 %v8378_v9, %v8377_v19 }
0x10a3   : > { %10414 = vmatpush3.bf16.msra.mxu0 %v10413_v34  ;;  %v10453_v25 = vpack.c.bf16 %v8348_v54, %v8347_v41  ;;  %v8380_v48 = vld [vmem:[%s16005_s18 + $0x178] sm:$0xff] }
0x10a4   : > { %v10415_v18 = vpack.c.bf16 %v8226_v12, %v8225_v21  ;;  %v8379_v12 = vld [vmem:[%s16005_s18 + $0x170] sm:$0xff] }
0x10a5   : > { %v10483_v21 = vpack.c.bf16 %v8380_v48, %v8379_v12 }
0x10a6   : > { %10416 = vmatprep.subr.bf16.mxu0 %v10415_v18  ;;  %v10943_v18 = vld [vmem:[#allocation2 + $0x18] sm:$0xff] }
0x10a7   : > { %10418 = vmatpush3.bf16.msra.mxu0 %v10417_v57  ;;  %v8367_v57 = vld [vmem:[%s16005_s18 + $0x110] sm:$0xff] }
0x10a8   : > { %v10459_v17 = vpack.c.bf16 %v8368_v32, %v8367_v57  ;;  %v8330_v57 = vrot.slane %v8319_v58, 2 }
0x10ba   : > { %v10284_v3 = vpop.f32.mrb[162].mxu1 }
0x10bb   : > { %v8228_v33 = vmul.f32 %v10284_v3, %v9284_v63  ;;  %v8124_v49 = vpop.f32.mrb[163].mxu1 }
0x10bc   : > { %v8227_v34 = vmul.f32 %v9283_v4, %v8124_v49 }
0x10be   : > { %v10419_v13 = vpack.c.bf16 %v8228_v33, %v8227_v34 }
0x10c0   : > { %10420 = vmatprep.subr.bf16.mxu0 %v10419_v13 }
0x10c1   : > { %10422 = vmatpush3.bf16.msra.mxu0 %v10421_v56  ;;  %v10437_v56 = vpack.c.bf16 %v8340_v23, %v8339_v55 }
0x10c2   : > { %10456 = vmatprep.subr.bf16.mxu0 %v10455_v42 }
0x10c3   : > { %10438 = vmatpush3.bf16.msra.mxu1 %v10437_v56 }
0x10c4   : > { %8304 = vmatmul.mubr.bf16.vlgmr.msra.gmra.mrb[136].mxu0 %v10922_v62  ;;  %10440 = vmatprep.subr.bf16.mxu1 %v10439_v61 }
0x10c5   : > { %10458 = vmatpush3.bf16.msra.mxu0 %v10455_v42  ;;  %v8383_v42 = vrot.slane %v8314_v52, 7 }
0x10c6   : > { %10460 = vmatprep.subr.bf16.mxu0 %v10459_v17 }
0x10c7   : > { %10442 = vmatpush3.bf16.msra.mxu1 %v10441_v31 }
0x10c8   : > { %10444 = vmatprep.subr.bf16.mxu1 %v10443_v51 }
0x10c9   : > { %10462 = vmatpush3.bf16.msra.mxu0 %v10459_v17 }
0x10ca   : > { %10464 = vmatprep.subr.bf16.mxu0 %v10463_v38 }
0x10cb   : > { %10446 = vmatpush3.bf16.msra.mxu1 %v10445_v16 }
0x10cc   : > { %10448 = vmatprep.subr.bf16.mxu1 %v10447_v60 }
0x10cd   : > { %10466 = vmatpush3.bf16.msra.mxu0 %v10463_v38 }
0x10ce   : > { %10468 = vmatprep.subr.bf16.mxu0 %v10467_v10 }
0x10cf   : > { %10450 = vmatpush3.bf16.msra.mxu1 %v10449_v27 }
0x10d0   : > { %10452 = vmatprep.subr.bf16.mxu1 %v10451_v50 }
0x10d1   : > { %10470 = vmatpush3.bf16.msra.mxu0 %v10467_v10  ;;  %v10925_v10 = vld [vmem:[%s16002_s15] sm:$0xff]  }
0x10d2   : > { %10472 = vmatprep.subr.bf16.mxu0 %v10471_v30 }
0x10d3   : > { %10454 = vmatpush3.bf16.msra.mxu1 %v10453_v25 }
0x10d4   : > { %10320 = vmatprep.subr.bf16.mxu1 %v10943_v18 }
0x10d5   : > { %10474 = vmatpush3.bf16.msra.mxu0 %v10471_v30 }
0x10d6   : > { %10476 = vmatprep.subr.bf16.mxu0 %v10475_v5 }
0x10d9   : > { %10478 = vmatpush3.bf16.msra.mxu0 %v10475_v5 }
0x10da   : > { %10480 = vmatprep.subr.bf16.mxu0 %v10479_v15 }
0x10dd   : > { %10482 = vmatpush3.bf16.msra.mxu0 %v10479_v15 }
0x10de   : > { %10484 = vmatprep.subr.bf16.mxu0 %v10483_v21 }
0x10e1   : > { %10486 = vmatpush3.bf16.msra.mxu0 %v10483_v21 }
0x1197   : > { %v9679_v11 = vpop.f32.mrb[136].mxu0 }
0x1198   : > { %v9680_v63 = vpop.f32.mrb[137].mxu0 }
0x1199   : > { %v9681_v4 = vadd.f32 %v9680_v63, %v9679_v11  ;;  %v9682_v3 = vpop.f32.mrb[138].mxu0 }
0x119a   : > { %v9683_v33 = vpop.f32.mrb[139].mxu0 }
0x119b   : > { %8312 = vst [vmem:[#allocation2 + $0x20] sm:$0xff] %v9681_v4  ;;  %v9684_v49 = vadd.f32 %v9683_v33, %v9682_v3  ;;  %v8322_v34 = vrot.slane %v9681_v4, 1  ;;  %v8384_v62 = vrot.slane %v9681_v4, 7 }
0x119d   : > { %8313 = vst [vmem:[#allocation2 + $0x38] sm:$0xff] %v9684_v49  ;;  %v8323_v13 = vrot.slane %v9684_v49, 1  ;;  %v8328_v40 = vrot.slane %v9684_v49, 2  ;;  %v8386_v44 = vrot.slane %v8322_v34, 7  ;;  %v8385_v22 = vsel %vm1012_vm1, %v8383_v42, %v8384_v62 }
0x119f   : > { %v8324_v32 = vsel %vm1358_vm2, %v8322_v34, %v8323_v13  ;;  %v8394_v17 = vrot.slane %v8323_v13, 7  ;;  %v8331_v45 = vsel %vm1565_vm3, %v8328_v40, %v8330_v57  ;;  %vm8658_vm2 = vcmask 25600  }
0x11a0   : > { %v8387_v55 = vrot.slane %v8324_v32, 7  ;;  %v8396_v31 = vrot.slane %v8331_v45, 7 }
0x11a2   : > { %v8388_v24 = vsel %vm1012_vm1, %v8386_v44, %v8387_v55  ;;  %v8395_v23 = vsel %vm1012_vm1, %v8387_v55, %v8394_v17  ;;  %v8318_v56 = vld [vmem:[#allocation2 + $0x20] sm:$0xfe] }
0x11a3   : > { %8468 = vmatprep.mubr.f32.mxu1 %v8388_v24  ;;  %v8327_v43 = vrot.slane %v8318_v56, 2 }
0x11a4   : > { %8469 = vmatmul.mubr.f32.vlgmr.msra.gmra.mrb[164].mxu1 %v8385_v22  ;;  %v8316_v38 = vld [vmem:[#allocation2 + $0x38] sm:$0x7f] }
0x11a5   : > { %8473 = vmatprep.mubr.f32.mxu1 %v8395_v23  ;;  %v8392_v39 = vrot.slane %v8316_v38, 7  ;;  %v8329_v46 = vsel %vm1565_vm3, %v8327_v43, %v8328_v40  ;;  %v8389_v29 = vrot.slane %v8327_v43, 7  ;;  %10321 = vmatpush3.bf16.msra.mxu1 %v10925_v10 }
0x11a6   : > { %v8390_v61 = vrot.slane %v8329_v46, 7  ;;  %10322 = vmatprep.subr.bf16.mxu1 %v10943_v18 }
0x11a7   : > { %v8393_v36 = vsel %vm1012_vm1, %v8384_v62, %v8392_v39 }
0x11a8   : > { %8474 = vmatmul.mubr.f32.gmra.mrb[166].mxu1 %v8393_v36  ;;  %v8391_v28 = vsel %vm1012_vm1, %v8389_v29, %v8390_v61  ;;  %v8397_v35 = vsel %vm1012_vm1, %v8390_v61, %v8396_v31 }
0x11a9   : > { %10317 = vmatprep.mubr.f32.mxu0 %v8391_v28  ;;  %10328 = vmatprep.mubr.msk.f32.mxu1 %vm10957_vm4, %v10943_v18 }
0x11aa   : > { %10318 = vmatmul.mubr.f32.vlgmr.msra.gmra.mrb[134].mxu0 %v8397_v35  ;;  %10323 = vmatpush3.bf16.msra.mxu1 %v10926_v7 }
0x11ab   : > { %10324 = vmatprep.subr.bf16.mxu1 %v10943_v18 }
0x11ae   : > { %10325 = vmatpush3.bf16.msra.mxu1 %v10927_v1 }
0x11af   : > { %10326 = vmatprep.subr.bf16.mxu1 %v10943_v18 }
0x11b2   : > { %10327 = vmatpush3.bf16.msra.mxu1 %v10928_v53 }
0x1277   : > { %v9717_v51 = vpop.f32.mrb[164].mxu1 }
0x1278   : > { %v9718_v14 = vpop.f32.mrb[165].mxu1 }
0x1279   : > { %v9719_v26 = vadd.f32 %v9718_v14, %v9717_v51 }
0x127b   : > { %v9720_v59 = vpop.f32.mrb[166].mxu1 }
0x127c   : > { %v9721_v30 = vpop.f32.mrb[167].mxu1 }
0x127d   : > { %v9722_v0 = vadd.f32 %v9721_v30, %v9720_v59  ;;  %v10319_v16 = vpop.f32.mrb[134].mxu0 }
0x127e   : > { %v8545_v20 = vpop.f32.mrb[135].mxu0 }
0x127f   : > { %v8551_v60 = vadd.f32 %v10319_v16, %v9722_v0  ;;  %v8546_v37 = vadd.f32 %v9719_v26, %v8545_v20 }
0x1281   : > { %v8561_v8 = vadd.f32 %v9143_v47, %v8551_v60  ;;  %v8560_v2 = vadd.f32 %v9143_v47, %v8546_v37 }
0x1283   : > { %8563 = vst.msk [vmem:[%s743_s5 + $0x8] sm:$0xff] %vm2637_vm12, %v8561_v8  ;;  %v8565_v6 = vsel %vm2637_vm12, %v8561_v8, 0.0  ;;  %v8574_v5 = vmul.f32 %v8561_v8, %v8561_v8  ;;  %8562 = vst.msk [vmem:[%s743_s5] sm:$0xff] %vm2637_vm12, %v8560_v2  ;;  %v8564_v27 = vsel %vm2637_vm12, %v8560_v2, 0.0  ;;  %v8573_v19 = vmul.f32 %v8560_v2, %v8560_v2 }
0x1284   : > { %v8566_v9 = vadd.f32 %v8565_v6, %v8564_v27 }
0x1285   : > { %v8576_v50 = vsel %vm2637_vm12, %v8574_v5, 0.0  ;;  %v8575_v41 = vsel %vm2637_vm12, %v8573_v19, 0.0 }
0x1286   : > { %v8567_v54 = vrot.slane %v8566_v9, 4  ;;  %v8577_v15 = vadd.f32 %v8576_v50, %v8575_v41 }
0x1288   : > { %v8568_v25 = vadd.f32 %v8567_v54, %v8566_v9  ;;  %v8578_v12 = vrot.slane %v8577_v15, 4 }
0x128a   : > { %v8569_v48 = vrot.slane %v8568_v25, 2  ;;  %v8579_v21 = vadd.f32 %v8578_v12, %v8577_v15 }
0x128c   : > { %v8570_v18 = vadd.f32 %v8569_v48, %v8568_v25  ;;  %v8580_v11 = vrot.slane %v8579_v21, 2 }
0x128e   : > { %v8571_v63 = vrot.slane %v8570_v18, 1  ;;  %v8581_v4 = vadd.f32 %v8580_v11, %v8579_v21 }
0x1290   : > { %v8582_v3 = vrot.slane %v8581_v4, 1  ;;  %v8572_v33 = vadd.f32 %v8571_v63, %v8570_v18 }
0x1292   : > { %v8583_v49 = vadd.f32 %v8582_v3, %v8581_v4 }
0x1294   : > { %v8584_v52 = vsel %vm1012_vm1, %v8572_v33, %v8583_v49 }
0x1295   : > { %10329 = vmatmul.mubr.msk.f32.vlgmr.msra.gmra.mrb[168].mxu1 %vm2637_vm12, %v8584_v52 }
0x1368   : > { %v8654_v58 = vpop.f32.mrb[168].mxu1 }
0x1369   : > { %8659 = vst.msk [vmem:[%s747_s2] sm:$0x3] %vm8658_vm2, %v8654_v58  ;;  %v10330_v34 = vpop.f32.mrb[169].mxu1 }
0x136a PF: > { %s16894_s22 = sld [smem:[#allocation3_spill]] }
0x1370   : > { %s32_s2 = sadd.s32 1, %s16894_s22  }
0x1371   : > { %p29_p4 = scmp.ge.s32.totalorder %s32_s2, 4  }
0x1373   :  { %31 = sbr.rel (!%p29_p4) target bundleno = 7 (0x7), region = 154 }

</bundles_post_ra>
